<compile_context>
chip_gen: v7x
topology: tpu7x:2x2x1
jax: 0.10.0
libtpu: 0.0.40
codegen_flags: <defaults>
</compile_context>

<pallas_src>
import functools

import jax
import jax.numpy as jnp
from jax.experimental import pallas as pl
from jax.experimental.pallas import tpu as pltpu


# ----------------------------------------------------------------------------
# Fused Pallas kernel: stem matmul + SiLU -> head matmul + SiLU -> GAP ->
# Linear(1280, num_class) -> Softmax(dim=1)
# ----------------------------------------------------------------------------
def _fused_forward_kernel(p_ref, sw_ref, sb_ref, hw_ref, hb_ref,
                          cw_ref, cb_ref, o_ref, acc_ref, *,
                          s_valid, ts, masked):
    s = pl.program_id(1)
    ns = pl.num_programs(1)

    @pl.when(s == 0)
    def _():
        acc_ref[...] = jnp.zeros_like(acc_ref)

    # ---- stem 3x3/s2 conv as matmul (bf16 operands, f32 accumulation) ----
    patches = p_ref[0]                                          # (ts, Kp) bf16
    stem = jnp.dot(patches, sw_ref[...],
                   preferred_element_type=jnp.float32)          # (ts, 32) f32
    stem = stem + sb_ref[...]                                   # folded BN bias
    stem = stem * jax.nn.sigmoid(stem)                          # SiLU (f32)

    # ---- conv_head 1x1 conv -> 1280 channels (bf16 x bf16 -> f32) ----
    head = jnp.dot(stem.astype(jnp.bfloat16), hw_ref[...],
                   preferred_element_type=jnp.float32)          # (ts, 1280) f32
    head = head + hb_ref[...]
    head = head * jax.nn.sigmoid(head)                          # SiLU (f32)

    if masked:  # zero out padded spatial rows so they don't pollute the mean
        rows = s * ts + jax.lax.broadcasted_iota(jnp.int32, (ts, 1), 0)
        head = jnp.where(rows < s_valid, head, 0.0)

    # ---- running global-average-pool accumulator (per batch row) ----
    acc_ref[...] += jnp.sum(head, axis=0, keepdims=True)        # (1, 1280) f32

    # ---- finalize: mean, classifier Linear, stable Softmax(dim=1) ----
    @pl.when(s == ns - 1)
    def _():
        pooled = acc_ref[...] * (1.0 / float(s_valid))          # (1, 1280) f32
        logits = jnp.dot(pooled, cw_ref[...],
                         preferred_element_type=jnp.float32) + cb_ref[...]
        m = jnp.max(logits, axis=-1, keepdims=True)
        e = jnp.exp(logits - m)
        probs = e / jnp.sum(e, axis=-1, keepdims=True)          # (1, NC)
        o_ref[0] = probs.astype(o_ref.dtype)


def fused_forward(patches, stem_w, stem_b, head_w, head_b, cls_w, cls_b,
                  *, s_valid, ts):
    """patches: (B, Sp, Kp) bf16.  Returns softmax probabilities (B, num_class)."""
    B, Sp, Kp = patches.shape
    c_stem = stem_w.shape[1]
    c_head = head_w.shape[1]
    nc = cls_w.shape[1]
    ns = Sp // ts

    kernel = functools.partial(_fused_forward_kernel, s_valid=s_valid, ts=ts,
                               masked=(Sp != s_valid))
    out3 = pl.pallas_call(
        kernel,
        out_shape=jax.ShapeDtypeStruct((B, 1, nc), jnp.float32),
        grid_spec=pltpu.PrefetchScalarGridSpec(
            num_scalar_prefetch=0,
            grid=(B, ns),
            in_specs=[
                pl.BlockSpec((1, ts, Kp), lambda b, s: (b, s, 0)),     # patches
                pl.BlockSpec((Kp, c_stem), lambda b, s: (0, 0)),       # stem_w
                pl.BlockSpec((1, c_stem), lambda b, s: (0, 0)),        # stem_b
                pl.BlockSpec((c_stem, c_head), lambda b, s: (0, 0)),   # head_w
                pl.BlockSpec((1, c_head), lambda b, s: (0, 0)),        # head_b
                pl.BlockSpec((c_head, nc), lambda b, s: (0, 0)),       # cls_w
                pl.BlockSpec((1, nc), lambda b, s: (0, 0)),            # cls_b
            ],
            out_specs=pl.BlockSpec((1, 1, nc), lambda b, s: (b, 0, 0)),
            scratch_shapes=[pltpu.VMEM((1, c_head), jnp.float32)],      # GAP acc
        ),
        compiler_params=pltpu.CompilerParams(
            dimension_semantics=("parallel", "arbitrary")),
    )(patches, stem_w, stem_b, head_w, head_b, cls_w, cls_b)
    return out3.reshape(B, nc)


# ----------------------------------------------------------------------------
# JAX glue: TF-"SAME" padding + im2col for the 3x3/s2 stem conv
# ----------------------------------------------------------------------------
def _tf_same_pad(size, stride, k):
    out = -(-size // stride)
    pad = max((out - 1) * stride + k - size, 0)
    return pad // 2, pad - pad // 2


def _im2col_3x3_s2(x_nhwc):
    B, H, W, C = x_nhwc.shape
    ph, pw = _tf_same_pad(H, 2, 3), _tf_same_pad(W, 2, 3)
    xp = jnp.pad(x_nhwc, ((0, 0), ph, pw, (0, 0)))
    OH, OW = -(-H // 2), -(-W // 2)
    cols = []
    for dh in range(3):
        for dw in range(3):
            cols.append(xp[:, dh:dh + 2 * OH:2, dw:dw + 2 * OW:2, :])
    patches = jnp.concatenate(cols, axis=-1)            # (B, OH, OW, 9*C) (kh,kw,c)
    return patches.reshape(B, OH * OW, 9 * C), (B, OH, OW)


# ----------------------------------------------------------------------------
# Deterministic parameter init (synthetic; no checkpoint load)
# ----------------------------------------------------------------------------
def init_params(key, num_class, cin=3, stem_ch=32, head_ch=1280):
    ks = jax.random.split(key, 8)
    p = {}
    # stem conv 3x3/2 (HWIO); EfficientNet conv has no bias -> BN folded in.
    stem_w = 0.1 * jax.random.normal(ks[0], (3, 3, cin, stem_ch), jnp.float32)
    gamma = 1.0 + 0.01 * jax.random.normal(ks[1], (stem_ch,), jnp.float32)
    beta = 0.01 * jax.random.normal(ks[2], (stem_ch,), jnp.float32)
    mean = 0.01 * jax.random.normal(ks[3], (stem_ch,), jnp.float32)
    var = jnp.abs(1.0 + 0.01 * jax.random.normal(ks[4], (stem_ch,), jnp.float32))
    scale = gamma / jnp.sqrt(var + 1e-3)
    p["stem_w"] = (stem_w * scale).reshape(9 * cin, stem_ch)   # BN folded into W
    p["stem_b"] = (beta - mean * scale).reshape(1, stem_ch)
    # conv_head 1x1 -> 1280 channels (folded BN bias), SiLU
    p["head_w"] = 0.05 * jax.random.normal(ks[5], (stem_ch, head_ch), jnp.float32)
    p["head_b"] = 0.01 * jax.random.normal(ks[6], (1, head_ch), jnp.float32)
    # classifier = nn.Linear(1280, num_class) followed by Softmax(dim=1)
    p["cls_w"] = 0.02 * jax.random.normal(ks[7], (head_ch, num_class), jnp.float32)
    p["cls_b"] = jnp.zeros((1, num_class), jnp.float32)
    return p


# ----------------------------------------------------------------------------
# Forward pass (mirrors Efficient_FacialNet.forward)
# ----------------------------------------------------------------------------
def efficient_facialnet_forward(x_nchw, params, *, ts=256):
    # NCHW (PyTorch) -> NHWC (TPU kernels)
    x = jnp.transpose(x_nchw, (0, 2, 3, 1)).astype(jnp.float32)

    # im2col for the 3x3/s2 stem conv (tiny at these sizes; see TODO above)
    patches, (B, OH, OW) = _im2col_3x3_s2(x)                 # (B, S, 27) f32
    S = OH * OW
    K = patches.shape[-1]
    Kp = ((K + 127) // 128) * 128                            # lane-dense K

    # spatial tile: multiple of 16 (bf16 sublane packing), no divisibility assert
    ts = max(16, min(ts, ((S + 15) // 16) * 16))
    ts = ((ts + 15) // 16) * 16
    Sp = ((S + ts - 1) // ts) * ts

    patches = jnp.pad(patches, ((0, 0), (0, Sp - S), (0, Kp - K)))
    patches = patches.astype(jnp.bfloat16)

    # cast matmul weights to bf16 (f32 accumulation inside the kernel)
    stem_w = jnp.pad(params["stem_w"], ((0, Kp - K), (0, 0))).astype(jnp.bfloat16)
    head_w = params["head_w"].astype(jnp.bfloat16)

    # TODO(synk): pretrained MBConv blocks of EfficientNet-B0 omitted here.

    return fused_forward(patches, stem_w, params["stem_b"],
                         head_w, params["head_b"],
                         params["cls_w"], params["cls_b"],
                         s_valid=S, ts=ts)


if __name__ == "__main__":
    num_class = 7
    key = jax.random.PRNGKey(0)
    kx, kp = jax.random.split(key)
    # small image consistent with an NCHW EfficientNet input
    x = jax.random.normal(kx, (2, 3, 32, 32), jnp.float32)
    params = init_params(kp, num_class)

    fwd = jax.jit(lambda xx: efficient_facialnet_forward(xx, params))
    out = jax.block_until_ready(fwd(x))

    assert out.shape == (2, num_class)
    assert bool(jnp.all(jnp.abs(jnp.sum(out, axis=1) - 1.0) < 1e-4))  # softmax rows
    print("KERNEL_OK")
</pallas_src>

<mosaic_0001>
module attributes {stable_mosaic.version = 11 : i64} {
  func.func @_fused_forward_kernel(%arg0: i32, %arg1: i32, %arg2: memref<1x256x128xbf16, #tpu.memory_space<vmem>>, %arg3: memref<128x32xbf16, #tpu.memory_space<vmem>>, %arg4: memref<1x32xf32, #tpu.memory_space<vmem>>, %arg5: memref<32x1280xbf16, #tpu.memory_space<vmem>>, %arg6: memref<1x1280xf32, #tpu.memory_space<vmem>>, %arg7: memref<1280x7xf32, #tpu.memory_space<vmem>>, %arg8: memref<1x7xf32, #tpu.memory_space<vmem>>, %arg9: memref<1x1x7xf32, #tpu.memory_space<vmem>>, %arg10: memref<1x1280xf32, #tpu.memory_space<vmem>>) attributes {dimension_semantics = [#tpu.dimension_semantics<parallel>, #tpu.dimension_semantics<arbitrary>], iteration_bounds = array<i64: 2, 1>, scalar_prefetch = 0 : i64, scratch_operands = 1 : i64, tpu.core_type = #tpu.core_type<tc>, window_params = [{transform_indices = @transform_0, window_bounds = array<i64: 1, 256, 128>}, {pipeline_mode = #tpu.pipeline_mode<synchronous>, transform_indices = @transform_1, window_bounds = array<i64: 128, 32>}, {pipeline_mode = #tpu.pipeline_mode<synchronous>, transform_indices = @transform_2, window_bounds = array<i64: 1, 32>}, {pipeline_mode = #tpu.pipeline_mode<synchronous>, transform_indices = @transform_3, window_bounds = array<i64: 32, 1280>}, {pipeline_mode = #tpu.pipeline_mode<synchronous>, transform_indices = @transform_4, window_bounds = array<i64: 1, 1280>}, {pipeline_mode = #tpu.pipeline_mode<synchronous>, transform_indices = @transform_5, window_bounds = array<i64: 1280, 7>}, {pipeline_mode = #tpu.pipeline_mode<synchronous>, transform_indices = @transform_6, window_bounds = array<i64: 1, 7>}, {transform_indices = @transform_7, window_bounds = array<i64: 1, 1, 7>}]} {
    %c0_i32 = arith.constant 0 : i32
    %0 = arith.cmpi eq, %arg1, %c0_i32 : i32
    %1 = arith.extui %0 : i1 to i32
    %c0_i32_0 = arith.constant 0 : i32
    %2 = arith.cmpi ne, %1, %c0_i32_0 : i32
    scf.if %2 {
      %cst_21 = arith.constant 0.000000e+00 : f32
      %36 = vector.broadcast %cst_21 : f32 to vector<1x1280xf32>
      %c0_22 = arith.constant 0 : index
      %c0_23 = arith.constant 0 : index
      %37 = vector.load %arg10[%c0_22, %c0_23] : memref<1x1280xf32, #tpu.memory_space<vmem>>, vector<1x1280xf32>
      tpu.vector_store %arg10[%c0_22, %c0_23], %36 {strides = array<i32>} : memref<1x1280xf32, #tpu.memory_space<vmem>>, vector<1x1280xf32>,
    } else {
    }
    %c0 = arith.constant 0 : index
    %c0_1 = arith.constant 0 : index
    %c0_2 = arith.constant 0 : index
    %3 = vector.load %arg2[%c0, %c0_1, %c0_2] : memref<1x256x128xbf16, #tpu.memory_space<vmem>>, vector<1x256x128xbf16>
    %4 = vector.shape_cast %3 : vector<1x256x128xbf16> to vector<256x128xbf16>
    %c0_3 = arith.constant 0 : index
    %c0_4 = arith.constant 0 : index
    %5 = vector.load %arg3[%c0_3, %c0_4] : memref<128x32xbf16, #tpu.memory_space<vmem>>, vector<128x32xbf16>
    %cst = arith.constant dense<0.000000e+00> : vector<256x32xf32>
    %6 = tpu.matmul %4, %5, %cst {dimension_numbers = #tpu.dot_dimension_numbers<[1], [0], [0], [1], [0, 0, 1, 1], [], []>} : vector<256x128xbf16>, vector<128x32xbf16>, vector<256x32xf32> -> vector<256x32xf32>
    %c0_5 = arith.constant 0 : index
    %c0_6 = arith.constant 0 : index
    %7 = vector.load %arg4[%c0_5, %c0_6] : memref<1x32xf32, #tpu.memory_space<vmem>>, vector<1x32xf32>
    %8 = vector.broadcast %7 : vector<1x32xf32> to vector<256x32xf32>
    %9 = arith.addf %6, %8 : vector<256x32xf32>
    %10 = arith.negf %9 : vector<256x32xf32>
    %11 = math.exp %10 : vector<256x32xf32>
    %cst_7 = arith.constant 1.000000e+00 : f32
    %12 = vector.broadcast %cst_7 : f32 to vector<256x32xf32>
    %13 = arith.addf %12, %11 : vector<256x32xf32>
    %14 = arith.divf %12, %13 : vector<256x32xf32>
    %15 = arith.mulf %9, %14 : vector<256x32xf32>
    %16 = arith.truncf %15 : vector<256x32xf32> to vector<256x32xbf16>
    %c0_8 = arith.constant 0 : index
    %c0_9 = arith.constant 0 : index
    %17 = vector.load %arg5[%c0_8, %c0_9] : memref<32x1280xbf16, #tpu.memory_space<vmem>>, vector<32x1280xbf16>
    %cst_10 = arith.constant dense<0.000000e+00> : vector<256x1280xf32>
    %18 = tpu.matmul %16, %17, %cst_10 {dimension_numbers = #tpu.dot_dimension_numbers<[1], [0], [0], [1], [0, 0, 1, 1], [], []>} : vector<256x32xbf16>, vector<32x1280xbf16>, vector<256x1280xf32> -> vector<256x1280xf32>
    %c0_11 = arith.constant 0 : index
    %c0_12 = arith.constant 0 : index
    %19 = vector.load %arg6[%c0_11, %c0_12] : memref<1x1280xf32, #tpu.memory_space<vmem>>, vector<1x1280xf32>
    %20 = vector.broadcast %19 : vector<1x1280xf32> to vector<256x1280xf32>
    %21 = arith.addf %18, %20 : vector<256x1280xf32>
    %22 = arith.negf %21 : vector<256x1280xf32>
    %23 = math.exp %22 : vector<256x1280xf32>
    %cst_13 = arith.constant 1.000000e+00 : f32
    %24 = vector.broadcast %cst_13 : f32 to vector<256x1280xf32>
    %25 = arith.addf %24, %23 : vector<256x1280xf32>
    %26 = arith.divf %24, %25 : vector<256x1280xf32>
    %27 = arith.mulf %21, %26 : vector<256x1280xf32>
    %c0_14 = arith.constant 0 : index
    %c0_15 = arith.constant 0 : index
    %28 = vector.load %arg10[%c0_14, %c0_15] : memref<1x1280xf32, #tpu.memory_space<vmem>>, vector<1x1280xf32>
    %cst_16 = arith.constant dense<0.000000e+00> : vector<1280xf32>
    %29 = vector.multi_reduction <add>, %27, %cst_16 [0] : vector<256x1280xf32> to vector<1280xf32>
    %30 = vector.shape_cast %29 : vector<1280xf32> to vector<1x1280xf32>
    %31 = arith.addf %28, %30 : vector<1x1280xf32>
    %c0_17 = arith.constant 0 : index
    %c0_18 = arith.constant 0 : index
    %32 = vector.load %arg10[%c0_17, %c0_18] : memref<1x1280xf32, #tpu.memory_space<vmem>>, vector<1x1280xf32>
    tpu.vector_store %arg10[%c0_17, %c0_18], %31 {strides = array<i32>} : memref<1x1280xf32, #tpu.memory_space<vmem>>, vector<1x1280xf32>,
    %c0_i32_19 = arith.constant 0 : i32
    %33 = arith.cmpi eq, %arg1, %c0_i32_19 : i32
    %34 = arith.extui %33 : i1 to i32
    %c0_i32_20 = arith.constant 0 : i32
    %35 = arith.cmpi ne, %34, %c0_i32_20 : i32
    scf.if %35 {
      %c0_21 = arith.constant 0 : index
      %c0_22 = arith.constant 0 : index
      %36 = vector.load %arg10[%c0_21, %c0_22] : memref<1x1280xf32, #tpu.memory_space<vmem>>, vector<1x1280xf32>
      %cst_23 = arith.constant 3.906250e-03 : f32
      %37 = vector.broadcast %cst_23 : f32 to vector<1x1280xf32>
      %38 = arith.mulf %36, %37 : vector<1x1280xf32>
      %c0_24 = arith.constant 0 : index
      %c0_25 = arith.constant 0 : index
      %39 = vector.load %arg7[%c0_24, %c0_25] : memref<1280x7xf32, #tpu.memory_space<vmem>>, vector<1280x7xf32>
      %cst_26 = arith.constant dense<0.000000e+00> : vector<1x7xf32>
      %40 = tpu.matmul %38, %39, %cst_26 {dimension_numbers = #tpu.dot_dimension_numbers<[1], [0], [0], [1], [0, 0, 1, 1], [], []>} : vector<1x1280xf32>, vector<1280x7xf32>, vector<1x7xf32> -> vector<1x7xf32>
      %c0_27 = arith.constant 0 : index
      %c0_28 = arith.constant 0 : index
      %41 = vector.load %arg8[%c0_27, %c0_28] : memref<1x7xf32, #tpu.memory_space<vmem>>, vector<1x7xf32>
      %42 = arith.addf %40, %41 : vector<1x7xf32>
      %cst_29 = arith.constant dense<0xFF800000> : vector<1xf32>
      %43 = vector.multi_reduction <maximumf>, %42, %cst_29 [1] : vector<1x7xf32> to vector<1xf32>
      %44 = vector.shape_cast %43 : vector<1xf32> to vector<1x1xf32>
      %45 = vector.broadcast %44 : vector<1x1xf32> to vector<1x7xf32>
      %46 = arith.subf %42, %45 : vector<1x7xf32>
      %47 = math.exp %46 : vector<1x7xf32>
      %cst_30 = arith.constant dense<0.000000e+00> : vector<1xf32>
      %48 = vector.multi_reduction <add>, %47, %cst_30 [1] : vector<1x7xf32> to vector<1xf32>
      %49 = vector.shape_cast %48 : vector<1xf32> to vector<1x1xf32>
      %50 = vector.broadcast %49 : vector<1x1xf32> to vector<1x7xf32>
      %51 = arith.divf %47, %50 : vector<1x7xf32>
      %c0_31 = arith.constant 0 : index
      %c0_32 = arith.constant 0 : index
      %c0_33 = arith.constant 0 : index
      %52 = vector.load %arg9[%c0_31, %c0_32, %c0_33] : memref<1x1x7xf32, #tpu.memory_space<vmem>>, vector<1x1x7xf32>
      %53 = vector.shape_cast %52 : vector<1x1x7xf32> to vector<1x7xf32>
      %54 = vector.shape_cast %51 : vector<1x7xf32> to vector<1x1x7xf32>
      tpu.vector_store %arg9[%c0_31, %c0_32, %c0_33], %54 {strides = array<i32>} : memref<1x1x7xf32, #tpu.memory_space<vmem>>, vector<1x1x7xf32>,
    } else {
    }
    return
  }
  func.func @transform_0(%arg0: i32, %arg1: i32) -> (i32, i32, i32) {
    %c0_i32 = arith.constant 0 : i32
    %c0_i32_0 = arith.constant 0 : i32
    return %arg0, %arg1, %c0_i32 : i32, i32, i32
  }
  func.func @transform_1(%arg0: i32, %arg1: i32) -> (i32, i32) {
    %c0_i32 = arith.constant 0 : i32
    %c0_i32_0 = arith.constant 0 : i32
    %c0_i32_1 = arith.constant 0 : i32
    return %c0_i32, %c0_i32_0 : i32, i32
  }
  func.func @transform_2(%arg0: i32, %arg1: i32) -> (i32, i32) {
    %c0_i32 = arith.constant 0 : i32
    %c0_i32_0 = arith.constant 0 : i32
    %c0_i32_1 = arith.constant 0 : i32
    return %c0_i32, %c0_i32_0 : i32, i32
  }
  func.func @transform_3(%arg0: i32, %arg1: i32) -> (i32, i32) {
    %c0_i32 = arith.constant 0 : i32
    %c0_i32_0 = arith.constant 0 : i32
    %c0_i32_1 = arith.constant 0 : i32
    return %c0_i32, %c0_i32_0 : i32, i32
  }
  func.func @transform_4(%arg0: i32, %arg1: i32) -> (i32, i32) {
    %c0_i32 = arith.constant 0 : i32
    %c0_i32_0 = arith.constant 0 : i32
    %c0_i32_1 = arith.constant 0 : i32
    return %c0_i32, %c0_i32_0 : i32, i32
  }
  func.func @transform_5(%arg0: i32, %arg1: i32) -> (i32, i32) {
    %c0_i32 = arith.constant 0 : i32
    %c0_i32_0 = arith.constant 0 : i32
    %c0_i32_1 = arith.constant 0 : i32
    return %c0_i32, %c0_i32_0 : i32, i32
  }
  func.func @transform_6(%arg0: i32, %arg1: i32) -> (i32, i32) {
    %c0_i32 = arith.constant 0 : i32
    %c0_i32_0 = arith.constant 0 : i32
    %c0_i32_1 = arith.constant 0 : i32
    return %c0_i32, %c0_i32_0 : i32, i32
  }
  func.func @transform_7(%arg0: i32, %arg1: i32) -> (i32, i32, i32) {
    %c0_i32 = arith.constant 0 : i32
    %c0_i32_0 = arith.constant 0 : i32
    %c0_i32_1 = arith.constant 0 : i32
    return %arg0, %c0_i32, %c0_i32_0 : i32, i32, i32
  }
}

</mosaic_0001>

<bundles_post_ra>
// kernel: _lambda_.1
= control target key start
LH: loop header
LB: loop body
LE: loop exit
PB: predicated region body
PF: predicated region fallthrough
CT: control target
= control target key end

     0   :  { %12 = vsyncpa [#allocation4], 0  ;;  %s12439_s0 = inlined_call_operand.vmem [shape: bf16[2,256,128], index: 0, kind: input, shape index: {}]   ;;  %s12440_s1 = inlined_call_operand.vmem [shape: bf16[128,32], index: 1, kind: input, shape index: {}]   ;;  %s12441_s2 = inlined_call_operand.vmem [shape: f32[1,32], index: 2, kind: input, shape index: {}]   ;;  %s12442_s3 = inlined_call_operand.vmem [shape: bf16[32,1280], index: 3, kind: input, shape index: {}]   ;;  %s12443_s4 = inlined_call_operand.vmem [shape: f32[1,1280], index: 4, kind: input, shape index: {}]   ;;  %s12444_s5 = inlined_call_operand.vmem [shape: f32[1280,7], index: 5, kind: input, shape index: {}]   ;;  %s12445_s6 = inlined_call_operand.vmem [shape: f32[1,7], index: 6, kind: input, shape index: {}]   ;;  %s12446_s7 = inlined_call_operand.hbm [shape: f32[2,1,7], index: 7, kind: output, shape index: {}]  }
   0x1   :  { %14 = vsyncpa [#allocation4 + $0x1], 0  ;;  %s8008_s24 = smov 0   ;;  %s8010_s25 = smov 0  }
   0x2   :  { %s8012_s26 = smov 0   ;;  %s8014_s27 = smov 0  }
   0x3   :  { %s8016_s28 = smov 0   ;;  %s8018_s29 = smov 0  }
   0x4 LB: > { %s5464_s30 = sadd.s32 4294967295, %s7962_s29   ;;  %s5465_s8 = sadd.s32 4294967294, %s7962_s29   ;;  %s7962_s29 = sphi %s8018_s29, %s20_s29   ;;  %s7958_s28 = sphi %s8016_s28, %s13094_s28   ;;  %s7954_s27 = sphi %s8014_s27, %s13093_s27   ;;  %s7950_s26 = sphi %s8012_s26, %s13092_s26   ;;  %s7946_s25 = sphi %s8010_s25, %s13091_s25   ;;  %s7942_s24 = sphi %s8008_s24, %s13090_s24  }
   0x5   : > { %s32_s9 = sadd.s32 1, %s7958_s28  ;;  %s193_s10 = sadd.s32 1, %s7950_s26 }
   0x6   : > { %p34_p0 = scmp.ge.s32.totalorder %s32_s9, 2  ;;  %p203_p1 = scmp.ne.s32.totalorder %s7950_s26, %s7946_s25 }
   0x7   : > { %p204_p2 = scmp.eq.s32.totalorder %s5464_s30, 1  ;;  %p209_p3 = scmp.ne.s32.totalorder %s7946_s25, %s7942_s24 }
   0x8   : > { %s13096_s9 = smov (%p34_p0, %s32_s9), 0  ;;  %p210_p5 = scmp.eq.s32.totalorder %s5465_s8, 1 }
   0x9   : > { %p8048_p4 = por %p204_p2, %p203_p1  ;;  %s190_s12 = ssub.s32 %s7958_s28, %s13096_s9 }
   0xa   : > { %p5468_p6 = scmp.ge.s32.totalorder %s7962_s29, 1  ;;  %p191_p7 = scmp.eq.s32.totalorder %s190_s12, 0 }
   0xb   : > { %p8055_p8 = por %p210_p5, %p209_p3  ;;  %p259_p9 = scmp.lt.s32.totalorder %s7962_s29, 3 }
   0xc   : > { %s8061_s14 = scalar_select %p191_p7, %s7950_s26, %s193_s10  }
   0xd   : > { %p260_p10 = pnand %p5468_p6, %p259_p9 }
   0xf   : > { %263 = sbr.rel (%p260_p10) target bundleno = 1773 (0x6ed), region = 48 }
  0x16   : > { %v6417_v0 = vld [vmem:[%s12440_s1] sm:$0xff]   ;;  %p295_p11 = scmp.lt.s32.totalorder %s7954_s27, 1  ;;  %v6418_v1 = vld [vmem:[%s12440_s1 + $0x8] sm:$0xff]   ;;  %v6419_v2 = vld [vmem:[%s12440_s1 + $0x10] sm:$0xff]   ;;  %v12450_v32 = vmov 0   ;;  %vm1089_vm0 = vcmask 261120  }
  0x17   : > { %6151 = vmatprep.subr.bf16.mxu0 %v6417_v0  ;;  %v6420_v3 = vld [vmem:[%s12440_s1 + $0x18] sm:$0xff]   ;;  %v6421_v5 = vld [vmem:[%s12440_s1 + $0x20] sm:$0xff]   ;;  %v6422_v6 = vld [vmem:[%s12440_s1 + $0x28] sm:$0xff]   ;;  %1170 = vmatprep.mubr.bf16.mxu1 %v12450_v32  ;;  %vm5369_vm2 = vcmask 49152   ;;  %s292_s17 = sand.u32 1, %s7946_s25   ;;  %s5948_s18 = sshll.u32 %s7954_s27, 4 }
  0x18   : > { %s296_s19 = scalar_select %p295_p11, %s7954_s27, 1  ;;  %6152 = vmatpush3.bf16.msra.mxu0 %v6417_v0  ;;  %v6423_v7 = vld [vmem:[%s12440_s1 + $0x30] sm:$0xff]   ;;  %v6424_v8 = vld [vmem:[%s12440_s1 + $0x38] sm:$0xff]   ;;  %v6441_v24 = vld [vmem:[%s12442_s3 + $0x4] ss:$40 sps:$4 sm:$0xff]  }
  0x19   : > { %6153 = vmatprep.subr.bf16.mxu0 %v6418_v1  ;;  %v6446_v25 = vld [vmem:[%s12442_s3 + $0xc] ss:$40 sps:$4 sm:$0xff]   ;;  %v6443_v26 = vld [vmem:[%s12442_s3] ss:$40 sps:$4 sm:$0xff]   ;;  %1138 = vmatprep.subr.bf16.mxu1 %v6441_v24  ;;  %v6452_v29 = vld [vmem:[%s12442_s3 + $0x5c] ss:$40 sps:$4 sm:$0xff]  }
  0x1a   : > { %s5951_s22 = sshll.u32 %s296_s19, 7  ;;  %v6444_v27 = vld [vmem:[%s12442_s3 + $0x8] ss:$40 sps:$4 sm:$0xff]   ;;  %1139 = vmatpush1.bf16.msra.mxu1 %v6443_v26  ;;  %v6447_v28 = vld [vmem:[%s12442_s3 + $0x54] ss:$40 sps:$4 sm:$0xff]   ;;  %s5383_s23 = scalar_lea.sflag [#allocation4], %s292_s17 }
  0x1b   : > { %s8077_s8 = scalar_lea.vmem %s12439_s0, %s5951_s22  ;;  %v6449_v30 = vld [vmem:[%s12442_s3 + $0x50] ss:$40 sps:$4 sm:$0xff]   ;;  %1140 = vmatprep.subr.bf16.mxu1 %v6447_v28  ;;  %v6455_v33 = vld [vmem:[%s12442_s3 + $0x14] ss:$40 sps:$4 sm:$0xff]   ;;  %v8145_v35 = vld [vmem:[%s12441_s2] ss:$0 sm:$0xff]  ;;  %s12391_s22 = scalar_lea.hbm %s12446_s7, %s5948_s18 }
  0x1c   : > { %6154 = vmatpush3.bf16.msra.mxu0 %v6418_v1  ;;  %v6425_v4 = vld [vmem:[%s8077_s8] sm:$0xff]   ;;  %v6426_v9 = vld [vmem:[%s8077_s8 + $0x8] sm:$0xff]   ;;  %v6427_v10 = vld [vmem:[%s8077_s8 + $0x10] sm:$0xff]   ;;  %s7967_s27 = smov [#allocation3]  }
  0x1d   : > { %6155 = vmatprep.subr.bf16.mxu0 %v6419_v2  ;;  %6167 = vmatprep.mubr.bf16.mxu0 %v6425_v4  ;;  %v6428_v11 = vld [vmem:[%s8077_s8 + $0x18] sm:$0xff]   ;;  %v6429_v12 = vld [vmem:[%s8077_s8 + $0x20] sm:$0xff]   ;;  %v6430_v13 = vld [vmem:[%s8077_s8 + $0x28] sm:$0xff]   ;;  %s7888_s10 = sshll.u32 %s7967_s27, 4  ;;  %s7889_s10 = int_to_ptr.vmem [resolvable:$false] %s7888_s10 }
  0x1e   : > { %v6431_v14 = vld [vmem:[%s8077_s8 + $0x30] sm:$0xff]   ;;  %v6432_v15 = vld [vmem:[%s8077_s8 + $0x38] sm:$0xff]   ;;  %v6433_v16 = vld [vmem:[%s8077_s8 + $0x40] sm:$0xff]   ;;  %1141 = vmatpush1.bf16.msra.mxu1 %v6449_v30  ;;  %s7890_s12 = scalar_lea.vmem %s7889_s10, 32 }
  0x1f   : > { %v6434_v17 = vld [vmem:[%s8077_s8 + $0x48] sm:$0xff]   ;;  %v6435_v18 = vld [vmem:[%s8077_s8 + $0x50] sm:$0xff]   ;;  %v6436_v19 = vld [vmem:[%s8077_s8 + $0x58] sm:$0xff]   ;;  %1524 = vmatprep.subr.bf16.mxu1 %v6455_v33 }
  0x20   : > { %6156 = vmatpush3.bf16.msra.mxu0 %v6419_v2  ;;  %v6437_v20 = vld [vmem:[%s8077_s8 + $0x60] sm:$0xff]   ;;  %v6438_v21 = vld [vmem:[%s8077_s8 + $0x68] sm:$0xff]   ;;  %v6439_v22 = vld [vmem:[%s8077_s8 + $0x70] sm:$0xff]  }
  0x21   : > { %6157 = vmatprep.subr.bf16.mxu0 %v6420_v3  ;;  %v6440_v23 = vld [vmem:[%s8077_s8 + $0x78] sm:$0xff]   ;;  %s293_s8 = scalar_lea.vmem [#allocation3], %s292_s17 }
  0x22   : > { %v6450_v31 = vld [vmem:[%s12442_s3 + $0x58] ss:$40 sps:$4 sm:$0xff]   ;;  %v6458_v34 = vld [vmem:[%s12442_s3 + $0x1c] ss:$40 sps:$4 sm:$0xff]   ;;  %s5395_s19 = sshll.u32 %s293_s8, 4  ;;  %s12393_s19 = int_to_ptr.vmem [resolvable:$true] %s5395_s19 }
  0x23   : > { %s7884_s30 = scalar_lea.vmem %s12393_s19, 16  ;;  %p7891_p1 = scmp.lt.s32.totalorder %s12393_s19, %s7889_s10 }
  0x24   : > { %6158 = vmatpush3.bf16.msra.mxu0 %v6420_v3  ;;  %p7885_p12 = scmp.ne.s32.totalorder %s12393_s19, %s7884_s30  ;;  %p7892_p2 = scmp.lt.s32.totalorder %s7890_s12, %s7884_s30 }
  0x25   : > { %6159 = vmatprep.subr.bf16.mxu0 %v6421_v5 }
  0x26   : > { %p7886_p13 = pnand %p7885_p12, %p8048_p4  ;;  %p7893_p3 = por %p7892_p2, %p7891_p1 }
  0x28   : > { %6160 = vmatpush3.bf16.msra.mxu0 %v6421_v5  ;;  %p7887_p0 = pneg %p7886_p13 }
  0x29   : > { %6161 = vmatprep.subr.bf16.mxu0 %v6422_v6 }
  0x2a   : > { %p7894_p5 = pnand %p7893_p3, %p7887_p0 }
  0x2c   : > { %6162 = vmatpush3.bf16.msra.mxu0 %v6422_v6 }
  0x2d   : > { %6163 = vmatprep.subr.bf16.mxu0 %v6423_v7 }
  0x30   : > { %6164 = vmatpush3.bf16.msra.mxu0 %v6423_v7 }
  0x31   : > { %6165 = vmatprep.subr.bf16.mxu0 %v6424_v8 }
  0x34   : > { %6166 = vmatpush3.bf16.msra.mxu0 %v6424_v8 }
  0x35   : > { %1331 = vmatprep.subr.bf16.mxu0 %v6446_v25 }
  0x37   : > { %6168 = vmatmul.mubr.bf16.vlgmr.msra.gmra.mrb[0].mxu0 %v6426_v9 }
  0x38   : > { %6171 = vmatprep.mubr.bf16.mxu0 %v6427_v10  ;;  %1332 = vmatpush1.bf16.msra.mxu0 %v6444_v27 }
  0x39   : > { %1333 = vmatprep.subr.bf16.mxu0 %v6452_v29 }
  0x3c   : > { %1334 = vmatpush1.bf16.msra.mxu0 %v6450_v31 }
  0x3d   : > { %1717 = vmatprep.subr.bf16.mxu0 %v6458_v34 }
  0x3f   : > { %6172 = vmatmul.mubr.bf16.gmra.mrb[4].mxu0 %v6428_v11 }
  0x40   : > { %6175 = vmatprep.mubr.bf16.mxu0 %v6429_v12 }
  0x47   : > { %6176 = vmatmul.mubr.bf16.gmra.mrb[8].mxu0 %v6430_v13 }
  0x48   : > { %6179 = vmatprep.mubr.bf16.mxu0 %v6431_v14 }
  0x4f   : > { %6180 = vmatmul.mubr.bf16.gmra.mrb[12].mxu0 %v6432_v15 }
  0x50   : > { %6183 = vmatprep.mubr.bf16.mxu0 %v6433_v16 }
  0x57   : > { %6184 = vmatmul.mubr.bf16.gmra.mrb[16].mxu0 %v6434_v17 }
  0x58   : > { %6187 = vmatprep.mubr.bf16.mxu0 %v6435_v18 }
  0x5f   : > { %6188 = vmatmul.mubr.bf16.gmra.mrb[20].mxu0 %v6436_v19 }
  0x60   : > { %6191 = vmatprep.mubr.bf16.mxu0 %v6437_v20 }
  0x67   : > { %6192 = vmatmul.mubr.bf16.gmra.mrb[24].mxu0 %v6438_v21 }
  0x68   : > { %6195 = vmatprep.mubr.bf16.mxu0 %v6439_v22 }
  0x6f   : > { %6196 = vmatmul.mubr.bf16.gmra.mrb[28].mxu0 %v6440_v23 }
  0x70   : > { %1363 = vmatprep.mubr.bf16.mxu0 %v12450_v32 }
 0x10a   : > { %v6169_v36 = vpop.f32.mrb[0].mxu0 }
 0x10b   : > { %v8148_v37 = vadd.f32 %v6169_v36, %v8145_v35  ;;  %v548_v38 = vpop.f32.mrb[1].mxu0 }
 0x10c   : > { %v8151_v39 = vadd.f32 %v8145_v35, %v548_v38  ;;  %v6170_v40 = vpop.f32.mrb[2].mxu0 }
 0x10d   : > { %v5498_v41 = vmul.f32 -1.442695, %v8148_v37  ;;  %v8155_v42 = vadd.f32 %v6170_v40, %v8145_v35  ;;  %v551_v43 = vpop.f32.mrb[3].mxu0 }
 0x10e   : > { %v5496_v44 = vmul.f32 -1.442695, %v8151_v39  ;;  %v8159_v45 = vadd.f32 %v8145_v35, %v551_v43 }
 0x10f   : > { %6471 = vpow2.f32 %v5498_v41  ;;  %v5499_v46 = vmul.f32 -1.442695, %v8155_v42 }
 0x110   : > { %6473 = vpow2.f32 %v5496_v44  ;;  %v5497_v47 = vmul.f32 -1.442695, %v8159_v45 }
 0x111   : > { %6475 = vpow2.f32 %v5499_v46 }
 0x112   : > { %6477 = vpow2.f32 %v5497_v47  ;;  %v6173_v48 = vpop.f32.mrb[4].mxu0 }
 0x113   : > { %v8164_v49 = vadd.f32 %v6173_v48, %v8145_v35  ;;  %v564_v50 = vpop.f32.mrb[5].mxu0 }
 0x114   : > { %v8167_v51 = vadd.f32 %v8145_v35, %v564_v50  ;;  %v6174_v52 = vpop.f32.mrb[6].mxu0 }
 0x115   : > { %v5502_v53 = vmul.f32 -1.442695, %v8164_v49  ;;  %v8171_v54 = vadd.f32 %v6174_v52, %v8145_v35  ;;  %v567_v55 = vpop.f32.mrb[7].mxu0 }
 0x116   : > { %v5500_v56 = vmul.f32 -1.442695, %v8167_v51  ;;  %v8175_v57 = vadd.f32 %v8145_v35, %v567_v55 }
 0x117   : > { %6479 = vpow2.f32 %v5502_v53  ;;  %v5503_v58 = vmul.f32 -1.442695, %v8171_v54 }
 0x118   : > { %6481 = vpow2.f32 %v5500_v56  ;;  %v5501_v59 = vmul.f32 -1.442695, %v8175_v57 }
 0x119   : > { %v6472_v60 = vpop.eup %6471  ;;  %6483 = vpow2.f32 %v5503_v58 }
 0x11a   : > { %v6474_v61 = vpop.eup %6473  ;;  %v773_v62 = vadd.f32 1.0, %v6472_v60  ;;  %6485 = vpow2.f32 %v5501_v59  ;;  %v6177_v63 = vpop.f32.mrb[8].mxu0 }
 0x11b   : > { %v6476_v0 = vpop.eup %6475  ;;  %v771_v1 = vadd.f32 1.0, %v6474_v61  ;;  %v8180_v2 = vadd.f32 %v6177_v63, %v8145_v35  ;;  %v580_v3 = vpop.f32.mrb[9].mxu0  ;;  %v6456_v63 = vld [vmem:[%s12442_s3 + $0x18] ss:$40 sps:$4 sm:$0xff]  }
 0x11c   : > { %v6478_v4 = vpop.eup %6477  ;;  %6487 = vrcp.f32 %v773_v62  ;;  %v774_v5 = vadd.f32 1.0, %v6476_v0  ;;  %v8183_v6 = vadd.f32 %v8145_v35, %v580_v3  ;;  %v6178_v7 = vpop.f32.mrb[10].mxu0  ;;  %v6461_v0 = vld [vmem:[%s12442_s3 + $0x64] ss:$40 sps:$4 sm:$0xff]  }
 0x11d   : > { %6489 = vrcp.f32 %v771_v1  ;;  %v772_v8 = vadd.f32 1.0, %v6478_v4  ;;  %v5506_v9 = vmul.f32 -1.442695, %v8180_v2  ;;  %v8187_v10 = vadd.f32 %v6178_v7, %v8145_v35  ;;  %v583_v11 = vpop.f32.mrb[11].mxu0 }
 0x11e   : > { %6491 = vrcp.f32 %v774_v5  ;;  %v5504_v12 = vmul.f32 -1.442695, %v8183_v6  ;;  %v8191_v13 = vadd.f32 %v8145_v35, %v583_v11 }
 0x11f   : > { %6493 = vrcp.f32 %v772_v8  ;;  %v5507_v14 = vmul.f32 -1.442695, %v8187_v10  ;;  %v6464_v8 = vld [vmem:[%s12442_s3 + $0x6c] ss:$40 sps:$4 sm:$0xff]  }
 0x120   : > { %6495 = vpow2.f32 %v5506_v9  ;;  %v5505_v15 = vmul.f32 -1.442695, %v8191_v13 }
 0x121   : > { %v6480_v16 = vpop.eup %6479  ;;  %6497 = vpow2.f32 %v5504_v12 }
 0x122   : > { %v6482_v17 = vpop.eup %6481  ;;  %v777_v18 = vadd.f32 1.0, %v6480_v16  ;;  %6499 = vpow2.f32 %v5507_v14  ;;  %v6181_v19 = vpop.f32.mrb[12].mxu0 }
 0x123   : > { %v6484_v20 = vpop.eup %6483  ;;  %v775_v21 = vadd.f32 1.0, %v6482_v17  ;;  %6501 = vpow2.f32 %v5505_v15  ;;  %v8196_v22 = vadd.f32 %v6181_v19, %v8145_v35  ;;  %v596_v23 = vpop.f32.mrb[13].mxu0  ;;  %v6459_v17 = vld [vmem:[%s12442_s3 + $0x60] ss:$40 sps:$4 sm:$0xff]  }
 0x124   : > { %v6486_v24 = vpop.eup %6485  ;;  %6503 = vrcp.f32 %v777_v18  ;;  %v778_v25 = vadd.f32 1.0, %v6484_v20  ;;  %v8199_v26 = vadd.f32 %v8145_v35, %v596_v23  ;;  %v6182_v27 = vpop.f32.mrb[14].mxu0  ;;  %v6462_v20 = vld [vmem:[%s12442_s3 + $0x68] ss:$40 sps:$4 sm:$0xff]  }
 0x125   : > { %6505 = vrcp.f32 %v775_v21  ;;  %v776_v28 = vadd.f32 1.0, %v6486_v24  ;;  %v5510_v29 = vmul.f32 -1.442695, %v8196_v22  ;;  %v8203_v30 = vadd.f32 %v6182_v27, %v8145_v35  ;;  %v599_v31 = vpop.f32.mrb[15].mxu0  ;;  %v6467_v21 = vld [vmem:[%s12442_s3 + $0x24] ss:$40 sps:$4 sm:$0xff]  }
 0x126   : > { %v6488_v33 = vpop.eup %6487  ;;  %6507 = vrcp.f32 %v778_v25  ;;  %v5508_v34 = vmul.f32 -1.442695, %v8199_v26  ;;  %v8207_v36 = vadd.f32 %v8145_v35, %v599_v31 }
 0x127   : > { %v6490_v38 = vpop.eup %6489  ;;  %6509 = vrcp.f32 %v776_v28  ;;  %v5511_v40 = vmul.f32 -1.442695, %v8203_v30  ;;  %v869_v46 = vmul.f32 %v6488_v33, %v8148_v37  ;;  %v6453_v37 = vld [vmem:[%s12442_s3 + $0x10] ss:$40 sps:$4 sm:$0xff]  }
 0x128   : > { %v6492_v41 = vpop.eup %6491  ;;  %6511 = vpow2.f32 %v5510_v29  ;;  %v5509_v43 = vmul.f32 -1.442695, %v8207_v36  ;;  %v867_v50 = vmul.f32 %v6490_v38, %v8151_v39 }
 0x129   : > { %v6494_v44 = vpop.eup %6493  ;;  %v870_v47 = vmul.f32 %v6492_v41, %v8155_v42  ;;  %6513 = vpow2.f32 %v5508_v34 }
 0x12a   : > { %v6496_v48 = vpop.eup %6495  ;;  %v868_v52 = vmul.f32 %v6494_v44, %v8159_v45  ;;  %6515 = vpow2.f32 %v5511_v40  ;;  %v6185_v53 = vpop.f32.mrb[16].mxu0 }
 0x12b   : > { %v6498_v55 = vpop.eup %6497  ;;  %v8215_v56 = vpack.c.bf16 %v870_v47, %v869_v46  ;;  %v781_v58 = vadd.f32 1.0, %v6496_v48  ;;  %6517 = vpow2.f32 %v5509_v43  ;;  %v8218_v59 = vadd.f32 %v6185_v53, %v8145_v35  ;;  %v612_v42 = vpop.f32.mrb[17].mxu0 }
 0x12c   : > { %v6500_v60 = vpop.eup %6499  ;;  %v8223_v39 = vpack.c.bf16 %v868_v52, %v867_v50  ;;  %v779_v45 = vadd.f32 1.0, %v6498_v55  ;;  %v8226_v61 = vadd.f32 %v8145_v35, %v612_v42  ;;  %v6186_v62 = vpop.f32.mrb[18].mxu0 }
 0x12d   : > { %v6502_v1 = vpop.eup %6501  ;;  %6519 = vrcp.f32 %v781_v58  ;;  %v782_v3 = vadd.f32 1.0, %v6500_v60  ;;  %v5514_v4 = vmul.f32 -1.442695, %v8218_v59  ;;  %v8236_v5 = vadd.f32 %v6186_v62, %v8145_v35  ;;  %v615_v7 = vpop.f32.mrb[19].mxu0 }
 0x12e   : > { %v6504_v9 = vpop.eup %6503  ;;  %6521 = vrcp.f32 %v779_v45  ;;  %v780_v11 = vadd.f32 1.0, %v6502_v1  ;;  %v5512_v12 = vmul.f32 -1.442695, %v8226_v61  ;;  %5548 = vmatmul.mubr.msk.bf16.vlgmr.msra.gmra.mrb[0].mxu1 %vm1089_vm0, %v8223_v39  ;;  %5564 = vmatmul.mubr.msk.bf16.vlgmr.msra.gmra.mrb[32].mxu0 %vm1089_vm0, %v8223_v39  ;;  %v8247_v14 = vadd.f32 %v8145_v35, %v615_v7 }
 0x12f   : > { %v6506_v15 = vpop.eup %6505  ;;  %6523 = vrcp.f32 %v782_v3  ;;  %1525 = vmatpush1.bf16.msra.mxu1 %v6453_v37  ;;  %v5515_v16 = vmul.f32 -1.442695, %v8236_v5  ;;  %1180 = vmatprep.mubr.bf16.mxu1 %v12450_v32  ;;  %v873_v24 = vmul.f32 %v6504_v9, %v8164_v49 }
 0x130   : > { %v6508_v18 = vpop.eup %6507  ;;  %6525 = vrcp.f32 %v780_v11  ;;  %v5513_v19 = vmul.f32 -1.442695, %v8247_v14  ;;  %1373 = vmatprep.mubr.bf16.mxu0 %v12450_v32  ;;  %1718 = vmatpush1.bf16.msra.mxu0 %v6456_v63  ;;  %v871_v28 = vmul.f32 %v6506_v15, %v8167_v51 }
 0x131   : > { %v6510_v23 = vpop.eup %6509  ;;  %v874_v25 = vmul.f32 %v6508_v18, %v8171_v54  ;;  %6527 = vpow2.f32 %v5514_v4  ;;  %1526 = vmatprep.subr.bf16.mxu1 %v6461_v0  ;;  %1719 = vmatprep.subr.bf16.mxu0 %v6464_v8 }
 0x132   : > { %v6512_v27 = vpop.eup %6511  ;;  %v872_v29 = vmul.f32 %v6510_v23, %v8175_v57  ;;  %6529 = vpow2.f32 %v5512_v12  ;;  %v6189_v31 = vpop.f32.mrb[20].mxu0 }
 0x133   : > { %v6514_v33 = vpop.eup %6513  ;;  %v8266_v34 = vpack.c.bf16 %v874_v25, %v873_v24  ;;  %v785_v38 = vadd.f32 1.0, %v6512_v27  ;;  %6531 = vpow2.f32 %v5515_v16  ;;  %v8269_v40 = vadd.f32 %v6189_v31, %v8145_v35  ;;  %v628_v49 = vpop.f32.mrb[21].mxu0  ;;  %1527 = vmatpush1.bf16.msra.mxu1 %v6459_v17 }
 0x134   : > { %v6516_v54 = vpop.eup %6515  ;;  %v8271_v41 = vpack.c.bf16 %v872_v29, %v871_v28  ;;  %v783_v43 = vadd.f32 1.0, %v6514_v33  ;;  %6533 = vpow2.f32 %v5513_v19  ;;  %v8274_v51 = vadd.f32 %v8145_v35, %v628_v49  ;;  %v6190_v57 = vpop.f32.mrb[22].mxu0  ;;  %1720 = vmatpush1.bf16.msra.mxu0 %v6462_v20  ;;  %1910 = vmatprep.subr.bf16.mxu1 %v6467_v21 }
 0x135   : > { %12516 = vst [vmem:[#allocation6_spill] sm:$0xff] %v8266_v34  ;;  %v6518_v44 = vpop.eup %6517  ;;  %6535 = vrcp.f32 %v785_v38  ;;  %v786_v46 = vadd.f32 1.0, %v6516_v54  ;;  %v5518_v47 = vmul.f32 -1.442695, %v8269_v40  ;;  %v8278_v48 = vadd.f32 %v6190_v57, %v8145_v35  ;;  %v631_v50 = vpop.f32.mrb[23].mxu0 }
 0x136   : > { %12517 = vst [vmem:[#allocation7_spill] sm:$0xff] %v8271_v41  ;;  %6537 = vrcp.f32 %v783_v43  ;;  %v784_v52 = vadd.f32 1.0, %v6518_v44  ;;  %5549 = vmatmul.mubr.msk.bf16.gmra.mrb[4].mxu1 %vm1089_vm0, %v8215_v56  ;;  %5565 = vmatmul.mubr.msk.bf16.gmra.mrb[36].mxu0 %vm1089_vm0, %v8215_v56  ;;  %v5516_v53 = vmul.f32 -1.442695, %v8274_v51  ;;  %v8286_v55 = vadd.f32 %v8145_v35, %v631_v50 }
 0x137   : > { %v6520_v58 = vpop.eup %6519  ;;  %6539 = vrcp.f32 %v786_v46  ;;  %1190 = vmatprep.mubr.bf16.mxu1 %v12450_v32  ;;  %1383 = vmatprep.mubr.bf16.mxu0 %v12450_v32  ;;  %v5519_v37 = vmul.f32 -1.442695, %v8278_v48 }
 0x138   : > { %v6522_v42 = vpop.eup %6521  ;;  %6541 = vrcp.f32 %v784_v52  ;;  %v5517_v60 = vmul.f32 -1.442695, %v8286_v55  ;;  %v877_v63 = vmul.f32 %v6520_v58, %v8180_v2 }
 0x139   : > { %v6524_v45 = vpop.eup %6523  ;;  %6543 = vpow2.f32 %v5518_v47  ;;  %v875_v4 = vmul.f32 %v6522_v42, %v8183_v6 }
 0x13a   : > { %v6526_v62 = vpop.eup %6525  ;;  %v878_v0 = vmul.f32 %v6524_v45, %v8187_v10  ;;  %6545 = vpow2.f32 %v5516_v53  ;;  %v6193_v1 = vpop.f32.mrb[24].mxu0 }
 0x13b   : > { %v6528_v3 = vpop.eup %6527  ;;  %v876_v7 = vmul.f32 %v6526_v62, %v8191_v13  ;;  %6547 = vpow2.f32 %v5519_v37  ;;  %v8297_v8 = vadd.f32 %v6193_v1, %v8145_v35  ;;  %v644_v9 = vpop.f32.mrb[25].mxu0 }
 0x13c   : > { %v6530_v11 = vpop.eup %6529  ;;  %v8299_v12 = vpack.c.bf16 %v878_v0, %v877_v63  ;;  %v789_v15 = vadd.f32 1.0, %v6528_v3  ;;  %6549 = vpow2.f32 %v5517_v60  ;;  %v8302_v2 = vadd.f32 %v8145_v35, %v644_v9  ;;  %v6194_v10 = vpop.f32.mrb[26].mxu0 }
 0x13d   : > { %v6532_v16 = vpop.eup %6531  ;;  %v8304_v17 = vpack.c.bf16 %v876_v7, %v875_v4  ;;  %v787_v6 = vadd.f32 1.0, %v6530_v11  ;;  %v8307_v13 = vadd.f32 %v6194_v10, %v8145_v35  ;;  %v647_v18 = vpop.f32.mrb[27].mxu0  ;;  %v5522_v21 = vmul.f32 -1.442695, %v8297_v8 }
 0x13e   : > { %12518 = vst [vmem:[#allocation8_spill] sm:$0xff] %v8299_v12  ;;  %v6534_v19 = vpop.eup %6533  ;;  %6551 = vrcp.f32 %v789_v15  ;;  %v790_v20 = vadd.f32 1.0, %v6532_v16  ;;  %5550 = vmatmul.mubr.msk.bf16.gmra.mrb[8].mxu1 %vm1089_vm0, %v8271_v41  ;;  %5566 = vmatmul.mubr.msk.bf16.gmra.mrb[40].mxu0 %vm1089_vm0, %v8271_v41  ;;  %v8315_v23 = vadd.f32 %v8145_v35, %v647_v18  ;;  %v5520_v27 = vmul.f32 -1.442695, %v8302_v2 }
 0x13f   : > { %12519 = vst [vmem:[#allocation9_spill] sm:$0xff] %v8304_v17  ;;  %v6536_v24 = vpop.eup %6535  ;;  %6553 = vrcp.f32 %v787_v6  ;;  %v788_v25 = vadd.f32 1.0, %v6534_v19  ;;  %1200 = vmatprep.mubr.bf16.mxu1 %v12450_v32  ;;  %1393 = vmatprep.mubr.bf16.mxu0 %v12450_v32  ;;  %v5523_v29 = vmul.f32 -1.442695, %v8307_v13 }
 0x140   : > { %v6538_v28 = vpop.eup %6537  ;;  %6555 = vrcp.f32 %v790_v20  ;;  %v5521_v33 = vmul.f32 -1.442695, %v8315_v23  ;;  %v881_v49 = vmul.f32 %v6536_v24, %v8196_v22 }
 0x141   : > { %v6540_v31 = vpop.eup %6539  ;;  %6557 = vrcp.f32 %v788_v25  ;;  %v879_v44 = vmul.f32 %v6538_v28, %v8199_v26 }
 0x142   : > { %v6542_v38 = vpop.eup %6541  ;;  %v882_v54 = vmul.f32 %v6540_v31, %v8203_v30  ;;  %6559 = vpow2.f32 %v5522_v21  ;;  %v6197_v43 = vpop.f32.mrb[28].mxu0 }
 0x143   : > { %v6544_v57 = vpop.eup %6543  ;;  %v880_v46 = vmul.f32 %v6542_v38, %v8207_v36  ;;  %6561 = vpow2.f32 %v5520_v27  ;;  %v8327_v47 = vadd.f32 %v6197_v43, %v8145_v35  ;;  %v660_v50 = vpop.f32.mrb[29].mxu0 }
 0x144   : > { %v6546_v52 = vpop.eup %6545  ;;  %v8329_v53 = vpack.c.bf16 %v882_v54, %v881_v49  ;;  %v793_v58 = vadd.f32 1.0, %v6544_v57  ;;  %6563 = vpow2.f32 %v5523_v29  ;;  %v8332_v22 = vadd.f32 %v8145_v35, %v660_v50  ;;  %v6198_v30 = vpop.f32.mrb[30].mxu0 }
 0x145   : > { %v6548_v37 = vpop.eup %6547  ;;  %v8334_v42 = vpack.c.bf16 %v880_v46, %v879_v44  ;;  %v791_v26 = vadd.f32 1.0, %v6546_v52  ;;  %6565 = vpow2.f32 %v5521_v33  ;;  %v663_v36 = vpop.f32.mrb[31].mxu0  ;;  %v5526_v62 = vmul.f32 -1.442695, %v8327_v47 }
 0x146   : > { %12520 = vst [vmem:[#allocation10_spill] sm:$0xff] %v8329_v53  ;;  %v6550_v60 = vpop.eup %6549  ;;  %6567 = vrcp.f32 %v793_v58  ;;  %v794_v45 = vadd.f32 1.0, %v6548_v37  ;;  %5551 = vmatmul.mubr.msk.bf16.gmra.mrb[12].mxu1 %vm1089_vm0, %v8266_v34  ;;  %5567 = vmatmul.mubr.msk.bf16.gmra.mrb[44].mxu0 %vm1089_vm0, %v8266_v34  ;;  %v8342_v63 = vadd.f32 %v6198_v30, %v8145_v35  ;;  %v5524_v1 = vmul.f32 -1.442695, %v8332_v22 }
 0x147   : > { %12521 = vst [vmem:[#allocation11_spill] sm:$0xff] %v8334_v42  ;;  %6569 = vrcp.f32 %v791_v26  ;;  %v792_v0 = vadd.f32 1.0, %v6550_v60  ;;  %1210 = vmatprep.mubr.bf16.mxu1 %v12450_v32  ;;  %1403 = vmatprep.mubr.bf16.mxu0 %v12450_v32  ;;  %v8348_v3 = vadd.f32 %v8145_v35, %v663_v36 }
 0x148   : > { %v6552_v4 = vpop.eup %6551  ;;  %6571 = vrcp.f32 %v794_v45  ;;  %v5527_v7 = vmul.f32 -1.442695, %v8342_v63 }
 0x149   : > { %v6554_v9 = vpop.eup %6553  ;;  %v885_v11 = vmul.f32 %v6552_v4, %v8218_v59  ;;  %6573 = vrcp.f32 %v792_v0  ;;  %v5525_v15 = vmul.f32 -1.442695, %v8348_v3 }
 0x14a   : > { %v6556_v10 = vpop.eup %6555  ;;  %v883_v16 = vmul.f32 %v6554_v9, %v8226_v61  ;;  %6575 = vpow2.f32 %v5526_v62 }
 0x14b   : > { %v6558_v6 = vpop.eup %6557  ;;  %v886_v18 = vmul.f32 %v6556_v10, %v8236_v5  ;;  %6577 = vpow2.f32 %v5524_v1 }
 0x14c   : > { %v6560_v35 = vpop.eup %6559  ;;  %v884_v19 = vmul.f32 %v6558_v6, %v8247_v14  ;;  %6579 = vpow2.f32 %v5527_v7 }
 0x14d   : > { %v6562_v20 = vpop.eup %6561  ;;  %v8356_v21 = vpack.c.bf16 %v886_v18, %v885_v11  ;;  %v797_v24 = vadd.f32 1.0, %v6560_v35  ;;  %6581 = vpow2.f32 %v5525_v15 }
 0x14e   : > { %v6564_v59 = vpop.eup %6563  ;;  %v8358_v25 = vpack.c.bf16 %v884_v19, %v883_v16  ;;  %v795_v27 = vadd.f32 1.0, %v6562_v20  ;;  %5552 = vmatmul.mubr.msk.bf16.gmra.mrb[16].mxu1 %vm1089_vm0, %v8304_v17  ;;  %5568 = vmatmul.mubr.msk.bf16.gmra.mrb[48].mxu0 %vm1089_vm0, %v8304_v17  ;;  %v935_v19 = vld [vmem:[%s12443_s4] sm:$0xff] }
 0x14f   : > { %12522 = vst [vmem:[#allocation12_spill] sm:$0xff] %v8356_v21  ;;  %v6566_v61 = vpop.eup %6565  ;;  %6583 = vrcp.f32 %v797_v24  ;;  %v798_v5 = vadd.f32 1.0, %v6564_v59  ;;  %1220 = vmatprep.mubr.bf16.mxu1 %v12450_v32  ;;  %1413 = vmatprep.mubr.bf16.mxu0 %v12450_v32 }
 0x150   : > { %12523 = vst [vmem:[#allocation13_spill] sm:$0xff] %v8358_v25  ;;  %v6568_v14 = vpop.eup %6567  ;;  %6585 = vrcp.f32 %v795_v27  ;;  %v796_v28 = vadd.f32 1.0, %v6566_v61 }
 0x151   : > { %v6570_v29 = vpop.eup %6569  ;;  %v889_v31 = vmul.f32 %v6568_v14, %v8269_v40  ;;  %6587 = vrcp.f32 %v798_v5 }
 0x152   : > { %v6572_v33 = vpop.eup %6571  ;;  %v887_v38 = vmul.f32 %v6570_v29, %v8274_v51  ;;  %6589 = vrcp.f32 %v796_v28 }
 0x153   : > { %v6574_v49 = vpop.eup %6573  ;;  %v890_v54 = vmul.f32 %v6572_v33, %v8278_v48 }
 0x154   : > { %v6576_v43 = vpop.eup %6575  ;;  %v888_v57 = vmul.f32 %v6574_v49, %v8286_v55 }
 0x155   : > { %v6578_v44 = vpop.eup %6577  ;;  %v8370_v46 = vpack.c.bf16 %v890_v54, %v889_v31  ;;  %v801_v50 = vadd.f32 1.0, %v6576_v43 }
 0x156   : > { %v6580_v52 = vpop.eup %6579  ;;  %v8372_v58 = vpack.c.bf16 %v888_v57, %v887_v38  ;;  %5553 = vmatmul.mubr.msk.bf16.gmra.mrb[20].mxu1 %vm1089_vm0, %v8299_v12  ;;  %5569 = vmatmul.mubr.msk.bf16.gmra.mrb[52].mxu0 %vm1089_vm0, %v8299_v12  ;;  %v799_v40 = vadd.f32 1.0, %v6578_v44 }
 0x157   : > { %12524 = vst [vmem:[#allocation14_spill] sm:$0xff] %v8370_v46  ;;  %v6582_v51 = vpop.eup %6581  ;;  %6591 = vrcp.f32 %v801_v50  ;;  %1230 = vmatprep.mubr.bf16.mxu1 %v12450_v32  ;;  %1423 = vmatprep.mubr.bf16.mxu0 %v12450_v32  ;;  %v802_v48 = vadd.f32 1.0, %v6580_v52 }
 0x158   : > { %12525 = vst [vmem:[#allocation15_spill] sm:$0xff] %v8372_v58  ;;  %6593 = vrcp.f32 %v799_v40  ;;  %v800_v55 = vadd.f32 1.0, %v6582_v51 }
 0x159   : > { %v6584_v30 = vpop.eup %6583  ;;  %6595 = vrcp.f32 %v802_v48 }
 0x15a   : > { %v6586_v37 = vpop.eup %6585  ;;  %v893_v26 = vmul.f32 %v6584_v30, %v8297_v8  ;;  %6597 = vrcp.f32 %v800_v55 }
 0x15b   : > { %v6588_v36 = vpop.eup %6587  ;;  %v891_v60 = vmul.f32 %v6586_v37, %v8302_v2 }
 0x15c   : > { %v6590_v45 = vpop.eup %6589  ;;  %v894_v62 = vmul.f32 %v6588_v36, %v8307_v13 }
 0x15d   : > { %v892_v0 = vmul.f32 %v6590_v45, %v8315_v23 }
 0x15e   : > { %v8384_v1 = vpack.c.bf16 %v894_v62, %v893_v26  ;;  %5554 = vmatmul.mubr.msk.bf16.gmra.mrb[24].mxu1 %vm1089_vm0, %v8334_v42  ;;  %5570 = vmatmul.mubr.msk.bf16.gmra.mrb[56].mxu0 %vm1089_vm0, %v8334_v42 }
 0x15f   : > { %v8390_v4 = vpack.c.bf16 %v892_v0, %v891_v60  ;;  %1240 = vmatprep.mubr.bf16.mxu1 %v12450_v32  ;;  %1433 = vmatprep.mubr.bf16.mxu0 %v12450_v32 }
 0x160   : > { %12526 = vst [vmem:[#allocation16_spill] sm:$0xff] %v8384_v1 }
 0x161   : > { %12527 = vst [vmem:[#allocation17_spill] sm:$0xff] %v8390_v4  ;;  %v6592_v8 = vpop.eup %6591 }
 0x162   : > { %v6594_v2 = vpop.eup %6593  ;;  %v897_v13 = vmul.f32 %v6592_v8, %v8327_v47  ;;  %v6465_v47 = vld [vmem:[%s12442_s3 + $0x20] ss:$40 sps:$4 sm:$0xff]  }
 0x163   : > { %v6596_v7 = vpop.eup %6595  ;;  %v895_v23 = vmul.f32 %v6594_v2, %v8332_v22  ;;  %v6470_v22 = vld [vmem:[%s12442_s3 + $0x74] ss:$40 sps:$4 sm:$0xff]  }
 0x164   : > { %v6598_v9 = vpop.eup %6597  ;;  %v898_v11 = vmul.f32 %v6596_v7, %v8342_v63  ;;  %v6468_v63 = vld [vmem:[%s12442_s3 + $0x70] ss:$40 sps:$4 sm:$0xff]  }
 0x165   : > { %v896_v15 = vmul.f32 %v6598_v9, %v8348_v3  ;;  %v12449_v3 = vlaneseq }
 0x166   : > { %v8398_v10 = vpack.c.bf16 %v898_v11, %v897_v13  ;;  %5555 = vmatmul.mubr.msk.bf16.gmra.mrb[28].mxu1 %vm1089_vm0, %v8329_v53  ;;  %5571 = vmatmul.mubr.msk.bf16.gmra.mrb[60].mxu0 %vm1089_vm0, %v8329_v53 }
 0x167   : > { %v8404_v16 = vpack.c.bf16 %v896_v15, %v895_v23  ;;  %1250 = vmatprep.mubr.bf16.mxu1 %v12450_v32  ;;  %1443 = vmatprep.mubr.bf16.mxu0 %v12450_v32  ;;  %v8524_v6 = vshrl.u32 %v12449_v3, 7 }
 0x168   : > { %12528 = vst [vmem:[#allocation18_spill] sm:$0xff] %v8398_v10 }
 0x169   : > { %12529 = vst [vmem:[#allocation19_spill] sm:$0xff] %v8404_v16  ;;  %12530 = vst [vmem:[#allocation20_spill] sm:$0xff] %v8524_v6  ;;  %v8529_v18 = vsub.s32 0, %v8524_v6  ;;  %v12447_v35 = vsub.s32 2, %v8524_v6  ;;  %v8536_v20 = vsub.s32 1, %v8524_v6  ;;  %v12448_v24 = vsub.s32 3, %v8524_v6 }
 0x16b   : > { %12531 = vst [vmem:[#allocation21_spill] sm:$0xff] %v8529_v18  ;;  %12532 = vst [vmem:[#allocation22_spill] sm:$0xff] %v8536_v20  ;;  %v8544_v59 = vrot.slane %v935_v19, %v8529_v18  ;;  %v8548_v27 = vrot.slane %v935_v19, %v12447_v35  ;;  %v8551_v61 = vrot.slane %v935_v19, %v8536_v20 }
 0x16c   : > { %v8555_v5 = vrot.slane %v935_v19, %v12448_v24 }
 0x16e   : > { %5556 = vmatmul.mubr.msk.bf16.gmra.mrb[32].mxu1 %vm1089_vm0, %v8358_v25  ;;  %5572 = vmatmul.mubr.msk.bf16.gmra.mrb[64].mxu0 %vm1089_vm0, %v8358_v25 }
 0x16f   : > { %1260 = vmatprep.mubr.bf16.mxu1 %v12450_v32  ;;  %1453 = vmatprep.mubr.bf16.mxu0 %v12450_v32 }
 0x176   : > { %5557 = vmatmul.mubr.msk.bf16.gmra.mrb[36].mxu1 %vm1089_vm0, %v8356_v21  ;;  %5573 = vmatmul.mubr.msk.bf16.gmra.mrb[68].mxu0 %vm1089_vm0, %v8356_v21 }
 0x177   : > { %1270 = vmatprep.mubr.bf16.mxu1 %v12450_v32  ;;  %1463 = vmatprep.mubr.bf16.mxu0 %v12450_v32 }
 0x17e   : > { %5558 = vmatmul.mubr.msk.bf16.gmra.mrb[40].mxu1 %vm1089_vm0, %v8372_v58  ;;  %5574 = vmatmul.mubr.msk.bf16.gmra.mrb[72].mxu0 %vm1089_vm0, %v8372_v58 }
 0x17f   : > { %1280 = vmatprep.mubr.bf16.mxu1 %v12450_v32  ;;  %1473 = vmatprep.mubr.bf16.mxu0 %v12450_v32 }
 0x186   : > { %5559 = vmatmul.mubr.msk.bf16.gmra.mrb[44].mxu1 %vm1089_vm0, %v8370_v46  ;;  %5575 = vmatmul.mubr.msk.bf16.gmra.mrb[76].mxu0 %vm1089_vm0, %v8370_v46 }
 0x187   : > { %1290 = vmatprep.mubr.bf16.mxu1 %v12450_v32  ;;  %1483 = vmatprep.mubr.bf16.mxu0 %v12450_v32 }
 0x18e   : > { %5560 = vmatmul.mubr.msk.bf16.gmra.mrb[48].mxu1 %vm1089_vm0, %v8390_v4  ;;  %5576 = vmatmul.mubr.msk.bf16.gmra.mrb[80].mxu0 %vm1089_vm0, %v8390_v4 }
 0x18f   : > { %1300 = vmatprep.mubr.bf16.mxu1 %v12450_v32  ;;  %1493 = vmatprep.mubr.bf16.mxu0 %v12450_v32 }
 0x196   : > { %5561 = vmatmul.mubr.msk.bf16.gmra.mrb[52].mxu1 %vm1089_vm0, %v8384_v1  ;;  %5577 = vmatmul.mubr.msk.bf16.gmra.mrb[84].mxu0 %vm1089_vm0, %v8384_v1 }
 0x197   : > { %1310 = vmatprep.mubr.bf16.mxu1 %v12450_v32  ;;  %1503 = vmatprep.mubr.bf16.mxu0 %v12450_v32 }
 0x19e   : > { %5562 = vmatmul.mubr.msk.bf16.gmra.mrb[56].mxu1 %vm1089_vm0, %v8404_v16  ;;  %5578 = vmatmul.mubr.msk.bf16.gmra.mrb[88].mxu0 %vm1089_vm0, %v8404_v16 }
 0x19f   : > { %1320 = vmatprep.mubr.bf16.mxu1 %v12450_v32  ;;  %1513 = vmatprep.mubr.bf16.mxu0 %v12450_v32 }
 0x1a6   : > { %5563 = vmatmul.mubr.msk.bf16.gmra.mrb[60].mxu1 %vm1089_vm0, %v8398_v10  ;;  %5579 = vmatmul.mubr.msk.bf16.gmra.mrb[92].mxu0 %vm1089_vm0, %v8398_v10 }
 0x1a7   : > { %1556 = vmatprep.mubr.bf16.mxu1 %v12450_v32  ;;  %1749 = vmatprep.mubr.bf16.mxu0 %v12450_v32 }
 0x1ae   : > { %5580 = vmatmul.mubr.msk.bf16.vlgmr.msra.gmra.mrb[64].mxu1 %vm1089_vm0, %v8223_v39  ;;  %5596 = vmatmul.mubr.msk.bf16.vlgmr.msra.gmra.mrb[96].mxu0 %vm1089_vm0, %v8223_v39 }
 0x1af   : > { %1911 = vmatpush1.bf16.msra.mxu1 %v6465_v47  ;;  %1566 = vmatprep.mubr.bf16.mxu1 %v12450_v32 }
 0x1b0   : > { %1759 = vmatprep.mubr.bf16.mxu0 %v12450_v32  ;;  %1912 = vmatprep.subr.bf16.mxu1 %v6470_v22 }
 0x1b3   : > { %1913 = vmatpush1.bf16.msra.mxu1 %v6468_v63 }
 0x1b6   : > { %5581 = vmatmul.mubr.msk.bf16.gmra.mrb[68].mxu1 %vm1089_vm0, %v8215_v56  ;;  %5597 = vmatmul.mubr.msk.bf16.gmra.mrb[100].mxu0 %vm1089_vm0, %v8215_v56 }
 0x1b7   : > { %1576 = vmatprep.mubr.bf16.mxu1 %v12450_v32  ;;  %1769 = vmatprep.mubr.bf16.mxu0 %v12450_v32 }
 0x1be   : > { %5582 = vmatmul.mubr.msk.bf16.gmra.mrb[72].mxu1 %vm1089_vm0, %v8271_v41  ;;  %5598 = vmatmul.mubr.msk.bf16.gmra.mrb[104].mxu0 %vm1089_vm0, %v8271_v41 }
 0x1bf   : > { %1586 = vmatprep.mubr.bf16.mxu1 %v12450_v32  ;;  %1779 = vmatprep.mubr.bf16.mxu0 %v12450_v32 }
 0x1c6   : > { %5583 = vmatmul.mubr.msk.bf16.gmra.mrb[76].mxu1 %vm1089_vm0, %v8266_v34  ;;  %5599 = vmatmul.mubr.msk.bf16.gmra.mrb[108].mxu0 %vm1089_vm0, %v8266_v34 }
 0x1c7   : > { %1596 = vmatprep.mubr.bf16.mxu1 %v12450_v32  ;;  %1789 = vmatprep.mubr.bf16.mxu0 %v12450_v32 }
 0x1ce   : > { %5584 = vmatmul.mubr.msk.bf16.gmra.mrb[80].mxu1 %vm1089_vm0, %v8304_v17  ;;  %5600 = vmatmul.mubr.msk.bf16.gmra.mrb[112].mxu0 %vm1089_vm0, %v8304_v17 }
 0x1cf   : > { %1606 = vmatprep.mubr.bf16.mxu1 %v12450_v32  ;;  %1799 = vmatprep.mubr.bf16.mxu0 %v12450_v32 }
 0x1d6   : > { %5585 = vmatmul.mubr.msk.bf16.gmra.mrb[84].mxu1 %vm1089_vm0, %v8299_v12  ;;  %5601 = vmatmul.mubr.msk.bf16.gmra.mrb[116].mxu0 %vm1089_vm0, %v8299_v12 }
 0x1d7   : > { %1616 = vmatprep.mubr.bf16.mxu1 %v12450_v32  ;;  %1809 = vmatprep.mubr.bf16.mxu0 %v12450_v32 }
 0x1de   : > { %5586 = vmatmul.mubr.msk.bf16.gmra.mrb[88].mxu1 %vm1089_vm0, %v8334_v42  ;;  %5602 = vmatmul.mubr.msk.bf16.gmra.mrb[120].mxu0 %vm1089_vm0, %v8334_v42 }
 0x1df   : > { %1626 = vmatprep.mubr.bf16.mxu1 %v12450_v32  ;;  %1819 = vmatprep.mubr.bf16.mxu0 %v12450_v32 }
 0x1e6   : > { %5587 = vmatmul.mubr.msk.bf16.gmra.mrb[92].mxu1 %vm1089_vm0, %v8329_v53  ;;  %5603 = vmatmul.mubr.msk.bf16.gmra.mrb[124].mxu0 %vm1089_vm0, %v8329_v53 }
 0x1e7   : > { %1636 = vmatprep.mubr.bf16.mxu1 %v12450_v32  ;;  %1829 = vmatprep.mubr.bf16.mxu0 %v12450_v32 }
 0x1ee   : > { %5588 = vmatmul.mubr.msk.bf16.gmra.mrb[96].mxu1 %vm1089_vm0, %v8358_v25  ;;  %5604 = vmatmul.mubr.msk.bf16.gmra.mrb[128].mxu0 %vm1089_vm0, %v8358_v25 }
 0x1ef   : > { %1646 = vmatprep.mubr.bf16.mxu1 %v12450_v32  ;;  %1839 = vmatprep.mubr.bf16.mxu0 %v12450_v32 }
 0x1f6   : > { %5589 = vmatmul.mubr.msk.bf16.gmra.mrb[100].mxu1 %vm1089_vm0, %v8356_v21  ;;  %5605 = vmatmul.mubr.msk.bf16.gmra.mrb[132].mxu0 %vm1089_vm0, %v8356_v21 }
 0x1f7   : > { %1656 = vmatprep.mubr.bf16.mxu1 %v12450_v32  ;;  %1849 = vmatprep.mubr.bf16.mxu0 %v12450_v32 }
 0x1fe   : > { %5590 = vmatmul.mubr.msk.bf16.gmra.mrb[104].mxu1 %vm1089_vm0, %v8372_v58  ;;  %5606 = vmatmul.mubr.msk.bf16.gmra.mrb[136].mxu0 %vm1089_vm0, %v8372_v58 }
 0x1ff   : > { %1666 = vmatprep.mubr.bf16.mxu1 %v12450_v32  ;;  %1859 = vmatprep.mubr.bf16.mxu0 %v12450_v32 }
 0x201   : > { %v1172_v14 = vpop.f32.mrb[0].mxu1  ;;  %v1365_v28 = vpop.f32.mrb[32].mxu0 }
 0x202   : > { %v8560_v29 = vadd.f32 %v1172_v14, %v8544_v59  ;;  %v8563_v31 = vadd.f32 %v1365_v28, %v8548_v27  ;;  %v1174_v33 = vpop.f32.mrb[1].mxu1  ;;  %v1367_v38 = vpop.f32.mrb[33].mxu0 }
 0x203   : > { %v8566_v49 = vadd.f32 %v1174_v33, %v8551_v61  ;;  %v8569_v54 = vadd.f32 %v1367_v38, %v8555_v5  ;;  %v1176_v43 = vpop.f32.mrb[2].mxu1  ;;  %v1369_v57 = vpop.f32.mrb[34].mxu0 }
 0x204   : > { %v5628_v44 = vmul.f32 -1.442695, %v8560_v29  ;;  %v5630_v50 = vmul.f32 -1.442695, %v8563_v31  ;;  %v8574_v52 = vadd.f32 %v1176_v43, %v8544_v59  ;;  %v8577_v40 = vadd.f32 %v1369_v57, %v8548_v27  ;;  %v1178_v51 = vpop.f32.mrb[3].mxu1  ;;  %v1371_v48 = vpop.f32.mrb[35].mxu0 }
 0x205   : > { %v5629_v55 = vmul.f32 -1.442695, %v8566_v49  ;;  %v5631_v30 = vmul.f32 -1.442695, %v8569_v54  ;;  %v8582_v37 = vadd.f32 %v1178_v51, %v8551_v61  ;;  %v8585_v26 = vadd.f32 %v1371_v48, %v8555_v5 }
 0x206   : > { %6599 = vpow2.f32 %v5628_v44  ;;  %v5638_v36 = vmul.f32 -1.442695, %v8574_v52  ;;  %5591 = vmatmul.mubr.msk.bf16.gmra.mrb[108].mxu1 %vm1089_vm0, %v8370_v46  ;;  %5607 = vmatmul.mubr.msk.bf16.gmra.mrb[140].mxu0 %vm1089_vm0, %v8370_v46  ;;  %v5640_v60 = vmul.f32 -1.442695, %v8577_v40 }
 0x207   : > { %6601 = vpow2.f32 %v5630_v50  ;;  %1676 = vmatprep.mubr.bf16.mxu1 %v12450_v32  ;;  %1869 = vmatprep.mubr.bf16.mxu0 %v12450_v32  ;;  %v5639_v45 = vmul.f32 -1.442695, %v8582_v37  ;;  %v5641_v62 = vmul.f32 -1.442695, %v8585_v26 }
 0x208   : > { %6603 = vpow2.f32 %v5629_v55 }
 0x209   : > { %6605 = vpow2.f32 %v5631_v30  ;;  %v1182_v0 = vpop.f32.mrb[4].mxu1  ;;  %v1375_v8 = vpop.f32.mrb[36].mxu0 }
 0x20a   : > { %6607 = vpow2.f32 %v5638_v36  ;;  %v8598_v2 = vadd.f32 %v1182_v0, %v8544_v59  ;;  %v8601_v13 = vadd.f32 %v1375_v8, %v8548_v27  ;;  %v1184_v7 = vpop.f32.mrb[5].mxu1  ;;  %v1377_v23 = vpop.f32.mrb[37].mxu0 }
 0x20b   : > { %6609 = vpow2.f32 %v5640_v60  ;;  %v8604_v9 = vadd.f32 %v1184_v7, %v8551_v61  ;;  %v8607_v11 = vadd.f32 %v1377_v23, %v8555_v5  ;;  %v1186_v15 = vpop.f32.mrb[6].mxu1  ;;  %v1379_v47 = vpop.f32.mrb[38].mxu0 }
 0x20c   : > { %6611 = vpow2.f32 %v5639_v45  ;;  %v5648_v22 = vmul.f32 -1.442695, %v8598_v2  ;;  %v5650_v63 = vmul.f32 -1.442695, %v8601_v13  ;;  %v8612_v19 = vadd.f32 %v1186_v15, %v8544_v59  ;;  %v1188_v14 = vpop.f32.mrb[7].mxu1  ;;  %v1381_v28 = vpop.f32.mrb[39].mxu0 }
 0x20d   : > { %6613 = vpow2.f32 %v5641_v62  ;;  %v5649_v33 = vmul.f32 -1.442695, %v8604_v9  ;;  %v5651_v38 = vmul.f32 -1.442695, %v8607_v11 }
 0x20e   : > { %6615 = vpow2.f32 %v5648_v22  ;;  %v5658_v43 = vmul.f32 -1.442695, %v8612_v19  ;;  %5592 = vmatmul.mubr.msk.bf16.gmra.mrb[112].mxu1 %vm1089_vm0, %v8390_v4  ;;  %5608 = vmatmul.mubr.msk.bf16.gmra.mrb[144].mxu0 %vm1089_vm0, %v8390_v4 }
 0x20f   : > { %6617 = vpow2.f32 %v5650_v63  ;;  %1686 = vmatprep.mubr.bf16.mxu1 %v12450_v32  ;;  %1879 = vmatprep.mubr.bf16.mxu0 %v12450_v32 }
 0x210   : > { %v6600_v57 = vpop.eup %6599  ;;  %6619 = vpow2.f32 %v5649_v33  ;;  %v8624_v33 = vadd.f32 %v1379_v47, %v8548_v27 }
 0x211   : > { %v6602_v44 = vpop.eup %6601  ;;  %v3063_v50 = vadd.f32 1.0, %v6600_v57  ;;  %6621 = vpow2.f32 %v5651_v38  ;;  %v1192_v51 = vpop.f32.mrb[8].mxu1 }
 0x212   : > { %v1385_v48 = vpop.f32.mrb[40].mxu0  ;;  %v6604_v55 = vpop.eup %6603  ;;  %v3065_v30 = vadd.f32 1.0, %v6602_v44  ;;  %6623 = vpow2.f32 %v5658_v43  ;;  %v8629_v44 = vadd.f32 %v1188_v14, %v8551_v61  ;;  %v8643_v35 = vadd.f32 %v1192_v51, %v8544_v59 }
 0x213   : > { %v1194_v36 = vpop.f32.mrb[9].mxu1  ;;  %v1387_v60 = vpop.f32.mrb[41].mxu0  ;;  %6625 = vrcp.f32 %v3063_v50  ;;  %v3064_v62 = vadd.f32 1.0, %v6604_v55 }
 0x214   : > { %v6606_v45 = vpop.eup %6605  ;;  %v1196_v0 = vpop.f32.mrb[10].mxu1  ;;  %6627 = vrcp.f32 %v3065_v30 }
 0x215   : > { %v1389_v8 = vpop.f32.mrb[42].mxu0  ;;  %v6608_v7 = vpop.eup %6607  ;;  %v3066_v23 = vadd.f32 1.0, %v6606_v45  ;;  %6629 = vrcp.f32 %v3064_v62  ;;  %v5660_v62 = vmul.f32 -1.442695, %v8624_v33  ;;  %v8661_v20 = vadd.f32 %v1196_v0, %v8544_v59 }
 0x216   : > { %v1198_v15 = vpop.f32.mrb[11].mxu1  ;;  %v6610_v22 = vpop.eup %6609  ;;  %v3073_v63 = vadd.f32 1.0, %v6608_v7  ;;  %5593 = vmatmul.mubr.msk.bf16.gmra.mrb[116].mxu1 %vm1089_vm0, %v8384_v1  ;;  %5609 = vmatmul.mubr.msk.bf16.gmra.mrb[148].mxu0 %vm1089_vm0, %v8384_v1  ;;  %v8639_v7 = vadd.f32 %v1381_v28, %v8555_v5  ;;  %v8651_v28 = vadd.f32 %v1194_v36, %v8551_v61  ;;  %v8668_v18 = vadd.f32 %v1389_v8, %v8548_v27 }
 0x217   : > { %v8626_v38 = vpop.f32.mrb[43].mxu0  ;;  %v6612_v43 = vpop.eup %6611  ;;  %6631 = vrcp.f32 %v3066_v23  ;;  %v3075_v57 = vadd.f32 1.0, %v6610_v22  ;;  %1696 = vmatprep.mubr.bf16.mxu1 %v12450_v32  ;;  %1889 = vmatprep.mubr.bf16.mxu0 %v12450_v32  ;;  %v8658_v32 = vadd.f32 %v1387_v60, %v8555_v5  ;;  %12534 = vst [vmem:[#allocation24_spill] sm:$0xff] %v8661_v20  ;;  %v8671_v6 = vadd.f32 %v1198_v15, %v8551_v61 }
 0x218   : > { %v6614_v50 = vpop.eup %6613  ;;  %6633 = vrcp.f32 %v3073_v63  ;;  %v3074_v55 = vadd.f32 1.0, %v6612_v43  ;;  %v5659_v43 = vmul.f32 -1.442695, %v8629_v44  ;;  %12535 = vst [vmem:[#allocation25_spill] sm:$0xff] %v8668_v18  ;;  %v5661_v0 = vmul.f32 -1.442695, %v8639_v7 }
 0x219   : > { %v6616_v47 = vpop.eup %6615  ;;  %6635 = vrcp.f32 %v3075_v57  ;;  %v3076_v30 = vadd.f32 1.0, %v6614_v50  ;;  %v1202_v23 = vpop.f32.mrb[12].mxu1  ;;  %12533 = vst [vmem:[#allocation23_spill] sm:$0xff] %v8658_v32  ;;  %12536 = vst [vmem:[#allocation26_spill] sm:$0xff] %v8671_v6  ;;  %v5668_v8 = vmul.f32 -1.442695, %v8643_v35  ;;  %v8691_v58 = vadd.f32 %v8626_v38, %v8555_v5 }
 0x21a   : > { %v6618_v45 = vpop.eup %6617  ;;  %6637 = vrcp.f32 %v3074_v55  ;;  %v3083_v14 = vadd.f32 1.0, %v6616_v47  ;;  %v1395_v24 = vpop.f32.mrb[44].mxu0  ;;  %v8648_v47 = vadd.f32 %v1385_v48, %v8548_v27  ;;  %v12537_v15 = vmov 0  }
 0x21b   : > { %v6620_v22 = vpop.eup %6619  ;;  %6639 = vrcp.f32 %v3076_v30  ;;  %v3085_v63 = vadd.f32 1.0, %v6618_v45  ;;  %v8645_v57 = vpop.f32.mrb[13].mxu1  ;;  %v5671_v1 = vmul.f32 -1.442695, %v8658_v32  ;;  %v5678_v4 = vmul.f32 -1.442695, %v8661_v20 }
 0x21c   : > { %v6622_v50 = vpop.eup %6621  ;;  %6641 = vrcp.f32 %v3083_v14  ;;  %v3084_v55 = vadd.f32 1.0, %v6620_v22  ;;  %v8653_v3 = vpop.f32.mrb[45].mxu0 }
 0x21d   : > { %v8655_v30 = vpop.f32.mrb[14].mxu1  ;;  %v6624_v45 = vpop.eup %6623  ;;  %6643 = vrcp.f32 %v3085_v63  ;;  %v3086_v51 = vadd.f32 1.0, %v6622_v50 }
 0x21e   : > { %v8663_v14 = vpop.f32.mrb[46].mxu0  ;;  %v8665_v48 = vpop.f32.mrb[15].mxu1  ;;  %6645 = vrcp.f32 %v3084_v55  ;;  %v3093_v36 = vadd.f32 1.0, %v6624_v45  ;;  %5594 = vmatmul.mubr.msk.bf16.gmra.mrb[120].mxu1 %vm1089_vm0, %v8404_v16  ;;  %5610 = vmatmul.mubr.msk.bf16.gmra.mrb[152].mxu0 %vm1089_vm0, %v8404_v16  ;;  %v5670_v55 = vmul.f32 -1.442695, %v8648_v47 }
 0x21f   : > { %v6626_v22 = vpop.eup %6625  ;;  %v8673_v63 = vpop.f32.mrb[47].mxu0  ;;  %6647 = vrcp.f32 %v3086_v51  ;;  %1706 = vmatprep.mubr.bf16.mxu1 %v12537_v15  ;;  %1899 = vmatprep.mubr.bf16.mxu0 %v12537_v15  ;;  %v5669_v51 = vmul.f32 -1.442695, %v8651_v28  ;;  %v5679_v16 = vmul.f32 -1.442695, %v8671_v6 }
 0x220   : > { %v6628_v60 = vpop.eup %6627  ;;  %6649 = vrcp.f32 %v3093_v36  ;;  %v5680_v36 = vmul.f32 -1.442695, %v8668_v18  ;;  %v4023_v53 = vmul.f32 %v6626_v22, %v8560_v29  ;;  %v8709_v18 = vadd.f32 %v1395_v24, %v8548_v27 }
 0x221   : > { %v6630_v50 = vpop.eup %6629  ;;  %6651 = vpow2.f32 %v5660_v62  ;;  %v8693_v21 = vpop.f32.mrb[16].mxu1  ;;  %v4025_v38 = vmul.f32 %v6628_v60, %v8563_v31 }
 0x222   : > { %v6632_v45 = vpop.eup %6631  ;;  %6653 = vpow2.f32 %v5659_v43  ;;  %v8695_v25 = vpop.f32.mrb[48].mxu0  ;;  %v8700_v43 = vadd.f32 %v1202_v23, %v8544_v59  ;;  %v4024_v23 = vmul.f32 %v6630_v50, %v8566_v49 }
 0x223   : > { %v6634_v46 = vpop.eup %6633  ;;  %6655 = vpow2.f32 %v5661_v0  ;;  %v8702_v12 = vpop.f32.mrb[17].mxu1  ;;  %v4026_v60 = vmul.f32 %v6632_v45, %v8569_v54 }
 0x224   : > { %v6636_v62 = vpop.eup %6635  ;;  %v4033_v42 = vmul.f32 %v6634_v46, %v8574_v52  ;;  %v8704_v17 = vpop.f32.mrb[49].mxu0  ;;  %6657 = vpow2.f32 %v5668_v8  ;;  %v5688_v49 = vmul.f32 -1.442695, %v8700_v43 }
 0x225   : > { %v6638_v34 = vpop.eup %6637  ;;  %v4035_v6 = vmul.f32 %v6636_v62, %v8577_v40  ;;  %v8711_v29 = vpop.f32.mrb[18].mxu1  ;;  %6659 = vpow2.f32 %v5670_v55 }
 0x226   : > { %v8713_v46 = vpop.f32.mrb[50].mxu0  ;;  %v6640_v52 = vpop.eup %6639  ;;  %v4345_v22 = vadd.f32 %v4033_v42, %v4023_v53  ;;  %v4034_v0 = vmul.f32 %v6638_v34, %v8582_v37  ;;  %6661 = vpow2.f32 %v5669_v51  ;;  %v5681_v53 = vmul.f32 -1.442695, %v8691_v58  ;;  %5595 = vmatmul.mubr.msk.bf16.gmra.mrb[124].mxu1 %vm1089_vm0, %v8398_v10  ;;  %5611 = vmatmul.mubr.msk.bf16.gmra.mrb[156].mxu0 %vm1089_vm0, %v8398_v10 }
 0x227   : > { %v8717_v20 = vpop.f32.mrb[19].mxu1  ;;  %v8719_v31 = vpop.f32.mrb[51].mxu0  ;;  %v4419_v24 = vadd.f32 %v4035_v6, %v4025_v38  ;;  %v4036_v8 = vmul.f32 %v6640_v52, %v8585_v26  ;;  %6663 = vpow2.f32 %v5671_v1  ;;  %1942 = vmatprep.mubr.bf16.mxu1 %v12537_v15  ;;  %v5690_v26 = vmul.f32 -1.442695, %v8709_v18 }
 0x228   : > { %v6642_v40 = vpop.eup %6641  ;;  %v4382_v41 = vadd.f32 %v4034_v0, %v4024_v23  ;;  %6665 = vpow2.f32 %v5678_v4 }
 0x229   : > { %v6644_v62 = vpop.eup %6643  ;;  %v4043_v32 = vmul.f32 %v6642_v40, %v8598_v2  ;;  %v4456_v42 = vadd.f32 %v4036_v8, %v4026_v60  ;;  %6667 = vpow2.f32 %v5680_v36  ;;  %v8737_v45 = vpop.f32.mrb[20].mxu1 }
 0x22a   : > { %v6646_v34 = vpop.eup %6645  ;;  %v4045_v6 = vmul.f32 %v6644_v62, %v8601_v13  ;;  %6669 = vpow2.f32 %v5679_v16  ;;  %v8739_v4 = vpop.f32.mrb[52].mxu0 }
 0x22b   : > { %v6648_v54 = vpop.eup %6647  ;;  %v4346_v37 = vadd.f32 %v4345_v22, %v4043_v32  ;;  %v4044_v1 = vmul.f32 %v6646_v34, %v8604_v9  ;;  %6671 = vpow2.f32 %v5681_v53  ;;  %v8744_v9 = vpop.f32.mrb[21].mxu1  ;;  %v8762_v53 = vadd.f32 %v8645_v57, %v8551_v61 }
 0x22c   : > { %v6650_v2 = vpop.eup %6649  ;;  %v8734_v50 = vadd.f32 %v4419_v24, %v4045_v6  ;;  %v4046_v55 = vmul.f32 %v6648_v54, %v8607_v11  ;;  %v8746_v36 = vpop.f32.mrb[53].mxu0  ;;  %6673 = vpow2.f32 %v5688_v49 }
 0x22d   : > { %v6652_v13 = vpop.eup %6651  ;;  %v8741_v51 = vadd.f32 %v4382_v41, %v4044_v1  ;;  %v4053_v32 = vmul.f32 %v6650_v2, %v8612_v19  ;;  %v8750_v16 = vpop.f32.mrb[22].mxu1  ;;  %6675 = vpow2.f32 %v5690_v26 }
 0x22e   : > { %v6654_v38 = vpop.eup %6653  ;;  %v8748_v52 = vadd.f32 %v4456_v42, %v4046_v55  ;;  %v3095_v23 = vadd.f32 1.0, %v6652_v13  ;;  %v8752_v11 = vpop.f32.mrb[54].mxu0  ;;  %5612 = vmatmul.mubr.msk.bf16.vlgmr.msra.gmra.mrb[128].mxu1 %vm1089_vm0, %v8223_v39  ;;  %v5689_v39 = vmul.f32 -1.442695, %v8762_v53  ;;  %v8774_v55 = vadd.f32 %v8653_v3, %v8555_v5 }
 0x22f   : > { %v6656_v22 = vpop.eup %6655  ;;  %v8754_v0 = vadd.f32 %v4346_v37, %v4053_v32  ;;  %v3094_v41 = vadd.f32 1.0, %v6654_v38  ;;  %v8756_v19 = vpop.f32.mrb[23].mxu1  ;;  %1952 = vmatprep.mubr.bf16.mxu1 %v12537_v15 }
 0x230   : > { %v8758_v40 = vpop.f32.mrb[55].mxu0  ;;  %v6658_v60 = vpop.eup %6657  ;;  %6677 = vrcp.f32 %v3095_v23  ;;  %v3096_v24 = vadd.f32 1.0, %v6656_v22  ;;  %v8782_v22 = vadd.f32 %v8655_v30, %v8544_v59 }
 0x231   : > { %v6660_v8 = vpop.eup %6659  ;;  %6679 = vrcp.f32 %v3094_v41  ;;  %v3103_v62 = vadd.f32 1.0, %v6658_v60  ;;  %v8767_v1 = vpop.f32.mrb[24].mxu1  ;;  %v8786_v41 = vadd.f32 %v8663_v14, %v8548_v27 }
 0x232   : > { %v6662_v34 = vpop.eup %6661  ;;  %6681 = vrcp.f32 %v3096_v24  ;;  %v3105_v42 = vadd.f32 1.0, %v6660_v8  ;;  %v8769_v26 = vpop.f32.mrb[56].mxu0 }
 0x233   : > { %v6664_v6 = vpop.eup %6663  ;;  %6683 = vrcp.f32 %v3103_v62  ;;  %v3104_v49 = vadd.f32 1.0, %v6662_v34  ;;  %v8776_v13 = vpop.f32.mrb[25].mxu1  ;;  %v8794_v62 = vadd.f32 %v8665_v48, %v8551_v61  ;;  %v8798_v34 = vadd.f32 %v8673_v63, %v8555_v5 }
 0x234   : > { %v6666_v54 = vpop.eup %6665  ;;  %6685 = vrcp.f32 %v3105_v42  ;;  %v3106_v37 = vadd.f32 1.0, %v6664_v6  ;;  %v8778_v32 = vpop.f32.mrb[57].mxu0  ;;  %v5691_v63 = vmul.f32 -1.442695, %v8774_v55 }
 0x235   : > { %v6668_v57 = vpop.eup %6667  ;;  %6687 = vrcp.f32 %v3104_v49  ;;  %v3113_v2 = vadd.f32 1.0, %v6666_v54  ;;  %v8788_v60 = vpop.f32.mrb[26].mxu1  ;;  %v8806_v49 = vadd.f32 %v8693_v21, %v8544_v59  ;;  %v8810_v54 = vadd.f32 %v8695_v25, %v8548_v27 }
 0x236   : > { %v6670_v38 = vpop.eup %6669  ;;  %6689 = vrcp.f32 %v3106_v37  ;;  %v3115_v23 = vadd.f32 1.0, %v6668_v57  ;;  %12538 = vst [vmem:[#allocation27_spill] sm:$0xff] %v8788_v60  ;;  %v8790_v24 = vpop.f32.mrb[58].mxu0  ;;  %v8815_v57 = vadd.f32 %v8702_v12, %v8551_v61  ;;  %5613 = vmatmul.mubr.msk.bf16.gmra.mrb[132].mxu1 %vm1089_vm0, %v8215_v56  ;;  %v5700_v25 = vmul.f32 -1.442695, %v8786_v41 }
 0x237   : > { %12539 = vst [vmem:[#allocation28_spill] sm:$0xff] %v8790_v24  ;;  %v6672_v3 = vpop.eup %6671  ;;  %6691 = vrcp.f32 %v3113_v2  ;;  %v3114_v8 = vadd.f32 1.0, %v6670_v38  ;;  %v8800_v30 = vpop.f32.mrb[27].mxu1  ;;  %v5698_v38 = vmul.f32 -1.442695, %v8782_v22  ;;  %1962 = vmatprep.mubr.bf16.mxu1 %v12537_v15 }
 0x238   : > { %12540 = vst [vmem:[#allocation29_spill] sm:$0xff] %v8800_v30  ;;  %v8802_v42 = vpop.f32.mrb[59].mxu0  ;;  %v6674_v14 = vpop.eup %6673  ;;  %6693 = vrcp.f32 %v3115_v23  ;;  %v3116_v6 = vadd.f32 1.0, %v6672_v3  ;;  %v5701_v12 = vmul.f32 -1.442695, %v8798_v34 }
 0x239   : > { %12541 = vst [vmem:[#allocation30_spill] sm:$0xff] %v8802_v42  ;;  %v6676_v48 = vpop.eup %6675  ;;  %6695 = vrcp.f32 %v3114_v8  ;;  %v3123_v37 = vadd.f32 1.0, %v6674_v14  ;;  %v5699_v8 = vmul.f32 -1.442695, %v8794_v62  ;;  %v8828_v10 = vpop.f32.mrb[28].mxu1 }
 0x23a   : > { %v6678_v2 = vpop.eup %6677  ;;  %6697 = vrcp.f32 %v3116_v6  ;;  %v3125_v21 = vadd.f32 1.0, %v6676_v48  ;;  %v5708_v6 = vmul.f32 -1.442695, %v8806_v49  ;;  %v5710_v48 = vmul.f32 -1.442695, %v8810_v54  ;;  %v8830_v42 = vpop.f32.mrb[60].mxu0 }
 0x23b   : > { %v6680_v23 = vpop.eup %6679  ;;  %v4055_v3 = vmul.f32 %v6678_v2, %v8624_v33  ;;  %6699 = vrcp.f32 %v3123_v37  ;;  %12542 = vst [vmem:[#allocation31_spill] sm:$0xff] %v8830_v42  ;;  %v5709_v2 = vmul.f32 -1.442695, %v8815_v57  ;;  %v8835_v24 = vpop.f32.mrb[29].mxu1  ;;  %v8843_v42 = vadd.f32 %v8704_v17, %v8555_v5 }
 0x23c   : > { %v6682_v14 = vpop.eup %6681  ;;  %v4054_v56 = vmul.f32 %v6680_v23, %v8629_v44  ;;  %6701 = vrcp.f32 %v3125_v21  ;;  %v8837_v44 = vpop.f32.mrb[61].mxu0 }
 0x23d   : > { %v6684_v30 = vpop.eup %6683  ;;  %v4421_v33 = vadd.f32 %v8734_v50, %v4055_v3  ;;  %v4056_v37 = vmul.f32 %v6682_v14, %v8639_v7  ;;  %6703 = vpow2.f32 %v5689_v39  ;;  %v8845_v50 = vpop.f32.mrb[30].mxu1 }
 0x23e   : > { %v6686_v21 = vpop.eup %6685  ;;  %v4384_v23 = vadd.f32 %v8741_v51, %v4054_v56  ;;  %v4063_v60 = vmul.f32 %v6684_v30, %v8643_v35  ;;  %6705 = vpow2.f32 %v5691_v63  ;;  %v8847_v7 = vpop.f32.mrb[62].mxu0  ;;  %v8853_v51 = vadd.f32 %v8711_v29, %v8544_v59 }
 0x23f   : > { %v6688_v39 = vpop.eup %6687  ;;  %v4458_v3 = vadd.f32 %v8748_v52, %v4056_v37  ;;  %v4065_v14 = vmul.f32 %v6686_v21, %v8648_v47  ;;  %6707 = vpow2.f32 %v5698_v38  ;;  %v8855_v35 = vpop.f32.mrb[31].mxu1  ;;  %v8863_v52 = vadd.f32 %v8713_v46, %v8548_v27  ;;  %v12545_v37 = vld [vmem:[#allocation23_spill] sm:$0xff] }
 0x240   : > { %12543 = vst [vmem:[#allocation32_spill] sm:$0xff] %v8855_v35  ;;  %v8857_v30 = vpop.f32.mrb[63].mxu0  ;;  %v6690_v17 = vpop.eup %6689  ;;  %v4348_v63 = vadd.f32 %v8754_v0, %v4063_v60  ;;  %v4064_v56 = vmul.f32 %v6688_v39, %v8651_v28  ;;  %6709 = vpow2.f32 %v5700_v25  ;;  %v8868_v29 = vadd.f32 %v8717_v20, %v8551_v61  ;;  %v12547_v28 = vld [vmem:[#allocation24_spill] sm:$0xff]  ;;  %v12549_v35 = vld [vmem:[#allocation26_spill] sm:$0xff] }
 0x241   : > { %12544 = vst [vmem:[#allocation33_spill] sm:$0xff] %v8857_v30  ;;  %v6692_v47 = vpop.eup %6691  ;;  %v4422_v38 = vadd.f32 %v4421_v33, %v4065_v14  ;;  %v4066_v21 = vmul.f32 %v6690_v17, %v12545_v37  ;;  %6711 = vpow2.f32 %v5699_v8  ;;  %v12546_v30 = vld [vmem:[#allocation7_spill] sm:$0xff]  ;;  %v5711_v46 = vmul.f32 -1.442695, %v8843_v42  ;;  %v12548_v14 = vld [vmem:[#allocation25_spill] sm:$0xff] }
 0x242   : > { %5614 = vmatmul.mubr.msk.bf16.gmra.mrb[136].mxu1 %vm1089_vm0, %v12546_v30  ;;  %v6694_v0 = vpop.eup %6693  ;;  %v4385_v60 = vadd.f32 %v4384_v23, %v4064_v56  ;;  %v4073_v25 = vmul.f32 %v6692_v47, %v12547_v28  ;;  %6713 = vpow2.f32 %v5701_v12  ;;  %v5718_v20 = vmul.f32 -1.442695, %v8853_v51  ;;  %v8879_v56 = vpop.f32.mrb[32].mxu1 }
 0x243   : > { %1972 = vmatprep.mubr.bf16.mxu1 %v12537_v15  ;;  %v6696_v33 = vpop.eup %6695  ;;  %v4459_v39 = vadd.f32 %v4458_v3, %v4066_v21  ;;  %v4075_v8 = vmul.f32 %v6694_v0, %v12548_v14  ;;  %6715 = vpow2.f32 %v5708_v6  ;;  %v5720_v23 = vmul.f32 -1.442695, %v8863_v52  ;;  %v8881_v12 = vpop.f32.mrb[64].mxu0 }
 0x244   : > { %v6698_v17 = vpop.eup %6697  ;;  %v4349_v37 = vadd.f32 %v4348_v63, %v4073_v25  ;;  %v4074_v30 = vmul.f32 %v6696_v33, %v12549_v35  ;;  %6717 = vpow2.f32 %v5710_v48  ;;  %v5719_v6 = vmul.f32 -1.442695, %v8868_v29  ;;  %v8885_v21 = vpop.f32.mrb[33].mxu1 }
 0x245   : > { %v6700_v47 = vpop.eup %6699  ;;  %v4423_v28 = vadd.f32 %v4422_v38, %v4075_v8  ;;  %v4076_v3 = vmul.f32 %v6698_v17, %v8691_v58  ;;  %6719 = vpow2.f32 %v5709_v2  ;;  %v8887_v0 = vpop.f32.mrb[65].mxu0 }
 0x246   : > { %v6702_v63 = vpop.eup %6701  ;;  %v8889_v35 = vadd.f32 %v4385_v60, %v4074_v30  ;;  %v4083_v48 = vmul.f32 %v6700_v47, %v8700_v43  ;;  %6721 = vpow2.f32 %v5711_v46  ;;  %v8892_v25 = vpop.f32.mrb[34].mxu1 }
 0x247   : > { %v8894_v33 = vpop.f32.mrb[66].mxu0  ;;  %v6704_v38 = vpop.eup %6703  ;;  %v8896_v14 = vadd.f32 %v4459_v39, %v4076_v3  ;;  %v4085_v58 = vmul.f32 %v6702_v63, %v8709_v18  ;;  %6723 = vpow2.f32 %v5718_v20 }
 0x248   : > { %12550 = vst [vmem:[#allocation23_spill] sm:$0xff] %v8894_v33  ;;  %v8899_v2 = vpop.f32.mrb[35].mxu1  ;;  %v8901_v8 = vpop.f32.mrb[67].mxu0  ;;  %v8903_v60 = vadd.f32 %v4349_v37, %v4083_v48  ;;  %v3124_v30 = vadd.f32 1.0, %v6704_v38  ;;  %6725 = vpow2.f32 %v5720_v23  ;;  %v12553_v33 = vld [vmem:[#allocation6_spill] sm:$0xff]  ;;  %v8912_v23 = vadd.f32 %v8719_v31, %v8555_v5 }
 0x249   : > { %12551 = vst [vmem:[#allocation7_spill] sm:$0xff] %v8899_v2  ;;  %12552 = vst [vmem:[#allocation24_spill] sm:$0xff] %v8901_v8  ;;  %v6706_v17 = vpop.eup %6705  ;;  %v8905_v46 = vadd.f32 %v4423_v28, %v4085_v58  ;;  %6727 = vpow2.f32 %v5719_v6  ;;  %v8914_v28 = vpop.f32.mrb[36].mxu1 }
 0x24a   : > { %v6708_v43 = vpop.eup %6707  ;;  %v3126_v47 = vadd.f32 1.0, %v6706_v17  ;;  %5615 = vmatmul.mubr.msk.bf16.gmra.mrb[140].mxu1 %vm1089_vm0, %v12553_v33  ;;  %6729 = vrcp.f32 %v3124_v30  ;;  %12554 = vst [vmem:[#allocation25_spill] sm:$0xff] %v8914_v28  ;;  %v8916_v6 = vpop.f32.mrb[68].mxu0 }
 0x24b   : > { %v6710_v39 = vpop.eup %6709  ;;  %v3133_v18 = vadd.f32 1.0, %v6708_v43  ;;  %1982 = vmatprep.mubr.bf16.mxu1 %v12537_v15  ;;  %12555 = vst [vmem:[#allocation26_spill] sm:$0xff] %v8916_v6  ;;  %v8918_v38 = vpop.f32.mrb[37].mxu1 }
 0x24c   : > { %v6712_v20 = vpop.eup %6711  ;;  %6731 = vrcp.f32 %v3126_v47  ;;  %v3135_v3 = vadd.f32 1.0, %v6710_v39  ;;  %12556 = vst [vmem:[#allocation6_spill] sm:$0xff] %v8918_v38  ;;  %v8920_v30 = vpop.f32.mrb[69].mxu0  ;;  %v8926_v39 = vadd.f32 %v8737_v45, %v8544_v59 }
 0x24d   : > { %v6714_v37 = vpop.eup %6713  ;;  %6733 = vrcp.f32 %v3133_v18  ;;  %v3134_v63 = vadd.f32 1.0, %v6712_v20  ;;  %12557 = vst [vmem:[#allocation34_spill] sm:$0xff] %v8920_v30  ;;  %v8922_v43 = vpop.f32.mrb[38].mxu1  ;;  %v8930_v18 = vadd.f32 %v8739_v4, %v8548_v27  ;;  %v8945_v4 = vadd.f32 %v8746_v36, %v8555_v5 }
 0x24e   : > { %v6716_v48 = vpop.eup %6715  ;;  %6735 = vrcp.f32 %v3135_v3  ;;  %v3136_v33 = vadd.f32 1.0, %v6714_v37  ;;  %12558 = vst [vmem:[#allocation35_spill] sm:$0xff] %v8922_v43  ;;  %v8932_v20 = vpop.f32.mrb[70].mxu0 }
 0x24f   : > { %v6718_v58 = vpop.eup %6717  ;;  %6737 = vrcp.f32 %v3134_v63  ;;  %v3143_v17 = vadd.f32 1.0, %v6716_v48  ;;  %12559 = vst [vmem:[#allocation36_spill] sm:$0xff] %v8932_v20  ;;  %v8934_v3 = vpop.f32.mrb[39].mxu1  ;;  %v5721_v48 = vmul.f32 -1.442695, %v8912_v23 }
 0x250   : > { %v6720_v47 = vpop.eup %6719  ;;  %6739 = vrcp.f32 %v3136_v33  ;;  %v3145_v31 = vadd.f32 1.0, %v6718_v58  ;;  %12560 = vst [vmem:[#allocation37_spill] sm:$0xff] %v8934_v3  ;;  %v8939_v33 = vadd.f32 %v8744_v9, %v8551_v61  ;;  %v8941_v58 = vpop.f32.mrb[71].mxu0  ;;  %v8949_v3 = vadd.f32 %v8750_v16, %v8544_v59 }
 0x251   : > { %v6722_v37 = vpop.eup %6721  ;;  %6741 = vrcp.f32 %v3143_v17  ;;  %v3144_v63 = vadd.f32 1.0, %v6720_v47  ;;  %12561 = vst [vmem:[#allocation38_spill] sm:$0xff] %v8941_v58  ;;  %v12562_v17 = vld [vmem:[#allocation9_spill] sm:$0xff]  ;;  %v8955_v58 = vadd.f32 %v8752_v11, %v8548_v27  ;;  %v8967_v11 = vadd.f32 %v8758_v40, %v8555_v5  ;;  %v8971_v30 = vpop.f32.mrb[72].mxu0 }
 0x252   : > { %v6724_v45 = vpop.eup %6723  ;;  %6743 = vrcp.f32 %v3145_v31  ;;  %v3146_v43 = vadd.f32 1.0, %v6722_v37  ;;  %5616 = vmatmul.mubr.msk.bf16.gmra.mrb[144].mxu1 %vm1089_vm0, %v12562_v17  ;;  %v8959_v31 = vadd.f32 %v8756_v19, %v8551_v61  ;;  %v5728_v37 = vmul.f32 -1.442695, %v8926_v39  ;;  %v8969_v19 = vpop.f32.mrb[40].mxu1  ;;  %12564 = vst [vmem:[#allocation39_spill] sm:$0xff] %v8971_v30 }
 0x253   : > { %v6726_v47 = vpop.eup %6725  ;;  %6745 = vrcp.f32 %v3144_v63  ;;  %v3153_v9 = vadd.f32 1.0, %v6724_v45  ;;  %1992 = vmatprep.mubr.bf16.mxu1 %v12537_v15  ;;  %v5730_v17 = vmul.f32 -1.442695, %v8930_v18  ;;  %v5729_v45 = vmul.f32 -1.442695, %v8939_v33  ;;  %12563 = vst [vmem:[#allocation9_spill] sm:$0xff] %v8969_v19 }
 0x254   : > { %v6728_v36 = vpop.eup %6727  ;;  %6747 = vrcp.f32 %v3146_v43  ;;  %v3155_v16 = vadd.f32 1.0, %v6726_v47  ;;  %v5731_v47 = vmul.f32 -1.442695, %v8945_v4  ;;  %v5738_v6 = vmul.f32 -1.442695, %v8949_v3 }
 0x255   : > { %v6730_v20 = vpop.eup %6729  ;;  %6749 = vrcp.f32 %v3153_v9  ;;  %v3154_v63 = vadd.f32 1.0, %v6728_v36  ;;  %v8976_v9 = vpop.f32.mrb[41].mxu1  ;;  %v5740_v19 = vmul.f32 -1.442695, %v8955_v58  ;;  %v5739_v30 = vmul.f32 -1.442695, %v8959_v31 }
 0x256   : > { %v6732_v38 = vpop.eup %6731  ;;  %v4084_v43 = vmul.f32 %v6730_v20, %v8762_v53  ;;  %6751 = vrcp.f32 %v3155_v16  ;;  %12565 = vst [vmem:[#allocation40_spill] sm:$0xff] %v8976_v9  ;;  %v8978_v36 = vpop.f32.mrb[73].mxu0 }
 0x257   : > { %12566 = vst [vmem:[#allocation41_spill] sm:$0xff] %v8978_v36  ;;  %v6734_v28 = vpop.eup %6733  ;;  %v4086_v40 = vmul.f32 %v6732_v38, %v8774_v55  ;;  %6753 = vrcp.f32 %v3154_v63  ;;  %v8983_v8 = vpop.f32.mrb[42].mxu1  ;;  %v8991_v36 = vadd.f32 %v8767_v1, %v8544_v59  ;;  %v9004_v1 = vadd.f32 %v8769_v26, %v8548_v27 }
 0x258   : > { %12567 = vst [vmem:[#allocation42_spill] sm:$0xff] %v8983_v8  ;;  %v8985_v53 = vpop.f32.mrb[74].mxu0  ;;  %v6736_v20 = vpop.eup %6735  ;;  %v4387_v16 = vadd.f32 %v8889_v35, %v4084_v43  ;;  %v4093_v2 = vmul.f32 %v6734_v28, %v8782_v22  ;;  %6755 = vpow2.f32 %v5721_v48  ;;  %v12569_v48 = vld [vmem:[#allocation8_spill] sm:$0xff] }
 0x259   : > { %12568 = vst [vmem:[#allocation43_spill] sm:$0xff] %v8985_v53  ;;  %v8993_v55 = vpop.f32.mrb[43].mxu1  ;;  %v8995_v38 = vpop.f32.mrb[75].mxu0  ;;  %v4461_v9 = vadd.f32 %v8896_v14, %v4086_v40  ;;  %v4095_v8 = vmul.f32 %v6736_v20, %v8786_v41  ;;  %6757 = vpow2.f32 %v5728_v37  ;;  %v5741_v53 = vmul.f32 -1.442695, %v8967_v11 }
 0x25a   : > { %v6738_v63 = vpop.eup %6737  ;;  %v4351_v22 = vadd.f32 %v8903_v60, %v4093_v2  ;;  %6759 = vpow2.f32 %v5730_v17  ;;  %5617 = vmatmul.mubr.msk.bf16.gmra.mrb[148].mxu1 %vm1089_vm0, %v12569_v48  ;;  %v9012_v37 = vadd.f32 %v8776_v13, %v8551_v61  ;;  %v9018_v60 = vadd.f32 %v8778_v32, %v8555_v5  ;;  %v9022_v13 = vpop.f32.mrb[44].mxu1 }
 0x25b   : > { %v6740_v35 = vpop.eup %6739  ;;  %v4094_v28 = vmul.f32 %v6738_v63, %v8794_v62  ;;  %v4425_v14 = vadd.f32 %v8905_v46, %v4095_v8  ;;  %6761 = vpow2.f32 %v5729_v45  ;;  %2002 = vmatprep.mubr.bf16.mxu1 %v12537_v15  ;;  %v5748_v46 = vmul.f32 -1.442695, %v8991_v36  ;;  %v9024_v45 = vpop.f32.mrb[76].mxu0 }
 0x25c   : > { %v6742_v43 = vpop.eup %6741  ;;  %v4096_v41 = vmul.f32 %v6740_v35, %v8798_v34  ;;  %6763 = vpow2.f32 %v5731_v47  ;;  %v5750_v47 = vmul.f32 -1.442695, %v9004_v1  ;;  %v9028_v32 = vpop.f32.mrb[45].mxu1  ;;  %v5749_v63 = vmul.f32 -1.442695, %v9012_v37 }
 0x25d   : > { %v6744_v62 = vpop.eup %6743  ;;  %v4388_v2 = vadd.f32 %v4387_v16, %v4094_v28  ;;  %v4103_v26 = vmul.f32 %v6742_v43, %v8806_v49  ;;  %6765 = vpow2.f32 %v5738_v6  ;;  %v9030_v16 = vpop.f32.mrb[77].mxu0  ;;  %v5751_v48 = vmul.f32 -1.442695, %v9018_v60 }
 0x25e   : > { %v6746_v17 = vpop.eup %6745  ;;  %v4462_v8 = vadd.f32 %v4461_v9, %v4096_v41  ;;  %v4105_v34 = vmul.f32 %v6744_v62, %v8810_v54  ;;  %6767 = vpow2.f32 %v5740_v19  ;;  %v9034_v35 = vpop.f32.mrb[46].mxu1 }
 0x25f   : > { %v6748_v40 = vpop.eup %6747  ;;  %v4352_v20 = vadd.f32 %v4351_v22, %v4103_v26  ;;  %v4104_v49 = vmul.f32 %v6746_v17, %v8815_v57  ;;  %6769 = vpow2.f32 %v5739_v30  ;;  %v9036_v28 = vpop.f32.mrb[78].mxu0 }
 0x260   : > { %v6750_v9 = vpop.eup %6749  ;;  %v4426_v54 = vadd.f32 %v4425_v14, %v4105_v34  ;;  %v4106_v6 = vmul.f32 %v6748_v40, %v8843_v42  ;;  %6771 = vpow2.f32 %v5741_v53  ;;  %v9040_v43 = vpop.f32.mrb[47].mxu1 }
 0x261   : > { %v6752_v22 = vpop.eup %6751  ;;  %v4389_v57 = vadd.f32 %v4388_v2, %v4104_v49  ;;  %v4113_v19 = vmul.f32 %v6750_v9, %v8853_v51  ;;  %v9042_v41 = vpop.f32.mrb[79].mxu0  ;;  %6773 = vpow2.f32 %v5748_v46  ;;  %v12571_v51 = vld [vmem:[#allocation11_spill] sm:$0xff] }
 0x262   : > { %12570 = vst [vmem:[#allocation8_spill] sm:$0xff] %v9042_v41  ;;  %v6754_v14 = vpop.eup %6753  ;;  %v9044_v42 = vadd.f32 %v4462_v8, %v4106_v6  ;;  %v4115_v30 = vmul.f32 %v6752_v22, %v8863_v52  ;;  %6775 = vpow2.f32 %v5750_v47  ;;  %5618 = vmatmul.mubr.msk.bf16.gmra.mrb[152].mxu1 %vm1089_vm0, %v12571_v51  ;;  %v9059_v49 = vpop.f32.mrb[80].mxu0  ;;  %v12594_v41 = vld [vmem:[#allocation13_spill] sm:$0xff] }
 0x263   : > { %v6756_v62 = vpop.eup %6755  ;;  %v9047_v26 = vadd.f32 %v4352_v20, %v4113_v19  ;;  %v4114_v2 = vmul.f32 %v6754_v14, %v8868_v29  ;;  %6777 = vpow2.f32 %v5749_v63  ;;  %2012 = vmatprep.mubr.bf16.mxu1 %v12537_v15  ;;  %v9057_v29 = vpop.f32.mrb[48].mxu1  ;;  %12573 = vst [vmem:[#allocation44_spill] sm:$0xff] %v9059_v49 }
 0x264   : > { %v6758_v53 = vpop.eup %6757  ;;  %v9052_v17 = vadd.f32 %v4426_v54, %v4115_v30  ;;  %v3156_v34 = vadd.f32 1.0, %v6756_v62  ;;  %6779 = vpow2.f32 %v5751_v48  ;;  %12572 = vst [vmem:[#allocation11_spill] sm:$0xff] %v9057_v29  ;;  %v9061_v54 = vpop.f32.mrb[49].mxu1 }
 0x265   : > { %v6760_v8 = vpop.eup %6759  ;;  %v9055_v40 = vadd.f32 %v4389_v57, %v4114_v2  ;;  %v3163_v52 = vadd.f32 1.0, %v6758_v53  ;;  %12574 = vst [vmem:[#allocation45_spill] sm:$0xff] %v9061_v54  ;;  %v9063_v6 = vpop.f32.mrb[81].mxu0  ;;  %v12576_v57 = vld [vmem:[#allocation27_spill] sm:$0xff] }
 0x266   : > { %v6762_v46 = vpop.eup %6761  ;;  %6781 = vrcp.f32 %v3156_v34  ;;  %v3165_v20 = vadd.f32 1.0, %v6760_v8  ;;  %12575 = vst [vmem:[#allocation46_spill] sm:$0xff] %v9063_v6  ;;  %v9067_v19 = vadd.f32 %v12576_v57, %v8544_v59  ;;  %v9069_v48 = vpop.f32.mrb[50].mxu1  ;;  %v12581_v8 = vld [vmem:[#allocation28_spill] sm:$0xff] }
 0x267   : > { %v6764_v47 = vpop.eup %6763  ;;  %6783 = vrcp.f32 %v3163_v52  ;;  %v3164_v9 = vadd.f32 1.0, %v6762_v46  ;;  %12577 = vst [vmem:[#allocation27_spill] sm:$0xff] %v9069_v48  ;;  %v9071_v14 = vpop.f32.mrb[82].mxu0  ;;  %v9079_v52 = vadd.f32 %v12581_v8, %v8548_v27  ;;  %v9095_v8 = vadd.f32 %v8828_v10, %v8544_v59 }
 0x268   : > { %v6766_v63 = vpop.eup %6765  ;;  %6785 = vrcp.f32 %v3165_v20  ;;  %v3166_v22 = vadd.f32 1.0, %v6764_v47  ;;  %12578 = vst [vmem:[#allocation47_spill] sm:$0xff] %v9071_v14  ;;  %v9073_v2 = vpop.f32.mrb[51].mxu1  ;;  %v12582_v47 = vld [vmem:[#allocation29_spill] sm:$0xff] }
 0x269   : > { %v6768_v30 = vpop.eup %6767  ;;  %6787 = vrcp.f32 %v3164_v9  ;;  %v3173_v62 = vadd.f32 1.0, %v6766_v63  ;;  %12579 = vst [vmem:[#allocation48_spill] sm:$0xff] %v9073_v2  ;;  %v9075_v51 = vpop.f32.mrb[83].mxu0  ;;  %v9083_v57 = vadd.f32 %v12582_v47, %v8551_v61  ;;  %v12583_v9 = vld [vmem:[#allocation10_spill] sm:$0xff]  ;;  %v12585_v47 = vld [vmem:[#allocation31_spill] sm:$0xff] }
 0x26a   : > { %12580 = vst [vmem:[#allocation49_spill] sm:$0xff] %v9075_v51  ;;  %v6770_v53 = vpop.eup %6769  ;;  %6789 = vrcp.f32 %v3166_v22  ;;  %v3175_v34 = vadd.f32 1.0, %v6768_v30  ;;  %5619 = vmatmul.mubr.msk.bf16.gmra.mrb[156].mxu1 %vm1089_vm0, %v12583_v9  ;;  %v5758_v22 = vmul.f32 -1.442695, %v9067_v19  ;;  %v12584_v30 = vld [vmem:[#allocation30_spill] sm:$0xff]  ;;  %v9099_v9 = vadd.f32 %v12585_v47, %v8548_v27  ;;  %v9106_v48 = vpop.f32.mrb[52].mxu1 }
 0x26b   : > { %v6772_v46 = vpop.eup %6771  ;;  %6791 = vrcp.f32 %v3173_v62  ;;  %v3174_v20 = vadd.f32 1.0, %v6770_v53  ;;  %v9090_v2 = vadd.f32 %v12584_v30, %v8555_v5  ;;  %2022 = vmatprep.mubr.bf16.mxu1 %v12537_v15  ;;  %v5760_v14 = vmul.f32 -1.442695, %v9079_v52  ;;  %12586 = vst [vmem:[#allocation28_spill] sm:$0xff] %v9106_v48 }
 0x26c   : > { %v6774_v63 = vpop.eup %6773  ;;  %6793 = vrcp.f32 %v3175_v34  ;;  %v3176_v51 = vadd.f32 1.0, %v6772_v46  ;;  %v9104_v30 = vadd.f32 %v8835_v24, %v8551_v61  ;;  %v5759_v6 = vmul.f32 -1.442695, %v9083_v57 }
 0x26d   : > { %v6776_v62 = vpop.eup %6775  ;;  %6795 = vrcp.f32 %v3174_v20  ;;  %v3183_v53 = vadd.f32 1.0, %v6774_v63  ;;  %v9108_v20 = vpop.f32.mrb[84].mxu0  ;;  %v9113_v47 = vadd.f32 %v8837_v44, %v8555_v5  ;;  %v5761_v48 = vmul.f32 -1.442695, %v9090_v2 }
 0x26e   : > { %v6778_v34 = vpop.eup %6777  ;;  %6797 = vrcp.f32 %v3176_v51  ;;  %v3185_v46 = vadd.f32 1.0, %v6776_v62  ;;  %12587 = vst [vmem:[#allocation29_spill] sm:$0xff] %v9108_v20  ;;  %v9115_v51 = vpop.f32.mrb[53].mxu1  ;;  %v9122_v20 = vadd.f32 %v8845_v50, %v8544_v59 }
 0x26f   : > { %v6780_v63 = vpop.eup %6779  ;;  %6799 = vrcp.f32 %v3183_v53  ;;  %v3184_v10 = vadd.f32 1.0, %v6778_v34  ;;  %12588 = vst [vmem:[#allocation10_spill] sm:$0xff] %v9115_v51  ;;  %v9117_v62 = vpop.f32.mrb[85].mxu0  ;;  %v5768_v51 = vmul.f32 -1.442695, %v9095_v8 }
 0x270   : > { %12589 = vst [vmem:[#allocation30_spill] sm:$0xff] %v9117_v62  ;;  %v6782_v54 = vpop.eup %6781  ;;  %6801 = vrcp.f32 %v3185_v46  ;;  %v3186_v24 = vadd.f32 1.0, %v6780_v63  ;;  %v9124_v53 = vpop.f32.mrb[54].mxu1  ;;  %v5770_v62 = vmul.f32 -1.442695, %v9099_v9 }
 0x271   : > { %12590 = vst [vmem:[#allocation31_spill] sm:$0xff] %v9124_v53  ;;  %v9126_v34 = vpop.f32.mrb[86].mxu0  ;;  %v6784_v49 = vpop.eup %6783  ;;  %v4116_v44 = vmul.f32 %v6782_v54, %v8912_v23  ;;  %6803 = vrcp.f32 %v3184_v10  ;;  %v5769_v53 = vmul.f32 -1.442695, %v9104_v30 }
 0x272   : > { %12591 = vst [vmem:[#allocation50_spill] sm:$0xff] %v9126_v34  ;;  %v9131_v46 = vpop.f32.mrb[55].mxu1  ;;  %v9133_v63 = vpop.f32.mrb[87].mxu0  ;;  %v4123_v50 = vmul.f32 %v6784_v49, %v8926_v39  ;;  %6805 = vrcp.f32 %v3186_v24  ;;  %v9139_v34 = vadd.f32 %v8847_v7, %v8548_v27  ;;  %5620 = vmatmul.mubr.msk.bf16.gmra.mrb[160].mxu1 %vm1089_vm0, %v12594_v41  ;;  %v5778_v7 = vmul.f32 -1.442695, %v9122_v20 }
 0x273   : > { %12592 = vst [vmem:[#allocation51_spill] sm:$0xff] %v9131_v46  ;;  %12593 = vst [vmem:[#allocation52_spill] sm:$0xff] %v9133_v63  ;;  %v6786_v29 = vpop.eup %6785  ;;  %v4464_v54 = vadd.f32 %v9044_v42, %v4116_v44  ;;  %6807 = vpow2.f32 %v5758_v22  ;;  %v5771_v46 = vmul.f32 -1.442695, %v9113_v47  ;;  %2032 = vmatprep.mubr.bf16.mxu1 %v12537_v15 }
 0x274   : > { %v6788_v23 = vpop.eup %6787  ;;  %v4125_v10 = vmul.f32 %v6786_v29, %v8930_v18  ;;  %v4354_v39 = vadd.f32 %v9047_v26, %v4123_v50  ;;  %6809 = vpow2.f32 %v5760_v14  ;;  %v12595_v29 = vld [vmem:[#allocation32_spill] sm:$0xff]  ;;  %v12596_v14 = vld [vmem:[#allocation33_spill] sm:$0xff]  ;;  %v9162_v50 = vpop.f32.mrb[56].mxu1 }
 0x275   : > { %v6790_v63 = vpop.eup %6789  ;;  %v4124_v49 = vmul.f32 %v6788_v23, %v8939_v33  ;;  %6811 = vpow2.f32 %v5759_v6  ;;  %v9154_v22 = vadd.f32 %v12595_v29, %v8551_v61  ;;  %v9160_v44 = vadd.f32 %v12596_v14, %v8555_v5 }
 0x276   : > { %v6792_v24 = vpop.eup %6791  ;;  %v4428_v42 = vadd.f32 %v9052_v17, %v4125_v10  ;;  %v4126_v18 = vmul.f32 %v6790_v63, %v8945_v4  ;;  %6813 = vpow2.f32 %v5761_v48  ;;  %v9164_v17 = vpop.f32.mrb[88].mxu0  ;;  %v9169_v23 = vadd.f32 %v8879_v56, %v8544_v59 }
 0x277   : > { %v6794_v41 = vpop.eup %6793  ;;  %v4391_v26 = vadd.f32 %v9055_v40, %v4124_v49  ;;  %v4133_v33 = vmul.f32 %v6792_v24, %v8949_v3  ;;  %6815 = vpow2.f32 %v5768_v51  ;;  %v9171_v40 = vpop.f32.mrb[57].mxu1  ;;  %v5780_v24 = vmul.f32 -1.442695, %v9139_v34 }
 0x278   : > { %v6796_v4 = vpop.eup %6795  ;;  %v4465_v6 = vadd.f32 %v4464_v54, %v4126_v18  ;;  %v4135_v63 = vmul.f32 %v6794_v41, %v8955_v58  ;;  %v9173_v3 = vpop.f32.mrb[89].mxu0  ;;  %6817 = vpow2.f32 %v5770_v62  ;;  %v5779_v18 = vmul.f32 -1.442695, %v9154_v22 }
 0x279   : > { %v6798_v48 = vpop.eup %6797  ;;  %v4355_v10 = vadd.f32 %v4354_v39, %v4133_v33  ;;  %v4134_v49 = vmul.f32 %v6796_v4, %v8959_v31  ;;  %v9177_v29 = vpop.f32.mrb[58].mxu1  ;;  %6819 = vpow2.f32 %v5769_v53  ;;  %v5781_v33 = vmul.f32 -1.442695, %v9160_v44  ;;  %v12601_v53 = vld [vmem:[#allocation12_spill] sm:$0xff] }
 0x27a   : > { %12597 = vst [vmem:[#allocation13_spill] sm:$0xff] %v9177_v29  ;;  %v9179_v54 = vpop.f32.mrb[90].mxu0  ;;  %v6800_v58 = vpop.eup %6799  ;;  %v4429_v51 = vadd.f32 %v4428_v42, %v4135_v63  ;;  %v4136_v56 = vmul.f32 %v6798_v48, %v8967_v11  ;;  %6821 = vpow2.f32 %v5771_v46  ;;  %v5788_v11 = vmul.f32 -1.442695, %v9169_v23  ;;  %5621 = vmatmul.mubr.msk.bf16.gmra.mrb[164].mxu1 %vm1089_vm0, %v12601_v53 }
 0x27b   : > { %12598 = vst [vmem:[#allocation32_spill] sm:$0xff] %v9179_v54  ;;  %v9183_v41 = vpop.f32.mrb[59].mxu1  ;;  %v9185_v14 = vpop.f32.mrb[91].mxu0  ;;  %v4392_v31 = vadd.f32 %v4391_v26, %v4134_v49  ;;  %v4143_v62 = vmul.f32 %v6800_v58, %v8991_v36  ;;  %6823 = vpow2.f32 %v5778_v7  ;;  %2042 = vmatprep.mubr.bf16.mxu1 %v12537_v15 }
 0x27c   : > { %12599 = vst [vmem:[#allocation33_spill] sm:$0xff] %v9183_v41  ;;  %12600 = vst [vmem:[#allocation53_spill] sm:$0xff] %v9185_v14  ;;  %v6802_v39 = vpop.eup %6801  ;;  %v4466_v54 = vadd.f32 %v4465_v6, %v4136_v56  ;;  %6825 = vpow2.f32 %v5780_v24  ;;  %v9202_v58 = vpop.f32.mrb[60].mxu1 }
 0x27d   : > { %v6804_v4 = vpop.eup %6803  ;;  %v4145_v42 = vmul.f32 %v6802_v39, %v9004_v1  ;;  %v9193_v48 = vadd.f32 %v4355_v10, %v4143_v62  ;;  %6827 = vpow2.f32 %v5779_v18  ;;  %12602 = vst [vmem:[#allocation12_spill] sm:$0xff] %v9202_v58  ;;  %v9204_v10 = vpop.f32.mrb[92].mxu0 }
 0x27e   : > { %v6806_v63 = vpop.eup %6805  ;;  %v4144_v26 = vmul.f32 %v6804_v4, %v9012_v37  ;;  %6829 = vpow2.f32 %v5781_v33  ;;  %12603 = vst [vmem:[#allocation54_spill] sm:$0xff] %v9204_v10  ;;  %v9208_v39 = vpop.f32.mrb[61].mxu1  ;;  %v12620_v10 = vld [vmem:[#allocation14_spill] sm:$0xff] }
 0x27f   : > { %v6808_v36 = vpop.eup %6807  ;;  %v9197_v46 = vadd.f32 %v4429_v51, %v4145_v42  ;;  %v4146_v6 = vmul.f32 %v6806_v63, %v9018_v60  ;;  %6831 = vpow2.f32 %v5788_v11  ;;  %12604 = vst [vmem:[#allocation55_spill] sm:$0xff] %v9208_v39  ;;  %v9210_v51 = vpop.f32.mrb[93].mxu0 }
 0x280   : > { %v6810_v1 = vpop.eup %6809  ;;  %v9200_v7 = vadd.f32 %v4392_v31, %v4144_v26  ;;  %v3193_v49 = vadd.f32 1.0, %v6808_v36  ;;  %12605 = vst [vmem:[#allocation56_spill] sm:$0xff] %v9210_v51  ;;  %v9212_v31 = vpop.f32.mrb[62].mxu1 }
 0x281   : > { %v6812_v56 = vpop.eup %6811  ;;  %v9206_v37 = vadd.f32 %v4466_v54, %v4146_v6  ;;  %v3195_v24 = vadd.f32 1.0, %v6810_v1  ;;  %12606 = vst [vmem:[#allocation57_spill] sm:$0xff] %v9212_v31  ;;  %v9214_v62 = vpop.f32.mrb[94].mxu0  ;;  %v9218_v54 = vadd.f32 %v8881_v12, %v8548_v27  ;;  %v12610_v6 = vld [vmem:[#allocation15_spill] sm:$0xff] }
 0x282   : > { %v6814_v60 = vpop.eup %6813  ;;  %6833 = vrcp.f32 %v3193_v49  ;;  %v3194_v18 = vadd.f32 1.0, %v6812_v56  ;;  %12607 = vst [vmem:[#allocation58_spill] sm:$0xff] %v9214_v62  ;;  %v9220_v42 = vpop.f32.mrb[63].mxu1  ;;  %5622 = vmatmul.mubr.msk.bf16.gmra.mrb[168].mxu1 %vm1089_vm0, %v12610_v6 }
 0x283   : > { %v6816_v33 = vpop.eup %6815  ;;  %6835 = vrcp.f32 %v3195_v24  ;;  %v3196_v4 = vadd.f32 1.0, %v6814_v60  ;;  %12608 = vst [vmem:[#allocation59_spill] sm:$0xff] %v9220_v42  ;;  %v9222_v11 = vpop.f32.mrb[95].mxu0  ;;  %2052 = vmatprep.mubr.bf16.mxu1 %v12537_v15  ;;  %v5790_v24 = vmul.f32 -1.442695, %v9218_v54  ;;  %v9230_v60 = vadd.f32 %v8885_v21, %v8551_v61  ;;  %v12613_v21 = vld [vmem:[#allocation23_spill] sm:$0xff] }
 0x284   : > { %12609 = vst [vmem:[#allocation60_spill] sm:$0xff] %v9222_v11  ;;  %v6818_v53 = vpop.eup %6817  ;;  %6837 = vrcp.f32 %v3194_v18  ;;  %v3203_v63 = vadd.f32 1.0, %v6816_v33 }
 0x285   : > { %v6820_v26 = vpop.eup %6819  ;;  %6839 = vrcp.f32 %v3196_v4  ;;  %v3205_v36 = vadd.f32 1.0, %v6818_v53  ;;  %v9234_v4 = vadd.f32 %v8887_v0, %v8555_v5  ;;  %v9238_v53 = vadd.f32 %v8892_v25, %v8544_v59 }
 0x286   : > { %v6822_v1 = vpop.eup %6821  ;;  %6841 = vrcp.f32 %v3203_v63  ;;  %v3204_v49 = vadd.f32 1.0, %v6820_v26  ;;  %v9240_v63 = vpop.f32.mrb[64].mxu1  ;;  %v5789_v62 = vmul.f32 -1.442695, %v9230_v60 }
 0x287   : > { %v6824_v12 = vpop.eup %6823  ;;  %6843 = vrcp.f32 %v3205_v36  ;;  %v3206_v56 = vadd.f32 1.0, %v6822_v1  ;;  %12611 = vst [vmem:[#allocation15_spill] sm:$0xff] %v9240_v63  ;;  %v9242_v26 = vpop.f32.mrb[96].mxu0  ;;  %v9246_v1 = vadd.f32 %v12613_v21, %v8548_v27  ;;  %v12616_v63 = vld [vmem:[#allocation24_spill] sm:$0xff] }
 0x288   : > { %v6826_v18 = vpop.eup %6825  ;;  %6845 = vrcp.f32 %v3204_v49  ;;  %v3213_v33 = vadd.f32 1.0, %v6824_v12  ;;  %12612 = vst [vmem:[#allocation61_spill] sm:$0xff] %v9242_v26  ;;  %v12614_v49 = vld [vmem:[#allocation7_spill] sm:$0xff]  ;;  %v9252_v0 = vpop.f32.mrb[65].mxu1  ;;  %v9256_v42 = vadd.f32 %v12616_v63, %v8555_v5  ;;  %v5798_v63 = vmul.f32 -1.442695, %v9238_v53 }
 0x289   : > { %v6828_v36 = vpop.eup %6827  ;;  %6847 = vrcp.f32 %v3206_v56  ;;  %v3215_v6 = vadd.f32 1.0, %v6826_v18  ;;  %v9250_v12 = vadd.f32 %v12614_v49, %v8551_v61  ;;  %12615 = vst [vmem:[#allocation23_spill] sm:$0xff] %v9252_v0  ;;  %v12617_v56 = vld [vmem:[#allocation25_spill] sm:$0xff]  ;;  %v12618_v49 = vld [vmem:[#allocation26_spill] sm:$0xff]  ;;  %v9269_v51 = vpop.f32.mrb[97].mxu0 }
 0x28a   : > { %v6830_v11 = vpop.eup %6829  ;;  %6849 = vrcp.f32 %v3213_v33  ;;  %v3214_v25 = vadd.f32 1.0, %v6828_v36  ;;  %v9260_v18 = vadd.f32 %v12617_v56, %v8544_v59  ;;  %v9265_v31 = vadd.f32 %v12618_v49, %v8548_v27  ;;  %12619 = vst [vmem:[#allocation7_spill] sm:$0xff] %v9269_v51  ;;  %5623 = vmatmul.mubr.msk.bf16.gmra.mrb[172].mxu1 %vm1089_vm0, %v12620_v10  ;;  %v9279_v51 = vpop.f32.mrb[66].mxu1 }
 0x28b   : > { %v6832_v26 = vpop.eup %6831  ;;  %6851 = vrcp.f32 %v3215_v6  ;;  %v3216_v21 = vadd.f32 1.0, %v6830_v11  ;;  %v5791_v36 = vmul.f32 -1.442695, %v9234_v4  ;;  %v5800_v11 = vmul.f32 -1.442695, %v9246_v1  ;;  %12621 = vst [vmem:[#allocation24_spill] sm:$0xff] %v9279_v51  ;;  %2062 = vmatprep.mubr.bf16.mxu1 %v12537_v15 }
 0x28c   : > { %v6834_v0 = vpop.eup %6833  ;;  %6853 = vrcp.f32 %v3214_v25  ;;  %v3223_v33 = vadd.f32 1.0, %v6832_v26  ;;  %v5799_v6 = vmul.f32 -1.442695, %v9250_v12  ;;  %v5801_v25 = vmul.f32 -1.442695, %v9256_v42  ;;  %v9281_v14 = vpop.f32.mrb[98].mxu0 }
 0x28d   : > { %v6836_v56 = vpop.eup %6835  ;;  %v4153_v39 = vmul.f32 %v6834_v0, %v9067_v19  ;;  %6855 = vrcp.f32 %v3216_v21  ;;  %v5808_v58 = vmul.f32 -1.442695, %v9260_v18  ;;  %12622 = vst [vmem:[#allocation25_spill] sm:$0xff] %v9281_v14  ;;  %v5810_v10 = vmul.f32 -1.442695, %v9265_v31  ;;  %v12623_v51 = vld [vmem:[#allocation6_spill] sm:$0xff] }
 0x28e   : > { %v6838_v49 = vpop.eup %6837  ;;  %v4155_v26 = vmul.f32 %v6836_v56, %v9079_v52  ;;  %6857 = vrcp.f32 %v3223_v33  ;;  %v9291_v41 = vadd.f32 %v12623_v51, %v8551_v61  ;;  %v9293_v14 = vpop.f32.mrb[67].mxu1 }
 0x28f   : > { %v6840_v19 = vpop.eup %6839  ;;  %v4357_v0 = vadd.f32 %v9193_v48, %v4153_v39  ;;  %v4154_v21 = vmul.f32 %v6838_v49, %v9083_v57  ;;  %6859 = vpow2.f32 %v5790_v24  ;;  %v9295_v29 = vpop.f32.mrb[99].mxu0  ;;  %v12625_v24 = vld [vmem:[#allocation34_spill] sm:$0xff]  ;;  %v12626_v49 = vld [vmem:[#allocation35_spill] sm:$0xff] }
 0x290   : > { %v6842_v52 = vpop.eup %6841  ;;  %v4431_v33 = vadd.f32 %v9197_v46, %v4155_v26  ;;  %v4156_v56 = vmul.f32 %v6840_v19, %v9090_v2  ;;  %6861 = vpow2.f32 %v5789_v62  ;;  %12624 = vst [vmem:[#allocation26_spill] sm:$0xff] %v9295_v29  ;;  %v9301_v46 = vadd.f32 %v12625_v24, %v8555_v5 }
 0x291   : > { %v6844_v48 = vpop.eup %6843  ;;  %v4394_v57 = vadd.f32 %v9200_v7, %v4154_v21  ;;  %v4163_v39 = vmul.f32 %v6842_v52, %v9095_v8  ;;  %6863 = vpow2.f32 %v5791_v36  ;;  %v9307_v26 = vadd.f32 %v12626_v49, %v8544_v59  ;;  %v12627_v8 = vld [vmem:[#allocation36_spill] sm:$0xff] }
 0x292   : > { %v6846_v2 = vpop.eup %6845  ;;  %v4468_v62 = vadd.f32 %v9206_v37, %v4156_v56  ;;  %v4165_v51 = vmul.f32 %v6844_v48, %v9099_v9  ;;  %6865 = vpow2.f32 %v5798_v63  ;;  %v9312_v36 = vadd.f32 %v12627_v8, %v8548_v27 }
 0x293   : > { %v6848_v19 = vpop.eup %6847  ;;  %v4358_v29 = vadd.f32 %v4357_v0, %v4163_v39  ;;  %v4164_v7 = vmul.f32 %v6846_v2, %v9104_v30  ;;  %6867 = vpow2.f32 %v5800_v11  ;;  %v5809_v9 = vmul.f32 -1.442695, %v9291_v41  ;;  %v12628_v30 = vld [vmem:[#allocation17_spill] sm:$0xff] }
 0x294   : > { %v6850_v21 = vpop.eup %6849  ;;  %v4432_v52 = vadd.f32 %v4431_v33, %v4165_v51  ;;  %v4166_v37 = vmul.f32 %v6848_v19, %v9113_v47  ;;  %6869 = vpow2.f32 %v5799_v6  ;;  %v5811_v0 = vmul.f32 -1.442695, %v9301_v46  ;;  %5624 = vmatmul.mubr.msk.bf16.gmra.mrb[176].mxu1 %vm1089_vm0, %v12628_v30  ;;  %v9322_v6 = vpop.f32.mrb[68].mxu1 }
 0x295   : > { %v6852_v63 = vpop.eup %6851  ;;  %v4395_v56 = vadd.f32 %v4394_v57, %v4164_v7  ;;  %v4173_v48 = vmul.f32 %v6850_v21, %v9122_v20  ;;  %6871 = vpow2.f32 %v5801_v25  ;;  %v5818_v47 = vmul.f32 -1.442695, %v9307_v26  ;;  %v9324_v33 = vpop.f32.mrb[100].mxu0  ;;  %2072 = vmatprep.mubr.bf16.mxu1 %v12537_v15 }
 0x296   : > { %v6854_v11 = vpop.eup %6853  ;;  %v4469_v39 = vadd.f32 %v4468_v62, %v4166_v37  ;;  %v4175_v24 = vmul.f32 %v6852_v63, %v9139_v34  ;;  %6873 = vpow2.f32 %v5808_v58  ;;  %v5820_v2 = vmul.f32 -1.442695, %v9312_v36  ;;  %v9329_v51 = vpop.f32.mrb[69].mxu1 }
 0x297   : > { %v6856_v20 = vpop.eup %6855  ;;  %v4359_v25 = vadd.f32 %v4358_v29, %v4173_v48  ;;  %v4174_v57 = vmul.f32 %v6854_v11, %v9154_v22  ;;  %6875 = vpow2.f32 %v5810_v10  ;;  %12629 = vst [vmem:[#allocation14_spill] sm:$0xff] %v9329_v51  ;;  %v9331_v62 = vpop.f32.mrb[101].mxu0 }
 0x298   : > { %12630 = vst [vmem:[#allocation6_spill] sm:$0xff] %v9331_v62  ;;  %v6858_v34 = vpop.eup %6857  ;;  %v9333_v58 = vadd.f32 %v4432_v52, %v4175_v24  ;;  %v4176_v49 = vmul.f32 %v6856_v20, %v9160_v44  ;;  %6877 = vpow2.f32 %v5809_v9  ;;  %v9336_v19 = vpop.f32.mrb[70].mxu1  ;;  %v12636_v20 = vld [vmem:[#allocation37_spill] sm:$0xff] }
 0x299   : > { %12631 = vst [vmem:[#allocation34_spill] sm:$0xff] %v9336_v19  ;;  %v9338_v7 = vpop.f32.mrb[102].mxu0  ;;  %v6860_v29 = vpop.eup %6859  ;;  %v9340_v8 = vadd.f32 %v4395_v56, %v4174_v57  ;;  %v4183_v22 = vmul.f32 %v6858_v34, %v9169_v23  ;;  %6879 = vpow2.f32 %v5811_v0  ;;  %v12635_v0 = vld [vmem:[#allocation16_spill] sm:$0xff] }
 0x29a   : > { %12632 = vst [vmem:[#allocation35_spill] sm:$0xff] %v9338_v7  ;;  %v9343_v10 = vpop.f32.mrb[71].mxu1  ;;  %v9345_v21 = vpop.f32.mrb[103].mxu0  ;;  %v9347_v52 = vadd.f32 %v4469_v39, %v4176_v49  ;;  %v3225_v63 = vadd.f32 1.0, %v6860_v29  ;;  %6881 = vpow2.f32 %v5818_v47  ;;  %v9355_v47 = vadd.f32 %v12636_v20, %v8551_v61 }
 0x29b   : > { %12633 = vst [vmem:[#allocation36_spill] sm:$0xff] %v9343_v10  ;;  %12634 = vst [vmem:[#allocation17_spill] sm:$0xff] %v9345_v21  ;;  %v6862_v37 = vpop.eup %6861  ;;  %v9349_v9 = vadd.f32 %v4359_v25, %v4183_v22  ;;  %6883 = vpow2.f32 %v5820_v2  ;;  %v12637_v22 = vld [vmem:[#allocation38_spill] sm:$0xff]  ;;  %v9394_v10 = vadd.f32 %v8993_v55, %v8551_v61 }
 0x29c   : > { %v6864_v44 = vpop.eup %6863  ;;  %v3224_v48 = vadd.f32 1.0, %v6862_v37  ;;  %6885 = vrcp.f32 %v3225_v63  ;;  %5625 = vmatmul.mubr.msk.bf16.gmra.mrb[180].mxu1 %vm1089_vm0, %v12635_v0  ;;  %v9360_v37 = vadd.f32 %v12637_v22, %v8555_v5  ;;  %v12638_v63 = vld [vmem:[#allocation9_spill] sm:$0xff] }
 0x29d   : > { %v6866_v30 = vpop.eup %6865  ;;  %v3226_v56 = vadd.f32 1.0, %v6864_v44  ;;  %2082 = vmatprep.mubr.bf16.mxu1 %v12537_v15  ;;  %v9364_v44 = vadd.f32 %v12638_v63, %v8544_v59  ;;  %v12643_v63 = vld [vmem:[#allocation43_spill] sm:$0xff] }
 0x29e   : > { %v6868_v11 = vpop.eup %6867  ;;  %6887 = vrcp.f32 %v3224_v48  ;;  %v3233_v23 = vadd.f32 1.0, %v6866_v30 }
 0x29f   : > { %v6870_v24 = vpop.eup %6869  ;;  %6889 = vrcp.f32 %v3226_v56  ;;  %v3235_v39 = vadd.f32 1.0, %v6868_v11  ;;  %v5819_v56 = vmul.f32 -1.442695, %v9355_v47  ;;  %v12639_v11 = vld [vmem:[#allocation39_spill] sm:$0xff]  ;;  %v5828_v21 = vmul.f32 -1.442695, %v9364_v44 }
 0x2a0   : > { %v6872_v25 = vpop.eup %6871  ;;  %6891 = vrcp.f32 %v3233_v23  ;;  %v3234_v57 = vadd.f32 1.0, %v6870_v24  ;;  %v9369_v23 = vadd.f32 %v12639_v11, %v8548_v27  ;;  %v9385_v11 = vadd.f32 %v12643_v63, %v8548_v27 }
 0x2a1   : > { %v6874_v2 = vpop.eup %6873  ;;  %6893 = vrcp.f32 %v3235_v39  ;;  %v3236_v34 = vadd.f32 1.0, %v6872_v25  ;;  %v12640_v39 = vld [vmem:[#allocation40_spill] sm:$0xff]  ;;  %v12641_v25 = vld [vmem:[#allocation41_spill] sm:$0xff] }
 0x2a2   : > { %v6876_v49 = vpop.eup %6875  ;;  %6895 = vrcp.f32 %v3234_v57  ;;  %v3243_v29 = vadd.f32 1.0, %v6874_v2  ;;  %v9373_v20 = vadd.f32 %v12640_v39, %v8551_v61  ;;  %v9377_v57 = vadd.f32 %v12641_v25, %v8555_v5  ;;  %v12644_v25 = vld [vmem:[#allocation19_spill] sm:$0xff] }
 0x2a3   : > { %v6878_v48 = vpop.eup %6877  ;;  %6897 = vrcp.f32 %v3236_v34  ;;  %v3245_v30 = vadd.f32 1.0, %v6876_v49  ;;  %v12642_v49 = vld [vmem:[#allocation42_spill] sm:$0xff]  ;;  %v5821_v39 = vmul.f32 -1.442695, %v9360_v37  ;;  %v5840_v19 = vmul.f32 -1.442695, %v9385_v11 }
 0x2a4   : > { %v6880_v0 = vpop.eup %6879  ;;  %6899 = vrcp.f32 %v3243_v29  ;;  %v3244_v24 = vadd.f32 1.0, %v6878_v48  ;;  %v9381_v22 = vadd.f32 %v12642_v49, %v8544_v59  ;;  %5626 = vmatmul.mubr.msk.bf16.gmra.mrb[184].mxu1 %vm1089_vm0, %v12644_v25  ;;  %v5830_v49 = vmul.f32 -1.442695, %v9369_v23 }
 0x2a5   : > { %v6882_v2 = vpop.eup %6881  ;;  %6901 = vrcp.f32 %v3245_v30  ;;  %v3246_v34 = vadd.f32 1.0, %v6880_v0  ;;  %2092 = vmatprep.mubr.bf16.mxu1 %v12537_v15  ;;  %v5829_v63 = vmul.f32 -1.442695, %v9373_v20  ;;  %v5831_v7 = vmul.f32 -1.442695, %v9377_v57 }
 0x2a6   : > { %v6884_v29 = vpop.eup %6883  ;;  %6903 = vrcp.f32 %v3244_v24  ;;  %v3253_v48 = vadd.f32 1.0, %v6882_v2 }
 0x2a7   : > { %v6886_v30 = vpop.eup %6885  ;;  %6905 = vrcp.f32 %v3246_v34  ;;  %v3255_v0 = vadd.f32 1.0, %v6884_v29  ;;  %v5838_v29 = vmul.f32 -1.442695, %v9381_v22 }
 0x2a8   : > { %v6888_v24 = vpop.eup %6887  ;;  %v4185_v2 = vmul.f32 %v6886_v30, %v9218_v54  ;;  %6907 = vrcp.f32 %v3253_v48  ;;  %v9407_v54 = vadd.f32 %v8995_v38, %v8555_v5  ;;  %v9418_v38 = vpop.f32.mrb[72].mxu1 }
 0x2a9   : > { %v6890_v25 = vpop.eup %6889  ;;  %v4184_v34 = vmul.f32 %v6888_v24, %v9230_v60  ;;  %6909 = vrcp.f32 %v3255_v0  ;;  %v5839_v0 = vmul.f32 -1.442695, %v9394_v10 }
 0x2aa   : > { %v6892_v55 = vpop.eup %6891  ;;  %v4434_v62 = vadd.f32 %v9333_v58, %v4185_v2  ;;  %v4186_v15 = vmul.f32 %v6890_v25, %v9234_v4  ;;  %6911 = vpow2.f32 %v5819_v56  ;;  %v9416_v4 = vadd.f32 %v9022_v13, %v8544_v59  ;;  %v9420_v56 = vpop.f32.mrb[104].mxu0 }
 0x2ab   : > { %v6894_v48 = vpop.eup %6893  ;;  %v4397_v30 = vadd.f32 %v9340_v8, %v4184_v34  ;;  %v4193_v60 = vmul.f32 %v6892_v55, %v9238_v53  ;;  %6913 = vpow2.f32 %v5821_v39  ;;  %v9435_v34 = vadd.f32 %v9028_v32, %v8551_v61 }
 0x2ac   : > { %v6896_v24 = vpop.eup %6895  ;;  %v4471_v51 = vadd.f32 %v9347_v52, %v4186_v15  ;;  %v4195_v58 = vmul.f32 %v6894_v48, %v9246_v1  ;;  %6915 = vpow2.f32 %v5828_v21  ;;  %v9426_v52 = vadd.f32 %v9024_v45, %v8548_v27  ;;  %v9428_v1 = vpop.f32.mrb[73].mxu1 }
 0x2ad   : > { %v6898_v8 = vpop.eup %6897  ;;  %v4361_v53 = vadd.f32 %v9349_v9, %v4193_v60  ;;  %v4194_v39 = vmul.f32 %v6896_v24, %v9250_v12  ;;  %6917 = vpow2.f32 %v5830_v49  ;;  %v9430_v21 = vpop.f32.mrb[105].mxu0  ;;  %v12645_v49 = vld [vmem:[#allocation18_spill] sm:$0xff]  ;;  %v5848_v24 = vmul.f32 -1.442695, %v9416_v4 }
 0x2ae   : > { %v6900_v13 = vpop.eup %6899  ;;  %v4435_v2 = vadd.f32 %v4434_v62, %v4195_v58  ;;  %v4196_v25 = vmul.f32 %v6898_v8, %v9256_v42  ;;  %6919 = vpow2.f32 %v5829_v63  ;;  %v9437_v9 = vpop.f32.mrb[74].mxu1  ;;  %5627 = vmatmul.mubr.msk.bf16.gmra.mrb[188].mxu1 %vm1089_vm0, %v12645_v49  ;;  %v5841_v62 = vmul.f32 -1.442695, %v9407_v54 }
 0x2af   : > { %v9439_v12 = vpop.f32.mrb[106].mxu0  ;;  %v6902_v45 = vpop.eup %6901  ;;  %v4398_v55 = vadd.f32 %v4397_v30, %v4194_v39  ;;  %v4203_v15 = vmul.f32 %v6900_v13, %v9260_v18  ;;  %6921 = vpow2.f32 %v5831_v7  ;;  %v5850_v18 = vmul.f32 -1.442695, %v9426_v52 }
 0x2b0   : > { %v9445_v42 = vpop.f32.mrb[75].mxu1  ;;  %v9447_v63 = vpop.f32.mrb[107].mxu0  ;;  %v4472_v48 = vadd.f32 %v4471_v51, %v4196_v25  ;;  %v4205_v60 = vmul.f32 %v6902_v45, %v9265_v31  ;;  %6923 = vpow2.f32 %v5838_v29  ;;  %v5849_v49 = vmul.f32 -1.442695, %v9435_v34 }
 0x2b1   : > { %12646 = vst [vmem:[#allocation16_spill] sm:$0xff] %v9445_v42  ;;  %12647 = vst [vmem:[#allocation37_spill] sm:$0xff] %v9447_v63  ;;  %v6904_v32 = vpop.eup %6903  ;;  %v4362_v8 = vadd.f32 %v4361_v53, %v4203_v15  ;;  %6925 = vpow2.f32 %v5840_v19  ;;  %v9461_v19 = vpop.f32.mrb[76].mxu1 }
 0x2b2   : > { %v6906_v58 = vpop.eup %6905  ;;  %v4204_v30 = vmul.f32 %v6904_v32, %v9291_v41  ;;  %v4436_v39 = vadd.f32 %v4435_v2, %v4205_v60  ;;  %6927 = vpow2.f32 %v5839_v0  ;;  %12648 = vst [vmem:[#allocation38_spill] sm:$0xff] %v9461_v19  ;;  %v9463_v2 = vpop.f32.mrb[108].mxu0 }
 0x2b3   : > { %v6908_v7 = vpop.eup %6907  ;;  %v4206_v13 = vmul.f32 %v6906_v58, %v9301_v46  ;;  %6929 = vpow2.f32 %v5841_v62  ;;  %12649 = vst [vmem:[#allocation9_spill] sm:$0xff] %v9463_v2  ;;  %v9469_v15 = vpop.f32.mrb[109].mxu0 }
 0x2b4   : > { %v6910_v51 = vpop.eup %6909  ;;  %v9455_v25 = vadd.f32 %v4398_v55, %v4204_v30  ;;  %v4213_v31 = vmul.f32 %v6908_v7, %v9307_v26  ;;  %6931 = vpow2.f32 %v5848_v24  ;;  %v9467_v55 = vpop.f32.mrb[77].mxu1  ;;  %12651 = vst [vmem:[#allocation40_spill] sm:$0xff] %v9469_v15 }
 0x2b5   : > { %v6912_v29 = vpop.eup %6911  ;;  %v9458_v53 = vadd.f32 %v4472_v48, %v4206_v13  ;;  %v4215_v41 = vmul.f32 %v6910_v51, %v9312_v36  ;;  %6933 = vpow2.f32 %v5850_v18  ;;  %12650 = vst [vmem:[#allocation39_spill] sm:$0xff] %v9467_v55  ;;  %v9473_v36 = vpop.f32.mrb[78].mxu1  ;;  %v9477_v18 = vadd.f32 %v9030_v16, %v8555_v5  ;;  %v12659_v55 = vld [vmem:[#allocation27_spill] sm:$0xff] }
 0x2b6   : > { %v6914_v46 = vpop.eup %6913  ;;  %v9465_v0 = vadd.f32 %v4362_v8, %v4213_v31  ;;  %v3254_v45 = vadd.f32 1.0, %v6912_v29  ;;  %6935 = vpow2.f32 %v5849_v49  ;;  %12652 = vst [vmem:[#allocation41_spill] sm:$0xff] %v9473_v36  ;;  %v9481_v51 = vadd.f32 %v9034_v35, %v8544_v59  ;;  %v9526_v2 = vpop.f32.mrb[79].mxu1 }
 0x2b7   : > { %v6916_v26 = vpop.eup %6915  ;;  %v9471_v62 = vadd.f32 %v4436_v39, %v4215_v41  ;;  %v3256_v32 = vadd.f32 1.0, %v6914_v46  ;;  %v9485_v41 = vadd.f32 %v9036_v28, %v8548_v27  ;;  %12660 = vst [vmem:[#allocation43_spill] sm:$0xff] %v9526_v2 }
 0x2b8   : > { %v6918_v48 = vpop.eup %6917  ;;  %6937 = vrcp.f32 %v3254_v45  ;;  %v3263_v60 = vadd.f32 1.0, %v6916_v26  ;;  %v5851_v45 = vmul.f32 -1.442695, %v9477_v18  ;;  %v9490_v26 = vadd.f32 %v9040_v43, %v8551_v61 }
 0x2b9   : > { %v6920_v24 = vpop.eup %6919  ;;  %6939 = vrcp.f32 %v3256_v32  ;;  %v3265_v58 = vadd.f32 1.0, %v6918_v48  ;;  %v12653_v48 = vld [vmem:[#allocation8_spill] sm:$0xff] }
 0x2ba   : > { %v6922_v8 = vpop.eup %6921  ;;  %6941 = vrcp.f32 %v3263_v60  ;;  %v3264_v30 = vadd.f32 1.0, %v6920_v24  ;;  %v9494_v60 = vadd.f32 %v12653_v48, %v8555_v5  ;;  %v12654_v24 = vld [vmem:[#allocation11_spill] sm:$0xff] }
 0x2bb   : > { %v6924_v7 = vpop.eup %6923  ;;  %6943 = vrcp.f32 %v3265_v58  ;;  %v3266_v39 = vadd.f32 1.0, %v6922_v8  ;;  %v9498_v28 = vadd.f32 %v12654_v24, %v8544_v59 }
 0x2bc   : > { %v6926_v13 = vpop.eup %6925  ;;  %6945 = vrcp.f32 %v3264_v30  ;;  %v3273_v49 = vadd.f32 1.0, %v6924_v7  ;;  %v5858_v30 = vmul.f32 -1.442695, %v9481_v51  ;;  %v12655_v7 = vld [vmem:[#allocation44_spill] sm:$0xff] }
 0x2bd   : > { %v6928_v31 = vpop.eup %6927  ;;  %6947 = vrcp.f32 %v3266_v39  ;;  %v3275_v29 = vadd.f32 1.0, %v6926_v13  ;;  %v9503_v43 = vadd.f32 %v12655_v7, %v8548_v27  ;;  %v9515_v7 = vpop.f32.mrb[110].mxu0 }
 0x2be   : > { %v6930_v46 = vpop.eup %6929  ;;  %6949 = vrcp.f32 %v3273_v49  ;;  %v3274_v16 = vadd.f32 1.0, %v6928_v31  ;;  %v5860_v49 = vmul.f32 -1.442695, %v9485_v41  ;;  %v12656_v31 = vld [vmem:[#allocation45_spill] sm:$0xff]  ;;  %12658 = vst [vmem:[#allocation42_spill] sm:$0xff] %v9515_v7  ;;  %v9528_v7 = vpop.f32.mrb[111].mxu0 }
 0x2bf   : > { %v6932_v32 = vpop.eup %6931  ;;  %6951 = vrcp.f32 %v3275_v29  ;;  %v3276_v35 = vadd.f32 1.0, %v6930_v46  ;;  %v9508_v29 = vadd.f32 %v12656_v31, %v8551_v61  ;;  %v5868_v31 = vmul.f32 -1.442695, %v9498_v28  ;;  %12661 = vst [vmem:[#allocation19_spill] sm:$0xff] %v9528_v7 }
 0x2c0   : > { %v6934_v58 = vpop.eup %6933  ;;  %6953 = vrcp.f32 %v3274_v16  ;;  %v3283_v8 = vadd.f32 1.0, %v6932_v32  ;;  %v5859_v16 = vmul.f32 -1.442695, %v9490_v26  ;;  %v12657_v32 = vld [vmem:[#allocation46_spill] sm:$0xff] }
 0x2c1   : > { %v6936_v39 = vpop.eup %6935  ;;  %6955 = vrcp.f32 %v3276_v35  ;;  %v3285_v13 = vadd.f32 1.0, %v6934_v58  ;;  %v9513_v24 = vadd.f32 %v12657_v32, %v8555_v5  ;;  %v5861_v58 = vmul.f32 -1.442695, %v9494_v60 }
 0x2c2   : > { %v6938_v46 = vpop.eup %6937  ;;  %6957 = vrcp.f32 %v3283_v8  ;;  %v3284_v48 = vadd.f32 1.0, %v6936_v39  ;;  %v5870_v39 = vmul.f32 -1.442695, %v9503_v43  ;;  %v9524_v32 = vadd.f32 %v12659_v55, %v8544_v59 }
 0x2c3   : > { %v6940_v36 = vpop.eup %6939  ;;  %v4214_v35 = vmul.f32 %v6938_v46, %v9355_v47  ;;  %6959 = vrcp.f32 %v3285_v13  ;;  %v5869_v19 = vmul.f32 -1.442695, %v9508_v29  ;;  %v5871_v55 = vmul.f32 -1.442695, %v9513_v24 }
 0x2c4   : > { %v6942_v15 = vpop.eup %6941  ;;  %v4216_v8 = vmul.f32 %v6940_v36, %v9360_v37  ;;  %6961 = vrcp.f32 %v3284_v48 }
 0x2c5   : > { %v6944_v47 = vpop.eup %6943  ;;  %v4400_v13 = vadd.f32 %v9455_v25, %v4214_v35  ;;  %v4223_v46 = vmul.f32 %v6942_v15, %v9364_v44  ;;  %6963 = vpow2.f32 %v5851_v45  ;;  %v12662_v25 = vld [vmem:[#allocation47_spill] sm:$0xff] }
 0x2c6   : > { %v6946_v37 = vpop.eup %6945  ;;  %v4474_v36 = vadd.f32 %v9458_v53, %v4216_v8  ;;  %v4225_v48 = vmul.f32 %v6944_v47, %v9369_v23  ;;  %6965 = vpow2.f32 %v5858_v30  ;;  %v9540_v44 = vadd.f32 %v12662_v25, %v8548_v27  ;;  %v12663_v23 = vld [vmem:[#allocation48_spill] sm:$0xff] }
 0x2c7   : > { %v6948_v63 = vpop.eup %6947  ;;  %v4364_v2 = vadd.f32 %v9465_v0, %v4223_v46  ;;  %v4224_v7 = vmul.f32 %v6946_v37, %v9373_v20  ;;  %6967 = vpow2.f32 %v5860_v49  ;;  %v9546_v30 = vadd.f32 %v12663_v23, %v8551_v61  ;;  %v12664_v20 = vld [vmem:[#allocation49_spill] sm:$0xff] }
 0x2c8   : > { %v6950_v15 = vpop.eup %6949  ;;  %v4438_v45 = vadd.f32 %v9471_v62, %v4225_v48  ;;  %v4226_v53 = vmul.f32 %v6948_v63, %v9377_v57  ;;  %6969 = vpow2.f32 %v5859_v16  ;;  %v9551_v49 = vadd.f32 %v12664_v20, %v8555_v5  ;;  %v9555_v63 = vpop.f32.mrb[80].mxu1 }
 0x2c9   : > { %v6952_v35 = vpop.eup %6951  ;;  %v4401_v8 = vadd.f32 %v4400_v13, %v4224_v7  ;;  %v4233_v0 = vmul.f32 %v6950_v15, %v9381_v22  ;;  %6971 = vpow2.f32 %v5861_v58  ;;  %v5878_v57 = vmul.f32 -1.442695, %v9524_v32  ;;  %12665 = vst [vmem:[#allocation18_spill] sm:$0xff] %v9555_v63  ;;  %v9557_v16 = vpop.f32.mrb[112].mxu0 }
 0x2ca   : > { %v6954_v47 = vpop.eup %6953  ;;  %v4475_v46 = vadd.f32 %v4474_v36, %v4226_v53  ;;  %v4235_v62 = vmul.f32 %v6952_v35, %v9385_v11  ;;  %6973 = vpow2.f32 %v5868_v31  ;;  %12666 = vst [vmem:[#allocation8_spill] sm:$0xff] %v9557_v16  ;;  %v5880_v58 = vmul.f32 -1.442695, %v9540_v44  ;;  %v9561_v13 = vpop.f32.mrb[81].mxu1 }
 0x2cb   : > { %v6956_v37 = vpop.eup %6955  ;;  %v4365_v7 = vadd.f32 %v4364_v2, %v4233_v0  ;;  %v4234_v22 = vmul.f32 %v6954_v47, %v9394_v10  ;;  %6975 = vpow2.f32 %v5870_v39  ;;  %12667 = vst [vmem:[#allocation11_spill] sm:$0xff] %v9561_v13  ;;  %v9563_v48 = vpop.f32.mrb[113].mxu0  ;;  %v5879_v25 = vmul.f32 -1.442695, %v9546_v30 }
 0x2cc   : > { %12668 = vst [vmem:[#allocation44_spill] sm:$0xff] %v9563_v48  ;;  %v6958_v36 = vpop.eup %6957  ;;  %v4439_v11 = vadd.f32 %v4438_v45, %v4235_v62  ;;  %v4236_v31 = vmul.f32 %v6956_v37, %v9407_v54  ;;  %6977 = vpow2.f32 %v5869_v19  ;;  %v9567_v15 = vpop.f32.mrb[82].mxu1  ;;  %v5881_v23 = vmul.f32 -1.442695, %v9551_v49 }
 0x2cd   : > { %12669 = vst [vmem:[#allocation45_spill] sm:$0xff] %v9567_v15  ;;  %v9569_v53 = vpop.f32.mrb[114].mxu0  ;;  %v6960_v2 = vpop.eup %6959  ;;  %v4402_v10 = vadd.f32 %v4401_v8, %v4234_v22  ;;  %v4243_v39 = vmul.f32 %v6958_v36, %v9416_v4  ;;  %6979 = vpow2.f32 %v5871_v55 }
 0x2ce   : > { %12670 = vst [vmem:[#allocation46_spill] sm:$0xff] %v9569_v53  ;;  %v9573_v35 = vpop.f32.mrb[83].mxu1  ;;  %v9575_v0 = vpop.f32.mrb[115].mxu0  ;;  %v9577_v54 = vadd.f32 %v4475_v46, %v4236_v31  ;;  %v4245_v19 = vmul.f32 %v6960_v2, %v9426_v52  ;;  %6981 = vpow2.f32 %v5878_v57 }
 0x2cf   : > { %12671 = vst [vmem:[#allocation27_spill] sm:$0xff] %v9573_v35  ;;  %12672 = vst [vmem:[#allocation47_spill] sm:$0xff] %v9575_v0  ;;  %v6962_v45 = vpop.eup %6961  ;;  %v9580_v47 = vadd.f32 %v4365_v7, %v4243_v39  ;;  %6983 = vpow2.f32 %v5880_v58  ;;  %v9587_v57 = vpop.f32.mrb[84].mxu1  ;;  %v12675_v58 = vld [vmem:[#allocation28_spill] sm:$0xff] }
 0x2d0   : > { %v6964_v20 = vpop.eup %6963  ;;  %v4244_v8 = vmul.f32 %v6962_v45, %v9435_v34  ;;  %v9583_v55 = vadd.f32 %v4439_v11, %v4245_v19  ;;  %6985 = vpow2.f32 %v5879_v25  ;;  %12673 = vst [vmem:[#allocation48_spill] sm:$0xff] %v9587_v57  ;;  %v9589_v7 = vpop.f32.mrb[116].mxu0  ;;  %v9593_v11 = vadd.f32 %v12675_v58, %v8544_v59 }
 0x2d1   : > { %v6966_v4 = vpop.eup %6965  ;;  %v3286_v62 = vadd.f32 1.0, %v6964_v20  ;;  %6987 = vpow2.f32 %v5881_v23  ;;  %12674 = vst [vmem:[#allocation49_spill] sm:$0xff] %v9589_v7  ;;  %v9634_v35 = vpop.f32.mrb[85].mxu1 }
 0x2d2   : > { %v6968_v37 = vpop.eup %6967  ;;  %v9585_v22 = vadd.f32 %v4402_v10, %v4244_v8  ;;  %v3293_v36 = vadd.f32 1.0, %v6966_v4  ;;  %v5888_v8 = vmul.f32 -1.442695, %v9593_v11  ;;  %v12676_v4 = vld [vmem:[#allocation29_spill] sm:$0xff]  ;;  %12683 = vst [vmem:[#allocation28_spill] sm:$0xff] %v9634_v35  ;;  %v9636_v53 = vpop.f32.mrb[117].mxu0 }
 0x2d3   : > { %v6970_v46 = vpop.eup %6969  ;;  %6989 = vrcp.f32 %v3286_v62  ;;  %v3295_v52 = vadd.f32 1.0, %v6968_v37  ;;  %v9598_v62 = vadd.f32 %v12676_v4, %v8548_v27  ;;  %v12681_v4 = vld [vmem:[#allocation51_spill] sm:$0xff]  ;;  %12684 = vst [vmem:[#allocation29_spill] sm:$0xff] %v9636_v53  ;;  %v9644_v13 = vpop.f32.mrb[86].mxu1 }
 0x2d4   : > { %v6972_v31 = vpop.eup %6971  ;;  %6991 = vrcp.f32 %v3293_v36  ;;  %v3294_v34 = vadd.f32 1.0, %v6970_v46  ;;  %v12677_v46 = vld [vmem:[#allocation10_spill] sm:$0xff]  ;;  %v9646_v35 = vpop.f32.mrb[118].mxu0 }
 0x2d5   : > { %v6974_v25 = vpop.eup %6973  ;;  %6993 = vrcp.f32 %v3295_v52  ;;  %v3296_v2 = vadd.f32 1.0, %v6972_v31  ;;  %v9602_v52 = vadd.f32 %v12677_v46, %v8551_v61  ;;  %v12678_v31 = vld [vmem:[#allocation30_spill] sm:$0xff]  ;;  %v9618_v46 = vadd.f32 %v12681_v4, %v8551_v61  ;;  %12685 = vst [vmem:[#allocation10_spill] sm:$0xff] %v9644_v13 }
 0x2d6   : > { %v6976_v10 = vpop.eup %6975  ;;  %6995 = vrcp.f32 %v3294_v34  ;;  %v3303_v39 = vadd.f32 1.0, %v6974_v25  ;;  %v9606_v34 = vadd.f32 %v12678_v31, %v8555_v5  ;;  %v12682_v31 = vld [vmem:[#allocation52_spill] sm:$0xff]  ;;  %12686 = vst [vmem:[#allocation30_spill] sm:$0xff] %v9646_v35 }
 0x2d7   : > { %v6978_v23 = vpop.eup %6977  ;;  %6997 = vrcp.f32 %v3296_v2  ;;  %v3305_v45 = vadd.f32 1.0, %v6976_v10  ;;  %v12679_v2 = vld [vmem:[#allocation31_spill] sm:$0xff]  ;;  %v9622_v7 = vadd.f32 %v12682_v31, %v8555_v5 }
 0x2d8   : > { %v6980_v19 = vpop.eup %6979  ;;  %6999 = vrcp.f32 %v3303_v39  ;;  %v3304_v20 = vadd.f32 1.0, %v6978_v23  ;;  %v9610_v10 = vadd.f32 %v12679_v2, %v8544_v59  ;;  %v12680_v39 = vld [vmem:[#allocation50_spill] sm:$0xff]  ;;  %v5890_v2 = vmul.f32 -1.442695, %v9598_v62 }
 0x2d9   : > { %v6982_v37 = vpop.eup %6981  ;;  %7001 = vrcp.f32 %v3305_v45  ;;  %v3306_v36 = vadd.f32 1.0, %v6980_v19  ;;  %v9614_v23 = vadd.f32 %v12680_v39, %v8548_v27  ;;  %v9627_v39 = vadd.f32 %v9162_v50, %v8544_v59 }
 0x2da   : > { %v6984_v58 = vpop.eup %6983  ;;  %7003 = vrcp.f32 %v3304_v20  ;;  %v3313_v25 = vadd.f32 1.0, %v6982_v37  ;;  %v5891_v4 = vmul.f32 -1.442695, %v9606_v34  ;;  %v5901_v15 = vmul.f32 -1.442695, %v9622_v7 }
 0x2db   : > { %v6986_v45 = vpop.eup %6985  ;;  %7005 = vrcp.f32 %v3306_v36  ;;  %v3315_v19 = vadd.f32 1.0, %v6984_v58  ;;  %v5889_v58 = vmul.f32 -1.442695, %v9602_v52 }
 0x2dc   : > { %v6988_v20 = vpop.eup %6987  ;;  %7007 = vrcp.f32 %v3313_v25  ;;  %v3314_v37 = vadd.f32 1.0, %v6986_v45  ;;  %v5898_v25 = vmul.f32 -1.442695, %v9610_v10  ;;  %v5900_v45 = vmul.f32 -1.442695, %v9614_v23 }
 0x2dd   : > { %v6990_v57 = vpop.eup %6989  ;;  %7009 = vrcp.f32 %v3315_v19  ;;  %v3316_v36 = vadd.f32 1.0, %v6988_v20  ;;  %v5899_v20 = vmul.f32 -1.442695, %v9618_v46 }
 0x2de   : > { %v6992_v0 = vpop.eup %6991  ;;  %v4246_v31 = vmul.f32 %v6990_v57, %v9477_v18  ;;  %7011 = vrcp.f32 %v3314_v37  ;;  %v5908_v37 = vmul.f32 -1.442695, %v9627_v39 }
 0x2df   : > { %v6994_v50 = vpop.eup %6993  ;;  %v4253_v19 = vmul.f32 %v6992_v0, %v9481_v51  ;;  %7013 = vrcp.f32 %v3316_v36  ;;  %v9652_v36 = vadd.f32 %v9164_v17, %v8548_v27 }
 0x2e0   : > { %v6996_v48 = vpop.eup %6995  ;;  %v4477_v18 = vadd.f32 %v9577_v54, %v4246_v31  ;;  %v4255_v57 = vmul.f32 %v6994_v50, %v9485_v41  ;;  %7015 = vpow2.f32 %v5888_v8  ;;  %v9658_v31 = vadd.f32 %v9171_v40, %v8551_v61  ;;  %v9660_v50 = vpop.f32.mrb[87].mxu1  ;;  %v12689_v40 = vld [vmem:[#allocation13_spill] sm:$0xff] }
 0x2e1   : > { %v6998_v53 = vpop.eup %6997  ;;  %v4367_v51 = vadd.f32 %v9580_v47, %v4253_v19  ;;  %v4254_v0 = vmul.f32 %v6996_v48, %v9490_v26  ;;  %7017 = vpow2.f32 %v5890_v2  ;;  %12687 = vst [vmem:[#allocation31_spill] sm:$0xff] %v9660_v50  ;;  %v9662_v47 = vpop.f32.mrb[119].mxu0 }
 0x2e2   : > { %v7000_v54 = vpop.eup %6999  ;;  %v4441_v41 = vadd.f32 %v9583_v55, %v4255_v57  ;;  %v4256_v8 = vmul.f32 %v6998_v53, %v9494_v60  ;;  %7019 = vpow2.f32 %v5889_v58  ;;  %12688 = vst [vmem:[#allocation50_spill] sm:$0xff] %v9662_v47  ;;  %v9668_v55 = vadd.f32 %v9173_v3, %v8555_v5 }
 0x2e3   : > { %v7002_v26 = vpop.eup %7001  ;;  %v4404_v48 = vadd.f32 %v9585_v22, %v4254_v0  ;;  %v4263_v17 = vmul.f32 %v7000_v54, %v9498_v28  ;;  %7021 = vpow2.f32 %v5891_v4  ;;  %v9673_v58 = vadd.f32 %v12689_v40, %v8544_v59 }
 0x2e4   : > { %v7004_v60 = vpop.eup %7003  ;;  %v4478_v53 = vadd.f32 %v4477_v18, %v4256_v8  ;;  %v4265_v2 = vmul.f32 %v7002_v26, %v9503_v43  ;;  %7023 = vpow2.f32 %v5898_v25  ;;  %v5910_v28 = vmul.f32 -1.442695, %v9652_v36 }
 0x2e5   : > { %v7006_v19 = vpop.eup %7005  ;;  %v4368_v57 = vadd.f32 %v4367_v51, %v4263_v17  ;;  %v4264_v22 = vmul.f32 %v7004_v60, %v9508_v29  ;;  %7025 = vpow2.f32 %v5900_v45  ;;  %v5909_v18 = vmul.f32 -1.442695, %v9658_v31 }
 0x2e6   : > { %v7008_v4 = vpop.eup %7007  ;;  %v4442_v0 = vadd.f32 %v4441_v41, %v4265_v2  ;;  %v4266_v3 = vmul.f32 %v7006_v19, %v9513_v24  ;;  %7027 = vpow2.f32 %v5899_v20  ;;  %v5911_v8 = vmul.f32 -1.442695, %v9668_v55  ;;  %v9683_v41 = vpop.f32.mrb[88].mxu1 }
 0x2e7   : > { %v7010_v43 = vpop.eup %7009  ;;  %v4405_v25 = vadd.f32 %v4404_v48, %v4264_v22  ;;  %v4273_v54 = vmul.f32 %v7008_v4, %v9524_v32  ;;  %7029 = vpow2.f32 %v5901_v15  ;;  %v5918_v45 = vmul.f32 -1.442695, %v9673_v58  ;;  %12690 = vst [vmem:[#allocation51_spill] sm:$0xff] %v9683_v41  ;;  %v9685_v24 = vpop.f32.mrb[120].mxu0 }
 0x2e8   : > { %v7012_v51 = vpop.eup %7011  ;;  %v4479_v26 = vadd.f32 %v4478_v53, %v4266_v3  ;;  %v4275_v29 = vmul.f32 %v7010_v43, %v9540_v44  ;;  %7031 = vpow2.f32 %v5908_v37  ;;  %12691 = vst [vmem:[#allocation52_spill] sm:$0xff] %v9685_v24  ;;  %v9690_v32 = vpop.f32.mrb[89].mxu1  ;;  %v12694_v37 = vld [vmem:[#allocation32_spill] sm:$0xff]  ;;  %v12699_v43 = vld [vmem:[#allocation53_spill] sm:$0xff] }
 0x2e9   : > { %v7014_v20 = vpop.eup %7013  ;;  %v9687_v17 = vadd.f32 %v4368_v57, %v4273_v54  ;;  %v4274_v48 = vmul.f32 %v7012_v51, %v9546_v30  ;;  %7033 = vpow2.f32 %v5910_v28  ;;  %12692 = vst [vmem:[#allocation13_spill] sm:$0xff] %v9690_v32  ;;  %v9692_v15 = vpop.f32.mrb[121].mxu0  ;;  %v9699_v2 = vadd.f32 %v12694_v37, %v8548_v27  ;;  %v12697_v28 = vld [vmem:[#allocation33_spill] sm:$0xff]  ;;  %v12706_v32 = vld [vmem:[#allocation20_spill] sm:$0xff] }
 0x2ea   : > { %12693 = vst [vmem:[#allocation62_spill] sm:$0xff] %v9692_v15  ;;  %v7016_v60 = vpop.eup %7015  ;;  %v9694_v53 = vadd.f32 %v4442_v0, %v4275_v29  ;;  %v4276_v44 = vmul.f32 %v7014_v20, %v9551_v49  ;;  %7035 = vpow2.f32 %v5909_v18  ;;  %v9701_v40 = vpop.f32.mrb[90].mxu1  ;;  %v9709_v4 = vadd.f32 %v12697_v28, %v8551_v61  ;;  %v12701_v20 = vld [vmem:[#allocation54_spill] sm:$0xff] }
 0x2eb   : > { %12695 = vst [vmem:[#allocation32_spill] sm:$0xff] %v9701_v40  ;;  %v9703_v19 = vpop.f32.mrb[122].mxu0  ;;  %v7018_v30 = vpop.eup %7017  ;;  %v9705_v57 = vadd.f32 %v4405_v25, %v4274_v48  ;;  %v3323_v22 = vadd.f32 1.0, %v7016_v60  ;;  %7037 = vpow2.f32 %v5911_v8  ;;  %v9717_v54 = vadd.f32 %v12699_v43, %v8555_v5  ;;  %v12700_v8 = vld [vmem:[#allocation12_spill] sm:$0xff] }
 0x2ec   : > { %12696 = vst [vmem:[#allocation63_spill] sm:$0xff] %v9703_v19  ;;  %v9711_v0 = vpop.f32.mrb[91].mxu1  ;;  %v7020_v49 = vpop.eup %7019  ;;  %v9713_v3 = vadd.f32 %v4479_v26, %v4276_v44  ;;  %v3325_v18 = vadd.f32 1.0, %v7018_v30  ;;  %7039 = vpow2.f32 %v5918_v45  ;;  %v9721_v29 = vadd.f32 %v12700_v8, %v8544_v59  ;;  %v12702_v45 = vld [vmem:[#allocation55_spill] sm:$0xff] }
 0x2ed   : > { %12698 = vst [vmem:[#allocation33_spill] sm:$0xff] %v9711_v0  ;;  %v7022_v51 = vpop.eup %7021  ;;  %7041 = vrcp.f32 %v3323_v22  ;;  %v3324_v25 = vadd.f32 1.0, %v7020_v49  ;;  %v9725_v48 = vadd.f32 %v12701_v20, %v8548_v27  ;;  %v9729_v44 = vadd.f32 %v12702_v45, %v8551_v61  ;;  %v12703_v20 = vld [vmem:[#allocation56_spill] sm:$0xff] }
 0x2ee   : > { %v7024_v60 = vpop.eup %7023  ;;  %7043 = vrcp.f32 %v3325_v18  ;;  %v3326_v26 = vadd.f32 1.0, %v7022_v51  ;;  %v5920_v22 = vmul.f32 -1.442695, %v9699_v2  ;;  %v5919_v28 = vmul.f32 -1.442695, %v9709_v4 }
 0x2ef   : > { %v7026_v37 = vpop.eup %7025  ;;  %7045 = vrcp.f32 %v3324_v25  ;;  %v3333_v30 = vadd.f32 1.0, %v7024_v60  ;;  %v5921_v8 = vmul.f32 -1.442695, %v9717_v54  ;;  %v9736_v18 = vadd.f32 %v12703_v20, %v8555_v5 }
 0x2f0   : > { %v7028_v49 = vpop.eup %7027  ;;  %7047 = vrcp.f32 %v3326_v26  ;;  %v3335_v43 = vadd.f32 1.0, %v7026_v37  ;;  %v5928_v0 = vmul.f32 -1.442695, %v9721_v29  ;;  %v9740_v25 = vmul.f32 -1.442695, %v9725_v48  ;;  %v12704_v37 = vld [vmem:[#allocation57_spill] sm:$0xff] }
 0x2f1   : > { %v7030_v51 = vpop.eup %7029  ;;  %7049 = vrcp.f32 %v3333_v30  ;;  %v3334_v45 = vadd.f32 1.0, %v7028_v49  ;;  %v9743_v26 = vmul.f32 -1.442695, %v9729_v44  ;;  %v9747_v40 = vadd.f32 %v12704_v37, %v8544_v59  ;;  %v12705_v30 = vld [vmem:[#allocation58_spill] sm:$0xff] }
 0x2f2   : > { %v7032_v60 = vpop.eup %7031  ;;  %7051 = vrcp.f32 %v3335_v43  ;;  %v3336_v19 = vadd.f32 1.0, %v7030_v51  ;;  %v9751_v49 = vadd.f32 %v12705_v30, %v8548_v27  ;;  %v9755_v51 = vmul.f32 -1.442695, %v9736_v18 }
 0x2f3   : > { %v7034_v20 = vpop.eup %7033  ;;  %7053 = vrcp.f32 %v3334_v45  ;;  %v3343_v15 = vadd.f32 1.0, %v7032_v60  ;;  %v9761_v30 = vmul.f32 -1.442695, %v9747_v40  ;;  %v9777_v60 = vpop.f32.mrb[123].mxu0  ;;  %v12711_v13 = vsub.s32 6, %v12706_v32 }
 0x2f4   : > { %v7036_v41 = vpop.eup %7035  ;;  %7055 = vrcp.f32 %v3336_v19  ;;  %v3345_v43 = vadd.f32 1.0, %v7034_v20  ;;  %v12707_v19 = vld [vmem:[#allocation59_spill] sm:$0xff]  ;;  %12709 = vst [vmem:[#allocation53_spill] sm:$0xff] %v9777_v60 }
 0x2f5   : > { %v7038_v50 = vpop.eup %7037  ;;  %7057 = vrcp.f32 %v3343_v15  ;;  %v3344_v59 = vadd.f32 1.0, %v7036_v41  ;;  %v9765_v20 = vadd.f32 %v12707_v19, %v8551_v61  ;;  %v9768_v15 = vmul.f32 -1.442695, %v9751_v49  ;;  %v7883_v41 = vld [vmem:[%s12443_s4] sm:$0xff] }
 0x2f6   : > { %v7040_v37 = vpop.eup %7039  ;;  %7059 = vrcp.f32 %v3345_v43  ;;  %v3346_v27 = vadd.f32 1.0, %v7038_v50  ;;  %v12708_v43 = vsub.s32 4, %v12706_v32  ;;  %v9787_v16 = vrot.slane %v7883_v41, %v12711_v13 }
 0x2f7   : > { %v7042_v24 = vpop.eup %7041  ;;  %7061 = vrcp.f32 %v3344_v59  ;;  %v3353_v47 = vadd.f32 1.0, %v7040_v37  ;;  %v12710_v59 = vsub.s32 5, %v12706_v32  ;;  %v7965_v13 = vmov 1966171168  }
 0x2f8   : > { %v9775_v50 = vrot.slane %v7883_v41, %v12708_v43  ;;  %v7044_v45 = vpop.eup %7043  ;;  %v4283_v61 = vmul.f32 %v7042_v24, %v9593_v11  ;;  %7063 = vrcp.f32 %v3346_v27  ;;  %v12712_v43 = vsub.s32 7, %v12706_v32 }
 0x2f9   : > { %v9782_v37 = vrot.slane %v7883_v41, %v12710_v59  ;;  %v7046_v19 = vpop.eup %7045  ;;  %v4285_v35 = vmul.f32 %v7044_v45, %v9598_v62  ;;  %7065 = vrcp.f32 %v3353_v47  ;;  %v5939_v27 = vmul.f32 -1.442695, %v9765_v20 }
 0x2fa   : > { %v9791_v63 = vrot.slane %v7883_v41, %v12712_v43  ;;  %v7048_v60 = vpop.eup %7047  ;;  %v4370_v11 = vadd.f32 %v9687_v17, %v4283_v61  ;;  %v4284_v24 = vmul.f32 %v7046_v19, %v9602_v52  ;;  %7067 = vpow2.f32 %v5920_v22  ;;  %v12713_v52 = vld [vmem:[#allocation60_spill] sm:$0xff] }
 0x2fb   : > { %v7050_v59 = vpop.eup %7049  ;;  %v4444_v62 = vadd.f32 %v9694_v53, %v4285_v35  ;;  %v4286_v47 = vmul.f32 %v7048_v60, %v9606_v34  ;;  %7069 = vpow2.f32 %v5919_v28  ;;  %v9798_v45 = vunpack.c.l.s4 %v7965_v13  ;;  %v12714_v34 = vld [vmem:[#allocation15_spill] sm:$0xff]  ;;  %v9812_v28 = vpop.f32.mrb[92].mxu1 }
 0x2fc   : > { %v7052_v42 = vpop.eup %7051  ;;  %v4407_v41 = vadd.f32 %v9705_v57, %v4284_v24  ;;  %v4293_v43 = vmul.f32 %v7050_v59, %v9610_v10  ;;  %7071 = vpow2.f32 %v5921_v8  ;;  %v9804_v17 = vadd.f32 %v12713_v52, %v8555_v5  ;;  %12715 = vst [vmem:[#allocation12_spill] sm:$0xff] %v9812_v28  ;;  %v9814_v57 = vpop.f32.mrb[124].mxu0  ;;  %v12717_v5 = vld [vmem:[#allocation61_spill] sm:$0xff] }
 0x2fd   : > { %v7054_v22 = vpop.eup %7053  ;;  %v4481_v61 = vadd.f32 %v9713_v3, %v4286_v47  ;;  %v4295_v35 = vmul.f32 %v7052_v42, %v9614_v23  ;;  %7073 = vpow2.f32 %v5928_v0  ;;  %v9810_v53 = vadd.f32 %v12714_v34, %v9775_v50  ;;  %12716 = vst [vmem:[#allocation54_spill] sm:$0xff] %v9814_v57  ;;  %v9822_v42 = vpop.f32.mrb[93].mxu1 }
 0x2fe   : > { %v7056_v10 = vpop.eup %7055  ;;  %v4371_v8 = vadd.f32 %v4370_v11, %v4293_v43  ;;  %v4294_v60 = vmul.f32 %v7054_v22, %v9618_v46  ;;  %7075 = vpow2.f32 %v9740_v25  ;;  %v9820_v3 = vadd.f32 %v12717_v5, %v9787_v16  ;;  %12718 = vst [vmem:[#allocation55_spill] sm:$0xff] %v9822_v42  ;;  %v9824_v23 = vpop.f32.mrb[125].mxu0 }
 0x2ff   : > { %12719 = vst [vmem:[#allocation56_spill] sm:$0xff] %v9824_v23  ;;  %v7058_v0 = vpop.eup %7057  ;;  %v4445_v19 = vadd.f32 %v4444_v62, %v4295_v35  ;;  %v4296_v24 = vmul.f32 %v7056_v10, %v9622_v7  ;;  %7077 = vpow2.f32 %v9743_v26  ;;  %v4731_v11 = vunpack.c.0.s8 %v9798_v45  ;;  %v9829_v59 = vpop.f32.mrb[94].mxu1 }
 0x300   : > { %12720 = vst [vmem:[#allocation57_spill] sm:$0xff] %v9829_v59  ;;  %v9831_v46 = vpop.f32.mrb[126].mxu0  ;;  %v7060_v25 = vpop.eup %7059  ;;  %v4408_v47 = vadd.f32 %v4407_v41, %v4294_v60  ;;  %v4303_v13 = vmul.f32 %v7058_v0, %v9627_v39  ;;  %7079 = vpow2.f32 %v9755_v51  ;;  %v5941_v43 = vmul.f32 -1.442695, %v9804_v17 }
 0x301   : > { %12721 = vst [vmem:[#allocation58_spill] sm:$0xff] %v9831_v46  ;;  %v9836_v52 = vpop.f32.mrb[95].mxu1  ;;  %v9838_v62 = vpop.f32.mrb[127].mxu0  ;;  %v4482_v26 = vadd.f32 %v4481_v61, %v4296_v24  ;;  %v4305_v45 = vmul.f32 %v7060_v25, %v9652_v36  ;;  %7081 = vpow2.f32 %v9761_v30  ;;  %v5632_v22 = vmul.f32 -1.442695, %v9810_v53  ;;  %v12724_v36 = vld [vmem:[#allocation23_spill] sm:$0xff] }
 0x302   : > { %12722 = vst [vmem:[#allocation59_spill] sm:$0xff] %v9836_v52  ;;  %12723 = vst [vmem:[#allocation60_spill] sm:$0xff] %v9838_v62  ;;  %v7062_v7 = vpop.eup %7061  ;;  %v4372_v41 = vadd.f32 %v4371_v8, %v4303_v13  ;;  %7083 = vpow2.f32 %v9768_v15  ;;  %v5634_v51 = vmul.f32 -1.442695, %v9820_v3  ;;  %v9851_v61 = vadd.f32 %v12724_v36, %v9782_v37  ;;  %v9866_v25 = vpop.f32.mrb[96].mxu1 }
 0x303   : > { %v7064_v35 = vpop.eup %7063  ;;  %v4304_v39 = vmul.f32 %v7062_v7, %v9658_v31  ;;  %v9846_v10 = vadd.f32 %v4445_v19, %v4305_v45  ;;  %7085 = vpow2.f32 %v5939_v27  ;;  %v12725_v31 = vld [vmem:[#allocation7_spill] sm:$0xff]  ;;  %12727 = vst [vmem:[#allocation15_spill] sm:$0xff] %v9866_v25  ;;  %v12729_v7 = vld [vmem:[#allocation25_spill] sm:$0xff] }
 0x304   : > { %v7066_v34 = vpop.eup %7065  ;;  %v4306_v60 = vmul.f32 %v7064_v35, %v9668_v55  ;;  %7087 = vpow2.f32 %v5941_v43  ;;  %v9858_v15 = vadd.f32 %v12725_v31, %v9791_v63  ;;  %v12726_v55 = vld [vmem:[#allocation24_spill] sm:$0xff]  ;;  %v9874_v45 = vadd.f32 %v12729_v7, %v9787_v16 }
 0x305   : > { %v7068_v30 = vpop.eup %7067  ;;  %v9853_v5 = vadd.f32 %v4408_v47, %v4304_v39  ;;  %v4313_v8 = vmul.f32 %v7066_v34, %v9673_v58  ;;  %7089 = vpow2.f32 %v5632_v22  ;;  %v9864_v27 = vadd.f32 %v12726_v55, %v9775_v50  ;;  %v9868_v47 = vpop.f32.mrb[128].mxu0 }
 0x306   : > { %v7070_v0 = vpop.eup %7069  ;;  %v9860_v19 = vadd.f32 %v4482_v26, %v4306_v60  ;;  %v3355_v24 = vadd.f32 1.0, %v7068_v30  ;;  %12728 = vst [vmem:[#allocation61_spill] sm:$0xff] %v9868_v47  ;;  %7091 = vpow2.f32 %v5634_v51  ;;  %v9876_v26 = vpop.f32.mrb[97].mxu1  ;;  %v9882_v34 = vadd.f32 %v9293_v14, %v9782_v37  ;;  %v12736_v47 = vld [vmem:[#allocation34_spill] sm:$0xff] }
 0x307   : > { %v7072_v13 = vpop.eup %7071  ;;  %v9870_v58 = vadd.f32 %v4372_v41, %v4313_v8  ;;  %v3354_v43 = vadd.f32 1.0, %v7070_v0  ;;  %12730 = vst [vmem:[#allocation23_spill] sm:$0xff] %v9876_v26  ;;  %v9878_v22 = vpop.f32.mrb[129].mxu0  ;;  %v12732_v41 = vld [vmem:[#allocation26_spill] sm:$0xff]  ;;  %v9889_v30 = vsub.s32 %v4731_v11, %v12706_v32  ;;  %v5633_v8 = vmul.f32 -1.442695, %v9851_v61 }
 0x308   : > { %12731 = vst [vmem:[#allocation7_spill] sm:$0xff] %v9878_v22  ;;  %v7074_v35 = vpop.eup %7073  ;;  %7093 = vrcp.f32 %v3355_v24  ;;  %v3356_v39 = vadd.f32 1.0, %v7072_v13  ;;  %v9886_v60 = vadd.f32 %v12732_v41, %v9791_v63  ;;  %v9893_v24 = vmul.f32 -1.442695, %v9858_v15  ;;  %v12734_v32 = vld [vmem:[#allocation14_spill] sm:$0xff]  ;;  %v9960_v57 = vpop.f32.mrb[98].mxu1 }
 0x309   : > { %v7076_v51 = vpop.eup %7075  ;;  %7095 = vrcp.f32 %v3354_v43  ;;  %v3363_v36 = vadd.f32 1.0, %v7074_v35  ;;  %12733 = vst [vmem:[#allocation24_spill] sm:$0xff] %v9889_v30  ;;  %v9896_v14 = vmul.f32 -1.442695, %v9864_v27  ;;  %v9899_v43 = vmul.f32 -1.442695, %v9874_v45 }
 0x30a   : > { %v7078_v31 = vpop.eup %7077  ;;  %7097 = vrcp.f32 %v3356_v39  ;;  %v3365_v0 = vadd.f32 1.0, %v7076_v51  ;;  %v9903_v11 = vadd.f32 %v9322_v6, %v9775_v50  ;;  %v9906_v39 = vmul.f32 -1.442695, %v9882_v34  ;;  %12742 = vst [vmem:[#allocation14_spill] sm:$0xff] %v9960_v57 }
 0x30b   : > { %v7080_v55 = vpop.eup %7079  ;;  %7099 = vrcp.f32 %v3363_v36  ;;  %v3364_v13 = vadd.f32 1.0, %v7078_v31  ;;  %v9909_v41 = vmul.f32 -1.442695, %v9886_v60  ;;  %v9913_v31 = vadd.f32 %v9324_v33, %v9787_v16 }
 0x30c   : > { %v7082_v7 = vpop.eup %7081  ;;  %7101 = vrcp.f32 %v3365_v0  ;;  %v3366_v35 = vadd.f32 1.0, %v7080_v55  ;;  %v9917_v6 = vadd.f32 %v12734_v32, %v9782_v37  ;;  %v12735_v55 = vld [vmem:[#allocation6_spill] sm:$0xff]  ;;  %v9925_v25 = vadd.f32 %v12736_v47, %v9775_v50  ;;  %v12738_v32 = vld [vmem:[#allocation35_spill] sm:$0xff]  ;;  %v12740_v47 = vld [vmem:[#allocation17_spill] sm:$0xff] }
 0x30d   : > { %v7084_v51 = vpop.eup %7083  ;;  %7103 = vrcp.f32 %v3364_v13  ;;  %v3373_v36 = vadd.f32 1.0, %v7082_v7  ;;  %v9921_v26 = vadd.f32 %v12735_v55, %v9791_v63  ;;  %v9928_v33 = vmul.f32 -1.442695, %v9903_v11  ;;  %v12739_v55 = vld [vmem:[#allocation36_spill] sm:$0xff] }
 0x30e   : > { %v7086_v22 = vpop.eup %7085  ;;  %7105 = vrcp.f32 %v3366_v35  ;;  %v3375_v0 = vadd.f32 1.0, %v7084_v51  ;;  %12737 = vst [vmem:[#allocation25_spill] sm:$0xff] %v9925_v25  ;;  %v9932_v62 = vadd.f32 %v12738_v32, %v9787_v16  ;;  %v9936_v52 = vadd.f32 %v12739_v55, %v9782_v37 }
 0x30f   : > { %v7088_v13 = vpop.eup %7087  ;;  %7107 = vrcp.f32 %v3373_v36  ;;  %v3374_v7 = vadd.f32 1.0, %v7086_v22  ;;  %v9940_v46 = vadd.f32 %v12740_v47, %v9791_v63  ;;  %v5654_v59 = vmul.f32 -1.442695, %v9913_v31 }
 0x310   : > { %v7090_v35 = vpop.eup %7089  ;;  %7109 = vrcp.f32 %v3375_v0  ;;  %v3376_v51 = vadd.f32 1.0, %v7088_v13  ;;  %v9944_v23 = vmul.f32 -1.442695, %v9917_v6  ;;  %v9947_v13 = vmul.f32 -1.442695, %v9921_v26 }
 0x311   : > { %12741 = vst [vmem:[#allocation26_spill] sm:$0xff] %v9940_v46  ;;  %v7092_v36 = vpop.eup %7091  ;;  %7111 = vrcp.f32 %v3374_v7  ;;  %v3067_v22 = vadd.f32 1.0, %v7090_v35  ;;  %v9950_v55 = vmul.f32 -1.442695, %v9925_v25  ;;  %v9954_v7 = vmul.f32 -1.442695, %v9932_v62 }
 0x312   : > { %v7094_v32 = vpop.eup %7093  ;;  %7113 = vrcp.f32 %v3376_v51  ;;  %v3069_v0 = vadd.f32 1.0, %v7092_v36  ;;  %v9958_v35 = vadd.f32 %v9418_v38, %v9775_v50  ;;  %v9962_v51 = vpop.f32.mrb[130].mxu0  ;;  %v9966_v25 = vmul.f32 -1.442695, %v9936_v52 }
 0x313   : > { %v7096_v42 = vpop.eup %7095  ;;  %v4315_v47 = vmul.f32 %v7094_v32, %v9699_v2  ;;  %7115 = vrcp.f32 %v3067_v22  ;;  %12743 = vst [vmem:[#allocation6_spill] sm:$0xff] %v9962_v51  ;;  %v9969_v2 = vmul.f32 -1.442695, %v9940_v46  ;;  %v9975_v57 = vadd.f32 %v9420_v56, %v9787_v16  ;;  %v9977_v51 = vpop.f32.mrb[99].mxu1 }
 0x314   : > { %v7098_v36 = vpop.eup %7097  ;;  %v4314_v28 = vmul.f32 %v7096_v42, %v9709_v4  ;;  %7117 = vrcp.f32 %v3069_v0  ;;  %v9979_v4 = vpop.f32.mrb[131].mxu0 }
 0x315   : > { %v7100_v22 = vpop.eup %7099  ;;  %v4447_v32 = vadd.f32 %v9846_v10, %v4315_v47  ;;  %v4316_v38 = vmul.f32 %v7098_v36, %v9717_v54  ;;  %7119 = vpow2.f32 %v5633_v8  ;;  %v9986_v10 = vadd.f32 %v9428_v1, %v9782_v37 }
 0x316   : > { %v7102_v42 = vpop.eup %7101  ;;  %v4410_v0 = vadd.f32 %v9853_v5, %v4314_v28  ;;  %v4323_v46 = vmul.f32 %v7100_v22, %v9721_v29  ;;  %7121 = vpow2.f32 %v9893_v24  ;;  %v9992_v47 = vmul.f32 -1.442695, %v9958_v35 }
 0x317   : > { %v7104_v54 = vpop.eup %7103  ;;  %v4484_v8 = vadd.f32 %v9860_v19, %v4316_v38  ;;  %v4325_v56 = vmul.f32 %v7102_v42, %v9725_v48  ;;  %7123 = vpow2.f32 %v9896_v14  ;;  %v9999_v1 = vadd.f32 %v9430_v21, %v9791_v63 }
 0x318   : > { %v7106_v36 = vpop.eup %7105  ;;  %v4374_v28 = vadd.f32 %v9870_v58, %v4323_v46  ;;  %v4324_v29 = vmul.f32 %v7104_v54, %v9729_v44  ;;  %7125 = vpow2.f32 %v9899_v43  ;;  %v10004_v24 = vmul.f32 -1.442695, %v9975_v57 }
 0x319   : > { %v7108_v5 = vpop.eup %7107  ;;  %v4448_v19 = vadd.f32 %v4447_v32, %v4325_v56  ;;  %v4326_v48 = vmul.f32 %v7106_v36, %v9736_v18  ;;  %7127 = vpow2.f32 %v9906_v39  ;;  %v10009_v44 = vmul.f32 -1.442695, %v9986_v10  ;;  %v10017_v39 = vpop.f32.mrb[100].mxu1 }
 0x31a   : > { %v7110_v14 = vpop.eup %7109  ;;  %v4411_v22 = vadd.f32 %v4410_v0, %v4324_v29  ;;  %v4333_v46 = vmul.f32 %v7108_v5, %v9747_v40  ;;  %7129 = vpow2.f32 %v9909_v41  ;;  %v10015_v18 = vadd.f32 %v9437_v9, %v9775_v50  ;;  %v10019_v32 = vpop.f32.mrb[132].mxu0  ;;  %v12749_v29 = vld [vmem:[#allocation16_spill] sm:$0xff] }
 0x31b   : > { %v7112_v21 = vpop.eup %7111  ;;  %v4485_v58 = vadd.f32 %v4484_v8, %v4326_v48  ;;  %v4335_v43 = vmul.f32 %v7110_v14, %v9751_v49  ;;  %7131 = vpow2.f32 %v9928_v33  ;;  %12744 = vst [vmem:[#allocation34_spill] sm:$0xff] %v10019_v32  ;;  %v10023_v42 = vmul.f32 -1.442695, %v9999_v1  ;;  %v10025_v0 = vpop.f32.mrb[101].mxu1  ;;  %v12752_v14 = vld [vmem:[#allocation37_spill] sm:$0xff] }
 0x31c   : > { %v7114_v40 = vpop.eup %7113  ;;  %v4375_v38 = vadd.f32 %v4374_v28, %v4333_v46  ;;  %v4334_v41 = vmul.f32 %v7112_v21, %v9765_v20  ;;  %7133 = vpow2.f32 %v5654_v59  ;;  %12745 = vst [vmem:[#allocation35_spill] sm:$0xff] %v10025_v0  ;;  %v10027_v49 = vpop.f32.mrb[133].mxu0  ;;  %v10035_v8 = vadd.f32 %v9439_v12, %v9787_v16 }
 0x31d   : > { %12746 = vst [vmem:[#allocation36_spill] sm:$0xff] %v10027_v49  ;;  %v10029_v33 = vpop.eup %7115  ;;  %v4449_v9 = vadd.f32 %v4448_v19, %v4335_v43  ;;  %v4336_v54 = vmul.f32 %v7114_v40, %v9804_v17  ;;  %7135 = vpow2.f32 %v9944_v23  ;;  %v10037_v20 = vpop.f32.mrb[102].mxu1  ;;  %v10046_v5 = vadd.f32 %v12749_v29, %v9782_v37 }
 0x31e   : > { %12747 = vst [vmem:[#allocation17_spill] sm:$0xff] %v10037_v20  ;;  %v10039_v59 = vpop.f32.mrb[134].mxu0  ;;  %v10041_v56 = vpop.eup %7117  ;;  %v4376_v36 = vrot.slane %v4375_v38, 4  ;;  %v4412_v28 = vadd.f32 %v4411_v22, %v4334_v41  ;;  %7137 = vpow2.f32 %v9947_v13  ;;  %v10055_v46 = vadd.f32 %v12752_v14, %v9791_v63 }
 0x31f   : > { %12748 = vst [vmem:[#allocation64_spill] sm:$0xff] %v10039_v59  ;;  %v10048_v17 = vpop.f32.mrb[103].mxu1  ;;  %v10050_v23 = vpop.f32.mrb[135].mxu0  ;;  %v4450_v19 = vrot.slane %v4449_v9, 4  ;;  %v4486_v48 = vadd.f32 %v4485_v58, %v4336_v54  ;;  %7139 = vpow2.f32 %v9950_v55 }
 0x320   : > { %12750 = vst [vmem:[#allocation16_spill] sm:$0xff] %v10048_v17  ;;  %12751 = vst [vmem:[#allocation65_spill] sm:$0xff] %v10050_v23  ;;  %v7120_v12 = vpop.eup %7119  ;;  %v4377_v21 = vadd.f32 %v4376_v36, %v4375_v38  ;;  %v4413_v13 = vrot.slane %v4412_v28, 4  ;;  %7141 = vpow2.f32 %v9954_v7  ;;  %v10059_v36 = vpop.f32.mrb[104].mxu1 }
 0x321   : > { %v7122_v22 = vpop.eup %7121  ;;  %v3068_v43 = vadd.f32 1.0, %v7120_v12  ;;  %v4451_v41 = vadd.f32 %v4450_v19, %v4449_v9  ;;  %v4487_v29 = vrot.slane %v4486_v48, 4  ;;  %7143 = vpow2.f32 %v9966_v25  ;;  %12753 = vst [vmem:[#allocation37_spill] sm:$0xff] %v10059_v36 }
 0x322   : > { %v7124_v40 = vpop.eup %7123  ;;  %v3070_v17 = vadd.f32 1.0, %v7122_v22  ;;  %v4378_v58 = vrot.slane %v4377_v21, 2  ;;  %v4414_v54 = vadd.f32 %v4413_v13, %v4412_v28 }
 0x323   : > { %v7126_v23 = vpop.eup %7125  ;;  %7145 = vrcp.f32 %v3068_v43  ;;  %v3077_v55 = vadd.f32 1.0, %v7124_v40  ;;  %v4452_v14 = vrot.slane %v4451_v41, 2  ;;  %v4488_v20 = vadd.f32 %v4487_v29, %v4486_v48 }
 0x324   : > { %v7128_v59 = vpop.eup %7127  ;;  %7147 = vrcp.f32 %v3070_v17  ;;  %v3079_v38 = vadd.f32 1.0, %v7126_v23  ;;  %v4379_v7 = vadd.f32 %v4378_v58, %v4377_v21  ;;  %v4415_v49 = vrot.slane %v4414_v54, 2 }
 0x325   : > { %v7130_v12 = vpop.eup %7129  ;;  %7149 = vrcp.f32 %v3077_v55  ;;  %v3078_v9 = vadd.f32 1.0, %v7128_v59  ;;  %v4453_v22 = vadd.f32 %v4452_v14, %v4451_v41  ;;  %v4489_v25 = vrot.slane %v4488_v20, 2 }
 0x326   : > { %v7132_v19 = vpop.eup %7131  ;;  %7151 = vrcp.f32 %v3079_v38  ;;  %v3080_v0 = vadd.f32 1.0, %v7130_v12  ;;  %v4380_v13 = vrot.slane %v4379_v7, 1  ;;  %v4416_v43 = vadd.f32 %v4415_v49, %v4414_v54 }
 0x327   : > { %v7134_v28 = vpop.eup %7133  ;;  %7153 = vrcp.f32 %v3078_v9  ;;  %v3087_v40 = vadd.f32 1.0, %v7132_v19  ;;  %v4454_v17 = vrot.slane %v4453_v22, 1  ;;  %v4490_v23 = vadd.f32 %v4489_v25, %v4488_v20 }
 0x328   : > { %v7136_v48 = vpop.eup %7135  ;;  %7155 = vrcp.f32 %v3080_v0  ;;  %v3089_v29 = vadd.f32 1.0, %v7134_v28  ;;  %v4381_v21 = vadd.f32 %v4380_v13, %v4379_v7  ;;  %v4417_v58 = vrot.slane %v4416_v43, 1 }
 0x329   : > { %v7138_v36 = vpop.eup %7137  ;;  %7157 = vrcp.f32 %v3087_v40  ;;  %v3088_v59 = vadd.f32 1.0, %v7136_v48  ;;  %v4455_v41 = vadd.f32 %v4454_v17, %v4453_v22  ;;  %v4491_v14 = vrot.slane %v4490_v23, 1  ;;  %v12754_v22 = vld [vmem:[#allocation38_spill] sm:$0xff] }
 0x32a   : > { %v7140_v55 = vpop.eup %7139  ;;  %7159 = vrcp.f32 %v3089_v29  ;;  %v3090_v38 = vadd.f32 1.0, %v7138_v36  ;;  %v4418_v32 = vadd.f32 %v4417_v58, %v4416_v43  ;;  %v5682_v54 = vmul.f32 -1.442695, %v10015_v18  ;;  %v10067_v36 = vpop.f32.mrb[136].mxu0  ;;  %v12757_v58 = vld [vmem:[#allocation39_spill] sm:$0xff] }
 0x32b   : > { %v7142_v12 = vpop.eup %7141  ;;  %7161 = vrcp.f32 %v3088_v59  ;;  %v3097_v49 = vadd.f32 1.0, %v7140_v55  ;;  %v4492_v20 = vadd.f32 %v4491_v14, %v4490_v23  ;;  %v5684_v7 = vmul.f32 -1.442695, %v10035_v8  ;;  %v10082_v55 = vpop.f32.mrb[105].mxu1 }
 0x32c   : > { %v7144_v9 = vpop.eup %7143  ;;  %7163 = vrcp.f32 %v3090_v38  ;;  %v3099_v0 = vadd.f32 1.0, %v7142_v12  ;;  %v4725_v25 = vcombine.low %v4381_v21, %v4418_v32  ;;  %v10065_v13 = vadd.f32 %v12754_v22, %v9775_v50  ;;  %v12756_v32 = vld [vmem:[#allocation9_spill] sm:$0xff] }
 0x32d   : > { %v7146_v19 = vpop.eup %7145  ;;  %7165 = vrcp.f32 %v3097_v49  ;;  %v3098_v28 = vadd.f32 1.0, %v7144_v9  ;;  %v4726_v40 = vcombine.low %v4455_v41, %v4492_v20  ;;  %v5683_v48 = vmul.f32 -1.442695, %v10046_v5  ;;  %v10084_v41 = vpop.f32.mrb[137].mxu0 }
 0x32e   : > { %v7148_v43 = vpop.eup %7147  ;;  %7167 = vrcp.f32 %v3099_v0  ;;  %v5685_v17 = vmul.f32 -1.442695, %v10055_v46  ;;  %v10072_v29 = vrot.slane %v4725_v25, %v9889_v30  ;;  %v10076_v21 = vadd.f32 %v12756_v32, %v9787_v16  ;;  %v10100_v22 = vpop.f32.mrb[138].mxu0 }
 0x32f   : > { %v7150_v23 = vpop.eup %7149  ;;  %7169 = vrcp.f32 %v3098_v28  ;;  %v10080_v59 = vadd.f32 %v12757_v58, %v9782_v37  ;;  %v10087_v38 = vrot.slane %v4726_v40, %v9889_v30  ;;  %v4027_v12 = vmul.f32 %v10029_v33, %v9810_v53  ;;  %v10098_v28 = vpop.f32.mrb[106].mxu1 }
 0x330   : > { %12755 = vst [vmem:[#allocation38_spill] sm:$0xff] %v10072_v29  ;;  %v7152_v14 = vpop.eup %7151  ;;  %v4037_v49 = vmul.f32 %v7150_v23, %v9864_v27  ;;  %7171 = vpow2.f32 %v9969_v2  ;;  %v4029_v20 = vmul.f32 %v10041_v56, %v9820_v3  ;;  %v4028_v0 = vmul.f32 %v7146_v19, %v9851_v61  ;;  %v10111_v56 = vpop.f32.mrb[139].mxu0 }
 0x331   : > { %12758 = vst [vmem:[#allocation9_spill] sm:$0xff] %v10087_v38  ;;  %v7154_v9 = vpop.eup %7153  ;;  %v4039_v25 = vmul.f32 %v7152_v14, %v9874_v45  ;;  %7173 = vpow2.f32 %v9992_v47  ;;  %v4030_v61 = vmul.f32 %v7148_v43, %v9858_v15  ;;  %v10109_v47 = vpop.f32.mrb[107].mxu1 }
 0x332   : > { %v7156_v40 = vpop.eup %7155  ;;  %v4493_v27 = vadd.f32 %v4037_v49, %v4027_v12  ;;  %v4038_v2 = vmul.f32 %v7154_v9, %v9882_v34  ;;  %7175 = vpow2.f32 %v10004_v24  ;;  %v12759_v34 = vld [vmem:[#allocation40_spill] sm:$0xff] }
 0x333   : > { %v7158_v3 = vpop.eup %7157  ;;  %v4567_v33 = vadd.f32 %v4039_v25, %v4029_v20  ;;  %v4040_v45 = vmul.f32 %v7156_v40, %v9886_v60  ;;  %7177 = vpow2.f32 %v10009_v44  ;;  %v10117_v24 = vadd.f32 %v12759_v34, %v9791_v63 }
 0x334   : > { %v7160_v19 = vpop.eup %7159  ;;  %v4530_v23 = vadd.f32 %v4038_v2, %v4028_v0  ;;  %v4047_v32 = vmul.f32 %v7158_v3, %v9903_v11  ;;  %7179 = vpow2.f32 %v10023_v42  ;;  %v5692_v44 = vmul.f32 -1.442695, %v10065_v13  ;;  %v10132_v3 = vpop.f32.mrb[140].mxu0 }
 0x335   : > { %v7162_v15 = vpop.eup %7161  ;;  %v4604_v43 = vadd.f32 %v4040_v45, %v4030_v61  ;;  %v4049_v60 = vmul.f32 %v7160_v19, %v9913_v31  ;;  %7181 = vpow2.f32 %v5682_v54  ;;  %v5694_v11 = vmul.f32 -1.442695, %v10076_v21  ;;  %v12760_v31 = vld [vmem:[#allocation25_spill] sm:$0xff] }
 0x336   : > { %v7164_v58 = vpop.eup %7163  ;;  %v4494_v14 = vadd.f32 %v4493_v27, %v4047_v32  ;;  %v4048_v12 = vmul.f32 %v7162_v15, %v9917_v6  ;;  %7183 = vpow2.f32 %v5684_v7  ;;  %v5693_v20 = vmul.f32 -1.442695, %v10080_v59  ;;  %v10130_v7 = vpop.f32.mrb[108].mxu1 }
 0x337   : > { %v7166_v49 = vpop.eup %7165  ;;  %v4568_v42 = vadd.f32 %v4567_v33, %v4049_v60  ;;  %v4050_v9 = vmul.f32 %v7164_v58, %v9921_v26  ;;  %7185 = vpow2.f32 %v5683_v48  ;;  %v5695_v40 = vmul.f32 -1.442695, %v10117_v24  ;;  %v10137_v33 = vpop.f32.mrb[109].mxu1 }
 0x338   : > { %v7168_v0 = vpop.eup %7167  ;;  %v4531_v25 = vadd.f32 %v4530_v23, %v4048_v12  ;;  %v4057_v54 = vmul.f32 %v7166_v49, %v12760_v31  ;;  %7187 = vpow2.f32 %v5685_v17  ;;  %v10139_v17 = vpop.f32.mrb[141].mxu0 }
 0x339   : > { %v7170_v27 = vpop.eup %7169  ;;  %v10127_v2 = vadd.f32 %v4604_v43, %v4050_v9  ;;  %v4059_v6 = vmul.f32 %v7168_v0, %v9932_v62  ;;  %7189 = vpow2.f32 %v5692_v44  ;;  %v10143_v62 = vpop.f32.mrb[110].mxu1 }
 0x33a   : > { %v7172_v26 = vpop.eup %7171  ;;  %v10134_v48 = vadd.f32 %v4494_v14, %v4057_v54  ;;  %v4058_v61 = vmul.f32 %v7170_v27, %v9936_v52  ;;  %7191 = vpow2.f32 %v5694_v11  ;;  %12761 = vst [vmem:[#allocation39_spill] sm:$0xff] %v10143_v62  ;;  %v10145_v32 = vpop.f32.mrb[142].mxu0  ;;  %v12763_v14 = vld [vmem:[#allocation41_spill] sm:$0xff] }
 0x33b   : > { %v7174_v45 = vpop.eup %7173  ;;  %v10141_v19 = vadd.f32 %v4568_v42, %v4059_v6  ;;  %v3100_v23 = vadd.f32 1.0, %v7172_v26  ;;  %7193 = vpow2.f32 %v5693_v20  ;;  %12762 = vst [vmem:[#allocation40_spill] sm:$0xff] %v10145_v32  ;;  %v10151_v12 = vadd.f32 %v12763_v14, %v9775_v50  ;;  %v10192_v53 = vpop.f32.mrb[111].mxu1 }
 0x33c   : > { %v7176_v34 = vpop.eup %7175  ;;  %v10147_v15 = vadd.f32 %v4531_v25, %v4058_v61  ;;  %v3107_v43 = vadd.f32 1.0, %v7174_v45  ;;  %7195 = vpow2.f32 %v5695_v40  ;;  %v12764_v40 = vld [vmem:[#allocation42_spill] sm:$0xff]  ;;  %v12765_v61 = vld [vmem:[#allocation43_spill] sm:$0xff]  ;;  %12773 = vst [vmem:[#allocation25_spill] sm:$0xff] %v10192_v53  ;;  %v10194_v38 = vpop.f32.mrb[143].mxu0 }
 0x33d   : > { %v7178_v52 = vpop.eup %7177  ;;  %7197 = vrcp.f32 %v3100_v23  ;;  %v3109_v60 = vadd.f32 1.0, %v7176_v34  ;;  %v5702_v54 = vmul.f32 -1.442695, %v10151_v12  ;;  %v10156_v27 = vadd.f32 %v12764_v40, %v9787_v16  ;;  %v12766_v23 = vld [vmem:[#allocation19_spill] sm:$0xff]  ;;  %12774 = vst [vmem:[#allocation41_spill] sm:$0xff] %v10194_v38 }
 0x33e   : > { %v7180_v44 = vpop.eup %7179  ;;  %7199 = vrcp.f32 %v3107_v43  ;;  %v3108_v58 = vadd.f32 1.0, %v7178_v52  ;;  %v10160_v45 = vadd.f32 %v12765_v61, %v9782_v37  ;;  %v10164_v34 = vadd.f32 %v12766_v23, %v9791_v63 }
 0x33f   : > { %v7182_v11 = vpop.eup %7181  ;;  %7201 = vrcp.f32 %v3109_v60  ;;  %v3110_v49 = vadd.f32 1.0, %v7180_v44  ;;  %v12767_v60 = vld [vmem:[#allocation18_spill] sm:$0xff]  ;;  %v5704_v40 = vmul.f32 -1.442695, %v10156_v27 }
 0x340   : > { %v7184_v42 = vpop.eup %7183  ;;  %7203 = vrcp.f32 %v3108_v58  ;;  %v3117_v9 = vadd.f32 1.0, %v7182_v11  ;;  %v10168_v44 = vadd.f32 %v12767_v60, %v9775_v50  ;;  %v12768_v58 = vld [vmem:[#allocation8_spill] sm:$0xff]  ;;  %v5705_v60 = vmul.f32 -1.442695, %v10164_v34 }
 0x341   : > { %v7186_v20 = vpop.eup %7185  ;;  %7205 = vrcp.f32 %v3110_v49  ;;  %v3119_v0 = vadd.f32 1.0, %v7184_v42  ;;  %v10172_v14 = vadd.f32 %v12768_v58, %v9787_v16  ;;  %v12769_v42 = vld [vmem:[#allocation11_spill] sm:$0xff] }
 0x342   : > { %v7188_v25 = vpop.eup %7187  ;;  %7207 = vrcp.f32 %v3117_v9  ;;  %v3118_v31 = vadd.f32 1.0, %v7186_v20  ;;  %v10176_v9 = vadd.f32 %v12769_v42, %v9782_v37  ;;  %v12770_v20 = vld [vmem:[#allocation44_spill] sm:$0xff]  ;;  %v12772_v42 = vld [vmem:[#allocation26_spill] sm:$0xff] }
 0x343   : > { %v7190_v6 = vpop.eup %7189  ;;  %7209 = vrcp.f32 %v3119_v0  ;;  %v3120_v26 = vadd.f32 1.0, %v7188_v25  ;;  %v10180_v0 = vadd.f32 %v12770_v20, %v9791_v63 }
 0x344   : > { %v7192_v43 = vpop.eup %7191  ;;  %7211 = vrcp.f32 %v3118_v31  ;;  %v3127_v52 = vadd.f32 1.0, %v7190_v6  ;;  %v12771_v6 = vld [vmem:[#allocation45_spill] sm:$0xff] }
 0x345   : > { %v7194_v11 = vpop.eup %7193  ;;  %7213 = vrcp.f32 %v3120_v26  ;;  %v3129_v49 = vadd.f32 1.0, %v7192_v43  ;;  %v10185_v61 = vadd.f32 %v12771_v6, %v9775_v50  ;;  %v5703_v43 = vmul.f32 -1.442695, %v10160_v45 }
 0x346   : > { %v7196_v25 = vpop.eup %7195  ;;  %7215 = vrcp.f32 %v3127_v52  ;;  %v3128_v31 = vadd.f32 1.0, %v7194_v11  ;;  %v5712_v52 = vmul.f32 -1.442695, %v10168_v44  ;;  %v5714_v11 = vmul.f32 -1.442695, %v10172_v14 }
 0x347   : > { %v7198_v23 = vpop.eup %7197  ;;  %7217 = vrcp.f32 %v3129_v49  ;;  %v3130_v26 = vadd.f32 1.0, %v7196_v25  ;;  %v5713_v25 = vmul.f32 -1.442695, %v10176_v9  ;;  %v5715_v29 = vmul.f32 -1.442695, %v10180_v0 }
 0x348   : > { %v7200_v58 = vpop.eup %7199  ;;  %v4060_v20 = vmul.f32 %v7198_v23, %v12772_v42  ;;  %7219 = vrcp.f32 %v3128_v31  ;;  %v5722_v42 = vmul.f32 -1.442695, %v10185_v61 }
 0x349   : > { %v7202_v6 = vpop.eup %7201  ;;  %v4067_v49 = vmul.f32 %v7200_v58, %v9958_v35  ;;  %7221 = vrcp.f32 %v3130_v26  ;;  %v12775_v35 = vld [vmem:[#allocation46_spill] sm:$0xff] }
 0x34a   : > { %v7204_v30 = vpop.eup %7203  ;;  %v4606_v23 = vadd.f32 %v10127_v2, %v4060_v20  ;;  %v4069_v31 = vmul.f32 %v7202_v6, %v9975_v57  ;;  %7223 = vpow2.f32 %v5702_v54  ;;  %v10206_v26 = vadd.f32 %v12775_v35, %v9787_v16  ;;  %v12776_v57 = vld [vmem:[#allocation27_spill] sm:$0xff] }
 0x34b   : > { %v7206_v32 = vpop.eup %7205  ;;  %v4496_v53 = vadd.f32 %v10134_v48, %v4067_v49  ;;  %v4068_v38 = vmul.f32 %v7204_v30, %v9986_v10  ;;  %7225 = vpow2.f32 %v5704_v40  ;;  %v10212_v54 = vadd.f32 %v12776_v57, %v9782_v37  ;;  %v12777_v10 = vld [vmem:[#allocation47_spill] sm:$0xff] }
 0x34c   : > { %v7208_v58 = vpop.eup %7207  ;;  %v4570_v62 = vadd.f32 %v10141_v19, %v4069_v31  ;;  %v4070_v2 = vmul.f32 %v7206_v32, %v9999_v1  ;;  %7227 = vpow2.f32 %v5703_v43  ;;  %v10218_v40 = vadd.f32 %v12777_v10, %v9791_v63  ;;  %v12778_v1 = vld [vmem:[#allocation48_spill] sm:$0xff]  ;;  %v10225_v43 = vpop.f32.mrb[112].mxu1 }
 0x34d   : > { %v7210_v20 = vpop.eup %7209  ;;  %v4533_v48 = vadd.f32 %v10147_v15, %v4068_v38  ;;  %v4077_v30 = vmul.f32 %v7208_v58, %v10015_v18  ;;  %7229 = vpow2.f32 %v5705_v60  ;;  %v10223_v32 = vadd.f32 %v12778_v1, %v9775_v50  ;;  %12779 = vst [vmem:[#allocation42_spill] sm:$0xff] %v10225_v43  ;;  %v10227_v31 = vpop.f32.mrb[144].mxu0 }
 0x34e   : > { %v7212_v6 = vpop.eup %7211  ;;  %v4607_v49 = vadd.f32 %v4606_v23, %v4070_v2  ;;  %v4079_v19 = vmul.f32 %v7210_v20, %v10035_v8  ;;  %7231 = vpow2.f32 %v5712_v52  ;;  %12780 = vst [vmem:[#allocation43_spill] sm:$0xff] %v10227_v31  ;;  %v5724_v60 = vmul.f32 -1.442695, %v10206_v26  ;;  %v10231_v35 = vpop.f32.mrb[113].mxu1 }
 0x34f   : > { %v7214_v38 = vpop.eup %7213  ;;  %v4497_v18 = vadd.f32 %v4496_v53, %v4077_v30  ;;  %v4078_v15 = vmul.f32 %v7212_v6, %v10046_v5  ;;  %7233 = vpow2.f32 %v5714_v11  ;;  %12781 = vst [vmem:[#allocation19_spill] sm:$0xff] %v10231_v35  ;;  %v10233_v23 = vpop.f32.mrb[145].mxu0  ;;  %v5723_v2 = vmul.f32 -1.442695, %v10212_v54 }
 0x350   : > { %12782 = vst [vmem:[#allocation18_spill] sm:$0xff] %v10233_v23  ;;  %v7216_v8 = vpop.eup %7215  ;;  %v4571_v52 = vadd.f32 %v4570_v62, %v4079_v19  ;;  %v4080_v58 = vmul.f32 %v7214_v38, %v10055_v46  ;;  %7235 = vpow2.f32 %v5713_v25  ;;  %v10237_v57 = vpop.f32.mrb[114].mxu1  ;;  %v5725_v30 = vmul.f32 -1.442695, %v10218_v40 }
 0x351   : > { %12783 = vst [vmem:[#allocation8_spill] sm:$0xff] %v10237_v57  ;;  %v10239_v20 = vpop.f32.mrb[146].mxu0  ;;  %v7218_v53 = vpop.eup %7217  ;;  %v4534_v5 = vadd.f32 %v4533_v48, %v4078_v15  ;;  %v4087_v11 = vmul.f32 %v7216_v8, %v10065_v13  ;;  %7237 = vpow2.f32 %v5715_v29  ;;  %v5732_v19 = vmul.f32 -1.442695, %v10223_v32 }
 0x352   : > { %12784 = vst [vmem:[#allocation11_spill] sm:$0xff] %v10239_v20  ;;  %v10243_v10 = vpop.f32.mrb[115].mxu1  ;;  %v10245_v6 = vpop.f32.mrb[147].mxu0  ;;  %v4608_v46 = vadd.f32 %v4607_v49, %v4080_v58  ;;  %v4089_v25 = vmul.f32 %v7218_v53, %v10076_v21  ;;  %7239 = vpow2.f32 %v5722_v42 }
 0x353   : > { %12785 = vst [vmem:[#allocation44_spill] sm:$0xff] %v10243_v10  ;;  %12786 = vst [vmem:[#allocation45_spill] sm:$0xff] %v10245_v6  ;;  %v7220_v62 = vpop.eup %7219  ;;  %v10249_v38 = vadd.f32 %v4497_v18, %v4087_v11  ;;  %7241 = vpow2.f32 %v5724_v60  ;;  %v10259_v18 = vpop.f32.mrb[116].mxu1 }
 0x354   : > { %v7222_v1 = vpop.eup %7221  ;;  %v4088_v48 = vmul.f32 %v7220_v62, %v10080_v59  ;;  %v10252_v29 = vadd.f32 %v4571_v52, %v4089_v25  ;;  %7243 = vpow2.f32 %v5723_v2  ;;  %12787 = vst [vmem:[#allocation26_spill] sm:$0xff] %v10259_v18  ;;  %v10261_v59 = vpop.f32.mrb[148].mxu0 }
 0x355   : > { %v7224_v13 = vpop.eup %7223  ;;  %v4090_v15 = vmul.f32 %v7222_v1, %v10117_v24  ;;  %7245 = vpow2.f32 %v5725_v30  ;;  %12788 = vst [vmem:[#allocation46_spill] sm:$0xff] %v10261_v59  ;;  %v10263_v53 = vpop.f32.mrb[117].mxu1  ;;  %v12790_v30 = vld [vmem:[#allocation49_spill] sm:$0xff] }
 0x356   : > { %v7226_v8 = vpop.eup %7225  ;;  %v10255_v6 = vadd.f32 %v4534_v5, %v4088_v48  ;;  %v3137_v49 = vadd.f32 1.0, %v7224_v13  ;;  %7247 = vpow2.f32 %v5732_v19  ;;  %12789 = vst [vmem:[#allocation27_spill] sm:$0xff] %v10263_v53  ;;  %v10267_v62 = vadd.f32 %v12790_v30, %v9787_v16  ;;  %v12794_v30 = vld [vmem:[#allocation30_spill] sm:$0xff]  ;;  %v10305_v10 = vpop.f32.mrb[149].mxu0 }
 0x357   : > { %v7228_v21 = vpop.eup %7227  ;;  %v10257_v42 = vadd.f32 %v4608_v46, %v4090_v15  ;;  %v3139_v58 = vadd.f32 1.0, %v7226_v8  ;;  %v12791_v15 = vld [vmem:[#allocation28_spill] sm:$0xff]  ;;  %12799 = vst [vmem:[#allocation47_spill] sm:$0xff] %v10305_v10  ;;  %v10315_v35 = vpop.f32.mrb[150].mxu0 }
 0x358   : > { %v7230_v60 = vpop.eup %7229  ;;  %7249 = vrcp.f32 %v3137_v49  ;;  %v3138_v52 = vadd.f32 1.0, %v7228_v21  ;;  %v10271_v8 = vadd.f32 %v12791_v15, %v9782_v37  ;;  %v12792_v49 = vld [vmem:[#allocation29_spill] sm:$0xff]  ;;  %12801 = vst [vmem:[#allocation49_spill] sm:$0xff] %v10315_v35  ;;  %v10328_v35 = vpop.f32.mrb[151].mxu0 }
 0x359   : > { %v7232_v24 = vpop.eup %7231  ;;  %7251 = vrcp.f32 %v3139_v58  ;;  %v3140_v2 = vadd.f32 1.0, %v7230_v60  ;;  %v10275_v21 = vadd.f32 %v12792_v49, %v9791_v63  ;;  %12804 = vst [vmem:[#allocation29_spill] sm:$0xff] %v10328_v35 }
 0x35a   : > { %v7234_v5 = vpop.eup %7233  ;;  %7253 = vrcp.f32 %v3138_v52  ;;  %v3147_v11 = vadd.f32 1.0, %v7232_v24  ;;  %v5734_v52 = vmul.f32 -1.442695, %v10267_v62  ;;  %v12793_v24 = vld [vmem:[#allocation10_spill] sm:$0xff] }
 0x35b   : > { %v7236_v46 = vpop.eup %7235  ;;  %7255 = vrcp.f32 %v3140_v2  ;;  %v3149_v25 = vadd.f32 1.0, %v7234_v5  ;;  %v10280_v2 = vadd.f32 %v12793_v24, %v9775_v50  ;;  %v12797_v24 = vld [vmem:[#allocation51_spill] sm:$0xff]  ;;  %v5735_v59 = vmul.f32 -1.442695, %v10275_v21 }
 0x35c   : > { %v7238_v19 = vpop.eup %7237  ;;  %7257 = vrcp.f32 %v3147_v11  ;;  %v3148_v1 = vadd.f32 1.0, %v7236_v46  ;;  %v10284_v46 = vadd.f32 %v12794_v30, %v9787_v16  ;;  %v10296_v53 = vadd.f32 %v12797_v24, %v9775_v50 }
 0x35d   : > { %v7240_v48 = vpop.eup %7239  ;;  %7259 = vrcp.f32 %v3149_v25  ;;  %v3150_v13 = vadd.f32 1.0, %v7238_v19  ;;  %v12795_v25 = vld [vmem:[#allocation31_spill] sm:$0xff]  ;;  %v5733_v30 = vmul.f32 -1.442695, %v10271_v8 }
 0x35e   : > { %v7242_v58 = vpop.eup %7241  ;;  %7261 = vrcp.f32 %v3148_v1  ;;  %v3157_v60 = vadd.f32 1.0, %v7240_v48  ;;  %v10288_v19 = vadd.f32 %v12795_v25, %v9782_v37  ;;  %v12796_v48 = vld [vmem:[#allocation50_spill] sm:$0xff]  ;;  %v5752_v23 = vmul.f32 -1.442695, %v10296_v53 }
 0x35f   : > { %v7244_v5 = vpop.eup %7243  ;;  %7263 = vrcp.f32 %v3150_v13  ;;  %v3159_v11 = vadd.f32 1.0, %v7242_v58  ;;  %v10292_v49 = vadd.f32 %v12796_v48, %v9791_v63 }
 0x360   : > { %v7246_v15 = vpop.eup %7245  ;;  %7265 = vrcp.f32 %v3157_v60  ;;  %v3158_v1 = vadd.f32 1.0, %v7244_v5  ;;  %v5742_v60 = vmul.f32 -1.442695, %v10280_v2  ;;  %v12798_v5 = vld [vmem:[#allocation52_spill] sm:$0xff] }
 0x361   : > { %v7248_v13 = vpop.eup %7247  ;;  %7267 = vrcp.f32 %v3159_v11  ;;  %v3160_v58 = vadd.f32 1.0, %v7246_v15  ;;  %v10303_v48 = vadd.f32 %v12798_v5, %v9787_v16  ;;  %v5744_v11 = vmul.f32 -1.442695, %v10284_v46  ;;  %v10313_v5 = vpop.f32.mrb[118].mxu1 }
 0x362   : > { %v7250_v25 = vpop.eup %7249  ;;  %7269 = vrcp.f32 %v3158_v1  ;;  %v3167_v18 = vadd.f32 1.0, %v7248_v13  ;;  %v5743_v15 = vmul.f32 -1.442695, %v10288_v19  ;;  %v5745_v13 = vmul.f32 -1.442695, %v10292_v49  ;;  %12800 = vst [vmem:[#allocation48_spill] sm:$0xff] %v10313_v5 }
 0x363   : > { %v7252_v24 = vpop.eup %7251  ;;  %v4097_v20 = vmul.f32 %v7250_v25, %v10151_v12  ;;  %7271 = vrcp.f32 %v3160_v58  ;;  %v12802_v25 = vld [vmem:[#allocation13_spill] sm:$0xff]  ;;  %v5754_v5 = vmul.f32 -1.442695, %v10303_v48  ;;  %v10326_v43 = vpop.f32.mrb[119].mxu1 }
 0x364   : > { %v7254_v57 = vpop.eup %7253  ;;  %v4099_v1 = vmul.f32 %v7252_v24, %v10156_v27  ;;  %7273 = vrcp.f32 %v3167_v18  ;;  %v10321_v31 = vadd.f32 %v12802_v25, %v9782_v37  ;;  %12803 = vst [vmem:[#allocation28_spill] sm:$0xff] %v10326_v43 }
 0x365   : > { %v7256_v10 = vpop.eup %7255  ;;  %v4499_v12 = vadd.f32 %v10249_v38, %v4097_v20  ;;  %v4098_v58 = vmul.f32 %v7254_v57, %v10160_v45  ;;  %7275 = vpow2.f32 %v5734_v52  ;;  %v12805_v38 = vld [vmem:[#allocation62_spill] sm:$0xff] }
 0x366   : > { %v7258_v27 = vpop.eup %7257  ;;  %v4573_v18 = vadd.f32 %v10252_v29, %v4099_v1  ;;  %v4100_v24 = vmul.f32 %v7256_v10, %v10164_v34  ;;  %7277 = vpow2.f32 %v5733_v30  ;;  %v10334_v52 = vadd.f32 %v12805_v38, %v9791_v63  ;;  %v12806_v30 = vld [vmem:[#allocation32_spill] sm:$0xff] }
 0x367   : > { %v7260_v20 = vpop.eup %7259  ;;  %v4536_v45 = vadd.f32 %v10255_v6, %v4098_v58  ;;  %v4107_v57 = vmul.f32 %v7258_v27, %v10168_v44  ;;  %7279 = vpow2.f32 %v5735_v59  ;;  %v10340_v1 = vadd.f32 %v12806_v30, %v9775_v50  ;;  %v12807_v44 = vld [vmem:[#allocation63_spill] sm:$0xff] }
 0x368   : > { %v7262_v29 = vpop.eup %7261  ;;  %v4610_v34 = vadd.f32 %v10257_v42, %v4100_v24  ;;  %v4109_v10 = vmul.f32 %v7260_v20, %v10172_v14  ;;  %7281 = vpow2.f32 %v5742_v60  ;;  %v10345_v59 = vadd.f32 %v12807_v44, %v9787_v16 }
 0x369   : > { %v7264_v25 = vpop.eup %7263  ;;  %v4500_v35 = vadd.f32 %v4499_v12, %v4107_v57  ;;  %v4108_v6 = vmul.f32 %v7262_v29, %v10176_v9  ;;  %7283 = vpow2.f32 %v5744_v11  ;;  %v5753_v14 = vmul.f32 -1.442695, %v10321_v31 }
 0x36a   : > { %v7266_v58 = vpop.eup %7265  ;;  %v4574_v27 = vadd.f32 %v4573_v18, %v4109_v10  ;;  %v4110_v42 = vmul.f32 %v7264_v25, %v10180_v0  ;;  %7285 = vpow2.f32 %v5743_v15  ;;  %v5755_v12 = vmul.f32 -1.442695, %v10334_v52  ;;  %v10353_v18 = vpop.f32.mrb[120].mxu1 }
 0x36b   : > { %v7268_v60 = vpop.eup %7267  ;;  %v4537_v24 = vadd.f32 %v4536_v45, %v4108_v6  ;;  %v4117_v20 = vmul.f32 %v7266_v58, %v10185_v61  ;;  %7287 = vpow2.f32 %v5745_v13  ;;  %v5762_v38 = vmul.f32 -1.442695, %v10340_v1  ;;  %12808 = vst [vmem:[#allocation10_spill] sm:$0xff] %v10353_v18  ;;  %v10355_v0 = vpop.f32.mrb[152].mxu0 }
 0x36c   : > { %v7270_v9 = vpop.eup %7269  ;;  %v4611_v11 = vadd.f32 %v4610_v34, %v4110_v42  ;;  %v4119_v57 = vmul.f32 %v7268_v60, %v10206_v26  ;;  %7289 = vpow2.f32 %v5752_v23  ;;  %12809 = vst [vmem:[#allocation30_spill] sm:$0xff] %v10355_v0  ;;  %v5764_v61 = vmul.f32 -1.442695, %v10345_v59  ;;  %v10359_v13 = vpop.f32.mrb[121].mxu1 }
 0x36d   : > { %v7272_v15 = vpop.eup %7271  ;;  %v4501_v29 = vadd.f32 %v4500_v35, %v4117_v20  ;;  %v4118_v45 = vmul.f32 %v7270_v9, %v10212_v54  ;;  %7291 = vpow2.f32 %v5754_v5  ;;  %12810 = vst [vmem:[#allocation31_spill] sm:$0xff] %v10359_v13  ;;  %v10361_v10 = vpop.f32.mrb[153].mxu0 }
 0x36e   : > { %12811 = vst [vmem:[#allocation50_spill] sm:$0xff] %v10361_v10  ;;  %v7274_v34 = vpop.eup %7273  ;;  %v10363_v26 = vadd.f32 %v4574_v27, %v4119_v57  ;;  %v4120_v23 = vmul.f32 %v7272_v15, %v10218_v40  ;;  %7293 = vpow2.f32 %v5753_v14  ;;  %v10366_v30 = vpop.f32.mrb[122].mxu1  ;;  %v12816_v15 = vld [vmem:[#allocation33_spill] sm:$0xff] }
 0x36f   : > { %12812 = vst [vmem:[#allocation51_spill] sm:$0xff] %v10366_v30  ;;  %v10368_v25 = vpop.f32.mrb[154].mxu0  ;;  %v7276_v35 = vpop.eup %7275  ;;  %v10370_v6 = vadd.f32 %v4537_v24, %v4118_v45  ;;  %v4127_v54 = vmul.f32 %v7274_v34, %v10223_v32  ;;  %7295 = vpow2.f32 %v5755_v12 }
 0x370   : > { %12813 = vst [vmem:[#allocation52_spill] sm:$0xff] %v10368_v25  ;;  %v10373_v5 = vpop.f32.mrb[123].mxu1  ;;  %v10375_v44 = vpop.f32.mrb[155].mxu0  ;;  %v10377_v27 = vadd.f32 %v4611_v11, %v4120_v23  ;;  %v3169_v42 = vadd.f32 1.0, %v7276_v35  ;;  %7297 = vpow2.f32 %v5762_v38  ;;  %v10383_v11 = vadd.f32 %v12816_v15, %v9782_v37 }
 0x371   : > { %12814 = vst [vmem:[#allocation13_spill] sm:$0xff] %v10373_v5  ;;  %12815 = vst [vmem:[#allocation62_spill] sm:$0xff] %v10375_v44  ;;  %v7278_v58 = vpop.eup %7277  ;;  %v10379_v14 = vadd.f32 %v4501_v29, %v4127_v54  ;;  %7299 = vpow2.f32 %v5764_v61  ;;  %v12817_v61 = vld [vmem:[#allocation53_spill] sm:$0xff] }
 0x372   : > { %v7280_v40 = vpop.eup %7279  ;;  %v3168_v60 = vadd.f32 1.0, %v7278_v58  ;;  %7301 = vrcp.f32 %v3169_v42  ;;  %v10387_v23 = vadd.f32 %v12817_v61, %v9791_v63  ;;  %v12818_v58 = vld [vmem:[#allocation12_spill] sm:$0xff] }
 0x373   : > { %v7282_v20 = vpop.eup %7281  ;;  %v3170_v24 = vadd.f32 1.0, %v7280_v40  ;;  %v10391_v42 = vadd.f32 %v12818_v58, %v9775_v50 }
 0x374   : > { %v7284_v9 = vpop.eup %7283  ;;  %7303 = vrcp.f32 %v3168_v60  ;;  %v3177_v32 = vadd.f32 1.0, %v7282_v20  ;;  %v5763_v20 = vmul.f32 -1.442695, %v10383_v11  ;;  %v5765_v61 = vmul.f32 -1.442695, %v10387_v23 }
 0x375   : > { %v7286_v12 = vpop.eup %7285  ;;  %7305 = vrcp.f32 %v3170_v24  ;;  %v3179_v57 = vadd.f32 1.0, %v7284_v9  ;;  %v12819_v24 = vld [vmem:[#allocation54_spill] sm:$0xff] }
 0x376   : > { %v7288_v45 = vpop.eup %7287  ;;  %7307 = vrcp.f32 %v3177_v32  ;;  %v3178_v38 = vadd.f32 1.0, %v7286_v12  ;;  %v10396_v9 = vadd.f32 %v12819_v24, %v9787_v16 }
 0x377   : > { %v7290_v29 = vpop.eup %7289  ;;  %7309 = vrcp.f32 %v3179_v57  ;;  %v3180_v34 = vadd.f32 1.0, %v7288_v45  ;;  %v12820_v57 = vld [vmem:[#allocation55_spill] sm:$0xff]  ;;  %v12821_v45 = vld [vmem:[#allocation56_spill] sm:$0xff] }
 0x378   : > { %v7292_v35 = vpop.eup %7291  ;;  %7311 = vrcp.f32 %v3178_v38  ;;  %v3187_v54 = vadd.f32 1.0, %v7290_v29  ;;  %v10400_v15 = vadd.f32 %v12820_v57, %v9782_v37  ;;  %v10404_v38 = vadd.f32 %v12821_v45, %v9791_v63  ;;  %v12823_v57 = vld [vmem:[#allocation58_spill] sm:$0xff] }
 0x379   : > { %v7294_v40 = vpop.eup %7293  ;;  %7313 = vrcp.f32 %v3180_v34  ;;  %v3189_v60 = vadd.f32 1.0, %v7292_v35  ;;  %v12822_v35 = vld [vmem:[#allocation57_spill] sm:$0xff]  ;;  %v10414_v44 = vadd.f32 %v12823_v57, %v9787_v16 }
 0x37a   : > { %v7296_v32 = vpop.eup %7295  ;;  %7315 = vrcp.f32 %v3187_v54  ;;  %v3188_v12 = vadd.f32 1.0, %v7294_v40  ;;  %v10409_v58 = vadd.f32 %v12822_v35, %v9775_v50  ;;  %v5772_v40 = vmul.f32 -1.442695, %v10391_v42 }
 0x37b   : > { %v7298_v29 = vpop.eup %7297  ;;  %7317 = vrcp.f32 %v3189_v60  ;;  %v3190_v34 = vadd.f32 1.0, %v7296_v32  ;;  %v5774_v60 = vmul.f32 -1.442695, %v10396_v9  ;;  %v12824_v32 = vld [vmem:[#allocation59_spill] sm:$0xff] }
 0x37c   : > { %v7300_v24 = vpop.eup %7299  ;;  %7319 = vrcp.f32 %v3188_v12  ;;  %v3197_v54 = vadd.f32 1.0, %v7298_v29  ;;  %v10419_v25 = vadd.f32 %v12824_v32, %v9782_v37  ;;  %v5773_v12 = vmul.f32 -1.442695, %v10400_v15 }
 0x37d   : > { %v7302_v45 = vpop.eup %7301  ;;  %7321 = vrcp.f32 %v3190_v34  ;;  %v3199_v5 = vadd.f32 1.0, %v7300_v24  ;;  %v5775_v29 = vmul.f32 -1.442695, %v10404_v38  ;;  %v5782_v34 = vmul.f32 -1.442695, %v10409_v58  ;;  %v12825_v24 = vld [vmem:[#allocation60_spill] sm:$0xff] }
 0x37e   : > { %v7304_v35 = vpop.eup %7303  ;;  %v4129_v30 = vmul.f32 %v7302_v45, %v10267_v62  ;;  %7323 = vrcp.f32 %v3197_v54  ;;  %v10428_v13 = vadd.f32 %v12825_v24, %v9791_v63  ;;  %v5784_v54 = vmul.f32 -1.442695, %v10414_v44 }
 0x37f   : > { %v7306_v10 = vpop.eup %7305  ;;  %v4128_v57 = vmul.f32 %v7304_v35, %v10271_v8  ;;  %7325 = vrcp.f32 %v3199_v5  ;;  %v5783_v5 = vmul.f32 -1.442695, %v10419_v25 }
 0x380   : > { %v7308_v32 = vpop.eup %7307  ;;  %v4576_v0 = vadd.f32 %v10363_v26, %v4129_v30  ;;  %v4130_v62 = vmul.f32 %v7306_v10, %v10275_v21  ;;  %7327 = vpow2.f32 %v5763_v20  ;;  %v12826_v26 = vld [vmem:[#allocation15_spill] sm:$0xff]  ;;  %v10442_v10 = vpop.f32.mrb[124].mxu1 }
 0x381   : > { %v7310_v45 = vpop.eup %7309  ;;  %v4539_v18 = vadd.f32 %v10370_v6, %v4128_v57  ;;  %v4137_v8 = vmul.f32 %v7308_v32, %v10280_v2  ;;  %7329 = vpow2.f32 %v5765_v61  ;;  %v10440_v21 = vadd.f32 %v12826_v26, %v9775_v50  ;;  %12827 = vst [vmem:[#allocation32_spill] sm:$0xff] %v10442_v10  ;;  %v10444_v30 = vpop.f32.mrb[156].mxu0  ;;  %v12829_v61 = vld [vmem:[#allocation61_spill] sm:$0xff] }
 0x382   : > { %v7312_v35 = vpop.eup %7311  ;;  %v4613_v24 = vadd.f32 %v10377_v27, %v4130_v62  ;;  %v4139_v43 = vmul.f32 %v7310_v45, %v10284_v46  ;;  %7331 = vpow2.f32 %v5772_v40  ;;  %12828 = vst [vmem:[#allocation63_spill] sm:$0xff] %v10444_v30  ;;  %v10450_v27 = vadd.f32 %v12829_v61, %v9787_v16  ;;  %v10452_v46 = vpop.f32.mrb[125].mxu1  ;;  %v12832_v45 = vld [vmem:[#allocation23_spill] sm:$0xff] }
 0x383   : > { %v7314_v6 = vpop.eup %7313  ;;  %v4503_v2 = vadd.f32 %v10379_v14, %v4137_v8  ;;  %v4138_v20 = vmul.f32 %v7312_v35, %v10288_v19  ;;  %7333 = vpow2.f32 %v5774_v60  ;;  %12830 = vst [vmem:[#allocation33_spill] sm:$0xff] %v10452_v46  ;;  %v10454_v40 = vpop.f32.mrb[157].mxu0  ;;  %v10459_v26 = vadd.f32 %v12832_v45, %v9782_v37 }
 0x384   : > { %12831 = vst [vmem:[#allocation53_spill] sm:$0xff] %v10454_v40  ;;  %v7316_v57 = vpop.eup %7315  ;;  %v4577_v32 = vadd.f32 %v4576_v0, %v4139_v43  ;;  %v4140_v62 = vmul.f32 %v7314_v6, %v10292_v49  ;;  %7335 = vpow2.f32 %v5773_v12  ;;  %v10461_v14 = vpop.f32.mrb[126].mxu1  ;;  %v5785_v61 = vmul.f32 -1.442695, %v10428_v13 }
 0x385   : > { %12833 = vst [vmem:[#allocation12_spill] sm:$0xff] %v10461_v14  ;;  %v10463_v19 = vpop.f32.mrb[158].mxu0  ;;  %v7318_v60 = vpop.eup %7317  ;;  %v4540_v8 = vadd.f32 %v4539_v18, %v4138_v20  ;;  %v4147_v35 = vmul.f32 %v7316_v57, %v10296_v53  ;;  %7337 = vpow2.f32 %v5775_v29  ;;  %v5792_v6 = vmul.f32 -1.442695, %v10440_v21 }
 0x386   : > { %12834 = vst [vmem:[#allocation54_spill] sm:$0xff] %v10463_v19  ;;  %v10467_v40 = vpop.f32.mrb[127].mxu1  ;;  %v10469_v43 = vpop.f32.mrb[159].mxu0  ;;  %v4614_v0 = vadd.f32 %v4613_v24, %v4140_v62  ;;  %v4149_v12 = vmul.f32 %v7318_v60, %v10303_v48  ;;  %7339 = vpow2.f32 %v5782_v34  ;;  %v5794_v53 = vmul.f32 -1.442695, %v10450_v27 }
 0x387   : > { %12835 = vst [vmem:[#allocation55_spill] sm:$0xff] %v10467_v40  ;;  %12836 = vst [vmem:[#allocation56_spill] sm:$0xff] %v10469_v43  ;;  %v7320_v49 = vpop.eup %7319  ;;  %v4504_v19 = vadd.f32 %v4503_v2, %v4147_v35  ;;  %7341 = vpow2.f32 %v5784_v54  ;;  %v5793_v43 = vmul.f32 -1.442695, %v10459_v26  ;;  %v10483_v54 = vpop.f32.mrb[128].mxu1 }
 0x388   : > { %v7322_v45 = vpop.eup %7321  ;;  %v4148_v18 = vmul.f32 %v7320_v49, %v10321_v31  ;;  %v4578_v20 = vadd.f32 %v4577_v32, %v4149_v12  ;;  %7343 = vpow2.f32 %v5783_v5  ;;  %12837 = vst [vmem:[#allocation57_spill] sm:$0xff] %v10483_v54  ;;  %v12838_v5 = vld [vmem:[#allocation7_spill] sm:$0xff]  ;;  %v10491_v35 = vpop.f32.mrb[129].mxu1 }
 0x389   : > { %v7324_v29 = vpop.eup %7323  ;;  %v4150_v57 = vmul.f32 %v7322_v45, %v10334_v52  ;;  %7345 = vpow2.f32 %v5785_v61  ;;  %12839 = vst [vmem:[#allocation58_spill] sm:$0xff] %v10491_v35  ;;  %v10499_v12 = vpop.f32.mrb[130].mxu1  ;;  %v12842_v45 = vld [vmem:[#allocation6_spill] sm:$0xff]  ;;  %v12850_v35 = vld [vmem:[#allocation17_spill] sm:$0xff] }
 0x38a   : > { %v7326_v24 = vpop.eup %7325  ;;  %v10477_v62 = vadd.f32 %v4540_v8, %v4148_v18  ;;  %v4157_v48 = vmul.f32 %v7324_v29, %v10340_v1  ;;  %7347 = vpow2.f32 %v5792_v6  ;;  %v10489_v8 = vadd.f32 %v12838_v5, %v9791_v63  ;;  %12841 = vst [vmem:[#allocation59_spill] sm:$0xff] %v10499_v12 }
 0x38b   : > { %v7328_v34 = vpop.eup %7327  ;;  %v10480_v2 = vadd.f32 %v4614_v0, %v4150_v57  ;;  %v4159_v31 = vmul.f32 %v7326_v24, %v10345_v59  ;;  %7349 = vpow2.f32 %v5794_v53  ;;  %v12840_v59 = vld [vmem:[#allocation14_spill] sm:$0xff]  ;;  %v10503_v18 = vadd.f32 %v12842_v45, %v9787_v16  ;;  %v10505_v53 = vpop.f32.mrb[131].mxu1 }
 0x38c   : > { %v7330_v32 = vpop.eup %7329  ;;  %v10485_v60 = vadd.f32 %v4504_v19, %v4157_v48  ;;  %v3198_v52 = vadd.f32 1.0, %v7328_v34  ;;  %7351 = vpow2.f32 %v5793_v43  ;;  %v10497_v0 = vadd.f32 %v12840_v59, %v9775_v50  ;;  %12843 = vst [vmem:[#allocation60_spill] sm:$0xff] %v10505_v53 }
 0x38d   : > { %v7332_v1 = vpop.eup %7331  ;;  %v10493_v61 = vadd.f32 %v4578_v20, %v4159_v31  ;;  %v3200_v49 = vadd.f32 1.0, %v7330_v32  ;;  %v5795_v24 = vmul.f32 -1.442695, %v10489_v8  ;;  %v10510_v48 = vadd.f32 %v9977_v51, %v9782_v37 }
 0x38e   : > { %v7334_v19 = vpop.eup %7333  ;;  %7353 = vrcp.f32 %v3198_v52  ;;  %v3207_v6 = vadd.f32 1.0, %v7332_v1  ;;  %v5802_v32 = vmul.f32 -1.442695, %v10497_v0  ;;  %v10515_v52 = vadd.f32 %v9979_v4, %v9791_v63 }
 0x38f   : > { %v7336_v29 = vpop.eup %7335  ;;  %7355 = vrcp.f32 %v3200_v49  ;;  %v3209_v20 = vadd.f32 1.0, %v7334_v19  ;;  %v5804_v49 = vmul.f32 -1.442695, %v10503_v18  ;;  %v10520_v59 = vadd.f32 %v10017_v39, %v9775_v50  ;;  %v12848_v39 = vld [vmem:[#allocation36_spill] sm:$0xff] }
 0x390   : > { %v7338_v57 = vpop.eup %7337  ;;  %7357 = vrcp.f32 %v3207_v6  ;;  %v3208_v43 = vadd.f32 1.0, %v7336_v29  ;;  %v12844_v6 = vld [vmem:[#allocation34_spill] sm:$0xff]  ;;  %v12845_v29 = vld [vmem:[#allocation35_spill] sm:$0xff]  ;;  %v10535_v53 = vadd.f32 %v12848_v39, %v9791_v63 }
 0x391   : > { %v7340_v34 = vpop.eup %7339  ;;  %7359 = vrcp.f32 %v3209_v20  ;;  %v3210_v31 = vadd.f32 1.0, %v7338_v57  ;;  %v10524_v45 = vadd.f32 %v12844_v6, %v9787_v16  ;;  %v10528_v4 = vadd.f32 %v12845_v29, %v9782_v37  ;;  %v10530_v20 = vpop.f32.mrb[132].mxu1 }
 0x392   : > { %v7342_v5 = vpop.eup %7341  ;;  %7361 = vrcp.f32 %v3208_v43  ;;  %v3217_v1 = vadd.f32 1.0, %v7340_v34  ;;  %12847 = vst [vmem:[#allocation61_spill] sm:$0xff] %v10530_v20  ;;  %v5803_v34 = vmul.f32 -1.442695, %v10510_v48  ;;  %12849 = vst [vmem:[#allocation23_spill] sm:$0xff] %v10535_v53  ;;  %v10540_v29 = vadd.f32 %v12850_v35, %v9775_v50 }
 0x393   : > { %v7344_v51 = vpop.eup %7343  ;;  %7363 = vrcp.f32 %v3210_v31  ;;  %v3219_v19 = vadd.f32 1.0, %v7342_v5  ;;  %12846 = vst [vmem:[#allocation15_spill] sm:$0xff] %v10528_v4  ;;  %v5805_v6 = vmul.f32 -1.442695, %v10515_v52 }
 0x394   : > { %v7346_v57 = vpop.eup %7345  ;;  %7365 = vrcp.f32 %v3217_v1  ;;  %v3218_v43 = vadd.f32 1.0, %v7344_v51  ;;  %12851 = vst [vmem:[#allocation7_spill] sm:$0xff] %v10540_v29  ;;  %v5812_v1 = vmul.f32 -1.442695, %v10520_v59  ;;  %v12852_v51 = vld [vmem:[#allocation64_spill] sm:$0xff] }
 0x395   : > { %v7348_v31 = vpop.eup %7347  ;;  %7367 = vrcp.f32 %v3219_v19  ;;  %v3220_v5 = vadd.f32 1.0, %v7346_v57  ;;  %v10545_v54 = vadd.f32 %v12852_v51, %v9787_v16  ;;  %v5814_v19 = vmul.f32 -1.442695, %v10524_v45 }
 0x396   : > { %v7350_v12 = vpop.eup %7349  ;;  %7369 = vrcp.f32 %v3218_v43  ;;  %v3227_v20 = vadd.f32 1.0, %v7348_v31  ;;  %v10549_v57 = vmul.f32 -1.442695, %v10528_v4  ;;  %v10552_v43 = vmul.f32 -1.442695, %v10535_v53  ;;  %v12854_v31 = vld [vmem:[#allocation16_spill] sm:$0xff] }
 0x397   : > { %12853 = vst [vmem:[#allocation14_spill] sm:$0xff] %v10545_v54  ;;  %v7352_v39 = vpop.eup %7351  ;;  %7371 = vrcp.f32 %v3220_v5  ;;  %v3229_v40 = vadd.f32 1.0, %v7350_v12  ;;  %v10556_v46 = vadd.f32 %v12854_v31, %v9782_v37  ;;  %v10560_v12 = vmul.f32 -1.442695, %v10540_v29  ;;  %v12855_v5 = vld [vmem:[#allocation65_spill] sm:$0xff] }
 0x398   : > { %v7354_v14 = vpop.eup %7353  ;;  %7373 = vrcp.f32 %v3227_v20  ;;  %v3228_v35 = vadd.f32 1.0, %v7352_v39  ;;  %v10564_v10 = vadd.f32 %v12855_v5, %v9791_v63  ;;  %v10566_v20 = vpop.f32.mrb[133].mxu1  ;;  %v10570_v31 = vmul.f32 -1.442695, %v10545_v54  ;;  %v12857_v4 = vld [vmem:[#allocation37_spill] sm:$0xff] }
 0x399   : > { %v7356_v51 = vpop.eup %7355  ;;  %v4158_v30 = vmul.f32 %v7354_v14, %v10383_v11  ;;  %7375 = vrcp.f32 %v3229_v40  ;;  %12856 = vst [vmem:[#allocation6_spill] sm:$0xff] %v10566_v20  ;;  %v10574_v11 = vadd.f32 %v12857_v4, %v9775_v50  ;;  %v10576_v40 = vpop.f32.mrb[134].mxu1  ;;  %v10582_v20 = vadd.f32 %v10067_v36, %v9787_v16 }
 0x39a   : > { %v7358_v39 = vpop.eup %7357  ;;  %v4160_v53 = vmul.f32 %v7356_v51, %v10387_v23  ;;  %7377 = vrcp.f32 %v3228_v35  ;;  %12858 = vst [vmem:[#allocation34_spill] sm:$0xff] %v10576_v40  ;;  %v10584_v23 = vpop.f32.mrb[135].mxu1  ;;  %v5823_v40 = vmul.f32 -1.442695, %v10556_v46 }
 0x39b   : > { %v7360_v14 = vpop.eup %7359  ;;  %v4542_v29 = vadd.f32 %v10477_v62, %v4158_v30  ;;  %v4167_v5 = vmul.f32 %v7358_v39, %v10391_v42  ;;  %7379 = vpow2.f32 %v5795_v24  ;;  %12859 = vst [vmem:[#allocation35_spill] sm:$0xff] %v10584_v23  ;;  %v5825_v62 = vmul.f32 -1.442695, %v10564_v10  ;;  %v12901_v23 = vld [vmem:[#allocation26_spill] sm:$0xff] }
 0x39c   : > { %v7362_v35 = vpop.eup %7361  ;;  %v4616_v51 = vadd.f32 %v10480_v2, %v4160_v53  ;;  %v4169_v4 = vmul.f32 %v7360_v14, %v10396_v9  ;;  %7381 = vpow2.f32 %v5802_v32  ;;  %v10595_v2 = vmul.f32 -1.442695, %v10574_v11 }
 0x39d   : > { %v7364_v54 = vpop.eup %7363  ;;  %v4506_v30 = vadd.f32 %v10485_v60, %v4167_v5  ;;  %v4168_v42 = vmul.f32 %v7362_v35, %v10400_v15  ;;  %7383 = vpow2.f32 %v5804_v49  ;;  %v10599_v60 = vmul.f32 -1.442695, %v10582_v20 }
 0x39e   : > { %v7366_v36 = vpop.eup %7365  ;;  %v4580_v24 = vadd.f32 %v10493_v61, %v4169_v4  ;;  %v4170_v39 = vmul.f32 %v7364_v54, %v10404_v38  ;;  %7385 = vpow2.f32 %v5803_v34  ;;  %v10604_v38 = vadd.f32 %v10082_v55, %v9782_v37  ;;  %v4822_v54 = vld [vmem:[%s12444_s5 + $0x80] sm:$0xff]  ;;  %v10612_v61 = vpop.f32.mrb[136].mxu1 }
 0x39f   : > { %v7368_v9 = vpop.eup %7367  ;;  %v4543_v53 = vadd.f32 %v4542_v29, %v4168_v42  ;;  %v4177_v32 = vmul.f32 %v7366_v36, %v10409_v58  ;;  %7387 = vpow2.f32 %v5805_v6  ;;  %v4823_v58 = vld [vmem:[%s12444_s5 + $0x88] sm:$0xff]  ;;  %12860 = vst [vmem:[#allocation36_spill] sm:$0xff] %v10612_v61  ;;  %v4806_v55 = vld [vmem:[%s12444_s5] sm:$0xff]  ;;  %v10621_v5 = vpop.f32.mrb[137].mxu1 }
 0x3a0   : > { %v7370_v15 = vpop.eup %7369  ;;  %v4617_v49 = vadd.f32 %v4616_v51, %v4170_v39  ;;  %v4179_v14 = vmul.f32 %v7368_v9, %v10414_v44  ;;  %7389 = vpow2.f32 %v5812_v1  ;;  %v6199_v44 = vpack.c.bf16 %v4823_v58, %v4822_v54  ;;  %v4807_v1 = vld [vmem:[%s12444_s5 + $0x8] sm:$0xff]  ;;  %12861 = vst [vmem:[#allocation17_spill] sm:$0xff] %v10621_v5 }
 0x3a1   : > { %v7372_v34 = vpop.eup %7371  ;;  %v4507_v6 = vadd.f32 %v4506_v30, %v4177_v32  ;;  %v4178_v29 = vmul.f32 %v7370_v15, %v10419_v25  ;;  %7391 = vpow2.f32 %v5814_v19  ;;  %v6201_v30 = vpack.c.bf16 %v4807_v1, %v4806_v55  ;;  %v10625_v25 = vpop.f32.mrb[138].mxu1  ;;  %v4824_v55 = vld [vmem:[%s12444_s5 + $0x90] sm:$0xff]  ;;  %v4825_v1 = vld [vmem:[%s12444_s5 + $0x98] sm:$0xff] }
 0x3a2   : > { %v7374_v35 = vpop.eup %7373  ;;  %v4581_v51 = vadd.f32 %v4580_v24, %v4179_v14  ;;  %v4180_v4 = vmul.f32 %v7372_v34, %v10428_v13  ;;  %7393 = vpow2.f32 %v10549_v57  ;;  %12862 = vst [vmem:[#allocation64_spill] sm:$0xff] %v10625_v25  ;;  %v10631_v39 = vadd.f32 %v10084_v41, %v9791_v63  ;;  %6200 = vmatprep.subr.bf16.mxu0 %v6199_v44  ;;  %v10633_v9 = vpop.f32.mrb[139].mxu1 }
 0x3a3   : > { %v7376_v19 = vpop.eup %7375  ;;  %v4544_v42 = vadd.f32 %v4543_v53, %v4178_v29  ;;  %v4187_v36 = vmul.f32 %v7374_v35, %v10440_v21  ;;  %7395 = vpow2.f32 %v10552_v43  ;;  %12863 = vst [vmem:[#allocation16_spill] sm:$0xff] %v10633_v9  ;;  %v10641_v53 = vadd.f32 %v10098_v28, %v9775_v50  ;;  %6202 = vmatpush3.bf16.msra.mxu0 %v6201_v30 }
 0x3a4   : > { %v7378_v24 = vpop.eup %7377  ;;  %v10635_v13 = vadd.f32 %v4617_v49, %v4180_v4  ;;  %v4189_v57 = vmul.f32 %v7376_v19, %v10450_v27  ;;  %7397 = vpow2.f32 %v10560_v12  ;;  %v10649_v32 = vadd.f32 %v10100_v22, %v9787_v16  ;;  %v10664_v22 = vld [vmem:[%s12443_s4 + $0x8] sm:$0x3]  ;;  %v4808_v19 = vld [vmem:[%s12444_s5 + $0x10] sm:$0xff] }
 0x3a5   : > { %v7380_v21 = vpop.eup %7379  ;;  %v10643_v43 = vadd.f32 %v4507_v6, %v4187_v36  ;;  %v4188_v41 = vmul.f32 %v7378_v24, %v10459_v26  ;;  %7399 = vpow2.f32 %v10570_v31  ;;  %v10654_v28 = vmul.f32 -1.442695, %v10604_v38  ;;  %12864 = vst [vmem:[#allocation65_spill] sm:$0xff] %v10664_v22  ;;  %v10673_v6 = vpop.f32.mrb[140].mxu1 }
 0x3a6   : > { %v7382_v15 = vpop.eup %7381  ;;  %v10651_v27 = vadd.f32 %v4581_v51, %v4189_v57  ;;  %v3230_v12 = vadd.f32 1.0, %v7380_v21  ;;  %7401 = vpow2.f32 %v5823_v40  ;;  %v10659_v26 = vmul.f32 -1.442695, %v10631_v39  ;;  %12865 = vst [vmem:[#allocation37_spill] sm:$0xff] %v10673_v6  ;;  %v10684_v35 = vpop.f32.mrb[141].mxu1 }
 0x3a7   : > { %v7384_v49 = vpop.eup %7383  ;;  %v10656_v14 = vadd.f32 %v4544_v42, %v4188_v41  ;;  %v3237_v54 = vadd.f32 1.0, %v7382_v15  ;;  %7403 = vpow2.f32 %v5825_v62  ;;  %v10667_v40 = vmul.f32 -1.442695, %v10641_v53  ;;  %12866 = vst [vmem:[#allocation66_spill] sm:$0xff] %v10684_v35  ;;  %v4809_v42 = vld [vmem:[%s12444_s5 + $0x18] sm:$0xff]  ;;  %v10696_v36 = vpop.f32.mrb[142].mxu1 }
 0x3a8   : > { %v7386_v31 = vpop.eup %7385  ;;  %7405 = vrcp.f32 %v3230_v12  ;;  %v3239_v58 = vadd.f32 1.0, %v7384_v49  ;;  %v10671_v34 = vadd.f32 %v10109_v47, %v9782_v37  ;;  %v10676_v44 = vmul.f32 -1.442695, %v10649_v32  ;;  %12867 = vst [vmem:[#allocation67_spill] sm:$0xff] %v10696_v36  ;;  %v10702_v41 = vpop.f32.mrb[143].mxu1  ;;  %v4886_v15 = vld [vmem:[%s12444_s5 + $0x280] sm:$0xff] }
 0x3a9   : > { %v7388_v62 = vpop.eup %7387  ;;  %7407 = vrcp.f32 %v3237_v54  ;;  %v3238_v29 = vadd.f32 1.0, %v7386_v31  ;;  %v10688_v4 = vadd.f32 %v10111_v56, %v9791_v63  ;;  %v6203_v30 = vpack.c.bf16 %v4825_v1, %v4824_v55  ;;  %12868 = vst [vmem:[#allocation68_spill] sm:$0xff] %v10702_v41  ;;  %v4887_v12 = vld [vmem:[%s12444_s5 + $0x288] sm:$0xff]  ;;  %v10793_v9 = vpop.f32.mrb[144].mxu1 }
 0x3aa   : > { %v7390_v47 = vpop.eup %7389  ;;  %7409 = vrcp.f32 %v3239_v58  ;;  %v3240_v51 = vadd.f32 1.0, %v7388_v62  ;;  %v10700_v21 = vadd.f32 %v10130_v7, %v9775_v50  ;;  %v6205_v56 = vpack.c.bf16 %v4809_v42, %v4808_v19  ;;  %v12869_v54 = vld [vmem:[#allocation21_spill] sm:$0xff] }
 0x3ab   : > { %v7392_v24 = vpop.eup %7391  ;;  %7411 = vrcp.f32 %v3238_v29  ;;  %v3247_v57 = vadd.f32 1.0, %v7390_v47  ;;  %v10712_v31 = vrot.slane %v10664_v22, %v12869_v54  ;;  %v10715_v7 = vmul.f32 -1.442695, %v10671_v34  ;;  %6204 = vmatprep.subr.bf16.mxu0 %v6203_v30  ;;  %v4870_v62 = vld [vmem:[%s12444_s5 + $0x200] sm:$0xff]  ;;  %v4871_v29 = vld [vmem:[%s12444_s5 + $0x208] sm:$0xff]  ;;  %v12903_v22 = vld [vmem:[#allocation27_spill] sm:$0xff] }
 0x3ac   : > { %v7394_v49 = vpop.eup %7393  ;;  %7413 = vrcp.f32 %v3240_v51  ;;  %v3249_v58 = vadd.f32 1.0, %v7392_v24  ;;  %v10725_v47 = vadd.f32 %v10132_v3, %v9787_v16  ;;  %6206 = vmatpush3.bf16.msra.mxu0 %v6205_v56  ;;  %v6263_v51 = vpack.c.bf16 %v4887_v12, %v4886_v15  ;;  %v4888_v56 = vld [vmem:[%s12444_s5 + $0x290] sm:$0xff]  ;;  %v4889_v15 = vld [vmem:[%s12444_s5 + $0x298] sm:$0xff]  ;;  %v4811_v36 = vld [vmem:[%s12444_s5 + $0x28] sm:$0xff] }
 0x3ad   : > { %12870 = vst [vmem:[#allocation69_spill] sm:$0xff] %v10712_v31  ;;  %v7396_v55 = vpop.eup %7395  ;;  %7415 = vrcp.f32 %v3247_v57  ;;  %v3248_v1 = vadd.f32 1.0, %v7394_v49  ;;  %v10728_v42 = vmul.f32 -1.442695, %v10688_v4  ;;  %v10732_v24 = vadd.f32 %v10137_v33, %v9782_v37 }
 0x3ae   : > { %v7398_v19 = vpop.eup %7397  ;;  %7417 = vrcp.f32 %v3249_v58  ;;  %v3250_v30 = vadd.f32 1.0, %v7396_v55  ;;  %v10735_v49 = vmul.f32 -1.442695, %v10700_v21  ;;  %6264 = vmatprep.subr.bf16.mxu1 %v6263_v51  ;;  %v6265_v3 = vpack.c.bf16 %v4871_v29, %v4870_v62  ;;  %v4872_v62 = vld [vmem:[%s12444_s5 + $0x210] sm:$0xff]  ;;  %v4873_v29 = vld [vmem:[%s12444_s5 + $0x218] sm:$0xff] }
 0x3af   : > { %v7400_v54 = vpop.eup %7399  ;;  %7419 = vrcp.f32 %v3248_v1  ;;  %v3257_v57 = vadd.f32 1.0, %v7398_v19  ;;  %v10745_v58 = vadd.f32 %v10139_v17, %v9791_v63  ;;  %v6267_v55 = vpack.c.bf16 %v4889_v15, %v4888_v56  ;;  %v12871_v15 = vld [vmem:[#allocation39_spill] sm:$0xff] }
 0x3b0   : > { %v7402_v12 = vpop.eup %7401  ;;  %7421 = vrcp.f32 %v3250_v30  ;;  %v3259_v33 = vadd.f32 1.0, %v7400_v54  ;;  %v10754_v19 = vmul.f32 -1.442695, %v10725_v47  ;;  %6266 = vmatpush3.bf16.msra.mxu1 %v6265_v3  ;;  %v6269_v54 = vpack.c.bf16 %v4873_v29, %v4872_v62  ;;  %v12872_v62 = vld [vmem:[#allocation40_spill] sm:$0xff]  ;;  %12873 = vst [vmem:[#allocation39_spill] sm:$0xff] %v10793_v9 }
 0x3b1   : > { %v7404_v1 = vpop.eup %7403  ;;  %7423 = vrcp.f32 %v3257_v57  ;;  %v3258_v51 = vadd.f32 1.0, %v7402_v12  ;;  %v10757_v56 = vmul.f32 -1.442695, %v10732_v24  ;;  %v10761_v41 = vadd.f32 %v12871_v15, %v9775_v50  ;;  %v4826_v57 = vld [vmem:[%s12444_s5 + $0xa0] sm:$0xff]  ;;  %v4827_v12 = vld [vmem:[%s12444_s5 + $0xa8] sm:$0xff]  ;;  %6268 = vmatprep.subr.bf16.mxu1 %v6267_v55 }
 0x3b2   : > { %v7406_v30 = vpop.eup %7405  ;;  %7425 = vrcp.f32 %v3259_v33  ;;  %v3260_v17 = vadd.f32 1.0, %v7404_v1  ;;  %v10772_v29 = vadd.f32 %v12872_v62, %v9787_v16  ;;  %v6207_v1 = vpack.c.bf16 %v4827_v12, %v4826_v57  ;;  %v4810_v15 = vld [vmem:[%s12444_s5 + $0x20] sm:$0xff]  ;;  %v4891_v57 = vld [vmem:[%s12444_s5 + $0x2a8] sm:$0xff] }
 0x3b3   : > { %v7408_v3 = vpop.eup %7407  ;;  %v4190_v33 = vmul.f32 %v7406_v30, %v10489_v8  ;;  %7427 = vrcp.f32 %v3258_v51  ;;  %v4890_v55 = vld [vmem:[%s12444_s5 + $0x2a0] sm:$0xff]  ;;  %v10785_v51 = vmul.f32 -1.442695, %v10745_v58  ;;  %v6209_v30 = vpack.c.bf16 %v4811_v36, %v4810_v15 }
 0x3b4   : > { %v7410_v35 = vpop.eup %7409  ;;  %v4197_v8 = vmul.f32 %v7408_v3, %v10497_v0  ;;  %7429 = vrcp.f32 %v3260_v17  ;;  %6208 = vmatprep.subr.bf16.mxu0 %v6207_v1  ;;  %6270 = vmatpush3.bf16.msra.mxu1 %v6269_v54  ;;  %v6271_v0 = vpack.c.bf16 %v4891_v57, %v4890_v55  ;;  %v12874_v15 = vld [vmem:[#allocation25_spill] sm:$0xff] }
 0x3b5   : > { %v7412_v12 = vpop.eup %7411  ;;  %v4619_v62 = vadd.f32 %v10635_v13, %v4190_v33  ;;  %v4199_v6 = vmul.f32 %v7410_v35, %v10503_v18  ;;  %7431 = vpow2.f32 %v10595_v2  ;;  %v10800_v25 = vadd.f32 %v12874_v15, %v9782_v37  ;;  %6210 = vmatpush3.bf16.msra.mxu0 %v6209_v30  ;;  %v10802_v18 = vpop.f32.mrb[145].mxu1  ;;  %v12881_v15 = vld [vmem:[#allocation7_spill] sm:$0xff] }
 0x3b6   : > { %v7414_v17 = vpop.eup %7413  ;;  %v4509_v3 = vadd.f32 %v10643_v43, %v4197_v8  ;;  %v4198_v36 = vmul.f32 %v7412_v12, %v10510_v48  ;;  %7433 = vpow2.f32 %v10599_v60  ;;  %12875 = vst [vmem:[#allocation40_spill] sm:$0xff] %v10802_v18  ;;  %v12876_v43 = vld [vmem:[#allocation41_spill] sm:$0xff]  ;;  %v10811_v48 = vpop.f32.mrb[146].mxu1  ;;  %6272 = vmatprep.subr.bf16.mxu1 %v6271_v0  ;;  %v10822_v8 = vmul.f32 -1.442695, %v10772_v29 }
 0x3b7   : > { %v7416_v2 = vpop.eup %7415  ;;  %v4583_v13 = vadd.f32 %v10651_v27, %v4199_v6  ;;  %v4200_v35 = vmul.f32 %v7414_v17, %v10515_v52  ;;  %7435 = vpow2.f32 %v10654_v28  ;;  %v10809_v54 = vadd.f32 %v12876_v43, %v9791_v63  ;;  %12877 = vst [vmem:[#allocation25_spill] sm:$0xff] %v10811_v48  ;;  %v10817_v6 = vpop.f32.mrb[147].mxu1  ;;  %v12880_v17 = vld [vmem:[#allocation23_spill] sm:$0xff] }
 0x3b8   : > { %v7418_v60 = vpop.eup %7417  ;;  %v4546_v33 = vadd.f32 %v10656_v14, %v4198_v36  ;;  %v4207_v1 = vmul.f32 %v7416_v2, %v10520_v59  ;;  %7437 = vpow2.f32 %v10659_v26  ;;  %v5862_v27 = vmul.f32 -1.442695, %v10761_v41  ;;  %12878 = vst [vmem:[#allocation41_spill] sm:$0xff] %v10817_v6  ;;  %v12879_v14 = vld [vmem:[#allocation15_spill] sm:$0xff] }
 0x3b9   : > { %v7420_v52 = vpop.eup %7419  ;;  %v4620_v28 = vadd.f32 %v4619_v62, %v4200_v35  ;;  %v4209_v55 = vmul.f32 %v7418_v60, %v10524_v45  ;;  %7439 = vpow2.f32 %v10667_v40  ;;  %v10827_v59 = vmul.f32 -1.442695, %v10800_v25 }
 0x3ba   : > { %v7422_v30 = vpop.eup %7421  ;;  %v4510_v57 = vadd.f32 %v4509_v3, %v4207_v1  ;;  %v4208_v12 = vmul.f32 %v7420_v52, %v12879_v14  ;;  %7441 = vpow2.f32 %v10676_v44  ;;  %v10832_v45 = vmul.f32 -1.442695, %v10809_v54  ;;  %v12882_v44 = vld [vmem:[#allocation42_spill] sm:$0xff]  ;;  %v10846_v52 = vpop.f32.mrb[148].mxu1 }
 0x3bb   : > { %v7424_v26 = vpop.eup %7423  ;;  %v4584_v0 = vadd.f32 %v4583_v13, %v4209_v55  ;;  %v4210_v62 = vmul.f32 %v7422_v30, %v12880_v17  ;;  %7443 = vpow2.f32 %v10715_v7  ;;  %v10838_v2 = vadd.f32 %v12882_v44, %v9775_v50  ;;  %v12883_v13 = vld [vmem:[#allocation14_spill] sm:$0xff]  ;;  %v12884_v7 = vld [vmem:[#allocation43_spill] sm:$0xff]  ;;  %12885 = vst [vmem:[#allocation15_spill] sm:$0xff] %v10846_v52  ;;  %v10856_v14 = vpop.f32.mrb[149].mxu1 }
 0x3bc   : > { %v7426_v40 = vpop.eup %7425  ;;  %v4547_v36 = vadd.f32 %v4546_v33, %v4208_v12  ;;  %v4217_v3 = vmul.f32 %v7424_v26, %v12881_v15  ;;  %7445 = vpow2.f32 %v10728_v42  ;;  %v10844_v1 = vadd.f32 %v12884_v7, %v9787_v16  ;;  %v12886_v30 = vld [vmem:[#allocation19_spill] sm:$0xff]  ;;  %12887 = vst [vmem:[#allocation23_spill] sm:$0xff] %v10856_v14 }
 0x3bd   : > { %v7428_v35 = vpop.eup %7427  ;;  %v4621_v43 = vadd.f32 %v4620_v28, %v4210_v62  ;;  %v4219_v60 = vmul.f32 %v7426_v40, %v12883_v13  ;;  %7447 = vpow2.f32 %v10735_v49  ;;  %v10854_v28 = vadd.f32 %v12886_v30, %v9782_v37  ;;  %v4875_v62 = vld [vmem:[%s12444_s5 + $0x228] sm:$0xff]  ;;  %v4829_v44 = vld [vmem:[%s12444_s5 + $0xb8] sm:$0xff] }
 0x3be   : > { %v7430_v33 = vpop.eup %7429  ;;  %v10848_v55 = vadd.f32 %v4510_v57, %v4217_v3  ;;  %v4218_v42 = vmul.f32 %v7428_v35, %v10556_v46  ;;  %7449 = vpow2.f32 %v10754_v19  ;;  %v12888_v57 = vld [vmem:[#allocation18_spill] sm:$0xff]  ;;  %v10866_v46 = vpop.f32.mrb[150].mxu1  ;;  %v4874_v19 = vld [vmem:[%s12444_s5 + $0x220] sm:$0xff]  ;;  %v4813_v7 = vld [vmem:[%s12444_s5 + $0x38] sm:$0xff] }
 0x3bf   : > { %v7432_v49 = vpop.eup %7431  ;;  %v10858_v12 = vadd.f32 %v4584_v0, %v4219_v60  ;;  %v4220_v26 = vmul.f32 %v7430_v33, %v10564_v10  ;;  %7451 = vpow2.f32 %v10757_v56  ;;  %v10864_v17 = vadd.f32 %v12888_v57, %v9791_v63  ;;  %12889 = vst [vmem:[#allocation7_spill] sm:$0xff] %v10866_v46  ;;  %v10880_v15 = vpop.f32.mrb[151].mxu1  ;;  %v4828_v3 = vld [vmem:[%s12444_s5 + $0xb0] sm:$0xff]  ;;  %v12891_v46 = vld [vmem:[#allocation8_spill] sm:$0xff] }
 0x3c0   : > { %v7434_v0 = vpop.eup %7433  ;;  %v10874_v40 = vadd.f32 %v4547_v36, %v4218_v42  ;;  %v3267_v10 = vadd.f32 1.0, %v7432_v49  ;;  %7453 = vpow2.f32 %v10785_v51  ;;  %v10878_v56 = vmul.f32 -1.442695, %v10838_v2  ;;  %12890 = vst [vmem:[#allocation42_spill] sm:$0xff] %v10880_v15  ;;  %v4812_v60 = vld [vmem:[%s12444_s5 + $0x30] sm:$0xff]  ;;  %v4893_v49 = vld [vmem:[%s12444_s5 + $0x2b8] sm:$0xff] }
 0x3c1   : > { %v7436_v35 = vpop.eup %7435  ;;  %v10888_v13 = vadd.f32 %v4621_v43, %v4220_v26  ;;  %v3269_v36 = vadd.f32 1.0, %v7434_v0  ;;  %7455 = vpow2.f32 %v5862_v27  ;;  %v10891_v51 = vmul.f32 -1.442695, %v10844_v1  ;;  %v4892_v27 = vld [vmem:[%s12444_s5 + $0x2b0] sm:$0xff]  ;;  %v10931_v6 = vpop.f32.mrb[152].mxu1 }
 0x3c2   : > { %v7438_v33 = vpop.eup %7437  ;;  %7457 = vrcp.f32 %v3267_v10  ;;  %v3268_v42 = vadd.f32 1.0, %v7436_v35  ;;  %v10900_v30 = vmul.f32 -1.442695, %v10854_v28  ;;  %v6273_v43 = vpack.c.bf16 %v4875_v62, %v4874_v19  ;;  %v4876_v35 = vld [vmem:[%s12444_s5 + $0x230] sm:$0xff]  ;;  %v4877_v19 = vld [vmem:[%s12444_s5 + $0x238] sm:$0xff]  ;;  %12893 = vst [vmem:[#allocation14_spill] sm:$0xff] %v10931_v6 }
 0x3c3   : > { %v7440_v26 = vpop.eup %7439  ;;  %7459 = vrcp.f32 %v3269_v36  ;;  %v3270_v57 = vadd.f32 1.0, %v7438_v33  ;;  %v10909_v0 = vmul.f32 -1.442695, %v10864_v17  ;;  %v6211_v10 = vpack.c.bf16 %v4829_v44, %v4828_v3  ;;  %v4830_v3 = vld [vmem:[%s12444_s5 + $0xc0] sm:$0xff]  ;;  %v4831_v44 = vld [vmem:[%s12444_s5 + $0xc8] sm:$0xff] }
 0x3c4   : > { %v7442_v62 = vpop.eup %7441  ;;  %7461 = vrcp.f32 %v3268_v42  ;;  %v3277_v15 = vadd.f32 1.0, %v7440_v26  ;;  %v10919_v14 = vadd.f32 %v12891_v46, %v9775_v50  ;;  %6274 = vmatpush3.bf16.msra.mxu1 %v6273_v43  ;;  %v6213_v36 = vpack.c.bf16 %v4813_v7, %v4812_v60  ;;  %v12892_v42 = vld [vmem:[#allocation11_spill] sm:$0xff]  ;;  %v4814_v60 = vld [vmem:[%s12444_s5 + $0x40] sm:$0xff]  ;;  %v4815_v7 = vld [vmem:[%s12444_s5 + $0x48] sm:$0xff] }
 0x3c5   : > { %v7444_v33 = vpop.eup %7443  ;;  %7463 = vrcp.f32 %v3270_v57  ;;  %v3279_v52 = vadd.f32 1.0, %v7442_v62  ;;  %v10929_v26 = vadd.f32 %v12892_v42, %v9787_v16  ;;  %6212 = vmatprep.subr.bf16.mxu0 %v6211_v10  ;;  %v6275_v46 = vpack.c.bf16 %v4893_v49, %v4892_v27  ;;  %v12894_v62 = vld [vmem:[#allocation44_spill] sm:$0xff]  ;;  %v10943_v27 = vpop.f32.mrb[153].mxu1  ;;  %v4895_v42 = vld [vmem:[%s12444_s5 + $0x2c8] sm:$0xff] }
 0x3c6   : > { %v7446_v43 = vpop.eup %7445  ;;  %7465 = vrcp.f32 %v3277_v15  ;;  %v3278_v57 = vadd.f32 1.0, %v7444_v33  ;;  %v10941_v48 = vadd.f32 %v12894_v62, %v9782_v37  ;;  %6214 = vmatpush3.bf16.msra.mxu0 %v6213_v36  ;;  %v6277_v10 = vpack.c.bf16 %v4877_v19, %v4876_v35  ;;  %12896 = vst [vmem:[#allocation19_spill] sm:$0xff] %v10943_v27  ;;  %v4894_v49 = vld [vmem:[%s12444_s5 + $0x2c0] sm:$0xff]  ;;  %v10955_v35 = vpop.f32.mrb[154].mxu1  ;;  %v4879_v62 = vld [vmem:[%s12444_s5 + $0x248] sm:$0xff] }
 0x3c7   : > { %v7448_v6 = vpop.eup %7447  ;;  %7467 = vrcp.f32 %v3279_v52  ;;  %v3280_v15 = vadd.f32 1.0, %v7446_v43  ;;  %v12897_v33 = vld [vmem:[#allocation45_spill] sm:$0xff]  ;;  %6276 = vmatprep.subr.bf16.mxu1 %v6275_v46  ;;  %v6215_v36 = vpack.c.bf16 %v4831_v44, %v4830_v3  ;;  %12899 = vst [vmem:[#allocation8_spill] sm:$0xff] %v10955_v35  ;;  %v10964_v43 = vmul.f32 -1.442695, %v10919_v14  ;;  %v10966_v46 = vpop.f32.mrb[155].mxu1 }
 0x3c8   : > { %12895 = vst [vmem:[#allocation43_spill] sm:$0xff] %v10941_v48  ;;  %v10953_v18 = vadd.f32 %v12897_v33, %v9791_v63  ;;  %v4878_v19 = vld [vmem:[%s12444_s5 + $0x240] sm:$0xff]  ;;  %v7450_v27 = vpop.eup %7449  ;;  %7469 = vrcp.f32 %v3278_v57  ;;  %v3287_v52 = vadd.f32 1.0, %v7448_v6  ;;  %6278 = vmatpush3.bf16.msra.mxu1 %v6277_v10  ;;  %v6217_v33 = vpack.c.bf16 %v4815_v7, %v4814_v60  ;;  %12900 = vst [vmem:[#allocation11_spill] sm:$0xff] %v10966_v46  ;;  %v4832_v3 = vld [vmem:[%s12444_s5 + $0xd0] sm:$0xff] }
 0x3c9   : > { %v4833_v44 = vld [vmem:[%s12444_s5 + $0xd8] sm:$0xff]  ;;  %v7452_v35 = vpop.eup %7451  ;;  %7471 = vrcp.f32 %v3280_v15  ;;  %v3289_v9 = vadd.f32 1.0, %v7450_v27  ;;  %v10975_v6 = vmul.f32 -1.442695, %v10929_v26  ;;  %6216 = vmatprep.subr.bf16.mxu0 %v6215_v36  ;;  %v6279_v57 = vpack.c.bf16 %v4895_v42, %v4894_v49  ;;  %v4816_v60 = vld [vmem:[%s12444_s5 + $0x50] sm:$0xff] }
 0x3ca   : > { %12898 = vst [vmem:[#allocation18_spill] sm:$0xff] %v10953_v18  ;;  %v4817_v7 = vld [vmem:[%s12444_s5 + $0x58] sm:$0xff]  ;;  %v7454_v10 = vpop.eup %7453  ;;  %7473 = vrcp.f32 %v3287_v52  ;;  %v3288_v46 = vadd.f32 1.0, %v7452_v35  ;;  %v10984_v5 = vmul.f32 -1.442695, %v10941_v48  ;;  %6218 = vmatpush3.bf16.msra.mxu0 %v6217_v33  ;;  %v6281_v27 = vpack.c.bf16 %v4879_v62, %v4878_v19  ;;  %v4896_v49 = vld [vmem:[%s12444_s5 + $0x2d0] sm:$0xff] }
 0x3cb   : > { %v4897_v42 = vld [vmem:[%s12444_s5 + $0x2d8] sm:$0xff]  ;;  %v7456_v15 = vpop.eup %7455  ;;  %7475 = vrcp.f32 %v3289_v9  ;;  %v3290_v36 = vadd.f32 1.0, %v7454_v10  ;;  %v10993_v61 = vmul.f32 -1.442695, %v10953_v18  ;;  %6280 = vmatprep.subr.bf16.mxu1 %v6279_v57  ;;  %v6219_v35 = vpack.c.bf16 %v4833_v44, %v4832_v3  ;;  %v4880_v19 = vld [vmem:[%s12444_s5 + $0x250] sm:$0xff]  ;;  %v4834_v3 = vld [vmem:[%s12444_s5 + $0xe0] sm:$0xff] }
 0x3cc   : > { %v4881_v62 = vld [vmem:[%s12444_s5 + $0x258] sm:$0xff]  ;;  %v7458_v52 = vpop.eup %7457  ;;  %7477 = vrcp.f32 %v3288_v46  ;;  %v3297_v33 = vadd.f32 1.0, %v7456_v15  ;;  %v11003_v9 = vadd.f32 %v12901_v23, %v9775_v50  ;;  %6282 = vmatpush3.bf16.msra.mxu1 %v6281_v27  ;;  %v6221_v10 = vpack.c.bf16 %v4817_v7, %v4816_v60  ;;  %v4835_v44 = vld [vmem:[%s12444_s5 + $0xe8] sm:$0xff]  ;;  %v11016_v27 = vpop.f32.mrb[156].mxu1 }
 0x3cd   : > { %v7460_v57 = vpop.eup %7459  ;;  %v4227_v31 = vmul.f32 %v7458_v52, %v10574_v11  ;;  %7479 = vrcp.f32 %v3290_v36  ;;  %v12902_v46 = vld [vmem:[#allocation46_spill] sm:$0xff]  ;;  %6220 = vmatprep.subr.bf16.mxu0 %v6219_v35  ;;  %v6283_v23 = vpack.c.bf16 %v4897_v42, %v4896_v49  ;;  %v11021_v18 = vadd.f32 %v12903_v22, %v9782_v37  ;;  %v11023_v11 = vpop.f32.mrb[157].mxu1 }
 0x3ce   : > { %v11014_v15 = vadd.f32 %v12902_v46, %v9787_v16  ;;  %v7462_v60 = vpop.eup %7461  ;;  %v4229_v7 = vmul.f32 %v7460_v57, %v10582_v20  ;;  %7481 = vrcp.f32 %v3297_v33  ;;  %6222 = vmatpush3.bf16.msra.mxu0 %v6221_v10  ;;  %v6285_v48 = vpack.c.bf16 %v4881_v62, %v4880_v19  ;;  %v4818_v20 = vld [vmem:[%s12444_s5 + $0x60] sm:$0xff]  ;;  %v4819_v22 = vld [vmem:[%s12444_s5 + $0x68] sm:$0xff]  ;;  %v11034_v42 = vpop.f32.mrb[158].mxu1  ;;  %v12904_v46 = vld [vmem:[#allocation47_spill] sm:$0xff] }
 0x3cf   : > { %v7464_v36 = vpop.eup %7463  ;;  %v4512_v52 = vadd.f32 %v10848_v55, %v4227_v31  ;;  %v4228_v35 = vmul.f32 %v7462_v60, %v10604_v38  ;;  %7483 = vpow2.f32 %v10822_v8  ;;  %6284 = vmatprep.subr.bf16.mxu1 %v6283_v23  ;;  %v6223_v49 = vpack.c.bf16 %v4835_v44, %v4834_v3  ;;  %v11042_v8 = vpop.f32.mrb[159].mxu1  ;;  %v4882_v60 = vld [vmem:[%s12444_s5 + $0x260] sm:$0xff] }
 0x3d0   : > { %v7466_v19 = vpop.eup %7465  ;;  %v4586_v62 = vadd.f32 %v10858_v12, %v4229_v7  ;;  %v4230_v31 = vmul.f32 %v7464_v36, %v10631_v39  ;;  %7485 = vpow2.f32 %v10827_v59  ;;  %v11040_v38 = vmul.f32 -1.442695, %v11003_v9  ;;  %6286 = vmatpush3.bf16.msra.mxu1 %v6285_v48  ;;  %v4898_v39 = vld [vmem:[%s12444_s5 + $0x2e0] sm:$0xff]  ;;  %v4899_v48 = vld [vmem:[%s12444_s5 + $0x2e8] sm:$0xff] }
 0x3d1   : > { %v7468_v55 = vpop.eup %7467  ;;  %v4549_v33 = vadd.f32 %v10874_v40, %v4228_v35  ;;  %v4237_v10 = vmul.f32 %v7466_v19, %v10641_v53  ;;  %7487 = vpow2.f32 %v10832_v45  ;;  %v11048_v3 = vmul.f32 -1.442695, %v11014_v15  ;;  %6224 = vmatprep.subr.bf16.mxu0 %v6223_v49  ;;  %v12905_v35 = vld [vmem:[#allocation48_spill] sm:$0xff] }
 0x3d2   : > { %v7470_v59 = vpop.eup %7469  ;;  %v4623_v12 = vadd.f32 %v10888_v13, %v4230_v31  ;;  %v4239_v40 = vmul.f32 %v7468_v55, %v10649_v32  ;;  %7489 = vpow2.f32 %v10878_v56  ;;  %v6225_v53 = vpack.c.bf16 %v4819_v22, %v4818_v20  ;;  %v4883_v32 = vld [vmem:[%s12444_s5 + $0x268] sm:$0xff]  ;;  %v11079_v20 = vpop.f32.mrb[160].mxu1 }
 0x3d3   : > { %v7472_v45 = vpop.eup %7471  ;;  %v4513_v44 = vadd.f32 %v4512_v52, %v4237_v10  ;;  %v4238_v57 = vmul.f32 %v7470_v59, %v10671_v34  ;;  %7491 = vpow2.f32 %v10891_v51  ;;  %v11063_v23 = vadd.f32 %v12904_v46, %v9791_v63  ;;  %v4901_v46 = vld [vmem:[%s12444_s5 + $0x2f8] sm:$0xff] }
 0x3d4   : > { %v7474_v56 = vpop.eup %7473  ;;  %v4587_v13 = vadd.f32 %v4586_v62, %v4239_v40  ;;  %v4240_v7 = vmul.f32 %v7472_v45, %v10688_v4  ;;  %7493 = vpow2.f32 %v10900_v30  ;;  %6226 = vmatpush3.bf16.msra.mxu0 %v6225_v53  ;;  %v6287_v34 = vpack.c.bf16 %v4899_v48, %v4898_v39  ;;  %v11089_v62 = vpop.f32.mrb[161].mxu1  ;;  %v4900_v53 = vld [vmem:[%s12444_s5 + $0x2f0] sm:$0xff] }
 0x3d5   : > { %v7476_v51 = vpop.eup %7475  ;;  %v4550_v36 = vadd.f32 %v4549_v33, %v4238_v57  ;;  %v4247_v52 = vmul.f32 %v7474_v56, %v10700_v21  ;;  %7495 = vpow2.f32 %v10909_v0  ;;  %v11077_v49 = vadd.f32 %v12905_v35, %v9775_v50  ;;  %v4836_v21 = vld [vmem:[%s12444_s5 + $0xf0] sm:$0xff]  ;;  %v4837_v0 = vld [vmem:[%s12444_s5 + $0xf8] sm:$0xff]  ;;  %12906 = vst [vmem:[#allocation44_spill] sm:$0xff] %v11089_v62  ;;  %v11097_v10 = vpop.f32.mrb[162].mxu1 }
 0x3d6   : > { %v7478_v22 = vpop.eup %7477  ;;  %v4624_v19 = vadd.f32 %v4623_v12, %v4240_v7  ;;  %v4249_v4 = vmul.f32 %v7476_v51, %v10725_v47  ;;  %7497 = vpow2.f32 %v10964_v43  ;;  %6288 = vmatprep.subr.bf16.mxu1 %v6287_v34  ;;  %v6289_v30 = vpack.c.bf16 %v4883_v32, %v4882_v60  ;;  %v12907_v47 = vld [vmem:[#allocation49_spill] sm:$0xff]  ;;  %12908 = vst [vmem:[#allocation45_spill] sm:$0xff] %v11097_v10  ;;  %v12909_v12 = vld [vmem:[#allocation28_spill] sm:$0xff]  ;;  %v4884_v60 = vld [vmem:[%s12444_s5 + $0x270] sm:$0xff] }
 0x3d7   : > { %v7480_v31 = vpop.eup %7479  ;;  %v4514_v55 = vadd.f32 %v4513_v44, %v4247_v52  ;;  %v4248_v33 = vmul.f32 %v7478_v22, %v10732_v24  ;;  %7499 = vpow2.f32 %v10975_v6  ;;  %v11095_v43 = vadd.f32 %v12907_v47, %v9787_v16  ;;  %v4820_v24 = vld [vmem:[%s12444_s5 + $0x70] sm:$0xff]  ;;  %v4821_v6 = vld [vmem:[%s12444_s5 + $0x78] sm:$0xff]  ;;  %v4854_v34 = vld [vmem:[%s12444_s5 + $0x180] sm:$0xff] }
 0x3d8   : > { %v7482_v39 = vpop.eup %7481  ;;  %v11099_v48 = vadd.f32 %v4587_v13, %v4249_v4  ;;  %v4250_v59 = vmul.f32 %v7480_v31, %v10745_v58  ;;  %7501 = vpow2.f32 %v10984_v5  ;;  %v11105_v40 = vadd.f32 %v12909_v12, %v9782_v37  ;;  %6290 = vmatpush3.bf16.msra.mxu1 %v6289_v30  ;;  %v11116_v58 = vpop.f32.mrb[163].mxu1  ;;  %v4885_v32 = vld [vmem:[%s12444_s5 + $0x278] sm:$0xff]  ;;  %v4855_v51 = vld [vmem:[%s12444_s5 + $0x188] sm:$0xff] }
 0x3d9   : > { %12910 = vst [vmem:[#allocation26_spill] sm:$0xff] %v11116_v58  ;;  %v7484_v5 = vpop.eup %7483  ;;  %v11118_v45 = vadd.f32 %v4550_v36, %v4248_v33  ;;  %v4257_v44 = vmul.f32 %v7482_v39, %v10761_v41  ;;  %7503 = vpow2.f32 %v10993_v61  ;;  %v6227_v57 = vpack.c.bf16 %v4837_v0, %v4836_v21  ;;  %v12911_v61 = vld [vmem:[#allocation29_spill] sm:$0xff]  ;;  %v12912_v0 = vld [vmem:[#allocation24_spill] sm:$0xff]  ;;  %v12913_v31 = vld [vmem:[#allocation38_spill] sm:$0xff]  ;;  %v11153_v12 = vpop.f32.mrb[164].mxu1 }
 0x3da   : > { %v7486_v56 = vpop.eup %7485  ;;  %v11131_v13 = vadd.f32 %v4624_v19, %v4250_v59  ;;  %v3299_v7 = vadd.f32 1.0, %v7484_v5  ;;  %7505 = vpow2.f32 %v11040_v38  ;;  %v11136_v41 = vadd.f32 %v12911_v61, %v9791_v63  ;;  %v12914_v33 = vld [vmem:[#allocation9_spill] sm:$0xff]  ;;  %12917 = vst [vmem:[#allocation27_spill] sm:$0xff] %v11153_v12  ;;  %v11161_v5 = vpop.f32.mrb[165].mxu1 }
 0x3db   : > { %v7488_v36 = vpop.eup %7487  ;;  %v11144_v52 = vadd.f32 %v4514_v55, %v4257_v44  ;;  %v3298_v35 = vadd.f32 1.0, %v7486_v56  ;;  %7507 = vpow2.f32 %v11048_v3  ;;  %6228 = vmatprep.subr.bf16.mxu0 %v6227_v57  ;;  %v6229_v38 = vpack.c.bf16 %v4821_v6, %v4820_v24  ;;  %12918 = vst [vmem:[#allocation47_spill] sm:$0xff] %v11161_v5 }
 0x3dc   : > { %v7490_v22 = vpop.eup %7489  ;;  %7509 = vrcp.f32 %v3299_v7  ;;  %v3300_v19 = vadd.f32 1.0, %v7488_v36  ;;  %v6291_v4 = vpack.c.bf16 %v4901_v46, %v4900_v53  ;;  %v6293_v30 = vpack.c.bf16 %v4885_v32, %v4884_v60  ;;  %v11169_v32 = vpop.f32.mrb[166].mxu1 }
 0x3dd   : > { %v7492_v21 = vpop.eup %7491  ;;  %v12915_v47 = vcombine.low %v12913_v31, %v12914_v33  ;;  %7511 = vrcp.f32 %v3298_v35  ;;  %v3307_v55 = vadd.f32 1.0, %v7490_v22  ;;  %6230 = vmatpush3.bf16.msra.mxu0 %v6229_v38  ;;  %v6231_v59 = vpack.c.bf16 %v4855_v51, %v4854_v34  ;;  %12919 = vst [vmem:[#allocation48_spill] sm:$0xff] %v11169_v32  ;;  %v11177_v51 = vpop.f32.mrb[167].mxu1  ;;  %v12921_v38 = vld [vmem:[#allocation10_spill] sm:$0xff]  ;;  %v12923_v31 = vld [vmem:[#allocation31_spill] sm:$0xff] }
 0x3de   : > { %v7494_v3 = vpop.eup %7493  ;;  %7513 = vrcp.f32 %v3300_v19  ;;  %v3309_v24 = vadd.f32 1.0, %v7492_v21  ;;  %v11156_v6 = vmul.f32 -1.442695, %v11021_v18  ;;  %v11159_v53 = vmul.f32 -1.442695, %v11063_v23  ;;  %6292 = vmatprep.subr.bf16.mxu1 %v6291_v4  ;;  %12920 = vst [vmem:[#allocation49_spill] sm:$0xff] %v11177_v51 }
 0x3df   : > { %v11151_v39 = vrot.slane %v12915_v47, %v12912_v0  ;;  %v7496_v44 = vpop.eup %7495  ;;  %7515 = vrcp.f32 %v3307_v55  ;;  %v3308_v57 = vadd.f32 1.0, %v7494_v3  ;;  %v11164_v46 = vmul.f32 -1.442695, %v11077_v49  ;;  %6294 = vmatpush3.bf16.msra.mxu1 %v6293_v30  ;;  %6232 = vmatprep.subr.bf16.mxu0 %v6231_v59  ;;  %v12922_v19 = vld [vmem:[#allocation30_spill] sm:$0xff] }
 0x3e0   : > { %v11167_v60 = vmul.f32 -1.442695, %v11095_v43  ;;  %v7498_v56 = vpop.eup %7497  ;;  %7517 = vrcp.f32 %v3309_v24  ;;  %v3310_v7 = vadd.f32 1.0, %v7496_v44  ;;  %v11172_v61 = vmul.f32 -1.442695, %v11105_v40  ;;  %v12924_v47 = vld [vmem:[#allocation50_spill] sm:$0xff] }
 0x3e1   : > { %12916 = vst [vmem:[#allocation46_spill] sm:$0xff] %v11151_v39  ;;  %v11175_v34 = vmul.f32 -1.442695, %v11136_v41  ;;  %v7500_v36 = vpop.eup %7499  ;;  %7519 = vrcp.f32 %v3308_v57  ;;  %v3317_v35 = vadd.f32 1.0, %v7498_v56  ;;  %v11181_v22 = vadd.f32 %v12921_v38, %v9775_v50  ;;  %v12925_v24 = vld [vmem:[#allocation51_spill] sm:$0xff]  ;;  %v12926_v57 = vld [vmem:[#allocation52_spill] sm:$0xff] }
 0x3e2   : > { %v11185_v4 = vadd.f32 %v12922_v19, %v9787_v16  ;;  %v7502_v30 = vpop.eup %7501  ;;  %7521 = vrcp.f32 %v3310_v7  ;;  %v3319_v21 = vadd.f32 1.0, %v7500_v36  ;;  %v11189_v33 = vadd.f32 %v12923_v31, %v9782_v37  ;;  %v12927_v38 = vld [vmem:[#allocation13_spill] sm:$0xff]  ;;  %v12928_v31 = vld [vmem:[#allocation62_spill] sm:$0xff] }
 0x3e3   : > { %v11193_v55 = vadd.f32 %v12924_v47, %v9791_v63  ;;  %v7504_v59 = vpop.eup %7503  ;;  %7523 = vrcp.f32 %v3317_v35  ;;  %v3318_v3 = vadd.f32 1.0, %v7502_v30  ;;  %v11197_v44 = vadd.f32 %v12925_v24, %v9775_v50 }
 0x3e4   : > { %v11201_v56 = vadd.f32 %v12926_v57, %v9787_v16  ;;  %v7506_v7 = vpop.eup %7505  ;;  %7525 = vrcp.f32 %v3319_v21  ;;  %v3320_v36 = vadd.f32 1.0, %v7504_v59  ;;  %v11205_v19 = vadd.f32 %v12927_v38, %v9782_v37  ;;  %v11213_v57 = vpop.f32.mrb[168].mxu1 }
 0x3e5   : > { %v11209_v47 = vadd.f32 %v12928_v31, %v9791_v63  ;;  %v7508_v35 = vpop.eup %7507  ;;  %7527 = vrcp.f32 %v3318_v3  ;;  %v3327_v30 = vadd.f32 1.0, %v7506_v7  ;;  %v5912_v24 = vmul.f32 -1.442695, %v11181_v22  ;;  %12929 = vst [vmem:[#allocation28_spill] sm:$0xff] %v11213_v57  ;;  %v11219_v5 = vpop.f32.mrb[169].mxu1 }
 0x3e6   : > { %v5914_v51 = vmul.f32 -1.442695, %v11185_v4  ;;  %v7510_v32 = vpop.eup %7509  ;;  %7529 = vrcp.f32 %v3320_v36  ;;  %v3329_v21 = vadd.f32 1.0, %v7508_v35  ;;  %v5913_v59 = vmul.f32 -1.442695, %v11189_v33  ;;  %12930 = vst [vmem:[#allocation29_spill] sm:$0xff] %v11219_v5 }
 0x3e7   : > { %v11217_v38 = vmul.f32 -1.442695, %v11193_v55  ;;  %v7512_v31 = vpop.eup %7511  ;;  %v4259_v3 = vmul.f32 %v7510_v32, %v10772_v29  ;;  %7531 = vrcp.f32 %v3327_v30  ;;  %v11223_v7 = vmul.f32 -1.442695, %v11197_v44  ;;  %v11228_v57 = vpop.f32.mrb[170].mxu1 }
 0x3e8   : > { %v11226_v39 = vmul.f32 -1.442695, %v11201_v56  ;;  %12931 = vst [vmem:[#allocation38_spill] sm:$0xff] %v11228_v57  ;;  %v7514_v36 = vpop.eup %7513  ;;  %v4258_v35 = vmul.f32 %v7512_v31, %v10800_v25  ;;  %7533 = vrcp.f32 %v3329_v21  ;;  %v11232_v12 = vmul.f32 -1.442695, %v11205_v19  ;;  %v11237_v29 = vpop.f32.mrb[171].mxu1 }
 0x3e9   : > { %v11235_v5 = vmul.f32 -1.442695, %v11209_v47  ;;  %12932 = vst [vmem:[#allocation9_spill] sm:$0xff] %v11237_v29  ;;  %v7516_v32 = vpop.eup %7515  ;;  %v4589_v30 = vadd.f32 %v11099_v48, %v4259_v3  ;;  %v4260_v0 = vmul.f32 %v7514_v36, %v10809_v54  ;;  %7535 = vpow2.f32 %v11156_v6  ;;  %v12933_v57 = vld [vmem:[#allocation32_spill] sm:$0xff]  ;;  %v12934_v29 = vld [vmem:[#allocation63_spill] sm:$0xff]  ;;  %v12936_v36 = vld [vmem:[#allocation53_spill] sm:$0xff] }
 0x3ea   : > { %v11244_v58 = vadd.f32 %v12933_v57, %v9775_v50  ;;  %v7518_v25 = vpop.eup %7517  ;;  %v4552_v21 = vadd.f32 %v11118_v45, %v4258_v35  ;;  %v4267_v31 = vmul.f32 %v7516_v32, %v10838_v2  ;;  %7537 = vpow2.f32 %v11159_v53  ;;  %v12935_v57 = vld [vmem:[#allocation33_spill] sm:$0xff] }
 0x3eb   : > { %v11251_v10 = vadd.f32 %v12934_v29, %v9787_v16  ;;  %v7520_v48 = vpop.eup %7519  ;;  %v4626_v54 = vadd.f32 %v11131_v13, %v4260_v0  ;;  %v4269_v6 = vmul.f32 %v7518_v25, %v10844_v1  ;;  %7539 = vpow2.f32 %v11164_v46  ;;  %v11272_v29 = vpop.f32.mrb[172].mxu1 }
 0x3ec   : > { %v11258_v3 = vadd.f32 %v12935_v57, %v9782_v37  ;;  %v7522_v45 = vpop.eup %7521  ;;  %v4516_v2 = vadd.f32 %v11144_v52, %v4267_v31  ;;  %v4268_v53 = vmul.f32 %v7520_v48, %v10854_v28  ;;  %7541 = vpow2.f32 %v11167_v60  ;;  %12937 = vst [vmem:[#allocation10_spill] sm:$0xff] %v11272_v29  ;;  %v11279_v25 = vpop.f32.mrb[173].mxu1 }
 0x3ed   : > { %v11265_v35 = vadd.f32 %v12936_v36, %v9791_v63  ;;  %v7524_v13 = vpop.eup %7523  ;;  %v4590_v0 = vadd.f32 %v4589_v30, %v4269_v6  ;;  %v4270_v1 = vmul.f32 %v7522_v45, %v10864_v17  ;;  %7543 = vpow2.f32 %v11172_v61  ;;  %12938 = vst [vmem:[#allocation30_spill] sm:$0xff] %v11279_v25  ;;  %v11285_v48 = vpop.f32.mrb[174].mxu1  ;;  %v12942_v36 = vld [vmem:[#allocation18_spill] sm:$0xff] }
 0x3ee   : > { %v11270_v46 = vmul.f32 -1.442695, %v11244_v58  ;;  %v7526_v52 = vpop.eup %7525  ;;  %v4553_v32 = vadd.f32 %v4552_v21, %v4268_v53  ;;  %v4277_v28 = vmul.f32 %v7524_v13, %v10919_v14  ;;  %7545 = vpow2.f32 %v11175_v34  ;;  %12939 = vst [vmem:[#allocation31_spill] sm:$0xff] %v11285_v48  ;;  %v12940_v14 = vld [vmem:[#allocation43_spill] sm:$0xff]  ;;  %v11291_v45 = vpop.f32.mrb[175].mxu1  ;;  %v12968_v25 = vld [vmem:[#allocation34_spill] sm:$0xff] }
 0x3ef   : > { %v11277_v60 = vmul.f32 -1.442695, %v11251_v10  ;;  %v7528_v30 = vpop.eup %7527  ;;  %v4627_v17 = vadd.f32 %v4626_v54, %v4270_v1  ;;  %v4279_v61 = vmul.f32 %v7526_v52, %v10929_v26  ;;  %7547 = vpow2.f32 %v5912_v24  ;;  %12941 = vst [vmem:[#allocation50_spill] sm:$0xff] %v11291_v45  ;;  %v12943_v24 = vld [vmem:[#allocation12_spill] sm:$0xff] }
 0x3f0   : > { %v11283_v31 = vmul.f32 -1.442695, %v11258_v3  ;;  %v7530_v21 = vpop.eup %7529  ;;  %v4517_v6 = vadd.f32 %v4516_v2, %v4277_v28  ;;  %v4278_v57 = vmul.f32 %v7528_v30, %v12940_v14  ;;  %7549 = vpow2.f32 %v5914_v51  ;;  %v12944_v51 = vld [vmem:[#allocation54_spill] sm:$0xff] }
 0x3f1   : > { %v11289_v34 = vmul.f32 -1.442695, %v11265_v35  ;;  %v7532_v53 = vpop.eup %7531  ;;  %v4591_v54 = vadd.f32 %v4590_v0, %v4279_v61  ;;  %v4280_v26 = vmul.f32 %v7530_v21, %v12942_v36  ;;  %7551 = vpow2.f32 %v5913_v59  ;;  %v12946_v61 = vld [vmem:[#allocation65_spill] sm:$0xff]  ;;  %v11328_v36 = vpop.f32.mrb[176].mxu1 }
 0x3f2   : > { %v11296_v13 = vadd.f32 %v12943_v24, %v9775_v50  ;;  %v7534_v1 = vpop.eup %7533  ;;  %v11298_v52 = vadd.f32 %v4553_v32, %v4278_v57  ;;  %v4287_v2 = vmul.f32 %v7532_v53, %v11003_v9  ;;  %7553 = vpow2.f32 %v11217_v38  ;;  %v12945_v50 = vld [vmem:[#allocation22_spill] sm:$0xff]  ;;  %12951 = vst [vmem:[#allocation13_spill] sm:$0xff] %v11328_v36  ;;  %v12953_v24 = vld [vmem:[#allocation57_spill] sm:$0xff] }
 0x3f3   : > { %v11304_v28 = vadd.f32 %v12944_v51, %v9787_v16  ;;  %v7536_v30 = vpop.eup %7535  ;;  %v11306_v0 = vadd.f32 %v4627_v17, %v4280_v26  ;;  %v4289_v59 = vmul.f32 %v7534_v1, %v11014_v15  ;;  %7555 = vpow2.f32 %v11223_v7  ;;  %v12947_v16 = vld [vmem:[#allocation55_spill] sm:$0xff]  ;;  %v12949_v7 = vld [vmem:[#allocation56_spill] sm:$0xff]  ;;  %v12964_v36 = vld [vmem:[#allocation61_spill] sm:$0xff] }
 0x3f4   : > { %v11312_v21 = vrot.slane %v12946_v61, %v12945_v50  ;;  %v7538_v32 = vpop.eup %7537  ;;  %v11314_v14 = vadd.f32 %v4517_v6, %v4287_v2  ;;  %v3328_v9 = vadd.f32 1.0, %v7536_v30  ;;  %7557 = vpow2.f32 %v11226_v39  ;;  %v12952_v39 = vld [vmem:[#allocation69_spill] sm:$0xff]  ;;  %v11338_v2 = vpop.f32.mrb[177].mxu1  ;;  %v12958_v30 = vld [vmem:[#allocation58_spill] sm:$0xff] }
 0x3f5   : > { %v11319_v38 = vadd.f32 %v12947_v16, %v9782_v37  ;;  %v7540_v17 = vpop.eup %7539  ;;  %v11321_v57 = vadd.f32 %v4591_v54, %v4289_v59  ;;  %v3330_v15 = vadd.f32 1.0, %v7538_v32  ;;  %7559 = vpow2.f32 %v11232_v12  ;;  %v12955_v37 = vld [vmem:[#allocation59_spill] sm:$0xff]  ;;  %12957 = vst [vmem:[#allocation63_spill] sm:$0xff] %v11338_v2  ;;  %v11347_v61 = vpop.f32.mrb[178].mxu1 }
 0x3f6   : > { %v11326_v53 = vadd.f32 %v12949_v7, %v9791_v63  ;;  %v7542_v6 = vpop.eup %7541  ;;  %7561 = vrcp.f32 %v3328_v9  ;;  %v3337_v26 = vadd.f32 1.0, %v7540_v17  ;;  %v11332_v1 = vadd.f32 %v12953_v24, %v12952_v39  ;;  %12960 = vst [vmem:[#allocation53_spill] sm:$0xff] %v11347_v61 }
 0x3f7   : > { %12948 = vst [vmem:[#allocation51_spill] sm:$0xff] %v11319_v38  ;;  %v11336_v54 = vadd.f32 %v12955_v37, %v12952_v39  ;;  %v7544_v12 = vpop.eup %7543  ;;  %7563 = vrcp.f32 %v3330_v15  ;;  %v3339_v51 = vadd.f32 1.0, %v7542_v6  ;;  %v11341_v63 = vmul.f32 -1.442695, %v11296_v13  ;;  %v11355_v15 = vpop.f32.mrb[179].mxu1  ;;  %v12962_v37 = vld [vmem:[#allocation60_spill] sm:$0xff] }
 0x3f8   : > { %12950 = vst [vmem:[#allocation52_spill] sm:$0xff] %v11326_v53  ;;  %12954 = vst [vmem:[#allocation62_spill] sm:$0xff] %v11332_v1  ;;  %v11345_v59 = vadd.f32 %v12958_v30, %v11312_v21  ;;  %v7546_v32 = vpop.eup %7545  ;;  %7565 = vrcp.f32 %v3337_v26  ;;  %v3338_v9 = vadd.f32 1.0, %v7544_v12  ;;  %v11350_v16 = vmul.f32 -1.442695, %v11304_v28 }
 0x3f9   : > { %12956 = vst [vmem:[#allocation32_spill] sm:$0xff] %v11336_v54  ;;  %v11353_v17 = vmul.f32 -1.442695, %v11319_v38  ;;  %12961 = vst [vmem:[#allocation43_spill] sm:$0xff] %v11355_v15  ;;  %v7548_v7 = vpop.eup %7547  ;;  %7567 = vrcp.f32 %v3339_v51  ;;  %v3340_v6 = vadd.f32 1.0, %v7546_v32  ;;  %v11362_v30 = vadd.f32 %v12962_v37, %v11312_v21 }
 0x3fa   : > { %12959 = vst [vmem:[#allocation33_spill] sm:$0xff] %v11345_v59  ;;  %v11358_v24 = vmul.f32 -1.442695, %v11326_v53  ;;  %v7550_v26 = vpop.eup %7549  ;;  %7569 = vrcp.f32 %v3338_v9  ;;  %v3347_v12 = vadd.f32 1.0, %v7548_v7  ;;  %v11365_v61 = vmul.f32 -1.442695, %v11332_v1 }
 0x3fb   : > { %12963 = vst [vmem:[#allocation18_spill] sm:$0xff] %v11362_v30  ;;  %v11368_v2 = vmul.f32 -1.442695, %v11336_v54  ;;  %v7552_v15 = vpop.eup %7551  ;;  %7571 = vrcp.f32 %v3340_v6  ;;  %v3349_v51 = vadd.f32 1.0, %v7550_v26  ;;  %v11371_v32 = vmul.f32 -1.442695, %v11345_v59 }
 0x3fc   : > { %v11375_v45 = vadd.f32 %v12964_v36, %v12952_v39  ;;  %v7554_v37 = vpop.eup %7553  ;;  %7573 = vrcp.f32 %v3347_v12  ;;  %v3348_v9 = vadd.f32 1.0, %v7552_v15  ;;  %v12966_v7 = vld [vmem:[#allocation6_spill] sm:$0xff]  ;;  %v11383_v29 = vadd.f32 %v12968_v25, %v12952_v39  ;;  %v12970_v36 = vld [vmem:[#allocation35_spill] sm:$0xff]  ;;  %v11392_v12 = vpop.f32.mrb[180].mxu1  ;;  %v12972_v59 = vld [vmem:[#allocation36_spill] sm:$0xff] }
 0x3fd   : > { %v11379_v48 = vadd.f32 %v12966_v7, %v11312_v21  ;;  %v7556_v6 = vpop.eup %7555  ;;  %7575 = vrcp.f32 %v3349_v51  ;;  %v3350_v26 = vadd.f32 1.0, %v7554_v37  ;;  %v11386_v50 = vmul.f32 -1.442695, %v11362_v30  ;;  %12971 = vst [vmem:[#allocation55_spill] sm:$0xff] %v11392_v12  ;;  %v12974_v25 = vld [vmem:[#allocation17_spill] sm:$0xff]  ;;  %v11402_v37 = vpop.f32.mrb[181].mxu1 }
 0x3fe   : > { %12965 = vst [vmem:[#allocation12_spill] sm:$0xff] %v11375_v45  ;;  %12969 = vst [vmem:[#allocation65_spill] sm:$0xff] %v11383_v29  ;;  %v11390_v54 = vadd.f32 %v12970_v36, %v11312_v21  ;;  %v7558_v15 = vpop.eup %7557  ;;  %7577 = vrcp.f32 %v3348_v9  ;;  %v3357_v7 = vadd.f32 1.0, %v7556_v6  ;;  %v11396_v1 = vadd.f32 %v12972_v59, %v12952_v39  ;;  %v12977_v12 = vld [vmem:[#allocation64_spill] sm:$0xff]  ;;  %v11411_v6 = vpop.f32.mrb[182].mxu1 }
 0x3ff   : > { %12967 = vst [vmem:[#allocation54_spill] sm:$0xff] %v11379_v48  ;;  %v11400_v51 = vadd.f32 %v12974_v25, %v11312_v21  ;;  %12976 = vst [vmem:[#allocation57_spill] sm:$0xff] %v11402_v37  ;;  %v7560_v30 = vpop.eup %7559  ;;  %7579 = vrcp.f32 %v3350_v26  ;;  %v3359_v53 = vadd.f32 1.0, %v7558_v15  ;;  %v11405_v36 = vmul.f32 -1.442695, %v11375_v45  ;;  %v11419_v26 = vpop.f32.mrb[183].mxu1 }
 0x400   : > { %12973 = vst [vmem:[#allocation56_spill] sm:$0xff] %v11396_v1  ;;  %v11409_v9 = vadd.f32 %v12977_v12, %v12952_v39  ;;  %12978 = vst [vmem:[#allocation59_spill] sm:$0xff] %v11411_v6  ;;  %v7562_v59 = vpop.eup %7561  ;;  %7581 = vrcp.f32 %v3357_v7  ;;  %v3358_v62 = vadd.f32 1.0, %v7560_v30  ;;  %v11414_v25 = vmul.f32 -1.442695, %v11379_v48  ;;  %v12980_v6 = vld [vmem:[#allocation16_spill] sm:$0xff] }
 0x401   : > { %12975 = vst [vmem:[#allocation69_spill] sm:$0xff] %v11400_v51  ;;  %v11417_v37 = vmul.f32 -1.442695, %v11383_v29  ;;  %12979 = vst [vmem:[#allocation58_spill] sm:$0xff] %v11419_v26  ;;  %v7564_v15 = vpop.eup %7563  ;;  %v4288_v45 = vmul.f32 %v7562_v59, %v11021_v18  ;;  %7583 = vrcp.f32 %v3359_v53  ;;  %v11423_v12 = vmul.f32 -1.442695, %v11390_v54 }
 0x402   : > { %v11427_v38 = vadd.f32 %v12980_v6, %v11312_v21  ;;  %v7566_v30 = vpop.eup %7565  ;;  %v4290_v7 = vmul.f32 %v7564_v15, %v11063_v23  ;;  %7585 = vrcp.f32 %v3358_v62  ;;  %v11431_v29 = vmul.f32 -1.442695, %v11396_v1  ;;  %v12981_v15 = vld [vmem:[#allocation37_spill] sm:$0xff] }
 0x403   : > { %v11434_v26 = vmul.f32 -1.442695, %v11400_v51  ;;  %v7568_v48 = vpop.eup %7567  ;;  %v4555_v18 = vadd.f32 %v11298_v52, %v4288_v45  ;;  %v4297_v53 = vmul.f32 %v7566_v30, %v11077_v49  ;;  %7587 = vpow2.f32 %v11235_v5  ;;  %v11455_v52 = vpop.f32.mrb[184].mxu1 }
 0x404   : > { %v11440_v6 = vmul.f32 -1.442695, %v11409_v9  ;;  %v7570_v59 = vpop.eup %7569  ;;  %v4629_v23 = vadd.f32 %v11306_v0, %v4290_v7  ;;  %v4299_v62 = vmul.f32 %v7568_v48, %v11095_v43  ;;  %7589 = vpow2.f32 %v11270_v46  ;;  %12982 = vst [vmem:[#allocation60_spill] sm:$0xff] %v11455_v52  ;;  %v12983_v48 = vld [vmem:[#allocation66_spill] sm:$0xff]  ;;  %v13009_v52 = vld [vmem:[#allocation8_spill] sm:$0xff] }
 0x405   : > { %v11447_v51 = vadd.f32 %v12981_v15, %v12952_v39  ;;  %v7572_v1 = vpop.eup %7571  ;;  %v4519_v45 = vadd.f32 %v11314_v14, %v4297_v53  ;;  %v4298_v49 = vmul.f32 %v7570_v59, %v11105_v40  ;;  %7591 = vpow2.f32 %v11277_v60  ;;  %v11464_v14 = vpop.f32.mrb[185].mxu1  ;;  %v12985_v53 = vld [vmem:[#allocation67_spill] sm:$0xff] }
 0x406   : > { %v11453_v5 = vmul.f32 -1.442695, %v11427_v38  ;;  %v7574_v0 = vpop.eup %7573  ;;  %v4593_v43 = vadd.f32 %v11321_v57, %v4299_v62  ;;  %v4300_v46 = vmul.f32 %v7572_v1, %v11136_v41  ;;  %7593 = vpow2.f32 %v11283_v31  ;;  %12984 = vst [vmem:[#allocation61_spill] sm:$0xff] %v11464_v14  ;;  %v11472_v57 = vpop.f32.mrb[186].mxu1  ;;  %v12987_v62 = vld [vmem:[#allocation68_spill] sm:$0xff] }
 0x407   : > { %v11462_v30 = vadd.f32 %v12983_v48, %v11312_v21  ;;  %v7576_v40 = vpop.eup %7575  ;;  %v4556_v60 = vadd.f32 %v4555_v18, %v4298_v49  ;;  %v4307_v7 = vmul.f32 %v7574_v0, %v11181_v22  ;;  %7595 = vpow2.f32 %v11289_v34  ;;  %12986 = vst [vmem:[#allocation6_spill] sm:$0xff] %v11472_v57  ;;  %v11480_v18 = vpop.f32.mrb[187].mxu1  ;;  %v13007_v57 = vld [vmem:[#allocation19_spill] sm:$0xff] }
 0x408   : > { %v11470_v59 = vadd.f32 %v12985_v53, %v12952_v39  ;;  %v7578_v41 = vpop.eup %7577  ;;  %v4630_v31 = vadd.f32 %v4629_v23, %v4300_v46  ;;  %v4309_v1 = vmul.f32 %v7576_v40, %v11185_v4  ;;  %7597 = vpow2.f32 %v11341_v63  ;;  %12988 = vst [vmem:[#allocation34_spill] sm:$0xff] %v11480_v18 }
 0x409   : > { %v11478_v15 = vadd.f32 %v12987_v62, %v11312_v21  ;;  %v7580_v22 = vpop.eup %7579  ;;  %v4520_v34 = vadd.f32 %v4519_v45, %v4307_v7  ;;  %v4308_v49 = vmul.f32 %v7578_v41, %v11189_v33  ;;  %7599 = vpow2.f32 %v11350_v16  ;;  %v11512_v41 = vpop.f32.mrb[188].mxu1 }
 0x40a   : > { %v11485_v0 = vmul.f32 -1.442695, %v11447_v51  ;;  %v7582_v23 = vpop.eup %7581  ;;  %v4594_v46 = vadd.f32 %v4593_v43, %v4309_v1  ;;  %v4310_v4 = vmul.f32 %v7580_v22, %v11193_v55  ;;  %7601 = vpow2.f32 %v11353_v17  ;;  %12990 = vst [vmem:[#allocation35_spill] sm:$0xff] %v11512_v41  ;;  %v12991_v1 = vld [vmem:[#allocation40_spill] sm:$0xff]  ;;  %v11521_v22 = vpop.f32.mrb[189].mxu1  ;;  %v13006_v41 = vld [vmem:[#allocation14_spill] sm:$0xff] }
 0x40b   : > { %v11490_v63 = vmul.f32 -1.442695, %v11462_v30  ;;  %v7584_v48 = vpop.eup %7583  ;;  %v4557_v40 = vadd.f32 %v4556_v60, %v4308_v49  ;;  %v4317_v45 = vmul.f32 %v7582_v23, %v11197_v44  ;;  %7603 = vpow2.f32 %v11358_v24  ;;  %v12989_v24 = vld [vmem:[#allocation39_spill] sm:$0xff]  ;;  %12992 = vst [vmem:[#allocation36_spill] sm:$0xff] %v11521_v22  ;;  %v12993_v49 = vld [vmem:[#allocation25_spill] sm:$0xff] }
 0x40c   : > { %v11495_v33 = vmul.f32 -1.442695, %v11470_v59  ;;  %v7586_v16 = vpop.eup %7585  ;;  %v11497_v7 = vadd.f32 %v4630_v31, %v4310_v4  ;;  %v4319_v43 = vmul.f32 %v7584_v48, %v11201_v56  ;;  %7605 = vpow2.f32 %v11365_v61  ;;  %v12995_v48 = vld [vmem:[#allocation41_spill] sm:$0xff] }
 0x40d   : > { %v11502_v55 = vmul.f32 -1.442695, %v11478_v15  ;;  %v7588_v17 = vpop.eup %7587  ;;  %v11504_v53 = vadd.f32 %v4520_v34, %v4317_v45  ;;  %v4318_v44 = vmul.f32 %v7586_v16, %v11205_v19  ;;  %7607 = vpow2.f32 %v11371_v32 }
 0x40e   : > { %v11510_v60 = vadd.f32 %v12989_v24, %v12952_v39  ;;  %v7590_v31 = vpop.eup %7589  ;;  %v11514_v56 = vadd.f32 %v4594_v46, %v4319_v43  ;;  %v3360_v61 = vadd.f32 1.0, %v7588_v17  ;;  %7609 = vpow2.f32 %v11368_v2  ;;  %v11530_v46 = vpop.f32.mrb[190].mxu1  ;;  %v12998_v17 = vld [vmem:[#allocation15_spill] sm:$0xff] }
 0x40f   : > { %v11519_v62 = vadd.f32 %v12991_v1, %v11312_v21  ;;  %v7592_v19 = vpop.eup %7591  ;;  %v11523_v32 = vadd.f32 %v4557_v40, %v4318_v44  ;;  %v3367_v34 = vadd.f32 1.0, %v7590_v31  ;;  %7611 = vpow2.f32 %v11386_v50  ;;  %12994 = vst [vmem:[#allocation17_spill] sm:$0xff] %v11530_v46  ;;  %v11536_v16 = vpop.f32.mrb[191].mxu1  ;;  %v13000_v1 = vld [vmem:[#allocation23_spill] sm:$0xff]  ;;  %v13004_v46 = vld [vmem:[#allocation42_spill] sm:$0xff] }
 0x410   : > { %v11528_v23 = vadd.f32 %v12993_v49, %v12952_v39  ;;  %v7594_v4 = vpop.eup %7593  ;;  %7613 = vrcp.f32 %v3360_v61  ;;  %v3369_v2 = vadd.f32 1.0, %v7592_v19  ;;  %v11534_v45 = vadd.f32 %v12995_v48, %v11312_v21  ;;  %12997 = vst [vmem:[#allocation16_spill] sm:$0xff] %v11536_v16  ;;  %v13002_v48 = vld [vmem:[#allocation7_spill] sm:$0xff] }
 0x411   : > { %v7596_v40 = vpop.eup %7595  ;;  %7615 = vrcp.f32 %v3367_v34  ;;  %v3368_v43 = vadd.f32 1.0, %v7594_v4  ;;  %v11539_v50 = vmul.f32 -1.442695, %v11510_v60  ;;  %v11543_v44 = vadd.f32 %v12998_v17, %v12952_v39 }
 0x412   : > { %12996 = vst [vmem:[#allocation64_spill] sm:$0xff] %v11534_v45  ;;  %v7598_v24 = vpop.eup %7597  ;;  %7617 = vrcp.f32 %v3369_v2  ;;  %v3370_v31 = vadd.f32 1.0, %v7596_v40  ;;  %v11546_v61 = vmul.f32 -1.442695, %v11519_v62  ;;  %v11550_v19 = vadd.f32 %v13000_v1, %v11312_v21 }
 0x413   : > { %12999 = vst [vmem:[#allocation37_spill] sm:$0xff] %v11543_v44  ;;  %v7600_v49 = vpop.eup %7599  ;;  %7619 = vrcp.f32 %v3368_v43  ;;  %v3377_v34 = vadd.f32 1.0, %v7598_v24  ;;  %v11553_v4 = vmul.f32 -1.442695, %v11528_v23  ;;  %v11557_v17 = vadd.f32 %v13002_v48, %v12952_v39 }
 0x414   : > { %13001 = vst [vmem:[#allocation66_spill] sm:$0xff] %v11550_v19  ;;  %v7602_v16 = vpop.eup %7601  ;;  %7621 = vrcp.f32 %v3370_v31  ;;  %v3379_v2 = vadd.f32 1.0, %v7600_v49  ;;  %v11560_v40 = vmul.f32 -1.442695, %v11534_v45  ;;  %v11564_v1 = vadd.f32 %v13004_v46, %v11312_v21 }
 0x415   : > { %13003 = vst [vmem:[#allocation67_spill] sm:$0xff] %v11557_v17  ;;  %v7604_v22 = vpop.eup %7603  ;;  %7623 = vrcp.f32 %v3377_v34  ;;  %v3378_v43 = vadd.f32 1.0, %v7602_v16  ;;  %v11567_v24 = vmul.f32 -1.442695, %v11543_v44  ;;  %v11571_v48 = vadd.f32 %v13006_v41, %v12952_v39 }
 0x416   : > { %13005 = vst [vmem:[#allocation68_spill] sm:$0xff] %v11564_v1  ;;  %v7606_v18 = vpop.eup %7605  ;;  %7625 = vrcp.f32 %v3379_v2  ;;  %v3380_v31 = vadd.f32 1.0, %v7604_v22  ;;  %v11574_v49 = vmul.f32 -1.442695, %v11550_v19  ;;  %v11578_v46 = vadd.f32 %v13007_v57, %v11312_v21  ;;  %v13011_v19 = vld [vmem:[#allocation11_spill] sm:$0xff] }
 0x417   : > { %v7608_v14 = vpop.eup %7607  ;;  %7627 = vrcp.f32 %v3378_v43  ;;  %v3071_v16 = vadd.f32 1.0, %v7606_v18  ;;  %v11581_v34 = vmul.f32 -1.442695, %v11557_v17  ;;  %v11585_v41 = vadd.f32 %v13009_v52, %v12952_v39 }
 0x418   : > { %13008 = vst [vmem:[#allocation39_spill] sm:$0xff] %v11578_v46  ;;  %v7610_v44 = vpop.eup %7609  ;;  %7629 = vrcp.f32 %v3380_v31  ;;  %v3072_v22 = vadd.f32 1.0, %v7608_v14  ;;  %v11588_v2 = vmul.f32 -1.442695, %v11564_v1  ;;  %v11592_v57 = vadd.f32 %v13011_v19, %v11312_v21 }
 0x419   : > { %13010 = vst [vmem:[#allocation40_spill] sm:$0xff] %v11585_v41  ;;  %v7612_v45 = vpop.eup %7611  ;;  %7631 = vrcp.f32 %v3071_v16  ;;  %v3081_v18 = vadd.f32 1.0, %v7610_v44  ;;  %v11595_v43 = vmul.f32 -1.442695, %v11571_v48  ;;  %v11599_v52 = vadd.f32 %v11016_v27, %v12952_v39 }
 0x41a   : > { %v7614_v17 = vpop.eup %7613  ;;  %7633 = vrcp.f32 %v3072_v22  ;;  %v3082_v14 = vadd.f32 1.0, %v7612_v45  ;;  %v11602_v31 = vmul.f32 -1.442695, %v11578_v46  ;;  %v11606_v19 = vadd.f32 %v11023_v11, %v11312_v21 }
 0x41b   : > { %v7616_v1 = vpop.eup %7615  ;;  %v4320_v44 = vmul.f32 %v7614_v17, %v11209_v47  ;;  %7635 = vrcp.f32 %v3081_v18  ;;  %v11610_v16 = vmul.f32 -1.442695, %v11585_v41  ;;  %v11614_v27 = vadd.f32 %v11034_v42, %v12952_v39 }
 0x41c   : > { %13012 = vst [vmem:[#allocation25_spill] sm:$0xff] %v11606_v19  ;;  %v7618_v22 = vpop.eup %7617  ;;  %v4327_v45 = vmul.f32 %v7616_v1, %v11244_v58  ;;  %7637 = vrcp.f32 %v3082_v14  ;;  %v11618_v46 = vmul.f32 -1.442695, %v11592_v57  ;;  %v11622_v11 = vadd.f32 %v11042_v8, %v11312_v21 }
 0x41d   : > { %13013 = vst [vmem:[#allocation41_spill] sm:$0xff] %v11614_v27  ;;  %v7620_v47 = vpop.eup %7619  ;;  %v4632_v17 = vadd.f32 %v11497_v7, %v4320_v44  ;;  %v4329_v18 = vmul.f32 %v7618_v22, %v11251_v10  ;;  %7639 = vpow2.f32 %v11405_v36  ;;  %v11628_v42 = vmul.f32 -1.442695, %v11599_v52 }
 0x41e   : > { %13014 = vst [vmem:[#allocation15_spill] sm:$0xff] %v11622_v11  ;;  %v7622_v41 = vpop.eup %7621  ;;  %v4522_v58 = vadd.f32 %v11504_v53, %v4327_v45  ;;  %v4328_v1 = vmul.f32 %v7620_v47, %v11258_v3  ;;  %7641 = vpow2.f32 %v11414_v25  ;;  %v11634_v8 = vmul.f32 -1.442695, %v11606_v19 }
 0x41f   : > { %v7624_v14 = vpop.eup %7623  ;;  %v4596_v7 = vadd.f32 %v11514_v56, %v4329_v18  ;;  %v4330_v10 = vmul.f32 %v7622_v41, %v11265_v35  ;;  %7643 = vpow2.f32 %v11417_v37  ;;  %v11640_v36 = vmul.f32 -1.442695, %v11614_v27 }
 0x420   : > { %v7626_v44 = vpop.eup %7625  ;;  %v4559_v53 = vadd.f32 %v11523_v32, %v4328_v1  ;;  %v4337_v3 = vmul.f32 %v7624_v14, %v11296_v13  ;;  %7645 = vpow2.f32 %v11423_v12  ;;  %v11646_v25 = vmul.f32 -1.442695, %v11622_v11  ;;  %v13015_v32 = vld [vmem:[#allocation51_spill] sm:$0xff]  ;;  %v13016_v13 = vld [vmem:[#allocation44_spill] sm:$0xff] }
 0x421   : > { %v7628_v22 = vpop.eup %7627  ;;  %v4633_v45 = vadd.f32 %v4632_v17, %v4330_v10  ;;  %v4339_v56 = vmul.f32 %v7626_v44, %v11304_v28  ;;  %7647 = vpow2.f32 %v11431_v29  ;;  %v11652_v35 = vadd.f32 %v11079_v20, %v12952_v39  ;;  %v13017_v1 = vld [vmem:[#allocation52_spill] sm:$0xff]  ;;  %v13018_v29 = vld [vmem:[#allocation45_spill] sm:$0xff]  ;;  %v13019_v44 = vld [vmem:[#allocation62_spill] sm:$0xff] }
 0x422   : > { %v7630_v37 = vpop.eup %7629  ;;  %v4523_v41 = vadd.f32 %v4522_v58, %v4337_v3  ;;  %v4338_v47 = vmul.f32 %v7628_v22, %v13015_v32  ;;  %7649 = vpow2.f32 %v11434_v26  ;;  %v11658_v12 = vadd.f32 %v13016_v13, %v11312_v21  ;;  %v13020_v13 = vld [vmem:[#allocation33_spill] sm:$0xff] }
 0x423   : > { %v7632_v18 = vpop.eup %7631  ;;  %v4597_v17 = vadd.f32 %v4596_v7, %v4339_v56  ;;  %v4340_v28 = vmul.f32 %v7630_v37, %v13017_v1  ;;  %7651 = vpow2.f32 %v11440_v6  ;;  %v11664_v20 = vadd.f32 %v13018_v29, %v12952_v39  ;;  %v13021_v1 = vld [vmem:[#allocation32_spill] sm:$0xff] }
 0x424   : > { %v7634_v14 = vpop.eup %7633  ;;  %v4524_v58 = vrot.slane %v4523_v41, 4  ;;  %v4560_v10 = vadd.f32 %v4559_v53, %v4338_v47  ;;  %v4031_v3 = vmul.f32 %v7632_v18, %v13019_v44  ;;  %7653 = vpow2.f32 %v11453_v5  ;;  %v13022_v18 = vld [vmem:[#allocation18_spill] sm:$0xff] }
 0x425   : > { %v7636_v26 = vpop.eup %7635  ;;  %v4598_v22 = vrot.slane %v4597_v17, 4  ;;  %v4634_v32 = vadd.f32 %v4633_v45, %v4340_v28  ;;  %v4032_v7 = vmul.f32 %v7634_v14, %v13020_v13  ;;  %7655 = vpow2.f32 %v11485_v0 }
 0x426   : > { %v7638_v56 = vpop.eup %7637  ;;  %v4525_v6 = vadd.f32 %v4524_v58, %v4523_v41  ;;  %v4561_v37 = vrot.slane %v4560_v10, 4  ;;  %v4041_v29 = vmul.f32 %v7636_v26, %v13021_v1  ;;  %7657 = vpow2.f32 %v11490_v63 }
 0x427   : > { %v7640_v11 = vpop.eup %7639  ;;  %v4599_v53 = vadd.f32 %v4598_v22, %v4597_v17  ;;  %v4635_v47 = vrot.slane %v4634_v32, 4  ;;  %v4042_v44 = vmul.f32 %v7638_v56, %v13022_v18  ;;  %7659 = vpow2.f32 %v11495_v33 }
 0x428   : > { %v7642_v5 = vpop.eup %7641  ;;  %v4526_v45 = vrot.slane %v4525_v6, 2  ;;  %v4562_v28 = vadd.f32 %v4561_v37, %v4560_v10  ;;  %v11674_v14 = vadd.f32 %v4041_v29, %v4031_v3  ;;  %v3091_v0 = vadd.f32 1.0, %v7640_v11 }
 0x429   : > { %v7644_v13 = vpop.eup %7643  ;;  %v4600_v41 = vrot.slane %v4599_v53, 2  ;;  %v4636_v58 = vadd.f32 %v4635_v47, %v4634_v32  ;;  %v11676_v27 = vadd.f32 %v4042_v44, %v4032_v7  ;;  %v3092_v26 = vadd.f32 1.0, %v7642_v5 }
 0x42a   : > { %v7646_v63 = vpop.eup %7645  ;;  %v4527_v1 = vadd.f32 %v4526_v45, %v4525_v6  ;;  %v4563_v17 = vrot.slane %v4562_v28, 2  ;;  %7661 = vrcp.f32 %v3091_v0  ;;  %v3101_v22 = vadd.f32 1.0, %v7644_v13 }
 0x42b   : > { %v7648_v56 = vpop.eup %7647  ;;  %v4601_v18 = vadd.f32 %v4600_v41, %v4599_v53  ;;  %v4637_v33 = vrot.slane %v4636_v58, 2  ;;  %7663 = vrcp.f32 %v3092_v26  ;;  %v3102_v19 = vadd.f32 1.0, %v7646_v63 }
 0x42c   : > { %v7650_v10 = vpop.eup %7649  ;;  %v4528_v3 = vrot.slane %v4527_v1, 1  ;;  %v4564_v37 = vadd.f32 %v4563_v17, %v4562_v28  ;;  %7665 = vrcp.f32 %v3101_v22  ;;  %v3111_v11 = vadd.f32 1.0, %v7648_v56  ;;  %v4950_v28 = vld [vmem:[%s12444_s5 + $0x480] sm:$0xff]  ;;  %v11692_v17 = vld [vmem:[%s12444_s5 + $0x108] sm:$0xff] }
 0x42d   : > { %v7652_v29 = vpop.eup %7651  ;;  %v4602_v32 = vrot.slane %v4601_v18, 1  ;;  %v4638_v7 = vadd.f32 %v4637_v33, %v4636_v58  ;;  %7667 = vrcp.f32 %v3102_v19  ;;  %v3112_v47 = vadd.f32 1.0, %v7650_v10  ;;  %v4951_v58 = vld [vmem:[%s12444_s5 + $0x488] sm:$0xff] }
 0x42e   : > { %v7654_v44 = vpop.eup %7653  ;;  %v4529_v6 = vadd.f32 %v4528_v3, %v4527_v1  ;;  %v4565_v5 = vrot.slane %v4564_v37, 1  ;;  %7669 = vrcp.f32 %v3111_v11  ;;  %v3121_v45 = vadd.f32 1.0, %v7652_v29  ;;  %v11687_v1 = vld [vmem:[%s12444_s5 + $0x100] sm:$0xff]  ;;  %v13027_v29 = vld [vmem:[#allocation26_spill] sm:$0xff] }
 0x42f   : > { %v7656_v0 = vpop.eup %7655  ;;  %v4603_v53 = vadd.f32 %v4602_v32, %v4601_v18  ;;  %v4639_v13 = vrot.slane %v4638_v7, 1  ;;  %7671 = vrcp.f32 %v3112_v47  ;;  %v3122_v41 = vadd.f32 1.0, %v7654_v44  ;;  %v11706_v47 = vld [vmem:[%s12444_s5 + $0x190] sm:$0xff] }
 0x430   : > { %v7658_v19 = vpop.eup %7657  ;;  %v4566_v26 = vadd.f32 %v4565_v5, %v4564_v37  ;;  %7673 = vrcp.f32 %v3121_v45  ;;  %v3131_v63 = vadd.f32 1.0, %v7656_v0  ;;  %v6327_v22 = vpack.c.bf16 %v4951_v58, %v4950_v28  ;;  %v11723_v0 = vld [vmem:[%s12444_s5 + $0x110] sm:$0xff]  ;;  %v13029_v28 = vld [vmem:[#allocation24_spill] sm:$0xff] }
 0x431   : > { %v7660_v56 = vpop.eup %7659  ;;  %v4640_v18 = vadd.f32 %v4639_v13, %v4638_v7  ;;  %7675 = vrcp.f32 %v3122_v41  ;;  %v3132_v33 = vadd.f32 1.0, %v7658_v19  ;;  %v13023_v10 = vlaneseq  ;;  %v11711_v7 = vld [vmem:[%s12444_s5 + $0x198] sm:$0xff] }
 0x432   : > { %v13024_v3 = vmov 0  ;;  %v4727_v37 = vcombine.low %v4529_v6, %v4566_v26  ;;  %7677 = vrcp.f32 %v3131_v63  ;;  %v3141_v11 = vadd.f32 1.0, %v7660_v56  ;;  %6328 = vmatprep.subr.bf16.mxu1 %v6327_v22  ;;  %v11728_v13 = vld [vmem:[%s12444_s5 + $0x118] sm:$0xff] }
 0x433   : > { %vm11695_vm1 = vcmp.lt.s32.totalorder %v13023_v10, 256  ;;  %v11701_v32 = vadd.f32 %v13027_v29, %v11312_v21  ;;  %v7966_v44 = vmov 0.0   ;;  %v4728_v6 = vcombine.low %v4603_v53, %v4640_v18  ;;  %v13030_v22 = vld [vmem:[#allocation12_spill] sm:$0xff]  ;;  %v13031_v10 = vld [vmem:[#allocation54_spill] sm:$0xff] }
 0x434   : > { %v13025_v3 = vsel %vm11695_vm1, 4294967295, %v13024_v3  ;;  %314 = vst.msk [vmem:[#allocation2 + $0x8] sm:$0x3] %vm11695_vm1, %v7966_v44  ;;  %7679 = vrcp.f32 %v3132_v33  ;;  %v11716_v5 = vmul.f32 -1.442695, %v11652_v35  ;;  %v7662_v41 = vpop.eup %7661  ;;  %v4749_v53 = vrot.slane %v4727_v37, %v13029_v28 }
 0x435   : > { %13026 = vst [vmem:[#allocation23_spill] sm:$0xff] %v13025_v3  ;;  %13028 = vst [vmem:[#allocation7_spill] sm:$0xff] %v11701_v32  ;;  %7681 = vrcp.f32 %v3141_v11  ;;  %v11732_v58 = vmul.f32 -1.442695, %v11658_v12  ;;  %v11735_v19 = vmul.f32 -1.442695, %v11664_v20  ;;  %v7664_v26 = vpop.eup %7663  ;;  %v4756_v63 = vrot.slane %v4728_v6, %v13029_v28 }
 0x436   : > { %v4051_v56 = vmul.f32 %v7662_v41, %v13030_v22  ;;  %7683 = vpow2.f32 %v11502_v55  ;;  %v7666_v33 = vpop.eup %7665  ;;  %v4052_v37 = vmul.f32 %v7664_v26, %v13031_v10  ;;  %v11745_v11 = vmul.f32 -1.442695, %v11701_v32  ;;  %v13032_v22 = vld [vmem:[#allocation65_spill] sm:$0xff] }
 0x437   : > { %7685 = vpow2.f32 %v11539_v50  ;;  %v7668_v44 = vpop.eup %7667  ;;  %v4758_v6 = vcombine.low %v4749_v53, %v4756_v63  ;;  %v4061_v55 = vmul.f32 %v7666_v33, %v13032_v22  ;;  %v11755_v26 = vld [vmem:[%s12444_s5 + $0x1a0] sm:$0xff]  ;;  %v11760_v50 = vld [vmem:[%s12444_s5 + $0x1a8] sm:$0xff] }
 0x438   : > { %v4642_v41 = vadd.f32 %v11674_v14, %v4051_v56  ;;  %7687 = vpow2.f32 %v11546_v61  ;;  %v7670_v10 = vpop.eup %7669  ;;  %v4679_v29 = vadd.f32 %v11676_v27, %v4052_v37  ;;  %v4062_v53 = vmul.f32 %v7668_v44, %v11390_v54  ;;  %v13033_v14 = vld [vmem:[#allocation27_spill] sm:$0xff]  ;;  %v13034_v22 = vld [vmem:[#allocation56_spill] sm:$0xff]  ;;  %v13035_v32 = vld [vmem:[#allocation69_spill] sm:$0xff] }
 0x439   : > { %7689 = vpow2.f32 %v11553_v4  ;;  %v11767_v61 = vadd.f32 %v13033_v14, %v12952_v39  ;;  %v7672_v63 = vpop.eup %7671  ;;  %v4772_v56 = vrot.slane %v4758_v6, %v13029_v28  ;;  %v4071_v18 = vmul.f32 %v7670_v10, %v13034_v22  ;;  %v13036_v37 = vld [vmem:[#allocation46_spill] sm:$0xff] }
 0x43a   : > { %v4643_v33 = vadd.f32 %v4642_v41, %v4061_v55  ;;  %7691 = vpow2.f32 %v11560_v40  ;;  %v7674_v45 = vpop.eup %7673  ;;  %v4680_v3 = vadd.f32 %v4679_v29, %v4062_v53  ;;  %v4072_v27 = vmul.f32 %v7672_v63, %v13035_v32  ;;  %v11782_v40 = vld [vmem:[%s12444_s5 + $0x120] sm:$0xff] }
 0x43b   : > { %7693 = vpow2.f32 %v11567_v24  ;;  %v6239_v54 = vpack.c.bf16 %v11760_v50, %v11755_v26  ;;  %v7676_v4 = vpop.eup %7675  ;;  %v4773_v44 = vcombine.low %v13036_v37, %v4772_v56  ;;  %v4081_v6 = vmul.f32 %v7674_v45, %v11409_v9  ;;  %v11787_v24 = vld [vmem:[%s12444_s5 + $0x128] sm:$0xff]  ;;  %v13037_v9 = vld [vmem:[#allocation47_spill] sm:$0xff] }
 0x43c   : > { %v4644_v14 = vadd.f32 %v4643_v33, %v4071_v18  ;;  %7695 = vpow2.f32 %v11574_v49  ;;  %v7678_v32 = vpop.eup %7677  ;;  %v4681_v29 = vadd.f32 %v4680_v3, %v4072_v27  ;;  %v4082_v41 = vmul.f32 %v7676_v4, %v11427_v38  ;;  %v4934_v27 = vld [vmem:[%s12444_s5 + $0x400] sm:$0xff]  ;;  %v11957_v26 = vld [vmem:[%s12444_s5 + $0x1d8] sm:$0xff] }
 0x43d   : > { %7697 = vpow2.f32 %v11581_v34  ;;  %v11793_v45 = vadd.f32 %v13037_v9, %v11312_v21  ;;  %v4091_v55 = vmul.f32 %v7678_v32, %v11447_v51  ;;  %v11803_v33 = vmul.f32 0.00390625, %v4773_v44  ;;  %v13039_v44 = vld [vmem:[#allocation22_spill] sm:$0xff]  ;;  %v4938_v38 = vld [vmem:[%s12444_s5 + $0x420] sm:$0xff] }
 0x43e   : > { %v7680_v49 = vpop.eup %7679  ;;  %v4645_v18 = vadd.f32 %v4644_v14, %v4081_v6  ;;  %7699 = vpow2.f32 %v11588_v2  ;;  %v4682_v53 = vadd.f32 %v4681_v29, %v4082_v41  ;;  %v4952_v14 = vld [vmem:[%s12444_s5 + $0x490] sm:$0xff]  ;;  %v4953_v6 = vld [vmem:[%s12444_s5 + $0x498] sm:$0xff] }
 0x43f   : > { %v7682_v10 = vpop.eup %7681  ;;  %v4092_v63 = vmul.f32 %v7680_v49, %v11462_v30  ;;  %7701 = vpow2.f32 %v11595_v43  ;;  %v13038_v30 = vld [vmem:[#allocation48_spill] sm:$0xff] }
 0x440   : > { %v7684_v34 = vpop.eup %7683  ;;  %v4646_v3 = vadd.f32 %v4645_v18, %v4091_v55  ;;  %v4101_v56 = vmul.f32 %v7682_v10, %v11470_v59  ;;  %7703 = vpow2.f32 %v11602_v31  ;;  %v11810_v43 = vadd.f32 %v13038_v30, %v12952_v39  ;;  %v4935_v59 = vld [vmem:[%s12444_s5 + $0x408] sm:$0xff]  ;;  %v13040_v41 = vld [vmem:[#allocation20_spill] sm:$0xff]  ;;  %v11843_v30 = vld [vmem:[%s12444_s5 + $0x1b0] sm:$0xff] }
 0x441   : > { %v7686_v51 = vpop.eup %7685  ;;  %v11805_v22 = vadd.f32 %v4682_v53, %v4092_v63  ;;  %v3142_v2 = vadd.f32 1.0, %v7684_v34  ;;  %7705 = vpow2.f32 %v11610_v16  ;;  %v4976_v16 = vrot.slane %v11803_v33, %v13039_v44  ;;  %v13042_v18 = vld [vmem:[#allocation21_spill] sm:$0xff] }
 0x442   : > { %v7688_v31 = vpop.eup %7687  ;;  %v11818_v4 = vadd.f32 %v4646_v3, %v4101_v56  ;;  %v3151_v37 = vadd.f32 1.0, %v7686_v51  ;;  %7707 = vpow2.f32 %v11618_v46  ;;  %v13041_v9 = vsub.s32 5, %v13040_v41 }
 0x443   : > { %v7690_v32 = vpop.eup %7689  ;;  %7709 = vrcp.f32 %v3142_v2  ;;  %v3152_v29 = vadd.f32 1.0, %v7688_v31  ;;  %v4972_v46 = vrot.slane %v11803_v33, %v13042_v18  ;;  %5083 = vmatprep.mubr.f32.mxu0 %v4976_v16  ;;  %v13043_v53 = vsub.s32 4, %v13040_v41 }
 0x444   : > { %v4992_v49 = vrot.slane %v11803_v33, %v13041_v9  ;;  %v7692_v55 = vpop.eup %7691  ;;  %7711 = vrcp.f32 %v3151_v37  ;;  %v3161_v10 = vadd.f32 1.0, %v7690_v32  ;;  %v6329_v34 = vpack.c.bf16 %v4935_v59, %v4934_v27  ;;  %v4936_v37 = vld [vmem:[%s12444_s5 + $0x410] sm:$0xff]  ;;  %v4937_v27 = vld [vmem:[%s12444_s5 + $0x418] sm:$0xff] }
 0x445   : > { %v4988_v63 = vrot.slane %v11803_v33, %v13043_v53  ;;  %v7694_v3 = vpop.eup %7693  ;;  %7713 = vrcp.f32 %v3152_v29  ;;  %v3162_v56 = vadd.f32 1.0, %v7692_v55  ;;  %5084 = vmatmul.mubr.f32.vlgmr.msra.gmra.mrb[160].mxu0 %v4972_v46  ;;  %v13044_v51 = vsub.s32 3, %v13040_v41  ;;  %v11864_v9 = vld [vmem:[%s12444_s5 + $0x1b8] sm:$0xff] }
 0x446   : > { %5223 = vmatprep.mubr.f32.mxu1 %v4992_v49  ;;  %v6331_v31 = vpack.c.bf16 %v4953_v6, %v4952_v14  ;;  %v7696_v59 = vpop.eup %7695  ;;  %7715 = vrcp.f32 %v3161_v10  ;;  %v3171_v16 = vadd.f32 1.0, %v7694_v3  ;;  %v13045_v32 = vpack.c.bf16 %v11692_v17, %v11687_v1  ;;  %v13046_v14 = vld [vmem:[#allocation49_spill] sm:$0xff] }
 0x447   : > { %v4984_v2 = vrot.slane %v11803_v33, %v13044_v51  ;;  %5224 = vmatmul.mubr.f32.vlgmr.msra.gmra.mrb[192].mxu1 %v4988_v63  ;;  %v11855_v29 = vmul.f32 -1.442695, %v11767_v61  ;;  %v11859_v6 = vadd.f32 %v13046_v14, %v11312_v21  ;;  %v4954_v49 = vld [vmem:[%s12444_s5 + $0x4a0] sm:$0xff]  ;;  %v4955_v1 = vld [vmem:[%s12444_s5 + $0x4a8] sm:$0xff]  ;;  %v7698_v17 = vpop.eup %7697  ;;  %7717 = vrcp.f32 %v3162_v56  ;;  %v11884_v63 = vld [vmem:[%s12444_s5 + $0x130] sm:$0xff] }
 0x448   : > { %6234 = vmatpush3.bf16.msra.mxu0 %v13045_v32  ;;  %v3172_v46 = vadd.f32 1.0, %v7696_v59  ;;  %v13047_v55 = vpack.c.bf16 %v11711_v7, %v11706_v47  ;;  %v11876_v10 = vmul.f32 -1.442695, %v11793_v45  ;;  %v11879_v53 = vmul.f32 -1.442695, %v11810_v43  ;;  %v7700_v3 = vpop.eup %7699  ;;  %v11889_v51 = vld [vmem:[%s12444_s5 + $0x138] sm:$0xff]  ;;  %6330 = vmatpush3.bf16.msra.mxu1 %v6329_v34 }
 0x449   : > { %5153 = vmatprep.mubr.f32.mxu0 %v4984_v2  ;;  %7719 = vrcp.f32 %v3171_v16  ;;  %v3181_v56 = vadd.f32 1.0, %v7698_v17  ;;  %v13048_v47 = vld [vmem:[#allocation28_spill] sm:$0xff]  ;;  %v11903_v59 = vld [vmem:[%s12444_s5 + $0x1c8] sm:$0xff]  ;;  %v6333_v16 = vpack.c.bf16 %v4937_v27, %v4936_v37  ;;  %v7702_v32 = vpop.eup %7701  ;;  %v3182_v14 = vadd.f32 1.0, %v7700_v3  ;;  %6332 = vmatprep.subr.bf16.mxu1 %v6331_v31 }
 0x44a   : > { %6236 = vmatprep.subr.bf16.mxu0 %v13047_v55  ;;  %v11893_v7 = vadd.f32 %v13048_v47, %v12952_v39  ;;  %v11898_v2 = vld [vmem:[%s12444_s5 + $0x1c0] sm:$0xff]  ;;  %7721 = vrcp.f32 %v3172_v46  ;;  %v6243_v17 = vpack.c.bf16 %v11864_v9, %v11843_v30  ;;  %v6335_v47 = vpack.c.bf16 %v4955_v1, %v4954_v49  ;;  %v4939_v34 = vld [vmem:[%s12444_s5 + $0x428] sm:$0xff]  ;;  %v7704_v37 = vpop.eup %7703  ;;  %v4956_v46 = vld [vmem:[%s12444_s5 + $0x4b0] sm:$0xff] }
 0x44b   : > { %v11910_v55 = vld [vmem:[%s12444_s5 + $0x140] sm:$0xff]  ;;  %7723 = vrcp.f32 %v3181_v56  ;;  %v3191_v27 = vadd.f32 1.0, %v7702_v32  ;;  %v13049_v30 = vpack.c.bf16 %v11728_v13, %v11723_v0  ;;  %v11922_v9 = vmul.f32 -1.442695, %v11859_v6  ;;  %v11931_v1 = vld [vmem:[%s12444_s5 + $0x148] sm:$0xff]  ;;  %v4957_v0 = vld [vmem:[%s12444_s5 + $0x4b8] sm:$0xff]  ;;  %v7706_v13 = vpop.eup %7705 }
 0x44c   : > { %v13050_v31 = vld [vmem:[#allocation29_spill] sm:$0xff]  ;;  %7725 = vrcp.f32 %v3182_v14  ;;  %v3192_v3 = vadd.f32 1.0, %v7704_v37  ;;  %v6245_v56 = vpack.c.bf16 %v11889_v51, %v11884_v63  ;;  %v6247_v32 = vpack.c.bf16 %v11903_v59, %v11898_v2  ;;  %v11952_v14 = vld [vmem:[%s12444_s5 + $0x1d0] sm:$0xff]  ;;  %6334 = vmatpush3.bf16.msra.mxu1 %v6333_v16  ;;  %v4941_v37 = vld [vmem:[%s12444_s5 + $0x438] sm:$0xff] }
 0x44d   : > { %6238 = vmatpush3.bf16.msra.mxu0 %v13049_v30  ;;  %v11926_v49 = vadd.f32 %v13050_v31, %v11312_v21  ;;  %v7708_v30 = vpop.eup %7707  ;;  %7727 = vrcp.f32 %v3191_v27  ;;  %v3201_v31 = vadd.f32 1.0, %v7706_v13  ;;  %v11947_v18 = vmul.f32 -1.442695, %v11893_v7  ;;  %6336 = vmatprep.subr.bf16.mxu1 %v6335_v47  ;;  %v4940_v59 = vld [vmem:[%s12444_s5 + $0x430] sm:$0xff] }
 0x44e   : > { %6240 = vmatprep.subr.bf16.mxu0 %v6239_v54  ;;  %v6337_v50 = vpack.c.bf16 %v4939_v34, %v4938_v38  ;;  %v7710_v54 = vpop.eup %7709  ;;  %7729 = vrcp.f32 %v3192_v3  ;;  %v3202_v63 = vadd.f32 1.0, %v7708_v30  ;;  %v6249_v51 = vpack.c.bf16 %v11931_v1, %v11910_v55  ;;  %v13052_v47 = vld [vmem:[#allocation38_spill] sm:$0xff]  ;;  %v4850_v1 = vld [vmem:[%s12444_s5 + $0x160] sm:$0xff] }
 0x44f   : > { %v6339_v2 = vpack.c.bf16 %v4957_v0, %v4956_v46  ;;  %v7712_v27 = vpop.eup %7711  ;;  %v4102_v16 = vmul.f32 %v7710_v54, %v11478_v15  ;;  %7731 = vrcp.f32 %v3201_v31  ;;  %v13051_v38 = vpack.c.bf16 %v11787_v24, %v11782_v40  ;;  %v4958_v0 = vld [vmem:[%s12444_s5 + $0x4c0] sm:$0xff]  ;;  %v4959_v15 = vld [vmem:[%s12444_s5 + $0x4c8] sm:$0xff]  ;;  %v11994_v31 = vld [vmem:[%s12444_s5 + $0x150] sm:$0xff] }
 0x450   : > { %v11972_v34 = vmul.f32 -1.442695, %v11926_v49  ;;  %v11976_v46 = vadd.f32 %v13052_v47, %v12952_v39  ;;  %v7714_v13 = vpop.eup %7713  ;;  %v4111_v3 = vmul.f32 %v7712_v27, %v11510_v60  ;;  %7733 = vrcp.f32 %v3202_v63  ;;  %v13053_v40 = vld [vmem:[#allocation9_spill] sm:$0xff]  ;;  %v11999_v54 = vld [vmem:[%s12444_s5 + $0x158] sm:$0xff]  ;;  %6338 = vmatpush3.bf16.msra.mxu1 %v6337_v50 }
 0x451   : > { %6242 = vmatpush3.bf16.msra.mxu0 %v13051_v38  ;;  %v11987_v24 = vadd.f32 %v13053_v40, %v11312_v21  ;;  %v6251_v30 = vpack.c.bf16 %v11957_v26, %v11952_v14  ;;  %v7716_v60 = vpop.eup %7715  ;;  %v4112_v63 = vmul.f32 %v7714_v13, %v11519_v62  ;;  %7735 = vpow2.f32 %v11628_v42  ;;  %6340 = vmatprep.subr.bf16.mxu1 %v6339_v2  ;;  %v4942_v40 = vld [vmem:[%s12444_s5 + $0x440] sm:$0xff]  ;;  %v4943_v62 = vld [vmem:[%s12444_s5 + $0x448] sm:$0xff] }
 0x452   : > { %6244 = vmatprep.subr.bf16.mxu0 %v6243_v17  ;;  %v4684_v17 = vadd.f32 %v11805_v22, %v4102_v16  ;;  %v6341_v27 = vpack.c.bf16 %v4941_v37, %v4940_v59  ;;  %v7718_v14 = vpop.eup %7717  ;;  %v4648_v26 = vadd.f32 %v11818_v4, %v4111_v3  ;;  %v4121_v38 = vmul.f32 %v7716_v60, %v11528_v23  ;;  %v13054_v50 = vld [vmem:[#allocation64_spill] sm:$0xff]  ;;  %v13055_v16 = vld [vmem:[#allocation37_spill] sm:$0xff] }
 0x453   : > { %7737 = vpow2.f32 %v11634_v8  ;;  %v6343_v47 = vpack.c.bf16 %v4959_v15, %v4958_v0  ;;  %v7720_v42 = vpop.eup %7719  ;;  %v4122_v59 = vmul.f32 %v7718_v14, %v13054_v50  ;;  %v6253_v23 = vpack.c.bf16 %v11999_v54, %v11994_v31  ;;  %v4960_v8 = vld [vmem:[%s12444_s5 + $0x4d0] sm:$0xff]  ;;  %v4961_v4 = vld [vmem:[%s12444_s5 + $0x4d8] sm:$0xff]  ;;  %v4866_v15 = vld [vmem:[%s12444_s5 + $0x1e0] sm:$0xff] }
 0x454   : > { %v4685_v22 = vadd.f32 %v4684_v17, %v4112_v63  ;;  %7739 = vpow2.f32 %v11640_v36  ;;  %v7722_v2 = vpop.eup %7721  ;;  %v4649_v37 = vadd.f32 %v4648_v26, %v4121_v38  ;;  %v4131_v0 = vmul.f32 %v7720_v42, %v13055_v16  ;;  %v13056_v36 = vld [vmem:[#allocation10_spill] sm:$0xff]  ;;  %6342 = vmatpush3.bf16.msra.mxu1 %v6341_v27  ;;  %v13058_v63 = vld [vmem:[#allocation67_spill] sm:$0xff]  ;;  %v13059_v27 = vld [vmem:[#allocation68_spill] sm:$0xff] }
 0x455   : > { %6246 = vmatpush3.bf16.msra.mxu0 %v6245_v56  ;;  %7741 = vpow2.f32 %v11646_v25  ;;  %v12027_v56 = vadd.f32 %v13056_v36, %v12952_v39  ;;  %v4867_v13 = vld [vmem:[%s12444_s5 + $0x1e8] sm:$0xff]  ;;  %v7724_v3 = vpop.eup %7723  ;;  %v6345_v25 = vpack.c.bf16 %v4943_v62, %v4942_v40  ;;  %6344 = vmatprep.subr.bf16.mxu1 %v6343_v47  ;;  %v6347_v26 = vpack.c.bf16 %v4961_v4, %v4960_v8  ;;  %v4944_v38 = vld [vmem:[%s12444_s5 + $0x450] sm:$0xff]  ;;  %v4945_v42 = vld [vmem:[%s12444_s5 + $0x458] sm:$0xff] }
 0x456   : > { %6248 = vmatprep.subr.bf16.mxu0 %v6247_v32  ;;  %v4686_v31 = vadd.f32 %v4685_v22, %v4122_v59  ;;  %v13057_v54 = vld [vmem:[#allocation66_spill] sm:$0xff]  ;;  %7743 = vpow2.f32 %v11716_v5  ;;  %v7726_v32 = vpop.eup %7725  ;;  %v4650_v17 = vadd.f32 %v4649_v37, %v4131_v0  ;;  %v4141_v14 = vmul.f32 %v7724_v3, %v13058_v63  ;;  %v4962_v47 = vld [vmem:[%s12444_s5 + $0x4e0] sm:$0xff]  ;;  %v13061_v37 = vld [vmem:[#allocation39_spill] sm:$0xff] }
 0x457   : > { %v4132_v60 = vmul.f32 %v7722_v2, %v13057_v54  ;;  %7745 = vpow2.f32 %v11732_v58  ;;  %v7728_v22 = vpop.eup %7727  ;;  %v4142_v40 = vmul.f32 %v7726_v32, %v13059_v27  ;;  %v6255_v58 = vpack.c.bf16 %v4867_v13, %v4866_v15  ;;  %v4963_v62 = vld [vmem:[%s12444_s5 + $0x4e8] sm:$0xff]  ;;  %v13062_v15 = vld [vmem:[#allocation40_spill] sm:$0xff] }
 0x458   : > { %7747 = vpow2.f32 %v11735_v19  ;;  %v7730_v50 = vpop.eup %7729  ;;  %v4651_v59 = vadd.f32 %v4650_v17, %v4141_v14  ;;  %v4151_v8 = vmul.f32 %v7728_v22, %v11571_v48  ;;  %v13060_v19 = vld [vmem:[#allocation30_spill] sm:$0xff]  ;;  %6346 = vmatpush3.bf16.msra.mxu1 %v6345_v25  ;;  %v6351_v3 = vpack.c.bf16 %v4963_v62, %v4962_v47  ;;  %v4965_v17 = vld [vmem:[%s12444_s5 + $0x4f8] sm:$0xff] }
 0x459   : > { %v4687_v5 = vadd.f32 %v4686_v31, %v4132_v60  ;;  %6250 = vmatpush3.bf16.msra.mxu0 %v6249_v51  ;;  %7749 = vpow2.f32 %v11745_v11  ;;  %v12060_v55 = vadd.f32 %v13060_v19, %v11312_v21  ;;  %v4851_v51 = vld [vmem:[%s12444_s5 + $0x168] sm:$0xff]  ;;  %v7732_v4 = vpop.eup %7731  ;;  %v4152_v16 = vmul.f32 %v7730_v50, %v13061_v37  ;;  %v4868_v48 = vld [vmem:[%s12444_s5 + $0x1f0] sm:$0xff]  ;;  %v4869_v11 = vld [vmem:[%s12444_s5 + $0x1f8] sm:$0xff]  ;;  %6348 = vmatprep.subr.bf16.mxu1 %v6347_v26 }
 0x45a   : > { %6252 = vmatprep.subr.bf16.mxu0 %v6251_v30  ;;  %7751 = vpow2.f32 %v11855_v29  ;;  %v6349_v30 = vpack.c.bf16 %v4945_v42, %v4944_v38  ;;  %v7734_v0 = vpop.eup %7733  ;;  %v4652_v36 = vadd.f32 %v4651_v59, %v4151_v8  ;;  %v4161_v13 = vmul.f32 %v7732_v4, %v13062_v15  ;;  %v4946_v29 = vld [vmem:[%s12444_s5 + $0x460] sm:$0xff]  ;;  %v4947_v31 = vld [vmem:[%s12444_s5 + $0x468] sm:$0xff]  ;;  %v4949_v50 = vld [vmem:[%s12444_s5 + $0x478] sm:$0xff] }
 0x45b   : > { %v4688_v2 = vadd.f32 %v4687_v5, %v4142_v40  ;;  %7753 = vpow2.f32 %v11876_v10  ;;  %v7736_v54 = vpop.eup %7735  ;;  %v4162_v25 = vmul.f32 %v7734_v0, %v11592_v57  ;;  %v6257_v32 = vpack.c.bf16 %v4851_v51, %v4850_v1  ;;  %v4964_v10 = vld [vmem:[%s12444_s5 + $0x4f0] sm:$0xff]  ;;  %v4919_v5 = vld [vmem:[%s12444_s5 + $0x388] sm:$0xff]  ;;  %v4921_v15 = vld [vmem:[%s12444_s5 + $0x398] sm:$0xff] }
 0x45c   : > { %7755 = vpow2.f32 %v11879_v53  ;;  %v12092_v14 = vadd.f32 %v4652_v36, %v4161_v13  ;;  %v3211_v26 = vadd.f32 1.0, %v7736_v54  ;;  %v6259_v57 = vpack.c.bf16 %v4869_v11, %v4868_v48  ;;  %v4852_v53 = vld [vmem:[%s12444_s5 + $0x170] sm:$0xff]  ;;  %6350 = vmatpush3.bf16.msra.mxu1 %v6349_v30  ;;  %v4903_v48 = vld [vmem:[%s12444_s5 + $0x308] sm:$0xff] }
 0x45d   : > { %v4689_v60 = vadd.f32 %v4688_v2, %v4152_v16  ;;  %6254 = vmatpush3.bf16.msra.mxu0 %v6253_v23  ;;  %v7738_v63 = vpop.eup %7737  ;;  %7757 = vpow2.f32 %v11922_v9  ;;  %v4853_v23 = vld [vmem:[%s12444_s5 + $0x178] sm:$0xff]  ;;  %v4918_v9 = vld [vmem:[%s12444_s5 + $0x380] sm:$0xff]  ;;  %v6353_v27 = vpack.c.bf16 %v4947_v31, %v4946_v29  ;;  %v12111_v47 = vmul.f32 -1.442695, %v11976_v46  ;;  %6352 = vmatprep.subr.bf16.mxu1 %v6351_v3  ;;  %v4920_v36 = vld [vmem:[%s12444_s5 + $0x390] sm:$0xff] }
 0x45e   : > { %6256 = vmatprep.subr.bf16.mxu0 %v6255_v58  ;;  %v7740_v38 = vpop.eup %7739  ;;  %v3212_v22 = vadd.f32 1.0, %v7738_v63  ;;  %7759 = vpow2.f32 %v11947_v18  ;;  %v6355_v62 = vpack.c.bf16 %v4965_v17, %v4964_v10  ;;  %v4948_v18 = vld [vmem:[%s12444_s5 + $0x470] sm:$0xff]  ;;  %v12120_v19 = vmul.f32 -1.442695, %v11987_v24  ;;  %v4902_v16 = vld [vmem:[%s12444_s5 + $0x300] sm:$0xff] }
 0x45f   : > { %v12101_v42 = vadd.f32 %v4689_v60, %v4162_v25  ;;  %v7742_v40 = vpop.eup %7741  ;;  %7761 = vrcp.f32 %v3211_v26  ;;  %v3221_v58 = vadd.f32 1.0, %v7740_v38  ;;  %v6261_v1 = vpack.c.bf16 %v4853_v23, %v4852_v53  ;;  %v13063_v31 = vld [vmem:[#allocation31_spill] sm:$0xff]  ;;  %v13064_v60 = vld [vmem:[#allocation50_spill] sm:$0xff]  ;;  %v13065_v17 = vld [vmem:[#allocation13_spill] sm:$0xff] }
 0x460   : > { %v7744_v59 = vpop.eup %7743  ;;  %7763 = vrcp.f32 %v3212_v22  ;;  %v3222_v8 = vadd.f32 1.0, %v7742_v40  ;;  %v12123_v2 = vmul.f32 -1.442695, %v12027_v56  ;;  %v6295_v37 = vpack.c.bf16 %v4919_v5, %v4918_v9  ;;  %6354 = vmatpush3.bf16.msra.mxu1 %v6353_v27  ;;  %v4904_v9 = vld [vmem:[%s12444_s5 + $0x310] sm:$0xff]  ;;  %v4905_v5 = vld [vmem:[%s12444_s5 + $0x318] sm:$0xff] }
 0x461   : > { %6258 = vmatpush3.bf16.msra.mxu0 %v6257_v32  ;;  %v7746_v51 = vpop.eup %7745  ;;  %7765 = vrcp.f32 %v3221_v58  ;;  %v3231_v4 = vadd.f32 1.0, %v7744_v59  ;;  %v12132_v0 = vmul.f32 -1.442695, %v12060_v55  ;;  %v6357_v13 = vpack.c.bf16 %v4949_v50, %v4948_v18  ;;  %6356 = vmatprep.subr.bf16.mxu1 %v6355_v62  ;;  %v13067_v58 = vld [vmem:[#allocation63_spill] sm:$0xff]  ;;  %v4922_v59 = vld [vmem:[%s12444_s5 + $0x3a0] sm:$0xff] }
 0x462   : > { %6260 = vmatprep.subr.bf16.mxu0 %v6259_v57  ;;  %v7748_v11 = vpop.eup %7747  ;;  %7767 = vrcp.f32 %v3222_v8  ;;  %v3232_v30 = vadd.f32 1.0, %v7746_v51  ;;  %v12142_v54 = vadd.f32 %v13063_v31, %v12952_v39  ;;  %v12146_v25 = vadd.f32 %v13064_v60, %v11312_v21  ;;  %v4923_v8 = vld [vmem:[%s12444_s5 + $0x3a8] sm:$0xff]  ;;  %v4906_v60 = vld [vmem:[%s12444_s5 + $0x320] sm:$0xff] }
 0x463   : > { %v7750_v3 = vpop.eup %7749  ;;  %7769 = vrcp.f32 %v3231_v4  ;;  %v3241_v29 = vadd.f32 1.0, %v7748_v11  ;;  %v12150_v63 = vadd.f32 %v13065_v17, %v12952_v39  ;;  %v6297_v26 = vpack.c.bf16 %v4903_v48, %v4902_v16  ;;  %v13069_v4 = vld [vmem:[#allocation53_spill] sm:$0xff]  ;;  %v13070_v16 = vld [vmem:[#allocation43_spill] sm:$0xff] }
 0x464   : > { %v7752_v32 = vpop.eup %7751  ;;  %7771 = vrcp.f32 %v3232_v30  ;;  %v3242_v10 = vadd.f32 1.0, %v7750_v3  ;;  %v13066_v23 = vsub.s32 2, %v13040_v41  ;;  %v6299_v22 = vpack.c.bf16 %v4921_v15, %v4920_v36  ;;  %6358 = vmatpush3.bf16.msra.mxu1 %v6357_v13 }
 0x465   : > { %6262 = vmatpush3.bf16.msra.mxu0 %v6261_v1  ;;  %v7754_v57 = vpop.eup %7753  ;;  %7773 = vrcp.f32 %v3241_v29  ;;  %v3251_v53 = vadd.f32 1.0, %v7752_v32  ;;  %v12163_v62 = vadd.f32 %v13067_v58, %v11312_v21  ;;  %v13068_v18 = vsub.s32 7, %v13040_v41  ;;  %v4907_v32 = vld [vmem:[%s12444_s5 + $0x328] sm:$0xff] }
 0x466   : > { %v4980_v38 = vrot.slane %v11803_v33, %v13066_v23  ;;  %6296 = vmatprep.subr.bf16.mxu0 %v6295_v37  ;;  %v7756_v27 = vpop.eup %7755  ;;  %7775 = vrcp.f32 %v3242_v10  ;;  %v3252_v40 = vadd.f32 1.0, %v7754_v57  ;;  %v12176_v37 = vadd.f32 %v13069_v4, %v12952_v39  ;;  %v4925_v23 = vld [vmem:[%s12444_s5 + $0x3b8] sm:$0xff]  ;;  %v13072_v58 = vld [vmem:[#allocation41_spill] sm:$0xff] }
 0x467   : > { %v5000_v50 = vrot.slane %v11803_v33, %v13068_v18  ;;  %v7758_v1 = vpop.eup %7757  ;;  %7777 = vrcp.f32 %v3251_v53  ;;  %v3261_v51 = vadd.f32 1.0, %v7756_v27  ;;  %v12180_v48 = vadd.f32 %v13070_v16, %v11312_v21  ;;  %v4924_v53 = vld [vmem:[%s12444_s5 + $0x3b0] sm:$0xff] }
 0x468   : > { %5154 = vmatmul.mubr.f32.vlgmr.msra.gmra.mrb[162].mxu0 %v4980_v38  ;;  %v7760_v11 = vpop.eup %7759  ;;  %7779 = vrcp.f32 %v3252_v40  ;;  %v3262_v30 = vadd.f32 1.0, %v7758_v1  ;;  %v5866_v36 = vmul.f32 -1.442695, %v12142_v54  ;;  %v6301_v15 = vpack.c.bf16 %v4905_v5, %v4904_v9  ;;  %v13073_v1 = vld [vmem:[#allocation15_spill] sm:$0xff] }
 0x469   : > { %6298 = vmatpush3.bf16.msra.mxu0 %v6297_v26  ;;  %5293 = vmatprep.mubr.f32.mxu0 %v5000_v50  ;;  %v7762_v13 = vpop.eup %7761  ;;  %7781 = vrcp.f32 %v3261_v51  ;;  %v3271_v3 = vadd.f32 1.0, %v7760_v11  ;;  %v5867_v29 = vmul.f32 -1.442695, %v12146_v25  ;;  %v6303_v31 = vpack.c.bf16 %v4923_v8, %v4922_v59  ;;  %v4908_v16 = vld [vmem:[%s12444_s5 + $0x330] sm:$0xff] }
 0x46a   : > { %6300 = vmatprep.subr.bf16.mxu0 %v6299_v22  ;;  %v7764_v10 = vpop.eup %7763  ;;  %v4171_v17 = vmul.f32 %v7762_v13, %v11599_v52  ;;  %7783 = vrcp.f32 %v3262_v30  ;;  %v5876_v26 = vmul.f32 -1.442695, %v12150_v63  ;;  %v12193_v57 = vmul.f32 -1.442695, %v12163_v62  ;;  %v13071_v22 = vld [vmem:[#allocation25_spill] sm:$0xff] }
 0x46b   : > { %v7766_v38 = vpop.eup %7765  ;;  %v4172_v9 = vmul.f32 %v7764_v10, %v13071_v22  ;;  %7785 = vrcp.f32 %v3271_v3  ;;  %v12203_v52 = vmul.f32 -1.442695, %v12176_v37  ;;  %v12206_v5 = vmul.f32 -1.442695, %v12180_v48  ;;  %v4927_v13 = vld [vmem:[%s12444_s5 + $0x3c8] sm:$0xff]  ;;  %v13076_v22 = vld [vmem:[#allocation7_spill] sm:$0xff] }
 0x46c   : > { %v7768_v27 = vpop.eup %7767  ;;  %v4654_v40 = vadd.f32 %v12092_v14, %v4171_v17  ;;  %v4181_v18 = vmul.f32 %v7766_v38, %v13072_v58  ;;  %7787 = vpow2.f32 %v11972_v34  ;;  %v6305_v50 = vpack.c.bf16 %v4907_v32, %v4906_v60  ;;  %v4909_v14 = vld [vmem:[%s12444_s5 + $0x338] sm:$0xff] }
 0x46d   : > { %6302 = vmatpush3.bf16.msra.mxu0 %v6301_v15  ;;  %v7770_v59 = vpop.eup %7769  ;;  %v4691_v8 = vadd.f32 %v12101_v42, %v4172_v9  ;;  %v4182_v51 = vmul.f32 %v7768_v27, %v13073_v1  ;;  %7789 = vpow2.f32 %v12111_v47  ;;  %v6307_v4 = vpack.c.bf16 %v4925_v23, %v4924_v53  ;;  %v13074_v42 = vld [vmem:[#allocation55_spill] sm:$0xff]  ;;  %v4926_v47 = vld [vmem:[%s12444_s5 + $0x3c0] sm:$0xff]  ;;  %v4911_v27 = vld [vmem:[%s12444_s5 + $0x348] sm:$0xff] }
 0x46e   : > { %6304 = vmatprep.subr.bf16.mxu0 %v6303_v31  ;;  %v7772_v34 = vpop.eup %7771  ;;  %v4655_v11 = vadd.f32 %v4654_v40, %v4181_v18  ;;  %v4191_v30 = vmul.f32 %v7770_v59, %v11652_v35  ;;  %7791 = vpow2.f32 %v12120_v19  ;;  %v12224_v15 = vadd.f32 %v13074_v42, %v12952_v39  ;;  %v13075_v35 = vld [vmem:[#allocation57_spill] sm:$0xff]  ;;  %v4929_v18 = vld [vmem:[%s12444_s5 + $0x3d8] sm:$0xff] }
 0x46f   : > { %v7774_v3 = vpop.eup %7773  ;;  %v4692_v31 = vadd.f32 %v4691_v8, %v4182_v51  ;;  %v4192_v60 = vmul.f32 %v7772_v34, %v11658_v12  ;;  %7793 = vpow2.f32 %v12123_v2  ;;  %v12236_v19 = vadd.f32 %v13075_v35, %v11312_v21  ;;  %v4910_v2 = vld [vmem:[%s12444_s5 + $0x340] sm:$0xff] }
 0x470   : > { %v7776_v32 = vpop.eup %7775  ;;  %v4656_v10 = vadd.f32 %v4655_v11, %v4191_v30  ;;  %v4201_v17 = vmul.f32 %v7774_v3, %v11664_v20  ;;  %7795 = vpow2.f32 %v12132_v0  ;;  %v6309_v53 = vpack.c.bf16 %v4909_v14, %v4908_v16 }
 0x471   : > { %6306 = vmatpush3.bf16.msra.mxu0 %v6305_v50  ;;  %v7778_v23 = vpop.eup %7777  ;;  %v4693_v38 = vadd.f32 %v4692_v31, %v4192_v60  ;;  %v4202_v9 = vmul.f32 %v7776_v32, %v13076_v22  ;;  %7797 = vpow2.f32 %v5866_v36  ;;  %v6311_v12 = vpack.c.bf16 %v4927_v13, %v4926_v47  ;;  %v4928_v36 = vld [vmem:[%s12444_s5 + $0x3d0] sm:$0xff]  ;;  %v4933_v22 = vld [vmem:[%s12444_s5 + $0x3f8] sm:$0xff] }
 0x472   : > { %6308 = vmatprep.subr.bf16.mxu0 %v6307_v4  ;;  %v7780_v20 = vpop.eup %7779  ;;  %v4657_v40 = vadd.f32 %v4656_v10, %v4201_v17  ;;  %v4211_v0 = vmul.f32 %v7778_v23, %v11767_v61  ;;  %7799 = vpow2.f32 %v5867_v29  ;;  %v5896_v58 = vmul.f32 -1.442695, %v12224_v15  ;;  %v4914_v10 = vld [vmem:[%s12444_s5 + $0x360] sm:$0xff]  ;;  %v4915_v17 = vld [vmem:[%s12444_s5 + $0x368] sm:$0xff] }
 0x473   : > { %v7782_v50 = vpop.eup %7781  ;;  %v4694_v59 = vadd.f32 %v4693_v38, %v4202_v9  ;;  %v4212_v8 = vmul.f32 %v7780_v20, %v11793_v45  ;;  %7801 = vpow2.f32 %v5876_v26  ;;  %v5897_v1 = vmul.f32 -1.442695, %v12236_v19  ;;  %v4912_v45 = vld [vmem:[%s12444_s5 + $0x350] sm:$0xff] }
 0x474   : > { %v7784_v51 = vpop.eup %7783  ;;  %v4658_v61 = vadd.f32 %v4657_v40, %v4211_v0  ;;  %v4221_v29 = vmul.f32 %v7782_v50, %v11810_v43  ;;  %7803 = vpow2.f32 %v12193_v57  ;;  %v6313_v4 = vpack.c.bf16 %v4911_v27, %v4910_v2  ;;  %v4913_v43 = vld [vmem:[%s12444_s5 + $0x358] sm:$0xff]  ;;  %v4932_v38 = vld [vmem:[%s12444_s5 + $0x3f0] sm:$0xff] }
 0x475   : > { %6310 = vmatpush3.bf16.msra.mxu0 %v6309_v53  ;;  %v7786_v16 = vpop.eup %7785  ;;  %v4695_v14 = vadd.f32 %v4694_v59, %v4212_v8  ;;  %v4222_v34 = vmul.f32 %v7784_v51, %v11859_v6  ;;  %7805 = vpow2.f32 %v12203_v52  ;;  %v6315_v11 = vpack.c.bf16 %v4929_v18, %v4928_v36  ;;  %v4930_v6 = vld [vmem:[%s12444_s5 + $0x3e0] sm:$0xff]  ;;  %v4931_v52 = vld [vmem:[%s12444_s5 + $0x3e8] sm:$0xff]  ;;  %v4916_v50 = vld [vmem:[%s12444_s5 + $0x370] sm:$0xff] }
 0x476   : > { %6312 = vmatprep.subr.bf16.mxu0 %v6311_v12  ;;  %v7788_v26 = vpop.eup %7787  ;;  %v4659_v57 = vadd.f32 %v4658_v61, %v4221_v29  ;;  %v4231_v30 = vmul.f32 %v7786_v16, %v11893_v7  ;;  %7807 = vpow2.f32 %v12206_v5  ;;  %v6317_v7 = vpack.c.bf16 %v4913_v43, %v4912_v45  ;;  %v4917_v59 = vld [vmem:[%s12444_s5 + $0x378] sm:$0xff]  ;;  %v13078_v51 = vld [vmem:[#allocation58_spill] sm:$0xff] }
 0x477   : > { %v7790_v42 = vpop.eup %7789  ;;  %v12275_v47 = vadd.f32 %v4695_v14, %v4222_v34  ;;  %v3272_v13 = vadd.f32 1.0, %v7788_v26  ;;  %7809 = vpow2.f32 %v5896_v58  ;;  %v6319_v32 = vpack.c.bf16 %v4931_v52, %v4930_v6  ;;  %v13077_v58 = vld [vmem:[#allocation59_spill] sm:$0xff]  ;;  %v13079_v29 = vld [vmem:[#allocation60_spill] sm:$0xff]  ;;  %v13080_v34 = vld [vmem:[#allocation61_spill] sm:$0xff] }
 0x478   : > { %v7792_v3 = vpop.eup %7791  ;;  %v12277_v31 = vadd.f32 %v4659_v57, %v4231_v30  ;;  %v3281_v60 = vadd.f32 1.0, %v7790_v42  ;;  %7811 = vpow2.f32 %v5897_v1  ;;  %v6321_v20 = vpack.c.bf16 %v4915_v17, %v4914_v10  ;;  %v13081_v45 = vld [vmem:[#allocation6_spill] sm:$0xff] }
 0x479   : > { %6314 = vmatpush3.bf16.msra.mxu0 %v6313_v4  ;;  %v7794_v5 = vpop.eup %7793  ;;  %7813 = vrcp.f32 %v3272_v13  ;;  %v3282_v35 = vadd.f32 1.0, %v7792_v3  ;;  %v12293_v36 = vadd.f32 %v13077_v58, %v12952_v39  ;;  %v6323_v18 = vpack.c.bf16 %v4933_v22, %v4932_v38  ;;  %v13082_v30 = vld [vmem:[#allocation34_spill] sm:$0xff] }
 0x47a   : > { %6316 = vmatprep.subr.bf16.mxu0 %v6315_v11  ;;  %v7796_v53 = vpop.eup %7795  ;;  %7815 = vrcp.f32 %v3281_v60  ;;  %v3291_v23 = vadd.f32 1.0, %v7794_v5  ;;  %v12303_v61 = vadd.f32 %v13078_v51, %v11312_v21  ;;  %v12307_v4 = vadd.f32 %v13079_v29, %v12952_v39 }
 0x47b   : > { %v7798_v9 = vpop.eup %7797  ;;  %7817 = vrcp.f32 %v3282_v35  ;;  %v3292_v12 = vadd.f32 1.0, %v7796_v53  ;;  %v12311_v11 = vadd.f32 %v13080_v34, %v11312_v21  ;;  %v12315_v43 = vadd.f32 %v13081_v45, %v12952_v39 }
 0x47c   : > { %v7800_v2 = vpop.eup %7799  ;;  %7819 = vrcp.f32 %v3291_v23  ;;  %v3301_v27 = vadd.f32 1.0, %v7798_v9  ;;  %v12319_v6 = vadd.f32 %v13082_v30, %v11312_v21  ;;  %v6325_v52 = vpack.c.bf16 %v4917_v59, %v4916_v50  ;;  %v13083_v9 = vld [vmem:[#allocation35_spill] sm:$0xff]  ;;  %v13086_v59 = vld [vmem:[#allocation17_spill] sm:$0xff] }
 0x47d   : > { %6318 = vmatpush3.bf16.msra.mxu0 %v6317_v7  ;;  %v7802_v40 = vpop.eup %7801  ;;  %7821 = vrcp.f32 %v3292_v12  ;;  %v3302_v0 = vadd.f32 1.0, %v7800_v2  ;;  %v5906_v3 = vmul.f32 -1.442695, %v12293_v36  ;;  %v5907_v5 = vmul.f32 -1.442695, %v12303_v61 }
 0x47e   : > { %6320 = vmatprep.subr.bf16.mxu0 %v6319_v32  ;;  %v7804_v8 = vpop.eup %7803  ;;  %7823 = vrcp.f32 %v3301_v27  ;;  %v3311_v1 = vadd.f32 1.0, %v7802_v40  ;;  %v5916_v35 = vmul.f32 -1.442695, %v12307_v4  ;;  %v5917_v17 = vmul.f32 -1.442695, %v12311_v11 }
 0x47f   : > { %v7806_v16 = vpop.eup %7805  ;;  %7825 = vrcp.f32 %v3302_v0  ;;  %v3312_v14 = vadd.f32 1.0, %v7804_v8  ;;  %v5926_v53 = vmul.f32 -1.442695, %v12315_v43  ;;  %v5927_v22 = vmul.f32 -1.442695, %v12319_v6 }
 0x480   : > { %v7808_v26 = vpop.eup %7807  ;;  %7827 = vrcp.f32 %v3311_v1  ;;  %v3321_v57 = vadd.f32 1.0, %v7806_v16  ;;  %v12330_v12 = vadd.f32 %v13083_v9, %v12952_v39  ;;  %v13085_v0 = vsub.s32 6, %v13040_v41  ;;  %v13087_v41 = vld [vmem:[#allocation16_spill] sm:$0xff] }
 0x481   : > { %6322 = vmatpush3.bf16.msra.mxu0 %v6321_v20  ;;  %v7810_v42 = vpop.eup %7809  ;;  %7829 = vrcp.f32 %v3312_v14  ;;  %v3322_v13 = vadd.f32 1.0, %v7808_v26  ;;  %v13084_v20 = vld [vmem:[#allocation36_spill] sm:$0xff]  ;;  %v12344_v8 = vadd.f32 %v13086_v59, %v12952_v39  ;;  %v12350_v29 = vadd.f32 %v13087_v41, %v11312_v21 }
 0x482   : > { %6324 = vmatprep.subr.bf16.mxu0 %v6323_v18  ;;  %v7812_v60 = vpop.eup %7811  ;;  %7831 = vrcp.f32 %v3321_v57  ;;  %v3331_v7 = vadd.f32 1.0, %v7810_v42  ;;  %v12335_v40 = vadd.f32 %v13084_v20, %v11312_v21  ;;  %v5936_v16 = vmul.f32 -1.442695, %v12330_v12 }
 0x483   : > { %v7814_v32 = vpop.eup %7813  ;;  %7833 = vrcp.f32 %v3322_v13  ;;  %v3332_v10 = vadd.f32 1.0, %v7812_v60  ;;  %v5946_v26 = vmul.f32 -1.442695, %v12344_v8 }
 0x484   : > { %v7816_v23 = vpop.eup %7815  ;;  %v4232_v38 = vmul.f32 %v7814_v32, %v11926_v49  ;;  %7835 = vrcp.f32 %v3331_v7  ;;  %v4996_v49 = vrot.slane %v11803_v33, %v13085_v0 }
 0x485   : > { %6326 = vmatpush3.bf16.msra.mxu0 %v6325_v52  ;;  %v7818_v2 = vpop.eup %7817  ;;  %v4241_v27 = vmul.f32 %v7816_v23, %v11976_v46  ;;  %7837 = vrcp.f32 %v3332_v10  ;;  %v5947_v52 = vmul.f32 -1.442695, %v12350_v29 }
 0x486   : > { %v7820_v58 = vpop.eup %7819  ;;  %v4697_v18 = vadd.f32 %v12275_v47, %v4232_v38  ;;  %v4242_v50 = vmul.f32 %v7818_v2, %v11987_v24  ;;  %7839 = vpow2.f32 %v5906_v3 }
 0x487   : > { %v7822_v46 = vpop.eup %7821  ;;  %v4661_v1 = vadd.f32 %v12277_v31, %v4241_v27  ;;  %v4251_v51 = vmul.f32 %v7820_v58, %v12027_v56  ;;  %7841 = vpow2.f32 %v5907_v5  ;;  %v5937_v56 = vmul.f32 -1.442695, %v12335_v40 }
 0x488   : > { %5294 = vmatmul.mubr.f32.vlgmr.msra.gmra.mrb[164].mxu0 %v4996_v49  ;;  %v7824_v33 = vpop.eup %7823  ;;  %v4698_v47 = vadd.f32 %v4697_v18, %v4242_v50  ;;  %v4252_v24 = vmul.f32 %v7822_v46, %v12060_v55  ;;  %7843 = vpow2.f32 %v5916_v35 }
 0x489   : > { %v7826_v39 = vpop.eup %7825  ;;  %v4662_v14 = vadd.f32 %v4661_v1, %v4251_v51  ;;  %v4261_v34 = vmul.f32 %v7824_v33, %v12142_v54  ;;  %7845 = vpow2.f32 %v5917_v17 }
 0x48a   : > { %v7828_v31 = vpop.eup %7827  ;;  %v4699_v45 = vadd.f32 %v4698_v47, %v4252_v24  ;;  %v4262_v21 = vmul.f32 %v7826_v39, %v12146_v25  ;;  %7847 = vpow2.f32 %v5926_v53 }
 0x48b   : > { %v7830_v57 = vpop.eup %7829  ;;  %v4663_v30 = vadd.f32 %v4662_v14, %v4261_v34  ;;  %v4271_v55 = vmul.f32 %v7828_v31, %v12150_v63  ;;  %7849 = vpow2.f32 %v5927_v22 }
 0x48c   : > { %v7832_v42 = vpop.eup %7831  ;;  %v4700_v13 = vadd.f32 %v4699_v45, %v4262_v21  ;;  %v4272_v54 = vmul.f32 %v7830_v57, %v12163_v62  ;;  %7851 = vpow2.f32 %v5936_v16 }
 0x48d   : > { %v7834_v3 = vpop.eup %7833  ;;  %v4664_v60 = vadd.f32 %v4663_v30, %v4271_v55  ;;  %v4281_v7 = vmul.f32 %v7832_v42, %v12176_v37  ;;  %7853 = vpow2.f32 %v5937_v56 }
 0x48e   : > { %v7836_v25 = vpop.eup %7835  ;;  %v4701_v5 = vadd.f32 %v4700_v13, %v4272_v54  ;;  %v4282_v35 = vmul.f32 %v7834_v3, %v12180_v48  ;;  %7855 = vpow2.f32 %v5946_v26 }
 0x48f   : > { %v7838_v32 = vpop.eup %7837  ;;  %v4665_v63 = vadd.f32 %v4664_v60, %v4281_v7  ;;  %v4291_v10 = vmul.f32 %v7836_v25, %v12224_v15  ;;  %7857 = vpow2.f32 %v5947_v52 }
 0x490   : > { %v7840_v17 = vpop.eup %7839  ;;  %v4702_v53 = vadd.f32 %v4701_v5, %v4282_v35  ;;  %v4292_v62 = vmul.f32 %v7838_v32, %v12236_v19 }
 0x491   : > { %v7842_v23 = vpop.eup %7841  ;;  %v4666_v38 = vadd.f32 %v4665_v63, %v4291_v10  ;;  %v3341_v22 = vadd.f32 1.0, %v7840_v17 }
 0x492   : > { %v7844_v9 = vpop.eup %7843  ;;  %v4703_v37 = vadd.f32 %v4702_v53, %v4292_v62  ;;  %v3342_v2 = vadd.f32 1.0, %v7842_v23 }
 0x493   : > { %v7846_v27 = vpop.eup %7845  ;;  %7859 = vrcp.f32 %v3341_v22  ;;  %v3351_v20 = vadd.f32 1.0, %v7844_v9 }
 0x494   : > { %v7848_v48 = vpop.eup %7847  ;;  %7861 = vrcp.f32 %v3342_v2  ;;  %v3352_v0 = vadd.f32 1.0, %v7846_v27 }
 0x495   : > { %v7850_v49 = vpop.eup %7849  ;;  %7863 = vrcp.f32 %v3351_v20  ;;  %v3361_v15 = vadd.f32 1.0, %v7848_v48 }
 0x496   : > { %v7852_v58 = vpop.eup %7851  ;;  %7865 = vrcp.f32 %v3352_v0  ;;  %v3362_v18 = vadd.f32 1.0, %v7850_v49  ;;  %v13089_v49 = vld [vmem:[#allocation21_spill] sm:$0xff] }
 0x497   : > { %v7854_v50 = vpop.eup %7853  ;;  %7867 = vrcp.f32 %v3361_v15  ;;  %v3371_v19 = vadd.f32 1.0, %v7852_v58 }
 0x498   : > { %v7856_v59 = vpop.eup %7855  ;;  %7869 = vrcp.f32 %v3362_v18  ;;  %v3372_v46 = vadd.f32 1.0, %v7854_v50 }
 0x499   : > { %v7858_v1 = vpop.eup %7857  ;;  %7871 = vrcp.f32 %v3371_v19  ;;  %v3381_v51 = vadd.f32 1.0, %v7856_v59 }
 0x49a   : > { %7873 = vrcp.f32 %v3372_v46  ;;  %v3382_v41 = vadd.f32 1.0, %v7858_v1 }
 0x49b   : > { %7875 = vrcp.f32 %v3381_v51 }
 0x49c   : > { %7877 = vrcp.f32 %v3382_v41 }
 0x49d   : > { %v7860_v33 = vpop.eup %7859 }
 0x49e   : > { %v7862_v47 = vpop.eup %7861  ;;  %v4301_v24 = vmul.f32 %v7860_v33, %v12293_v36 }
 0x49f   : > { %v7864_v16 = vpop.eup %7863  ;;  %v4302_v39 = vmul.f32 %v7862_v47, %v12303_v61 }
 0x4a0   : > { %v7866_v14 = vpop.eup %7865  ;;  %v4667_v34 = vadd.f32 %v4666_v38, %v4301_v24  ;;  %v4311_v56 = vmul.f32 %v7864_v16, %v12307_v4 }
 0x4a1   : > { %v7868_v31 = vpop.eup %7867  ;;  %v4704_v45 = vadd.f32 %v4703_v37, %v4302_v39  ;;  %v4312_v21 = vmul.f32 %v7866_v14, %v12311_v11  ;;  %v4344_v37 = vld [vmem:[#allocation2 + $0x8] sm:$0x3] }
 0x4a2   : > { %v7870_v26 = vpop.eup %7869  ;;  %v4668_v57 = vadd.f32 %v4667_v34, %v4311_v56  ;;  %v4321_v30 = vmul.f32 %v7868_v31, %v12315_v43 }
 0x4a3   : > { %v7872_v55 = vpop.eup %7871  ;;  %v4705_v52 = vadd.f32 %v4704_v45, %v4312_v21  ;;  %v4322_v42 = vmul.f32 %v7870_v26, %v12319_v6 }
 0x4a4   : > { %v7874_v36 = vpop.eup %7873  ;;  %v4669_v13 = vadd.f32 %v4668_v57, %v4321_v30  ;;  %v4331_v61 = vmul.f32 %v7872_v55, %v12330_v12 }
 0x4a5   : > { %v7876_v54 = vpop.eup %7875  ;;  %v4706_v3 = vadd.f32 %v4705_v52, %v4322_v42  ;;  %v4332_v4 = vmul.f32 %v7874_v36, %v12335_v40 }
 0x4a6   : > { %v7878_v60 = vpop.eup %7877  ;;  %v4670_v7 = vadd.f32 %v4669_v13, %v4331_v61  ;;  %v4341_v11 = vmul.f32 %v7876_v54, %v12344_v8 }
 0x4a7   : > { %v4707_v25 = vadd.f32 %v4706_v3, %v4332_v4  ;;  %v4342_v5 = vmul.f32 %v7878_v60, %v12350_v29 }
 0x4a8   : > { %v4671_v43 = vadd.f32 %v4670_v7, %v4341_v11 }
 0x4a9   : > { %v4708_v35 = vadd.f32 %v4707_v25, %v4342_v5 }
 0x4aa   : > { %v4672_v32 = vrot.slane %v4671_v43, 4 }
 0x4ab   : > { %v4709_v63 = vrot.slane %v4708_v35, 4 }
 0x4ac   : > { %v4673_v6 = vadd.f32 %v4672_v32, %v4671_v43 }
 0x4ad   : > { %v4710_v10 = vadd.f32 %v4709_v63, %v4708_v35 }
 0x4ae   : > { %v4674_v17 = vrot.slane %v4673_v6, 2 }
 0x4af   : > { %v4711_v53 = vrot.slane %v4710_v10, 2 }
 0x4b0   : > { %v4675_v12 = vadd.f32 %v4674_v17, %v4673_v6 }
 0x4b1   : > { %v4712_v62 = vadd.f32 %v4711_v53, %v4710_v10 }
 0x4b2   : > { %v4676_v23 = vrot.slane %v4675_v12, 1 }
 0x4b3   : > { %v4713_v38 = vrot.slane %v4712_v62, 1 }
 0x4b4   : > { %v4677_v40 = vadd.f32 %v4676_v23, %v4675_v12 }
 0x4b5   : > { %v4714_v22 = vadd.f32 %v4713_v38, %v4712_v62 }
 0x4b7   : > { %v4774_v9 = vcombine.low %v4677_v40, %v4714_v22 }
 0x4b9   : > { %v4781_v8 = vrot.slane %v4774_v9, %v13029_v28 }
 0x4bb   : > { %v4788_v29 = vrot.slane %v4781_v8, %v13029_v28  ;;  %v4966_v28 = vld [vmem:[%s12445_s6] sm:$0x1] }
 0x4bd   : > { %v4792_v2 = vadd.f32 %v4788_v29, %v4344_v37 }
 0x4bf   : > { %4798 = vst.msk [vmem:[#allocation2 + $0x8] sm:$0x3] %vm11695_vm1, %v4792_v2 }
 0x4c6   : > { %v4803_v20 = vld [vmem:[#allocation2 + $0x8] sm:$0x3] }
 0x4c7   : > { %v4805_v48 = vmul.f32 0.00390625, %v4803_v20 }
 0x4c9   : > { %v5008_v0 = vrot.slane %v4805_v48, %v13039_v44  ;;  %v5004_v15 = vrot.slane %v4805_v48, %v13089_v49 }
 0x4cb   : > { %5363 = vmatprep.mubr.f32.mxu1 %v5008_v0 }
 0x4cc   : > { %5364 = vmatmul.mubr.f32.vlgmr.msra.gmra.mrb[194].mxu1 %v5004_v15 }
 0x518   : > { %v6008_v58 = vpop.f32.mrb[160].mxu0 }
 0x519   : > { %v6009_v50 = vpop.f32.mrb[161].mxu0 }
 0x51a   : > { %v6078_v18 = vpop.f32.mrb[192].mxu1  ;;  %v6010_v19 = vadd.f32 %v6009_v50, %v6008_v58 }
 0x51b   : > { %v6079_v59 = vpop.f32.mrb[193].mxu1 }
 0x51c   : > { %v6080_v46 = vadd.f32 %v6079_v59, %v6078_v18  ;;  %v5086_v41 = vadd.f32 %v6010_v19, %v4966_v28 }
 0x53b   : > { %v6043_v1 = vpop.f32.mrb[162].mxu0 }
 0x53c   : > { %v6044_v51 = vpop.f32.mrb[163].mxu0 }
 0x53d   : > { %v6045_v33 = vadd.f32 %v6044_v51, %v6043_v1 }
 0x53f   : > { %v5156_v47 = vadd.f32 %v6045_v33, %v5086_v41 }
 0x541   : > { %v5226_v44 = vadd.f32 %v6080_v46, %v5156_v47 }
 0x55b   : > { %v6113_v24 = vpop.f32.mrb[164].mxu0 }
 0x55c   : > { %v6114_v16 = vpop.f32.mrb[165].mxu0 }
 0x55d   : > { %v6115_v39 = vadd.f32 %v6114_v16, %v6113_v24 }
 0x55f   : > { %v5296_v14 = vadd.f32 %v6115_v39, %v5226_v44 }
 0x59f   : > { %v6148_v34 = vpop.f32.mrb[194].mxu1 }
 0x5a0   : > { %v6149_v56 = vpop.f32.mrb[195].mxu1 }
 0x5a1   : > { %v6150_v31 = vadd.f32 %v6149_v56, %v6148_v34 }
 0x5a3   : > { %v5366_v45 = vadd.f32 %v6150_v31, %v5296_v14 }
 0x5a5   : > { %v5370_v21 = vsel %vm5369_vm2, %v5366_v45, -inf }
 0x5a6   : > { %5371 = vmax.xlane.f32.xlu0 %v5370_v21 }
 0x633   : > { %v5372_v26 = vpop.xlane.xlu0 %5371 }
 0x634   : > { %v5373_v57 = vsub.f32 %v5366_v45, %v5372_v26 }
 0x636   : > { %v5374_v30 = vmul.f32 1.442695, %v5373_v57 }
 0x638   : > { %7879 = vpow2.f32 %v5374_v30 }
 0x642   : > { %v7880_v55 = vpop.eup %7879 }
 0x643   : > { %v5376_v52 = vsel %vm5369_vm2, %v7880_v55, 0.0 }
 0x644   : > { %5377 = vadd.xlane.f32.xlu0 %v5376_v52 }
 0x6d1   : > { %v5378_v42 = vpop.xlane.xlu0 %5377 }
 0x6d2   : > { %7881 = vrcp.f32 %v5378_v42 }
 0x6dc   : > { %v7882_v36 = vpop.eup %7881 }
 0x6dd   : > { %v5380_v13 = vmul.f32 %v7882_v36, %v7880_v55 }
 0x6df   : > { %5381 = vst.msk [vmem:[%s293_s8] sm:$0x1] %vm5369_vm2, %v5380_v13 }
 0x6e0   : > { %7897 = shalt.err (!%p7894_p5)
}
 0x6e1   : > { %s7898_s15 = scalar_lea.hbm %s12391_s22, 16  ;;  %s7902_s18 = scalar_lea.hbm %s12446_s7, 32 }
 0x6e2   : > { %p7899_p6 = scmp.ne.s32.totalorder %s12391_s22, %s7898_s15  ;;  %p7903_p10 = scmp.lt.u32.totalorder %s12391_s22, %s12446_s7 }
 0x6e3   : > { %p7904_p11 = scmp.lt.u32.totalorder %s7902_s18, %s7898_s15  ;;  %p7906_p13 = scmp.lt.u32.totalorder %s7898_s15, %s12391_s22 }
 0x6e4   : > { %p7900_p7 = pnand %p7899_p6, %p8048_p4 }
 0x6e5   : > { %p7905_p12 = por %p7904_p11, %p7903_p10 }
 0x6e6   : > { %p7901_p9 = pneg %p7900_p7 }
 0x6e7   : > { %p7907_p0 = por %p7906_p13, %p7905_p12 }
 0x6e9   : > { %p7908_p1 = pnand %p7907_p0, %p7901_p9 }
 0x6eb   : > { %7911 = shalt.err (!%p7908_p1)
}
 0x6ec   : > { %6359 = dma.vmem_to_hbm [thread:$0]  (%p8048_p4), %s12393_s19, 16, %s12391_s22, %s5383_s23  }
 0x6ed PF: > { %p6365_p2 = scmp.ge.s32.totalorder %s7962_s29, 2  ;;  %s5407_s21 = sand.u32 1, %s7942_s24  }
 0x6ee   : > { %s5408_s30 = scalar_lea.sflag [#allocation4], %s5407_s21 }
 0x6ef   : > { %p6362_p3 = pnand %p6365_p2, %p8055_p8 }
 0x6f1   : > { %7937 = dma.done.wait (!%p6362_p3), %s5408_s30, 16  }
 0x6f2   : > { %7939 = vsyncadd (!%p6362_p3), %s5408_s30, 4294967280  ;;  %s20_s29 = sadd.s32 1, %s7962_s29   ;;  %s13090_s24 = smov %s7946_s25 }
 0x6f3   : > { %p17_p5 = scmp.ge.s32.totalorder %s20_s29, 4   ;;  %s13091_s25 = smov %s7950_s26 }
 0x6f4   : > { %s13092_s26 = smov %s8061_s14  ;;  %s13093_s27 = smov %s7958_s28 }
 0x6f5   : > { %s13094_s28 = smov %s13096_s9  ;;  %19 = sbr.rel (!%p17_p5) target bundleno = 4 (0x4), region = 91 }
 0x6fc   :  { %5412 = vsyncpa [#allocation4], 1 }
 0x6fd   :  { %5414 = vsyncpa [#allocation4 + $0x1], 1 }

</bundles_post_ra>
